<compile_context>
chip_gen: v7x
topology: tpu7x:2x2x1
jax: 0.10.0
libtpu: 0.0.40
codegen_flags: <defaults>
</compile_context>

<pallas_src>
import math
import functools

import jax
import jax.numpy as jnp
from jax import lax
from jax.experimental import pallas as pl
from jax.experimental.pallas import tpu as pltpu

_BLOCKS = ((1, 0), (2, 0), (3, 0), (4, 0), (6, 0), (9, 0))


def _lcm(*nums):
    return int(functools.reduce(lambda x, y: int(x * y // math.gcd(x, y)), nums, 1))


def gbswt_kernel(emb_ref, dw_ref, db_ref, pwT_ref, pb_ref, w_ref, b_ref,
                 o_ref, xf_ref, *, blocks):
    # emb_ref : (1, s, D)   token embeddings for this batch element
    # dw_ref  : (K, D)      depthwise conv weight, dw[k, c] == torch weight[c, 0, k]
    # db_ref  : (1, D)      depthwise conv bias
    # pwT_ref : (D, D)      1x1 conv weight, transposed (in_ch, out_ch)
    # pb_ref  : (1, D)      1x1 conv bias
    # w_ref   : (1, D)      candidate-scoring Linear weight
    # b_ref   : (1, 1)      candidate-scoring Linear bias
    # o_ref   : (1, S, D)   mixed output, S = seq padded to lcm(block sizes)
    # xf_ref  : (L, D)      scratch: zero-flanked slab, L = S + 2*halo.
    #                       Holds the embeddings during the conv, then the
    #                       posconv output (zero flanks double as the conv's
    #                       right pad and as pad-to-multiple).
    s = emb_ref.shape[1]
    D = emb_ref.shape[2]
    K = dw_ref.shape[0]
    halo = K - 1
    S = o_ref.shape[1]
    L = xf_ref.shape[0]

    # ---- zero-flanked slab with embeddings ----------------------------------
    xf_ref[...] = jnp.zeros((L, D), jnp.float32)
    xf_ref[halo:halo + s, :] = emb_ref[0]

    # ---- positional convolution ---------------------------------------------
    # Padding((0,0,0,K-1)) + depthwise Conv1d(k=K): acc[i] = sum_k emb[i+k]*dw[k]
    # with emb[j] = 0 for j >= s (right zero pad comes from the slab flank).
    # Accumulated purely in vregs -> no partial read-modify-write stores.
    dw = dw_ref[...]                                    # (K, D)
    acc = emb_ref[0] * dw[0:1, :]
    for k in range(1, K):
        acc = acc + xf_ref[halo + k:halo + k + s, :] * dw[k:k + 1, :]
    # 1x1 conv projection on the MXU
    y = jnp.dot(acc + db_ref[...], pwT_ref[...],
                preferred_element_type=jnp.float32) + pb_ref[...]

    # Overwrite the embedding region with the posconv output; the padded tail
    # [s:S) and both flanks stay zero -> fused pad-to-multiple.
    xf_ref[halo:halo + s, :] = y
    x = xf_ref[halo:halo + S, :]                        # (S, D)

    # ---- candidate score column (Linear(dim,1) applied once) ----------------
    # score_k[i] = w . blockmean_k(x)[i] == blockmean_k(w . x)[i]; compute
    # t = w.x once over the flanked slab, then block-mean the (L,1) column.
    w_row = w_ref[...]                                   # (1, D)
    t_f = jnp.sum(xf_ref[...] * w_row, axis=1, keepdims=True)   # (L, 1)
    t_c = t_f[halo:halo + S, :]                          # (S, 1)

    # ---- per-block-size means + per-block scores ----------------------------
    # rep_m[i] = mean of the size-m block containing position i, from 2m-1
    # statically shifted slab reads + per-position masks (masks shared with the
    # score column).
    row = lax.broadcasted_iota(jnp.int32, (S, 1), 0)
    reprs = []
    sc_cols = []
    for (m, _off) in blocks:
        if m == 1:
            rep = x
            sc_col = t_c
        else:
            r = row % m                                  # position within its block
            acc_r = x                                    # d = 0 term
            acc_t = t_c
            for d in range(1, m):
                mpos = (r < (m - d)).astype(jnp.float32)        # include x[i+d]
                mneg = (r >= d).astype(jnp.float32)             # include x[i-d]
                acc_r = (acc_r
                         + xf_ref[halo + d:halo + d + S, :] * mpos
                         + xf_ref[halo - d:halo - d + S, :] * mneg)
                acc_t = (acc_t
                         + t_f[halo + d:halo + d + S, :] * mpos
                         + t_f[halo - d:halo - d + S, :] * mneg)
            inv_m = 1.0 / m
            rep = acc_r * inv_m
            sc_col = acc_t * inv_m
        reprs.append(rep)
        sc_cols.append(sc_col)

    sc = jnp.concatenate(sc_cols, axis=1) + b_ref[...]  # (S, NB)

    # softmax over candidate blocks (reference: softmax(dim=2))
    sc = sc - jnp.max(sc, axis=1, keepdims=True)
    e = jnp.exp(sc)
    p = e * pl.reciprocal(jnp.sum(e, axis=1, keepdims=True), approx=True)

    # ---- score-consensus attention (MXU) ------------------------------------
    sim = lax.dot_general(p, p, (((1,), (1,)), ((), ())),
                          preferred_element_type=jnp.float32)   # (S, S)
    sim = sim - jnp.max(sim, axis=-1, keepdims=True)
    es = jnp.exp(sim)
    attn = es * pl.reciprocal(jnp.sum(es, axis=-1, keepdims=True), approx=True)
    ns = jnp.dot(attn, p, preferred_element_type=jnp.float32)   # (S, NB)

    # ---- weighted mixing: out[i] = sum_k ns[i, k] * rep_k[i] -----------------
    out = ns[:, 0:1] * reprs[0]
    for k in range(1, len(reprs)):
        out = out + ns[:, k:k + 1] * reprs[k]
    o_ref[0] = out


def gbswt_forward(token_ids, params, blocks=_BLOCKS, downsample_factor=1):
    # TODO(synk): attention_mask path (masked means / masked softmax) not
    #             implemented; reference default is attention_mask=None.
    blocks = tuple((int(b), int(o)) for (b, o) in blocks)
    assert all(off == 0 for _, off in blocks), "only offset-0 blocks supported"

    B, s = token_ids.shape
    emb = jnp.take(params["embed"], token_ids, axis=0).astype(jnp.float32)  # (B,s,D)
    D = emb.shape[-1]

    sizes = [bs for bs, _ in blocks]
    max_block = max(sizes)
    block_multi = _lcm(*sizes)
    halo = max_block - 1
    S_pad = int(math.ceil(s / block_multi) * block_multi)
    L = S_pad + 2 * halo

    kernel = functools.partial(gbswt_kernel, blocks=blocks)

    y = pl.pallas_call(
        kernel,
        out_shape=jax.ShapeDtypeStruct((B, S_pad, D), jnp.float32),
        grid_spec=pltpu.PrefetchScalarGridSpec(
            num_scalar_prefetch=0,
            grid=(B,),
            in_specs=[
                pl.BlockSpec((1, s, D), lambda i: (i, 0, 0)),          # embeddings
                pl.BlockSpec((max_block, D), lambda i: (0, 0)),        # depthwise w
                pl.BlockSpec((1, D), lambda i: (0, 0)),                # depthwise b
                pl.BlockSpec((D, D), lambda i: (0, 0)),                # 1x1 w (T)
                pl.BlockSpec((1, D), lambda i: (0, 0)),                # 1x1 b
                pl.BlockSpec((1, D), lambda i: (0, 0)),                # score w
                pl.BlockSpec((1, 1), lambda i: (0, 0)),                # score b
            ],
            out_specs=pl.BlockSpec((1, S_pad, D), lambda i: (i, 0, 0)),
            scratch_shapes=[
                pltpu.VMEM((L, D), jnp.float32),    # zero-flanked emb/posconv slab
            ],
        ),
        # Batch elements are independent -> shard grid across TensorCores (v7x).
        compiler_params=pltpu.CompilerParams(dimension_semantics=("parallel",)),
    )(emb, params["dw"], params["db"], params["pwT"], params["pb"],
      params["score_w"], params["score_b"])

    # downsample: slice to ceil(s/ds)*ds, group by ds, mean over each group
    ds = downsample_factor
    m = int(math.ceil(s / ds) * ds)
    if m > S_pad:  # guard: ds need not divide into S_pad
        y = jnp.pad(y, ((0, 0), (0, m - S_pad), (0, 0)))
    y = y[:, :m]
    y = y.reshape(B, m // ds, ds, D).mean(axis=2)
    return y, None  # (downsampled hidden states, resized mask=None)


if __name__ == "__main__":
    key = jax.random.PRNGKey(0)
    k_emb, k_dw, k_db, k_pw, k_pb, k_sw, k_sb, k_ids = jax.random.split(key, 8)

    num_tokens, D = 64, 32
    batch, seq = 2, 8
    max_block_size = max(bs for bs, _ in _BLOCKS)  # 9
    factor = 0.05

    params = {
        # nn.Embedding weight (num_tokens, dim)
        "embed": jax.random.normal(k_emb, (num_tokens, D), jnp.float32),
        # depthwise Conv1d(dim, dim, k=9, groups=dim): weight (d,1,K) stored as (K,d)
        "dw": factor * jax.random.normal(k_dw, (max_block_size, D), jnp.float32),
        "db": factor * jax.random.normal(k_db, (1, D), jnp.float32),
        # 1x1 Conv1d(dim, dim): weight (d,d,1) stored transposed as (in, out)
        "pwT": factor * jax.random.normal(k_pw, (D, D), jnp.float32),
        "pb": factor * jax.random.normal(k_pb, (1, D), jnp.float32),
        # candidate scoring Linear(dim, 1)
        "score_w": factor * jax.random.normal(k_sw, (1, D), jnp.float32),
        "score_b": factor * jax.random.normal(k_sb, (1, 1), jnp.float32),
    }

    token_ids = jax.random.randint(k_ids, (batch, seq), 0, num_tokens, dtype=jnp.int32)

    out, mask = jax.jit(gbswt_forward)(token_ids, params)
    out = jax.block_until_ready(out)
    assert out.shape == (batch, seq, D), out.shape
    assert bool(jnp.all(jnp.isfinite(out)))
    print("KERNEL_OK")
</pallas_src>

<mosaic_0001>
module attributes {stable_mosaic.version = 11 : i64} {
  func.func @gbswt_kernel(%arg0: i32, %arg1: memref<1x8x32xf32, #tpu.memory_space<vmem>>, %arg2: memref<9x32xf32, #tpu.memory_space<vmem>>, %arg3: memref<1x32xf32, #tpu.memory_space<vmem>>, %arg4: memref<32x32xf32, #tpu.memory_space<vmem>>, %arg5: memref<1x32xf32, #tpu.memory_space<vmem>>, %arg6: memref<1x32xf32, #tpu.memory_space<vmem>>, %arg7: memref<1x1xf32, #tpu.memory_space<vmem>>, %arg8: memref<1x36x32xf32, #tpu.memory_space<vmem>>, %arg9: memref<52x32xf32, #tpu.memory_space<vmem>>) attributes {dimension_semantics = [#tpu.dimension_semantics<parallel>], iteration_bounds = array<i64: 2>, scalar_prefetch = 0 : i64, scratch_operands = 1 : i64, tpu.core_type = #tpu.core_type<tc>, window_params = [{transform_indices = @transform_0, window_bounds = array<i64: 1, 8, 32>}, {pipeline_mode = #tpu.pipeline_mode<synchronous>, transform_indices = @transform_1, window_bounds = array<i64: 9, 32>}, {pipeline_mode = #tpu.pipeline_mode<synchronous>, transform_indices = @transform_2, window_bounds = array<i64: 1, 32>}, {pipeline_mode = #tpu.pipeline_mode<synchronous>, transform_indices = @transform_3, window_bounds = array<i64: 32, 32>}, {pipeline_mode = #tpu.pipeline_mode<synchronous>, transform_indices = @transform_4, window_bounds = array<i64: 1, 32>}, {pipeline_mode = #tpu.pipeline_mode<synchronous>, transform_indices = @transform_5, window_bounds = array<i64: 1, 32>}, {pipeline_mode = #tpu.pipeline_mode<synchronous>, transform_indices = @transform_6, window_bounds = array<i64: 1, 1>}, {transform_indices = @transform_7, window_bounds = array<i64: 1, 36, 32>}]} {
    %cst = arith.constant 0.000000e+00 : f32
    %0 = vector.broadcast %cst : f32 to vector<52x32xf32>
    %c0 = arith.constant 0 : index
    %c0_0 = arith.constant 0 : index
    %1 = vector.load %arg9[%c0, %c0_0] : memref<52x32xf32, #tpu.memory_space<vmem>>, vector<52x32xf32>
    tpu.vector_store %arg9[%c0, %c0_0], %0 {strides = array<i32>} : memref<52x32xf32, #tpu.memory_space<vmem>>, vector<52x32xf32>,
    %c0_1 = arith.constant 0 : index
    %c0_2 = arith.constant 0 : index
    %c0_3 = arith.constant 0 : index
    %2 = vector.load %arg1[%c0_1, %c0_2, %c0_3] : memref<1x8x32xf32, #tpu.memory_space<vmem>>, vector<1x8x32xf32>
    %3 = vector.shape_cast %2 : vector<1x8x32xf32> to vector<8x32xf32>
    %c8 = arith.constant 8 : index
    %c0_4 = arith.constant 0 : index
    %4 = vector.load %arg9[%c8, %c0_4] : memref<52x32xf32, #tpu.memory_space<vmem>>, vector<8x32xf32>
    tpu.vector_store %arg9[%c8, %c0_4], %3 {strides = array<i32>} : memref<52x32xf32, #tpu.memory_space<vmem>>, vector<8x32xf32>,
    %c0_5 = arith.constant 0 : index
    %c0_6 = arith.constant 0 : index
    %5 = vector.load %arg2[%c0_5, %c0_6] : memref<9x32xf32, #tpu.memory_space<vmem>>, vector<9x32xf32>
    %c0_7 = arith.constant 0 : index
    %c0_8 = arith.constant 0 : index
    %c0_9 = arith.constant 0 : index
    %6 = vector.load %arg1[%c0_7, %c0_8, %c0_9] : memref<1x8x32xf32, #tpu.memory_space<vmem>>, vector<1x8x32xf32>
    %7 = vector.shape_cast %6 : vector<1x8x32xf32> to vector<8x32xf32>
    %8 = vector.extract_strided_slice %5 {offsets = [0, 0], sizes = [1, 32], strides = [1, 1]} : vector<9x32xf32> to vector<1x32xf32>
    %9 = vector.broadcast %8 : vector<1x32xf32> to vector<8x32xf32>
    %10 = arith.mulf %7, %9 : vector<8x32xf32>
    %c9 = arith.constant 9 : index
    %c0_10 = arith.constant 0 : index
    %11 = vector.load %arg9[%c9, %c0_10] : memref<52x32xf32, #tpu.memory_space<vmem>>, vector<8x32xf32>
    %12 = vector.extract_strided_slice %5 {offsets = [1, 0], sizes = [1, 32], strides = [1, 1]} : vector<9x32xf32> to vector<1x32xf32>
    %13 = vector.broadcast %12 : vector<1x32xf32> to vector<8x32xf32>
    %14 = arith.mulf %11, %13 : vector<8x32xf32>
    %15 = arith.addf %10, %14 : vector<8x32xf32>
    %c10 = arith.constant 10 : index
    %c0_11 = arith.constant 0 : index
    %16 = vector.load %arg9[%c10, %c0_11] : memref<52x32xf32, #tpu.memory_space<vmem>>, vector<8x32xf32>
    %17 = vector.extract_strided_slice %5 {offsets = [2, 0], sizes = [1, 32], strides = [1, 1]} : vector<9x32xf32> to vector<1x32xf32>
    %18 = vector.broadcast %17 : vector<1x32xf32> to vector<8x32xf32>
    %19 = arith.mulf %16, %18 : vector<8x32xf32>
    %20 = arith.addf %15, %19 : vector<8x32xf32>
    %c11 = arith.constant 11 : index
    %c0_12 = arith.constant 0 : index
    %21 = vector.load %arg9[%c11, %c0_12] : memref<52x32xf32, #tpu.memory_space<vmem>>, vector<8x32xf32>
    %22 = vector.extract_strided_slice %5 {offsets = [3, 0], sizes = [1, 32], strides = [1, 1]} : vector<9x32xf32> to vector<1x32xf32>
    %23 = vector.broadcast %22 : vector<1x32xf32> to vector<8x32xf32>
    %24 = arith.mulf %21, %23 : vector<8x32xf32>
    %25 = arith.addf %20, %24 : vector<8x32xf32>
    %c12 = arith.constant 12 : index
    %c0_13 = arith.constant 0 : index
    %26 = vector.load %arg9[%c12, %c0_13] : memref<52x32xf32, #tpu.memory_space<vmem>>, vector<8x32xf32>
    %27 = vector.extract_strided_slice %5 {offsets = [4, 0], sizes = [1, 32], strides = [1, 1]} : vector<9x32xf32> to vector<1x32xf32>
    %28 = vector.broadcast %27 : vector<1x32xf32> to vector<8x32xf32>
    %29 = arith.mulf %26, %28 : vector<8x32xf32>
    %30 = arith.addf %25, %29 : vector<8x32xf32>
    %c13 = arith.constant 13 : index
    %c0_14 = arith.constant 0 : index
    %31 = vector.load %arg9[%c13, %c0_14] : memref<52x32xf32, #tpu.memory_space<vmem>>, vector<8x32xf32>
    %32 = vector.extract_strided_slice %5 {offsets = [5, 0], sizes = [1, 32], strides = [1, 1]} : vector<9x32xf32> to vector<1x32xf32>
    %33 = vector.broadcast %32 : vector<1x32xf32> to vector<8x32xf32>
    %34 = arith.mulf %31, %33 : vector<8x32xf32>
    %35 = arith.addf %30, %34 : vector<8x32xf32>
    %c14 = arith.constant 14 : index
    %c0_15 = arith.constant 0 : index
    %36 = vector.load %arg9[%c14, %c0_15] : memref<52x32xf32, #tpu.memory_space<vmem>>, vector<8x32xf32>
    %37 = vector.extract_strided_slice %5 {offsets = [6, 0], sizes = [1, 32], strides = [1, 1]} : vector<9x32xf32> to vector<1x32xf32>
    %38 = vector.broadcast %37 : vector<1x32xf32> to vector<8x32xf32>
    %39 = arith.mulf %36, %38 : vector<8x32xf32>
    %40 = arith.addf %35, %39 : vector<8x32xf32>
    %c15 = arith.constant 15 : index
    %c0_16 = arith.constant 0 : index
    %41 = vector.load %arg9[%c15, %c0_16] : memref<52x32xf32, #tpu.memory_space<vmem>>, vector<8x32xf32>
    %42 = vector.extract_strided_slice %5 {offsets = [7, 0], sizes = [1, 32], strides = [1, 1]} : vector<9x32xf32> to vector<1x32xf32>
    %43 = vector.broadcast %42 : vector<1x32xf32> to vector<8x32xf32>
    %44 = arith.mulf %41, %43 : vector<8x32xf32>
    %45 = arith.addf %40, %44 : vector<8x32xf32>
    %c16 = arith.constant 16 : index
    %c0_17 = arith.constant 0 : index
    %46 = vector.load %arg9[%c16, %c0_17] : memref<52x32xf32, #tpu.memory_space<vmem>>, vector<8x32xf32>
    %47 = vector.extract_strided_slice %5 {offsets = [8, 0], sizes = [1, 32], strides = [1, 1]} : vector<9x32xf32> to vector<1x32xf32>
    %48 = vector.broadcast %47 : vector<1x32xf32> to vector<8x32xf32>
    %49 = arith.mulf %46, %48 : vector<8x32xf32>
    %50 = arith.addf %45, %49 : vector<8x32xf32>
    %c0_18 = arith.constant 0 : index
    %c0_19 = arith.constant 0 : index
    %51 = vector.load %arg3[%c0_18, %c0_19] : memref<1x32xf32, #tpu.memory_space<vmem>>, vector<1x32xf32>
    %52 = vector.broadcast %51 : vector<1x32xf32> to vector<8x32xf32>
    %53 = arith.addf %50, %52 : vector<8x32xf32>
    %c0_20 = arith.constant 0 : index
    %c0_21 = arith.constant 0 : index
    %54 = vector.load %arg4[%c0_20, %c0_21] : memref<32x32xf32, #tpu.memory_space<vmem>>, vector<32x32xf32>
    %cst_22 = arith.constant dense<0.000000e+00> : vector<8x32xf32>
    %55 = tpu.matmul %53, %54, %cst_22 {dimension_numbers = #tpu.dot_dimension_numbers<[1], [0], [0], [1], [0, 0, 1, 1], [], []>} : vector<8x32xf32>, vector<32x32xf32>, vector<8x32xf32> -> vector<8x32xf32>
    %c0_23 = arith.constant 0 : index
    %c0_24 = arith.constant 0 : index
    %56 = vector.load %arg5[%c0_23, %c0_24] : memref<1x32xf32, #tpu.memory_space<vmem>>, vector<1x32xf32>
    %57 = vector.broadcast %56 : vector<1x32xf32> to vector<8x32xf32>
    %58 = arith.addf %55, %57 : vector<8x32xf32>
    %c8_25 = arith.constant 8 : index
    %c0_26 = arith.constant 0 : index
    %59 = vector.load %arg9[%c8_25, %c0_26] : memref<52x32xf32, #tpu.memory_space<vmem>>, vector<8x32xf32>
    tpu.vector_store %arg9[%c8_25, %c0_26], %58 {strides = array<i32>} : memref<52x32xf32, #tpu.memory_space<vmem>>, vector<8x32xf32>,
    %c8_27 = arith.constant 8 : index
    %c0_28 = arith.constant 0 : index
    %60 = vector.load %arg9[%c8_27, %c0_28] : memref<52x32xf32, #tpu.memory_space<vmem>>, vector<36x32xf32>
    %c0_29 = arith.constant 0 : index
    %c0_30 = arith.constant 0 : index
    %61 = vector.load %arg6[%c0_29, %c0_30] : memref<1x32xf32, #tpu.memory_space<vmem>>, vector<1x32xf32>
    %c0_31 = arith.constant 0 : index
    %c0_32 = arith.constant 0 : index
    %62 = vector.load %arg9[%c0_31, %c0_32] : memref<52x32xf32, #tpu.memory_space<vmem>>, vector<52x32xf32>
    %63 = vector.broadcast %61 : vector<1x32xf32> to vector<52x32xf32>
    %64 = arith.mulf %62, %63 : vector<52x32xf32>
    %cst_33 = arith.constant dense<0.000000e+00> : vector<52xf32>
    %65 = vector.multi_reduction <add>, %64, %cst_33 [1] : vector<52x32xf32> to vector<52xf32>
    %66 = vector.shape_cast %65 : vector<52xf32> to vector<52x1xf32>
    %67 = vector.extract_strided_slice %66 {offsets = [8, 0], sizes = [36, 1], strides = [1, 1]} : vector<52x1xf32> to vector<36x1xf32>
    %68 = tpu.iota {dimensions = array<i32: 0>} : vector<36x1xi32>
    %c2_i32 = arith.constant 2 : i32
    %c0_i32 = arith.constant 0 : i32
    %69 = arith.cmpi eq, %c2_i32, %c0_i32 : i32
    %c1_i32 = arith.constant 1 : i32
    %70 = arith.select %69, %c1_i32, %c2_i32 : i32
    %71 = vector.broadcast %70 : i32 to vector<36x1xi32>
    %72 = arith.remsi %68, %71 : vector<36x1xi32>
    %c0_i32_34 = arith.constant 0 : i32
    %73 = vector.broadcast %c0_i32_34 : i32 to vector<36x1xi32>
    %74 = arith.cmpi ne, %72, %73 : vector<36x1xi32>
    %c0_i32_35 = arith.constant 0 : i32
    %75 = vector.broadcast %c0_i32_35 : i32 to vector<36x1xi32>
    %76 = arith.cmpi slt, %72, %75 : vector<36x1xi32>
    %c0_i32_36 = arith.constant 0 : i32
    %77 = arith.cmpi slt, %70, %c0_i32_36 : i32
    %78 = vector.broadcast %77 : i1 to vector<36x1xi1>
    %79 = vector.broadcast %78 : vector<36x1xi1> to vector<36x1xi1>
    %80 = arith.xori %76, %79 : vector<36x1xi1>
    %81 = arith.andi %80, %74 : vector<36x1xi1>
    %82 = vector.broadcast %70 : i32 to vector<36x1xi32>
    %83 = arith.addi %72, %82 : vector<36x1xi32>
    %84 = arith.select %81, %83, %72 : vector<36x1xi1>, vector<36x1xi32>
    %c1_i32_37 = arith.constant 1 : i32
    %85 = vector.broadcast %c1_i32_37 : i32 to vector<36x1xi32>
    %86 = arith.cmpi slt, %84, %85 : vector<36x1xi32>
    %87 = arith.extui %86 : vector<36x1xi1> to vector<36x1xi32>
    %88 = arith.sitofp %87 : vector<36x1xi32> to vector<36x1xf32>
    %c1_i32_38 = arith.constant 1 : i32
    %89 = vector.broadcast %c1_i32_38 : i32 to vector<36x1xi32>
    %90 = arith.cmpi sge, %84, %89 : vector<36x1xi32>
    %91 = arith.extui %90 : vector<36x1xi1> to vector<36x1xi32>
    %92 = arith.sitofp %91 : vector<36x1xi32> to vector<36x1xf32>
    %c9_39 = arith.constant 9 : index
    %c0_40 = arith.constant 0 : index
    %93 = vector.load %arg9[%c9_39, %c0_40] : memref<52x32xf32, #tpu.memory_space<vmem>>, vector<36x32xf32>
    %94 = vector.broadcast %88 : vector<36x1xf32> to vector<36x32xf32>
    %95 = arith.mulf %93, %94 : vector<36x32xf32>
    %96 = arith.addf %60, %95 : vector<36x32xf32>
    %c7 = arith.constant 7 : index
    %c0_41 = arith.constant 0 : index
    %97 = vector.load %arg9[%c7, %c0_41] : memref<52x32xf32, #tpu.memory_space<vmem>>, vector<36x32xf32>
    %98 = vector.broadcast %92 : vector<36x1xf32> to vector<36x32xf32>
    %99 = arith.mulf %97, %98 : vector<36x32xf32>
    %100 = arith.addf %96, %99 : vector<36x32xf32>
    %101 = vector.extract_strided_slice %66 {offsets = [9, 0], sizes = [36, 1], strides = [1, 1]} : vector<52x1xf32> to vector<36x1xf32>
    %102 = arith.mulf %101, %88 : vector<36x1xf32>
    %103 = arith.addf %67, %102 : vector<36x1xf32>
    %104 = vector.extract_strided_slice %66 {offsets = [7, 0], sizes = [36, 1], strides = [1, 1]} : vector<52x1xf32> to vector<36x1xf32>
    %105 = arith.mulf %104, %92 : vector<36x1xf32>
    %106 = arith.addf %103, %105 : vector<36x1xf32>
    %cst_42 = arith.constant 5.000000e-01 : f32
    %107 = vector.broadcast %cst_42 : f32 to vector<36x32xf32>
    %108 = arith.mulf %100, %107 : vector<36x32xf32>
    %cst_43 = arith.constant 5.000000e-01 : f32
    %109 = vector.broadcast %cst_43 : f32 to vector<36x1xf32>
    %110 = arith.mulf %106, %109 : vector<36x1xf32>
    %c3_i32 = arith.constant 3 : i32
    %c0_i32_44 = arith.constant 0 : i32
    %111 = arith.cmpi eq, %c3_i32, %c0_i32_44 : i32
    %c1_i32_45 = arith.constant 1 : i32
    %112 = arith.select %111, %c1_i32_45, %c3_i32 : i32
    %113 = vector.broadcast %112 : i32 to vector<36x1xi32>
    %114 = arith.remsi %68, %113 : vector<36x1xi32>
    %c0_i32_46 = arith.constant 0 : i32
    %115 = vector.broadcast %c0_i32_46 : i32 to vector<36x1xi32>
    %116 = arith.cmpi ne, %114, %115 : vector<36x1xi32>
    %c0_i32_47 = arith.constant 0 : i32
    %117 = vector.broadcast %c0_i32_47 : i32 to vector<36x1xi32>
    %118 = arith.cmpi slt, %114, %117 : vector<36x1xi32>
    %c0_i32_48 = arith.constant 0 : i32
    %119 = arith.cmpi slt, %112, %c0_i32_48 : i32
    %120 = vector.broadcast %119 : i1 to vector<36x1xi1>
    %121 = vector.broadcast %120 : vector<36x1xi1> to vector<36x1xi1>
    %122 = arith.xori %118, %121 : vector<36x1xi1>
    %123 = arith.andi %122, %116 : vector<36x1xi1>
    %124 = vector.broadcast %112 : i32 to vector<36x1xi32>
    %125 = arith.addi %114, %124 : vector<36x1xi32>
    %126 = arith.select %123, %125, %114 : vector<36x1xi1>, vector<36x1xi32>
    %c2_i32_49 = arith.constant 2 : i32
    %127 = vector.broadcast %c2_i32_49 : i32 to vector<36x1xi32>
    %128 = arith.cmpi slt, %126, %127 : vector<36x1xi32>
    %129 = arith.extui %128 : vector<36x1xi1> to vector<36x1xi32>
    %130 = arith.sitofp %129 : vector<36x1xi32> to vector<36x1xf32>
    %c1_i32_50 = arith.constant 1 : i32
    %131 = vector.broadcast %c1_i32_50 : i32 to vector<36x1xi32>
    %132 = arith.cmpi sge, %126, %131 : vector<36x1xi32>
    %133 = arith.extui %132 : vector<36x1xi1> to vector<36x1xi32>
    %134 = arith.sitofp %133 : vector<36x1xi32> to vector<36x1xf32>
    %c9_51 = arith.constant 9 : index
    %c0_52 = arith.constant 0 : index
    %135 = vector.load %arg9[%c9_51, %c0_52] : memref<52x32xf32, #tpu.memory_space<vmem>>, vector<36x32xf32>
    %136 = vector.broadcast %130 : vector<36x1xf32> to vector<36x32xf32>
    %137 = arith.mulf %135, %136 : vector<36x32xf32>
    %138 = arith.addf %60, %137 : vector<36x32xf32>
    %c7_53 = arith.constant 7 : index
    %c0_54 = arith.constant 0 : index
    %139 = vector.load %arg9[%c7_53, %c0_54] : memref<52x32xf32, #tpu.memory_space<vmem>>, vector<36x32xf32>
    %140 = vector.broadcast %134 : vector<36x1xf32> to vector<36x32xf32>
    %141 = arith.mulf %139, %140 : vector<36x32xf32>
    %142 = arith.addf %138, %141 : vector<36x32xf32>
    %143 = vector.extract_strided_slice %66 {offsets = [9, 0], sizes = [36, 1], strides = [1, 1]} : vector<52x1xf32> to vector<36x1xf32>
    %144 = arith.mulf %143, %130 : vector<36x1xf32>
    %145 = arith.addf %67, %144 : vector<36x1xf32>
    %146 = vector.extract_strided_slice %66 {offsets = [7, 0], sizes = [36, 1], strides = [1, 1]} : vector<52x1xf32> to vector<36x1xf32>
    %147 = arith.mulf %146, %134 : vector<36x1xf32>
    %148 = arith.addf %145, %147 : vector<36x1xf32>
    %c1_i32_55 = arith.constant 1 : i32
    %149 = vector.broadcast %c1_i32_55 : i32 to vector<36x1xi32>
    %150 = arith.cmpi slt, %126, %149 : vector<36x1xi32>
    %151 = arith.extui %150 : vector<36x1xi1> to vector<36x1xi32>
    %152 = arith.sitofp %151 : vector<36x1xi32> to vector<36x1xf32>
    %c2_i32_56 = arith.constant 2 : i32
    %153 = vector.broadcast %c2_i32_56 : i32 to vector<36x1xi32>
    %154 = arith.cmpi sge, %126, %153 : vector<36x1xi32>
    %155 = arith.extui %154 : vector<36x1xi1> to vector<36x1xi32>
    %156 = arith.sitofp %155 : vector<36x1xi32> to vector<36x1xf32>
    %c10_57 = arith.constant 10 : index
    %c0_58 = arith.constant 0 : index
    %157 = vector.load %arg9[%c10_57, %c0_58] : memref<52x32xf32, #tpu.memory_space<vmem>>, vector<36x32xf32>
    %158 = vector.broadcast %152 : vector<36x1xf32> to vector<36x32xf32>
    %159 = arith.mulf %157, %158 : vector<36x32xf32>
    %160 = arith.addf %142, %159 : vector<36x32xf32>
    %c6 = arith.constant 6 : index
    %c0_59 = arith.constant 0 : index
    %161 = vector.load %arg9[%c6, %c0_59] : memref<52x32xf32, #tpu.memory_space<vmem>>, vector<36x32xf32>
    %162 = vector.broadcast %156 : vector<36x1xf32> to vector<36x32xf32>
    %163 = arith.mulf %161, %162 : vector<36x32xf32>
    %164 = arith.addf %160, %163 : vector<36x32xf32>
    %165 = vector.extract_strided_slice %66 {offsets = [10, 0], sizes = [36, 1], strides = [1, 1]} : vector<52x1xf32> to vector<36x1xf32>
    %166 = arith.mulf %165, %152 : vector<36x1xf32>
    %167 = arith.addf %148, %166 : vector<36x1xf32>
    %168 = vector.extract_strided_slice %66 {offsets = [6, 0], sizes = [36, 1], strides = [1, 1]} : vector<52x1xf32> to vector<36x1xf32>
    %169 = arith.mulf %168, %156 : vector<36x1xf32>
    %170 = arith.addf %167, %169 : vector<36x1xf32>
    %cst_60 = arith.constant 0.333333343 : f32
    %171 = vector.broadcast %cst_60 : f32 to vector<36x32xf32>
    %172 = arith.mulf %164, %171 : vector<36x32xf32>
    %cst_61 = arith.constant 0.333333343 : f32
    %173 = vector.broadcast %cst_61 : f32 to vector<36x1xf32>
    %174 = arith.mulf %170, %173 : vector<36x1xf32>
    %c4_i32 = arith.constant 4 : i32
    %c0_i32_62 = arith.constant 0 : i32
    %175 = arith.cmpi eq, %c4_i32, %c0_i32_62 : i32
    %c1_i32_63 = arith.constant 1 : i32
    %176 = arith.select %175, %c1_i32_63, %c4_i32 : i32
    %177 = vector.broadcast %176 : i32 to vector<36x1xi32>
    %178 = arith.remsi %68, %177 : vector<36x1xi32>
    %c0_i32_64 = arith.constant 0 : i32
    %179 = vector.broadcast %c0_i32_64 : i32 to vector<36x1xi32>
    %180 = arith.cmpi ne, %178, %179 : vector<36x1xi32>
    %c0_i32_65 = arith.constant 0 : i32
    %181 = vector.broadcast %c0_i32_65 : i32 to vector<36x1xi32>
    %182 = arith.cmpi slt, %178, %181 : vector<36x1xi32>
    %c0_i32_66 = arith.constant 0 : i32
    %183 = arith.cmpi slt, %176, %c0_i32_66 : i32
    %184 = vector.broadcast %183 : i1 to vector<36x1xi1>
    %185 = vector.broadcast %184 : vector<36x1xi1> to vector<36x1xi1>
    %186 = arith.xori %182, %185 : vector<36x1xi1>
    %187 = arith.andi %186, %180 : vector<36x1xi1>
    %188 = vector.broadcast %176 : i32 to vector<36x1xi32>
    %189 = arith.addi %178, %188 : vector<36x1xi32>
    %190 = arith.select %187, %189, %178 : vector<36x1xi1>, vector<36x1xi32>
    %c3_i32_67 = arith.constant 3 : i32
    %191 = vector.broadcast %c3_i32_67 : i32 to vector<36x1xi32>
    %192 = arith.cmpi slt, %190, %191 : vector<36x1xi32>
    %193 = arith.extui %192 : vector<36x1xi1> to vector<36x1xi32>
    %194 = arith.sitofp %193 : vector<36x1xi32> to vector<36x1xf32>
    %c1_i32_68 = arith.constant 1 : i32
    %195 = vector.broadcast %c1_i32_68 : i32 to vector<36x1xi32>
    %196 = arith.cmpi sge, %190, %195 : vector<36x1xi32>
    %197 = arith.extui %196 : vector<36x1xi1> to vector<36x1xi32>
    %198 = arith.sitofp %197 : vector<36x1xi32> to vector<36x1xf32>
    %c9_69 = arith.constant 9 : index
    %c0_70 = arith.constant 0 : index
    %199 = vector.load %arg9[%c9_69, %c0_70] : memref<52x32xf32, #tpu.memory_space<vmem>>, vector<36x32xf32>
    %200 = vector.broadcast %194 : vector<36x1xf32> to vector<36x32xf32>
    %201 = arith.mulf %199, %200 : vector<36x32xf32>
    %202 = arith.addf %60, %201 : vector<36x32xf32>
    %c7_71 = arith.constant 7 : index
    %c0_72 = arith.constant 0 : index
    %203 = vector.load %arg9[%c7_71, %c0_72] : memref<52x32xf32, #tpu.memory_space<vmem>>, vector<36x32xf32>
    %204 = vector.broadcast %198 : vector<36x1xf32> to vector<36x32xf32>
    %205 = arith.mulf %203, %204 : vector<36x32xf32>
    %206 = arith.addf %202, %205 : vector<36x32xf32>
    %207 = vector.extract_strided_slice %66 {offsets = [9, 0], sizes = [36, 1], strides = [1, 1]} : vector<52x1xf32> to vector<36x1xf32>
    %208 = arith.mulf %207, %194 : vector<36x1xf32>
    %209 = arith.addf %67, %208 : vector<36x1xf32>
    %210 = vector.extract_strided_slice %66 {offsets = [7, 0], sizes = [36, 1], strides = [1, 1]} : vector<52x1xf32> to vector<36x1xf32>
    %211 = arith.mulf %210, %198 : vector<36x1xf32>
    %212 = arith.addf %209, %211 : vector<36x1xf32>
    %c2_i32_73 = arith.constant 2 : i32
    %213 = vector.broadcast %c2_i32_73 : i32 to vector<36x1xi32>
    %214 = arith.cmpi slt, %190, %213 : vector<36x1xi32>
    %215 = arith.extui %214 : vector<36x1xi1> to vector<36x1xi32>
    %216 = arith.sitofp %215 : vector<36x1xi32> to vector<36x1xf32>
    %c2_i32_74 = arith.constant 2 : i32
    %217 = vector.broadcast %c2_i32_74 : i32 to vector<36x1xi32>
    %218 = arith.cmpi sge, %190, %217 : vector<36x1xi32>
    %219 = arith.extui %218 : vector<36x1xi1> to vector<36x1xi32>
    %220 = arith.sitofp %219 : vector<36x1xi32> to vector<36x1xf32>
    %c10_75 = arith.constant 10 : index
    %c0_76 = arith.constant 0 : index
    %221 = vector.load %arg9[%c10_75, %c0_76] : memref<52x32xf32, #tpu.memory_space<vmem>>, vector<36x32xf32>
    %222 = vector.broadcast %216 : vector<36x1xf32> to vector<36x32xf32>
    %223 = arith.mulf %221, %222 : vector<36x32xf32>
    %224 = arith.addf %206, %223 : vector<36x32xf32>
    %c6_77 = arith.constant 6 : index
    %c0_78 = arith.constant 0 : index
    %225 = vector.load %arg9[%c6_77, %c0_78] : memref<52x32xf32, #tpu.memory_space<vmem>>, vector<36x32xf32>
    %226 = vector.broadcast %220 : vector<36x1xf32> to vector<36x32xf32>
    %227 = arith.mulf %225, %226 : vector<36x32xf32>
    %228 = arith.addf %224, %227 : vector<36x32xf32>
    %229 = vector.extract_strided_slice %66 {offsets = [10, 0], sizes = [36, 1], strides = [1, 1]} : vector<52x1xf32> to vector<36x1xf32>
    %230 = arith.mulf %229, %216 : vector<36x1xf32>
    %231 = arith.addf %212, %230 : vector<36x1xf32>
    %232 = vector.extract_strided_slice %66 {offsets = [6, 0], sizes = [36, 1], strides = [1, 1]} : vector<52x1xf32> to vector<36x1xf32>
    %233 = arith.mulf %232, %220 : vector<36x1xf32>
    %234 = arith.addf %231, %233 : vector<36x1xf32>
    %c1_i32_79 = arith.constant 1 : i32
    %235 = vector.broadcast %c1_i32_79 : i32 to vector<36x1xi32>
    %236 = arith.cmpi slt, %190, %235 : vector<36x1xi32>
    %237 = arith.extui %236 : vector<36x1xi1> to vector<36x1xi32>
    %238 = arith.sitofp %237 : vector<36x1xi32> to vector<36x1xf32>
    %c3_i32_80 = arith.constant 3 : i32
    %239 = vector.broadcast %c3_i32_80 : i32 to vector<36x1xi32>
    %240 = arith.cmpi sge, %190, %239 : vector<36x1xi32>
    %241 = arith.extui %240 : vector<36x1xi1> to vector<36x1xi32>
    %242 = arith.sitofp %241 : vector<36x1xi32> to vector<36x1xf32>
    %c11_81 = arith.constant 11 : index
    %c0_82 = arith.constant 0 : index
    %243 = vector.load %arg9[%c11_81, %c0_82] : memref<52x32xf32, #tpu.memory_space<vmem>>, vector<36x32xf32>
    %244 = vector.broadcast %238 : vector<36x1xf32> to vector<36x32xf32>
    %245 = arith.mulf %243, %244 : vector<36x32xf32>
    %246 = arith.addf %228, %245 : vector<36x32xf32>
    %c5 = arith.constant 5 : index
    %c0_83 = arith.constant 0 : index
    %247 = vector.load %arg9[%c5, %c0_83] : memref<52x32xf32, #tpu.memory_space<vmem>>, vector<36x32xf32>
    %248 = vector.broadcast %242 : vector<36x1xf32> to vector<36x32xf32>
    %249 = arith.mulf %247, %248 : vector<36x32xf32>
    %250 = arith.addf %246, %249 : vector<36x32xf32>
    %251 = vector.extract_strided_slice %66 {offsets = [11, 0], sizes = [36, 1], strides = [1, 1]} : vector<52x1xf32> to vector<36x1xf32>
    %252 = arith.mulf %251, %238 : vector<36x1xf32>
    %253 = arith.addf %234, %252 : vector<36x1xf32>
    %254 = vector.extract_strided_slice %66 {offsets = [5, 0], sizes = [36, 1], strides = [1, 1]} : vector<52x1xf32> to vector<36x1xf32>
    %255 = arith.mulf %254, %242 : vector<36x1xf32>
    %256 = arith.addf %253, %255 : vector<36x1xf32>
    %cst_84 = arith.constant 2.500000e-01 : f32
    %257 = vector.broadcast %cst_84 : f32 to vector<36x32xf32>
    %258 = arith.mulf %250, %257 : vector<36x32xf32>
    %cst_85 = arith.constant 2.500000e-01 : f32
    %259 = vector.broadcast %cst_85 : f32 to vector<36x1xf32>
    %260 = arith.mulf %256, %259 : vector<36x1xf32>
    %c6_i32 = arith.constant 6 : i32
    %c0_i32_86 = arith.constant 0 : i32
    %261 = arith.cmpi eq, %c6_i32, %c0_i32_86 : i32
    %c1_i32_87 = arith.constant 1 : i32
    %262 = arith.select %261, %c1_i32_87, %c6_i32 : i32
    %263 = vector.broadcast %262 : i32 to vector<36x1xi32>
    %264 = arith.remsi %68, %263 : vector<36x1xi32>
    %c0_i32_88 = arith.constant 0 : i32
    %265 = vector.broadcast %c0_i32_88 : i32 to vector<36x1xi32>
    %266 = arith.cmpi ne, %264, %265 : vector<36x1xi32>
    %c0_i32_89 = arith.constant 0 : i32
    %267 = vector.broadcast %c0_i32_89 : i32 to vector<36x1xi32>
    %268 = arith.cmpi slt, %264, %267 : vector<36x1xi32>
    %c0_i32_90 = arith.constant 0 : i32
    %269 = arith.cmpi slt, %262, %c0_i32_90 : i32
    %270 = vector.broadcast %269 : i1 to vector<36x1xi1>
    %271 = vector.broadcast %270 : vector<36x1xi1> to vector<36x1xi1>
    %272 = arith.xori %268, %271 : vector<36x1xi1>
    %273 = arith.andi %272, %266 : vector<36x1xi1>
    %274 = vector.broadcast %262 : i32 to vector<36x1xi32>
    %275 = arith.addi %264, %274 : vector<36x1xi32>
    %276 = arith.select %273, %275, %264 : vector<36x1xi1>, vector<36x1xi32>
    %c5_i32 = arith.constant 5 : i32
    %277 = vector.broadcast %c5_i32 : i32 to vector<36x1xi32>
    %278 = arith.cmpi slt, %276, %277 : vector<36x1xi32>
    %279 = arith.extui %278 : vector<36x1xi1> to vector<36x1xi32>
    %280 = arith.sitofp %279 : vector<36x1xi32> to vector<36x1xf32>
    %c1_i32_91 = arith.constant 1 : i32
    %281 = vector.broadcast %c1_i32_91 : i32 to vector<36x1xi32>
    %282 = arith.cmpi sge, %276, %281 : vector<36x1xi32>
    %283 = arith.extui %282 : vector<36x1xi1> to vector<36x1xi32>
    %284 = arith.sitofp %283 : vector<36x1xi32> to vector<36x1xf32>
    %c9_92 = arith.constant 9 : index
    %c0_93 = arith.constant 0 : index
    %285 = vector.load %arg9[%c9_92, %c0_93] : memref<52x32xf32, #tpu.memory_space<vmem>>, vector<36x32xf32>
    %286 = vector.broadcast %280 : vector<36x1xf32> to vector<36x32xf32>
    %287 = arith.mulf %285, %286 : vector<36x32xf32>
    %288 = arith.addf %60, %287 : vector<36x32xf32>
    %c7_94 = arith.constant 7 : index
    %c0_95 = arith.constant 0 : index
    %289 = vector.load %arg9[%c7_94, %c0_95] : memref<52x32xf32, #tpu.memory_space<vmem>>, vector<36x32xf32>
    %290 = vector.broadcast %284 : vector<36x1xf32> to vector<36x32xf32>
    %291 = arith.mulf %289, %290 : vector<36x32xf32>
    %292 = arith.addf %288, %291 : vector<36x32xf32>
    %293 = vector.extract_strided_slice %66 {offsets = [9, 0], sizes = [36, 1], strides = [1, 1]} : vector<52x1xf32> to vector<36x1xf32>
    %294 = arith.mulf %293, %280 : vector<36x1xf32>
    %295 = arith.addf %67, %294 : vector<36x1xf32>
    %296 = vector.extract_strided_slice %66 {offsets = [7, 0], sizes = [36, 1], strides = [1, 1]} : vector<52x1xf32> to vector<36x1xf32>
    %297 = arith.mulf %296, %284 : vector<36x1xf32>
    %298 = arith.addf %295, %297 : vector<36x1xf32>
    %c4_i32_96 = arith.constant 4 : i32
    %299 = vector.broadcast %c4_i32_96 : i32 to vector<36x1xi32>
    %300 = arith.cmpi slt, %276, %299 : vector<36x1xi32>
    %301 = arith.extui %300 : vector<36x1xi1> to vector<36x1xi32>
    %302 = arith.sitofp %301 : vector<36x1xi32> to vector<36x1xf32>
    %c2_i32_97 = arith.constant 2 : i32
    %303 = vector.broadcast %c2_i32_97 : i32 to vector<36x1xi32>
    %304 = arith.cmpi sge, %276, %303 : vector<36x1xi32>
    %305 = arith.extui %304 : vector<36x1xi1> to vector<36x1xi32>
    %306 = arith.sitofp %305 : vector<36x1xi32> to vector<36x1xf32>
    %c10_98 = arith.constant 10 : index
    %c0_99 = arith.constant 0 : index
    %307 = vector.load %arg9[%c10_98, %c0_99] : memref<52x32xf32, #tpu.memory_space<vmem>>, vector<36x32xf32>
    %308 = vector.broadcast %302 : vector<36x1xf32> to vector<36x32xf32>
    %309 = arith.mulf %307, %308 : vector<36x32xf32>
    %310 = arith.addf %292, %309 : vector<36x32xf32>
    %c6_100 = arith.constant 6 : index
    %c0_101 = arith.constant 0 : index
    %311 = vector.load %arg9[%c6_100, %c0_101] : memref<52x32xf32, #tpu.memory_space<vmem>>, vector<36x32xf32>
    %312 = vector.broadcast %306 : vector<36x1xf32> to vector<36x32xf32>
    %313 = arith.mulf %311, %312 : vector<36x32xf32>
    %314 = arith.addf %310, %313 : vector<36x32xf32>
    %315 = vector.extract_strided_slice %66 {offsets = [10, 0], sizes = [36, 1], strides = [1, 1]} : vector<52x1xf32> to vector<36x1xf32>
    %316 = arith.mulf %315, %302 : vector<36x1xf32>
    %317 = arith.addf %298, %316 : vector<36x1xf32>
    %318 = vector.extract_strided_slice %66 {offsets = [6, 0], sizes = [36, 1], strides = [1, 1]} : vector<52x1xf32> to vector<36x1xf32>
    %319 = arith.mulf %318, %306 : vector<36x1xf32>
    %320 = arith.addf %317, %319 : vector<36x1xf32>
    %c3_i32_102 = arith.constant 3 : i32
    %321 = vector.broadcast %c3_i32_102 : i32 to vector<36x1xi32>
    %322 = arith.cmpi slt, %276, %321 : vector<36x1xi32>
    %323 = arith.extui %322 : vector<36x1xi1> to vector<36x1xi32>
    %324 = arith.sitofp %323 : vector<36x1xi32> to vector<36x1xf32>
    %c3_i32_103 = arith.constant 3 : i32
    %325 = vector.broadcast %c3_i32_103 : i32 to vector<36x1xi32>
    %326 = arith.cmpi sge, %276, %325 : vector<36x1xi32>
    %327 = arith.extui %326 : vector<36x1xi1> to vector<36x1xi32>
    %328 = arith.sitofp %327 : vector<36x1xi32> to vector<36x1xf32>
    %c11_104 = arith.constant 11 : index
    %c0_105 = arith.constant 0 : index
    %329 = vector.load %arg9[%c11_104, %c0_105] : memref<52x32xf32, #tpu.memory_space<vmem>>, vector<36x32xf32>
    %330 = vector.broadcast %324 : vector<36x1xf32> to vector<36x32xf32>
    %331 = arith.mulf %329, %330 : vector<36x32xf32>
    %332 = arith.addf %314, %331 : vector<36x32xf32>
    %c5_106 = arith.constant 5 : index
    %c0_107 = arith.constant 0 : index
    %333 = vector.load %arg9[%c5_106, %c0_107] : memref<52x32xf32, #tpu.memory_space<vmem>>, vector<36x32xf32>
    %334 = vector.broadcast %328 : vector<36x1xf32> to vector<36x32xf32>
    %335 = arith.mulf %333, %334 : vector<36x32xf32>
    %336 = arith.addf %332, %335 : vector<36x32xf32>
    %337 = vector.extract_strided_slice %66 {offsets = [11, 0], sizes = [36, 1], strides = [1, 1]} : vector<52x1xf32> to vector<36x1xf32>
    %338 = arith.mulf %337, %324 : vector<36x1xf32>
    %339 = arith.addf %320, %338 : vector<36x1xf32>
    %340 = vector.extract_strided_slice %66 {offsets = [5, 0], sizes = [36, 1], strides = [1, 1]} : vector<52x1xf32> to vector<36x1xf32>
    %341 = arith.mulf %340, %328 : vector<36x1xf32>
    %342 = arith.addf %339, %341 : vector<36x1xf32>
    %c2_i32_108 = arith.constant 2 : i32
    %343 = vector.broadcast %c2_i32_108 : i32 to vector<36x1xi32>
    %344 = arith.cmpi slt, %276, %343 : vector<36x1xi32>
    %345 = arith.extui %344 : vector<36x1xi1> to vector<36x1xi32>
    %346 = arith.sitofp %345 : vector<36x1xi32> to vector<36x1xf32>
    %c4_i32_109 = arith.constant 4 : i32
    %347 = vector.broadcast %c4_i32_109 : i32 to vector<36x1xi32>
    %348 = arith.cmpi sge, %276, %347 : vector<36x1xi32>
    %349 = arith.extui %348 : vector<36x1xi1> to vector<36x1xi32>
    %350 = arith.sitofp %349 : vector<36x1xi32> to vector<36x1xf32>
    %c12_110 = arith.constant 12 : index
    %c0_111 = arith.constant 0 : index
    %351 = vector.load %arg9[%c12_110, %c0_111] : memref<52x32xf32, #tpu.memory_space<vmem>>, vector<36x32xf32>
    %352 = vector.broadcast %346 : vector<36x1xf32> to vector<36x32xf32>
    %353 = arith.mulf %351, %352 : vector<36x32xf32>
    %354 = arith.addf %336, %353 : vector<36x32xf32>
    %c4 = arith.constant 4 : index
    %c0_112 = arith.constant 0 : index
    %355 = vector.load %arg9[%c4, %c0_112] : memref<52x32xf32, #tpu.memory_space<vmem>>, vector<36x32xf32>
    %356 = vector.broadcast %350 : vector<36x1xf32> to vector<36x32xf32>
    %357 = arith.mulf %355, %356 : vector<36x32xf32>
    %358 = arith.addf %354, %357 : vector<36x32xf32>
    %359 = vector.extract_strided_slice %66 {offsets = [12, 0], sizes = [36, 1], strides = [1, 1]} : vector<52x1xf32> to vector<36x1xf32>
    %360 = arith.mulf %359, %346 : vector<36x1xf32>
    %361 = arith.addf %342, %360 : vector<36x1xf32>
    %362 = vector.extract_strided_slice %66 {offsets = [4, 0], sizes = [36, 1], strides = [1, 1]} : vector<52x1xf32> to vector<36x1xf32>
    %363 = arith.mulf %362, %350 : vector<36x1xf32>
    %364 = arith.addf %361, %363 : vector<36x1xf32>
    %c1_i32_113 = arith.constant 1 : i32
    %365 = vector.broadcast %c1_i32_113 : i32 to vector<36x1xi32>
    %366 = arith.cmpi slt, %276, %365 : vector<36x1xi32>
    %367 = arith.extui %366 : vector<36x1xi1> to vector<36x1xi32>
    %368 = arith.sitofp %367 : vector<36x1xi32> to vector<36x1xf32>
    %c5_i32_114 = arith.constant 5 : i32
    %369 = vector.broadcast %c5_i32_114 : i32 to vector<36x1xi32>
    %370 = arith.cmpi sge, %276, %369 : vector<36x1xi32>
    %371 = arith.extui %370 : vector<36x1xi1> to vector<36x1xi32>
    %372 = arith.sitofp %371 : vector<36x1xi32> to vector<36x1xf32>
    %c13_115 = arith.constant 13 : index
    %c0_116 = arith.constant 0 : index
    %373 = vector.load %arg9[%c13_115, %c0_116] : memref<52x32xf32, #tpu.memory_space<vmem>>, vector<36x32xf32>
    %374 = vector.broadcast %368 : vector<36x1xf32> to vector<36x32xf32>
    %375 = arith.mulf %373, %374 : vector<36x32xf32>
    %376 = arith.addf %358, %375 : vector<36x32xf32>
    %c3 = arith.constant 3 : index
    %c0_117 = arith.constant 0 : index
    %377 = vector.load %arg9[%c3, %c0_117] : memref<52x32xf32, #tpu.memory_space<vmem>>, vector<36x32xf32>
    %378 = vector.broadcast %372 : vector<36x1xf32> to vector<36x32xf32>
    %379 = arith.mulf %377, %378 : vector<36x32xf32>
    %380 = arith.addf %376, %379 : vector<36x32xf32>
    %381 = vector.extract_strided_slice %66 {offsets = [13, 0], sizes = [36, 1], strides = [1, 1]} : vector<52x1xf32> to vector<36x1xf32>
    %382 = arith.mulf %381, %368 : vector<36x1xf32>
    %383 = arith.addf %364, %382 : vector<36x1xf32>
    %384 = vector.extract_strided_slice %66 {offsets = [3, 0], sizes = [36, 1], strides = [1, 1]} : vector<52x1xf32> to vector<36x1xf32>
    %385 = arith.mulf %384, %372 : vector<36x1xf32>
    %386 = arith.addf %383, %385 : vector<36x1xf32>
    %cst_118 = arith.constant 0.166666672 : f32
    %387 = vector.broadcast %cst_118 : f32 to vector<36x32xf32>
    %388 = arith.mulf %380, %387 : vector<36x32xf32>
    %cst_119 = arith.constant 0.166666672 : f32
    %389 = vector.broadcast %cst_119 : f32 to vector<36x1xf32>
    %390 = arith.mulf %386, %389 : vector<36x1xf32>
    %c9_i32 = arith.constant 9 : i32
    %c0_i32_120 = arith.constant 0 : i32
    %391 = arith.cmpi eq, %c9_i32, %c0_i32_120 : i32
    %c1_i32_121 = arith.constant 1 : i32
    %392 = arith.select %391, %c1_i32_121, %c9_i32 : i32
    %393 = vector.broadcast %392 : i32 to vector<36x1xi32>
    %394 = arith.remsi %68, %393 : vector<36x1xi32>
    %c0_i32_122 = arith.constant 0 : i32
    %395 = vector.broadcast %c0_i32_122 : i32 to vector<36x1xi32>
    %396 = arith.cmpi ne, %394, %395 : vector<36x1xi32>
    %c0_i32_123 = arith.constant 0 : i32
    %397 = vector.broadcast %c0_i32_123 : i32 to vector<36x1xi32>
    %398 = arith.cmpi slt, %394, %397 : vector<36x1xi32>
    %c0_i32_124 = arith.constant 0 : i32
    %399 = arith.cmpi slt, %392, %c0_i32_124 : i32
    %400 = vector.broadcast %399 : i1 to vector<36x1xi1>
    %401 = vector.broadcast %400 : vector<36x1xi1> to vector<36x1xi1>
    %402 = arith.xori %398, %401 : vector<36x1xi1>
    %403 = arith.andi %402, %396 : vector<36x1xi1>
    %404 = vector.broadcast %392 : i32 to vector<36x1xi32>
    %405 = arith.addi %394, %404 : vector<36x1xi32>
    %406 = arith.select %403, %405, %394 : vector<36x1xi1>, vector<36x1xi32>
    %c8_i32 = arith.constant 8 : i32
    %407 = vector.broadcast %c8_i32 : i32 to vector<36x1xi32>
    %408 = arith.cmpi slt, %406, %407 : vector<36x1xi32>
    %409 = arith.extui %408 : vector<36x1xi1> to vector<36x1xi32>
    %410 = arith.sitofp %409 : vector<36x1xi32> to vector<36x1xf32>
    %c1_i32_125 = arith.constant 1 : i32
    %411 = vector.broadcast %c1_i32_125 : i32 to vector<36x1xi32>
    %412 = arith.cmpi sge, %406, %411 : vector<36x1xi32>
    %413 = arith.extui %412 : vector<36x1xi1> to vector<36x1xi32>
    %414 = arith.sitofp %413 : vector<36x1xi32> to vector<36x1xf32>
    %c9_126 = arith.constant 9 : index
    %c0_127 = arith.constant 0 : index
    %415 = vector.load %arg9[%c9_126, %c0_127] : memref<52x32xf32, #tpu.memory_space<vmem>>, vector<36x32xf32>
    %416 = vector.broadcast %410 : vector<36x1xf32> to vector<36x32xf32>
    %417 = arith.mulf %415, %416 : vector<36x32xf32>
    %418 = arith.addf %60, %417 : vector<36x32xf32>
    %c7_128 = arith.constant 7 : index
    %c0_129 = arith.constant 0 : index
    %419 = vector.load %arg9[%c7_128, %c0_129] : memref<52x32xf32, #tpu.memory_space<vmem>>, vector<36x32xf32>
    %420 = vector.broadcast %414 : vector<36x1xf32> to vector<36x32xf32>
    %421 = arith.mulf %419, %420 : vector<36x32xf32>
    %422 = arith.addf %418, %421 : vector<36x32xf32>
    %423 = vector.extract_strided_slice %66 {offsets = [9, 0], sizes = [36, 1], strides = [1, 1]} : vector<52x1xf32> to vector<36x1xf32>
    %424 = arith.mulf %423, %410 : vector<36x1xf32>
    %425 = arith.addf %67, %424 : vector<36x1xf32>
    %426 = vector.extract_strided_slice %66 {offsets = [7, 0], sizes = [36, 1], strides = [1, 1]} : vector<52x1xf32> to vector<36x1xf32>
    %427 = arith.mulf %426, %414 : vector<36x1xf32>
    %428 = arith.addf %425, %427 : vector<36x1xf32>
    %c7_i32 = arith.constant 7 : i32
    %429 = vector.broadcast %c7_i32 : i32 to vector<36x1xi32>
    %430 = arith.cmpi slt, %406, %429 : vector<36x1xi32>
    %431 = arith.extui %430 : vector<36x1xi1> to vector<36x1xi32>
    %432 = arith.sitofp %431 : vector<36x1xi32> to vector<36x1xf32>
    %c2_i32_130 = arith.constant 2 : i32
    %433 = vector.broadcast %c2_i32_130 : i32 to vector<36x1xi32>
    %434 = arith.cmpi sge, %406, %433 : vector<36x1xi32>
    %435 = arith.extui %434 : vector<36x1xi1> to vector<36x1xi32>
    %436 = arith.sitofp %435 : vector<36x1xi32> to vector<36x1xf32>
    %c10_131 = arith.constant 10 : index
    %c0_132 = arith.constant 0 : index
    %437 = vector.load %arg9[%c10_131, %c0_132] : memref<52x32xf32, #tpu.memory_space<vmem>>, vector<36x32xf32>
    %438 = vector.broadcast %432 : vector<36x1xf32> to vector<36x32xf32>
    %439 = arith.mulf %437, %438 : vector<36x32xf32>
    %440 = arith.addf %422, %439 : vector<36x32xf32>
    %c6_133 = arith.constant 6 : index
    %c0_134 = arith.constant 0 : index
    %441 = vector.load %arg9[%c6_133, %c0_134] : memref<52x32xf32, #tpu.memory_space<vmem>>, vector<36x32xf32>
    %442 = vector.broadcast %436 : vector<36x1xf32> to vector<36x32xf32>
    %443 = arith.mulf %441, %442 : vector<36x32xf32>
    %444 = arith.addf %440, %443 : vector<36x32xf32>
    %445 = vector.extract_strided_slice %66 {offsets = [10, 0], sizes = [36, 1], strides = [1, 1]} : vector<52x1xf32> to vector<36x1xf32>
    %446 = arith.mulf %445, %432 : vector<36x1xf32>
    %447 = arith.addf %428, %446 : vector<36x1xf32>
    %448 = vector.extract_strided_slice %66 {offsets = [6, 0], sizes = [36, 1], strides = [1, 1]} : vector<52x1xf32> to vector<36x1xf32>
    %449 = arith.mulf %448, %436 : vector<36x1xf32>
    %450 = arith.addf %447, %449 : vector<36x1xf32>
    %c6_i32_135 = arith.constant 6 : i32
    %451 = vector.broadcast %c6_i32_135 : i32 to vector<36x1xi32>
    %452 = arith.cmpi slt, %406, %451 : vector<36x1xi32>
    %453 = arith.extui %452 : vector<36x1xi1> to vector<36x1xi32>
    %454 = arith.sitofp %453 : vector<36x1xi32> to vector<36x1xf32>
    %c3_i32_136 = arith.constant 3 : i32
    %455 = vector.broadcast %c3_i32_136 : i32 to vector<36x1xi32>
    %456 = arith.cmpi sge, %406, %455 : vector<36x1xi32>
    %457 = arith.extui %456 : vector<36x1xi1> to vector<36x1xi32>
    %458 = arith.sitofp %457 : vector<36x1xi32> to vector<36x1xf32>
    %c11_137 = arith.constant 11 : index
    %c0_138 = arith.constant 0 : index
    %459 = vector.load %arg9[%c11_137, %c0_138] : memref<52x32xf32, #tpu.memory_space<vmem>>, vector<36x32xf32>
    %460 = vector.broadcast %454 : vector<36x1xf32> to vector<36x32xf32>
    %461 = arith.mulf %459, %460 : vector<36x32xf32>
    %462 = arith.addf %444, %461 : vector<36x32xf32>
    %c5_139 = arith.constant 5 : index
    %c0_140 = arith.constant 0 : index
    %463 = vector.load %arg9[%c5_139, %c0_140] : memref<52x32xf32, #tpu.memory_space<vmem>>, vector<36x32xf32>
    %464 = vector.broadcast %458 : vector<36x1xf32> to vector<36x32xf32>
    %465 = arith.mulf %463, %464 : vector<36x32xf32>
    %466 = arith.addf %462, %465 : vector<36x32xf32>
    %467 = vector.extract_strided_slice %66 {offsets = [11, 0], sizes = [36, 1], strides = [1, 1]} : vector<52x1xf32> to vector<36x1xf32>
    %468 = arith.mulf %467, %454 : vector<36x1xf32>
    %469 = arith.addf %450, %468 : vector<36x1xf32>
    %470 = vector.extract_strided_slice %66 {offsets = [5, 0], sizes = [36, 1], strides = [1, 1]} : vector<52x1xf32> to vector<36x1xf32>
    %471 = arith.mulf %470, %458 : vector<36x1xf32>
    %472 = arith.addf %469, %471 : vector<36x1xf32>
    %c5_i32_141 = arith.constant 5 : i32
    %473 = vector.broadcast %c5_i32_141 : i32 to vector<36x1xi32>
    %474 = arith.cmpi slt, %406, %473 : vector<36x1xi32>
    %475 = arith.extui %474 : vector<36x1xi1> to vector<36x1xi32>
    %476 = arith.sitofp %475 : vector<36x1xi32> to vector<36x1xf32>
    %c4_i32_142 = arith.constant 4 : i32
    %477 = vector.broadcast %c4_i32_142 : i32 to vector<36x1xi32>
    %478 = arith.cmpi sge, %406, %477 : vector<36x1xi32>
    %479 = arith.extui %478 : vector<36x1xi1> to vector<36x1xi32>
    %480 = arith.sitofp %479 : vector<36x1xi32> to vector<36x1xf32>
    %c12_143 = arith.constant 12 : index
    %c0_144 = arith.constant 0 : index
    %481 = vector.load %arg9[%c12_143, %c0_144] : memref<52x32xf32, #tpu.memory_space<vmem>>, vector<36x32xf32>
    %482 = vector.broadcast %476 : vector<36x1xf32> to vector<36x32xf32>
    %483 = arith.mulf %481, %482 : vector<36x32xf32>
    %484 = arith.addf %466, %483 : vector<36x32xf32>
    %c4_145 = arith.constant 4 : index
    %c0_146 = arith.constant 0 : index
    %485 = vector.load %arg9[%c4_145, %c0_146] : memref<52x32xf32, #tpu.memory_space<vmem>>, vector<36x32xf32>
    %486 = vector.broadcast %480 : vector<36x1xf32> to vector<36x32xf32>
    %487 = arith.mulf %485, %486 : vector<36x32xf32>
    %488 = arith.addf %484, %487 : vector<36x32xf32>
    %489 = vector.extract_strided_slice %66 {offsets = [12, 0], sizes = [36, 1], strides = [1, 1]} : vector<52x1xf32> to vector<36x1xf32>
    %490 = arith.mulf %489, %476 : vector<36x1xf32>
    %491 = arith.addf %472, %490 : vector<36x1xf32>
    %492 = vector.extract_strided_slice %66 {offsets = [4, 0], sizes = [36, 1], strides = [1, 1]} : vector<52x1xf32> to vector<36x1xf32>
    %493 = arith.mulf %492, %480 : vector<36x1xf32>
    %494 = arith.addf %491, %493 : vector<36x1xf32>
    %c4_i32_147 = arith.constant 4 : i32
    %495 = vector.broadcast %c4_i32_147 : i32 to vector<36x1xi32>
    %496 = arith.cmpi slt, %406, %495 : vector<36x1xi32>
    %497 = arith.extui %496 : vector<36x1xi1> to vector<36x1xi32>
    %498 = arith.sitofp %497 : vector<36x1xi32> to vector<36x1xf32>
    %c5_i32_148 = arith.constant 5 : i32
    %499 = vector.broadcast %c5_i32_148 : i32 to vector<36x1xi32>
    %500 = arith.cmpi sge, %406, %499 : vector<36x1xi32>
    %501 = arith.extui %500 : vector<36x1xi1> to vector<36x1xi32>
    %502 = arith.sitofp %501 : vector<36x1xi32> to vector<36x1xf32>
    %c13_149 = arith.constant 13 : index
    %c0_150 = arith.constant 0 : index
    %503 = vector.load %arg9[%c13_149, %c0_150] : memref<52x32xf32, #tpu.memory_space<vmem>>, vector<36x32xf32>
    %504 = vector.broadcast %498 : vector<36x1xf32> to vector<36x32xf32>
    %505 = arith.mulf %503, %504 : vector<36x32xf32>
    %506 = arith.addf %488, %505 : vector<36x32xf32>
    %c3_151 = arith.constant 3 : index
    %c0_152 = arith.constant 0 : index
    %507 = vector.load %arg9[%c3_151, %c0_152] : memref<52x32xf32, #tpu.memory_space<vmem>>, vector<36x32xf32>
    %508 = vector.broadcast %502 : vector<36x1xf32> to vector<36x32xf32>
    %509 = arith.mulf %507, %508 : vector<36x32xf32>
    %510 = arith.addf %506, %509 : vector<36x32xf32>
    %511 = vector.extract_strided_slice %66 {offsets = [13, 0], sizes = [36, 1], strides = [1, 1]} : vector<52x1xf32> to vector<36x1xf32>
    %512 = arith.mulf %511, %498 : vector<36x1xf32>
    %513 = arith.addf %494, %512 : vector<36x1xf32>
    %514 = vector.extract_strided_slice %66 {offsets = [3, 0], sizes = [36, 1], strides = [1, 1]} : vector<52x1xf32> to vector<36x1xf32>
    %515 = arith.mulf %514, %502 : vector<36x1xf32>
    %516 = arith.addf %513, %515 : vector<36x1xf32>
    %c3_i32_153 = arith.constant 3 : i32
    %517 = vector.broadcast %c3_i32_153 : i32 to vector<36x1xi32>
    %518 = arith.cmpi slt, %406, %517 : vector<36x1xi32>
    %519 = arith.extui %518 : vector<36x1xi1> to vector<36x1xi32>
    %520 = arith.sitofp %519 : vector<36x1xi32> to vector<36x1xf32>
    %c6_i32_154 = arith.constant 6 : i32
    %521 = vector.broadcast %c6_i32_154 : i32 to vector<36x1xi32>
    %522 = arith.cmpi sge, %406, %521 : vector<36x1xi32>
    %523 = arith.extui %522 : vector<36x1xi1> to vector<36x1xi32>
    %524 = arith.sitofp %523 : vector<36x1xi32> to vector<36x1xf32>
    %c14_155 = arith.constant 14 : index
    %c0_156 = arith.constant 0 : index
    %525 = vector.load %arg9[%c14_155, %c0_156] : memref<52x32xf32, #tpu.memory_space<vmem>>, vector<36x32xf32>
    %526 = vector.broadcast %520 : vector<36x1xf32> to vector<36x32xf32>
    %527 = arith.mulf %525, %526 : vector<36x32xf32>
    %528 = arith.addf %510, %527 : vector<36x32xf32>
    %c2 = arith.constant 2 : index
    %c0_157 = arith.constant 0 : index
    %529 = vector.load %arg9[%c2, %c0_157] : memref<52x32xf32, #tpu.memory_space<vmem>>, vector<36x32xf32>
    %530 = vector.broadcast %524 : vector<36x1xf32> to vector<36x32xf32>
    %531 = arith.mulf %529, %530 : vector<36x32xf32>
    %532 = arith.addf %528, %531 : vector<36x32xf32>
    %533 = vector.extract_strided_slice %66 {offsets = [14, 0], sizes = [36, 1], strides = [1, 1]} : vector<52x1xf32> to vector<36x1xf32>
    %534 = arith.mulf %533, %520 : vector<36x1xf32>
    %535 = arith.addf %516, %534 : vector<36x1xf32>
    %536 = vector.extract_strided_slice %66 {offsets = [2, 0], sizes = [36, 1], strides = [1, 1]} : vector<52x1xf32> to vector<36x1xf32>
    %537 = arith.mulf %536, %524 : vector<36x1xf32>
    %538 = arith.addf %535, %537 : vector<36x1xf32>
    %c2_i32_158 = arith.constant 2 : i32
    %539 = vector.broadcast %c2_i32_158 : i32 to vector<36x1xi32>
    %540 = arith.cmpi slt, %406, %539 : vector<36x1xi32>
    %541 = arith.extui %540 : vector<36x1xi1> to vector<36x1xi32>
    %542 = arith.sitofp %541 : vector<36x1xi32> to vector<36x1xf32>
    %c7_i32_159 = arith.constant 7 : i32
    %543 = vector.broadcast %c7_i32_159 : i32 to vector<36x1xi32>
    %544 = arith.cmpi sge, %406, %543 : vector<36x1xi32>
    %545 = arith.extui %544 : vector<36x1xi1> to vector<36x1xi32>
    %546 = arith.sitofp %545 : vector<36x1xi32> to vector<36x1xf32>
    %c15_160 = arith.constant 15 : index
    %c0_161 = arith.constant 0 : index
    %547 = vector.load %arg9[%c15_160, %c0_161] : memref<52x32xf32, #tpu.memory_space<vmem>>, vector<36x32xf32>
    %548 = vector.broadcast %542 : vector<36x1xf32> to vector<36x32xf32>
    %549 = arith.mulf %547, %548 : vector<36x32xf32>
    %550 = arith.addf %532, %549 : vector<36x32xf32>
    %c1 = arith.constant 1 : index
    %c0_162 = arith.constant 0 : index
    %551 = vector.load %arg9[%c1, %c0_162] : memref<52x32xf32, #tpu.memory_space<vmem>>, vector<36x32xf32>
    %552 = vector.broadcast %546 : vector<36x1xf32> to vector<36x32xf32>
    %553 = arith.mulf %551, %552 : vector<36x32xf32>
    %554 = arith.addf %550, %553 : vector<36x32xf32>
    %555 = vector.extract_strided_slice %66 {offsets = [15, 0], sizes = [36, 1], strides = [1, 1]} : vector<52x1xf32> to vector<36x1xf32>
    %556 = arith.mulf %555, %542 : vector<36x1xf32>
    %557 = arith.addf %538, %556 : vector<36x1xf32>
    %558 = vector.extract_strided_slice %66 {offsets = [1, 0], sizes = [36, 1], strides = [1, 1]} : vector<52x1xf32> to vector<36x1xf32>
    %559 = arith.mulf %558, %546 : vector<36x1xf32>
    %560 = arith.addf %557, %559 : vector<36x1xf32>
    %c1_i32_163 = arith.constant 1 : i32
    %561 = vector.broadcast %c1_i32_163 : i32 to vector<36x1xi32>
    %562 = arith.cmpi slt, %406, %561 : vector<36x1xi32>
    %563 = arith.extui %562 : vector<36x1xi1> to vector<36x1xi32>
    %564 = arith.sitofp %563 : vector<36x1xi32> to vector<36x1xf32>
    %c8_i32_164 = arith.constant 8 : i32
    %565 = vector.broadcast %c8_i32_164 : i32 to vector<36x1xi32>
    %566 = arith.cmpi sge, %406, %565 : vector<36x1xi32>
    %567 = arith.extui %566 : vector<36x1xi1> to vector<36x1xi32>
    %568 = arith.sitofp %567 : vector<36x1xi32> to vector<36x1xf32>
    %c16_165 = arith.constant 16 : index
    %c0_166 = arith.constant 0 : index
    %569 = vector.load %arg9[%c16_165, %c0_166] : memref<52x32xf32, #tpu.memory_space<vmem>>, vector<36x32xf32>
    %570 = vector.broadcast %564 : vector<36x1xf32> to vector<36x32xf32>
    %571 = arith.mulf %569, %570 : vector<36x32xf32>
    %572 = arith.addf %554, %571 : vector<36x32xf32>
    %c0_167 = arith.constant 0 : index
    %c0_168 = arith.constant 0 : index
    %573 = vector.load %arg9[%c0_167, %c0_168] : memref<52x32xf32, #tpu.memory_space<vmem>>, vector<36x32xf32>
    %574 = vector.broadcast %568 : vector<36x1xf32> to vector<36x32xf32>
    %575 = arith.mulf %573, %574 : vector<36x32xf32>
    %576 = arith.addf %572, %575 : vector<36x32xf32>
    %577 = vector.extract_strided_slice %66 {offsets = [16, 0], sizes = [36, 1], strides = [1, 1]} : vector<52x1xf32> to vector<36x1xf32>
    %578 = arith.mulf %577, %564 : vector<36x1xf32>
    %579 = arith.addf %560, %578 : vector<36x1xf32>
    %580 = vector.extract_strided_slice %66 {offsets = [0, 0], sizes = [36, 1], strides = [1, 1]} : vector<52x1xf32> to vector<36x1xf32>
    %581 = arith.mulf %580, %568 : vector<36x1xf32>
    %582 = arith.addf %579, %581 : vector<36x1xf32>
    %cst_169 = arith.constant 0.111111112 : f32
    %583 = vector.broadcast %cst_169 : f32 to vector<36x32xf32>
    %584 = arith.mulf %576, %583 : vector<36x32xf32>
    %cst_170 = arith.constant 0.111111112 : f32
    %585 = vector.broadcast %cst_170 : f32 to vector<36x1xf32>
    %586 = arith.mulf %582, %585 : vector<36x1xf32>
    %587 = tpu.concatenate %67, %110, %174, %260, %390, %586 in 1 : vector<36x1xf32>, vector<36x1xf32>, vector<36x1xf32>, vector<36x1xf32>, vector<36x1xf32>, vector<36x1xf32> -> vector<36x6xf32>
    %c0_171 = arith.constant 0 : index
    %c0_172 = arith.constant 0 : index
    %588 = vector.load %arg7[%c0_171, %c0_172] : memref<1x1xf32, #tpu.memory_space<vmem>>, vector<1x1xf32>
    %589 = vector.broadcast %588 : vector<1x1xf32> to vector<36x6xf32>
    %590 = arith.addf %587, %589 : vector<36x6xf32>
    %cst_173 = arith.constant dense<0xFF800000> : vector<36xf32>
    %591 = vector.multi_reduction <maximumf>, %590, %cst_173 [1] : vector<36x6xf32> to vector<36xf32>
    %592 = vector.shape_cast %591 : vector<36xf32> to vector<36x1xf32>
    %593 = vector.broadcast %592 : vector<36x1xf32> to vector<36x6xf32>
    %594 = arith.subf %590, %593 : vector<36x6xf32>
    %595 = math.exp %594 : vector<36x6xf32>
    %cst_174 = arith.constant dense<0.000000e+00> : vector<36xf32>
    %596 = vector.multi_reduction <add>, %595, %cst_174 [1] : vector<36x6xf32> to vector<36xf32>
    %597 = vector.shape_cast %596 : vector<36xf32> to vector<36x1xf32>
    %598 = tpu.reciprocal %597 {approx = true} : vector<36x1xf32> -> vector<36x1xf32>
    %599 = vector.broadcast %598 : vector<36x1xf32> to vector<36x6xf32>
    %600 = arith.mulf %595, %599 : vector<36x6xf32>
    %cst_175 = arith.constant dense<0.000000e+00> : vector<36x36xf32>
    %601 = tpu.matmul %600, %600, %cst_175 {dimension_numbers = #tpu.dot_dimension_numbers<[1], [1], [0], [0], [0, 0, 1, 0], [], []>} : vector<36x6xf32>, vector<36x6xf32>, vector<36x36xf32> -> vector<36x36xf32>
    %cst_176 = arith.constant dense<0xFF800000> : vector<36xf32>
    %602 = vector.multi_reduction <maximumf>, %601, %cst_176 [1] : vector<36x36xf32> to vector<36xf32>
    %603 = vector.shape_cast %602 : vector<36xf32> to vector<36x1xf32>
    %604 = vector.broadcast %603 : vector<36x1xf32> to vector<36x36xf32>
    %605 = arith.subf %601, %604 : vector<36x36xf32>
    %606 = math.exp %605 : vector<36x36xf32>
    %cst_177 = arith.constant dense<0.000000e+00> : vector<36xf32>
    %607 = vector.multi_reduction <add>, %606, %cst_177 [1] : vector<36x36xf32> to vector<36xf32>
    %608 = vector.shape_cast %607 : vector<36xf32> to vector<36x1xf32>
    %609 = tpu.reciprocal %608 {approx = true} : vector<36x1xf32> -> vector<36x1xf32>
    %610 = vector.broadcast %609 : vector<36x1xf32> to vector<36x36xf32>
    %611 = arith.mulf %606, %610 : vector<36x36xf32>
    %cst_178 = arith.constant dense<0.000000e+00> : vector<36x6xf32>
    %612 = tpu.matmul %611, %600, %cst_178 {dimension_numbers = #tpu.dot_dimension_numbers<[1], [0], [0], [1], [0, 0, 1, 1], [], []>} : vector<36x36xf32>, vector<36x6xf32>, vector<36x6xf32> -> vector<36x6xf32>
    %613 = vector.extract_strided_slice %612 {offsets = [0, 0], sizes = [36, 1], strides = [1, 1]} : vector<36x6xf32> to vector<36x1xf32>
    %614 = vector.broadcast %613 : vector<36x1xf32> to vector<36x32xf32>
    %615 = arith.mulf %614, %60 : vector<36x32xf32>
    %616 = vector.extract_strided_slice %612 {offsets = [0, 1], sizes = [36, 1], strides = [1, 1]} : vector<36x6xf32> to vector<36x1xf32>
    %617 = vector.broadcast %616 : vector<36x1xf32> to vector<36x32xf32>
    %618 = arith.mulf %617, %108 : vector<36x32xf32>
    %619 = arith.addf %615, %618 : vector<36x32xf32>
    %620 = vector.extract_strided_slice %612 {offsets = [0, 2], sizes = [36, 1], strides = [1, 1]} : vector<36x6xf32> to vector<36x1xf32>
    %621 = vector.broadcast %620 : vector<36x1xf32> to vector<36x32xf32>
    %622 = arith.mulf %621, %172 : vector<36x32xf32>
    %623 = arith.addf %619, %622 : vector<36x32xf32>
    %624 = vector.extract_strided_slice %612 {offsets = [0, 3], sizes = [36, 1], strides = [1, 1]} : vector<36x6xf32> to vector<36x1xf32>
    %625 = vector.broadcast %624 : vector<36x1xf32> to vector<36x32xf32>
    %626 = arith.mulf %625, %258 : vector<36x32xf32>
    %627 = arith.addf %623, %626 : vector<36x32xf32>
    %628 = vector.extract_strided_slice %612 {offsets = [0, 4], sizes = [36, 1], strides = [1, 1]} : vector<36x6xf32> to vector<36x1xf32>
    %629 = vector.broadcast %628 : vector<36x1xf32> to vector<36x32xf32>
    %630 = arith.mulf %629, %388 : vector<36x32xf32>
    %631 = arith.addf %627, %630 : vector<36x32xf32>
    %632 = vector.extract_strided_slice %612 {offsets = [0, 5], sizes = [36, 1], strides = [1, 1]} : vector<36x6xf32> to vector<36x1xf32>
    %633 = vector.broadcast %632 : vector<36x1xf32> to vector<36x32xf32>
    %634 = arith.mulf %633, %584 : vector<36x32xf32>
    %635 = arith.addf %631, %634 : vector<36x32xf32>
    %c0_179 = arith.constant 0 : index
    %c0_180 = arith.constant 0 : index
    %c0_181 = arith.constant 0 : index
    %636 = vector.load %arg8[%c0_179, %c0_180, %c0_181] : memref<1x36x32xf32, #tpu.memory_space<vmem>>, vector<1x36x32xf32>
    %637 = vector.shape_cast %636 : vector<1x36x32xf32> to vector<36x32xf32>
    %638 = vector.shape_cast %635 : vector<36x32xf32> to vector<1x36x32xf32>
    tpu.vector_store %arg8[%c0_179, %c0_180, %c0_181], %638 {strides = array<i32>} : memref<1x36x32xf32, #tpu.memory_space<vmem>>, vector<1x36x32xf32>,
    return
  }
  func.func @transform_0(%arg0: i32) -> (i32, i32, i32) {
    %c0_i32 = arith.constant 0 : i32
    %c0_i32_0 = arith.constant 0 : i32
    %c0_i32_1 = arith.constant 0 : i32
    return %arg0, %c0_i32, %c0_i32_0 : i32, i32, i32
  }
  func.func @transform_1(%arg0: i32) -> (i32, i32) {
    %c0_i32 = arith.constant 0 : i32
    %c0_i32_0 = arith.constant 0 : i32
    %c0_i32_1 = arith.constant 0 : i32
    return %c0_i32, %c0_i32_0 : i32, i32
  }
  func.func @transform_2(%arg0: i32) -> (i32, i32) {
    %c0_i32 = arith.constant 0 : i32
    %c0_i32_0 = arith.constant 0 : i32
    %c0_i32_1 = arith.constant 0 : i32
    return %c0_i32, %c0_i32_0 : i32, i32
  }
  func.func @transform_3(%arg0: i32) -> (i32, i32) {
    %c0_i32 = arith.constant 0 : i32
    %c0_i32_0 = arith.constant 0 : i32
    %c0_i32_1 = arith.constant 0 : i32
    return %c0_i32, %c0_i32_0 : i32, i32
  }
  func.func @transform_4(%arg0: i32) -> (i32, i32) {
    %c0_i32 = arith.constant 0 : i32
    %c0_i32_0 = arith.constant 0 : i32
    %c0_i32_1 = arith.constant 0 : i32
    return %c0_i32, %c0_i32_0 : i32, i32
  }
  func.func @transform_5(%arg0: i32) -> (i32, i32) {
    %c0_i32 = arith.constant 0 : i32
    %c0_i32_0 = arith.constant 0 : i32
    %c0_i32_1 = arith.constant 0 : i32
    return %c0_i32, %c0_i32_0 : i32, i32
  }
  func.func @transform_6(%arg0: i32) -> (i32, i32) {
    %c0_i32 = arith.constant 0 : i32
    %c0_i32_0 = arith.constant 0 : i32
    %c0_i32_1 = arith.constant 0 : i32
    return %c0_i32, %c0_i32_0 : i32, i32
  }
  func.func @transform_7(%arg0: i32) -> (i32, i32, i32) {
    %c0_i32 = arith.constant 0 : i32
    %c0_i32_0 = arith.constant 0 : i32
    %c0_i32_1 = arith.constant 0 : i32
    return %arg0, %c0_i32, %c0_i32_0 : i32, i32, i32
  }
}

</mosaic_0001>

<bundles_post_ra>
// kernel: gbswt_forward.1
= control target key start
LH: loop header
LB: loop body
LE: loop exit
PB: predicated region body
PF: predicated region fallthrough
CT: control target
= control target key end

     0   :  { %s4966_s26 = smov 0   ;;  %s9153_s0 = inlined_call_operand.vmem [shape: f32[2,8,32], index: 0, kind: input, shape index: {}]   ;;  %s9154_s1 = inlined_call_operand.vmem [shape: f32[9,32], index: 1, kind: input, shape index: {}]   ;;  %s9155_s2 = inlined_call_operand.vmem [shape: f32[1,32], index: 2, kind: input, shape index: {}]   ;;  %s9156_s3 = inlined_call_operand.vmem [shape: f32[32,32], index: 3, kind: input, shape index: {}]   ;;  %s9157_s4 = inlined_call_operand.vmem [shape: f32[1,32], index: 4, kind: input, shape index: {}]   ;;  %s9158_s5 = inlined_call_operand.vmem [shape: f32[1,32], index: 5, kind: input, shape index: {}]   ;;  %s9159_s6 = inlined_call_operand.<no memory space> [shape: f32[1,1], index: 6, kind: input, shape index: {}]   ;;  %s9160_s7 = inlined_call_operand.vmem [shape: f32[2,36,32], index: 7, kind: output, shape index: {}]  }
   0x1   :  { %v12_v0 = vstv %s9159_s6 }
   0x2   :  { %13 = vst [vmem:[#allocation3] sm:$0x1] %v12_v0 }
   0x3 LB: > { %s4455_s27 = sadd.s32 4294967295, %s4907_s26   ;;  %p4459_p0 = scmp.ge.s32.totalorder %s4907_s26, 1  ;;  %s4907_s26 = sphi %s4966_s26, %s19_s26  }
   0x4   : > { %p238_p1 = scmp.lt.s32.totalorder %s4907_s26, 3 }
   0x6   : > { %p239_p2 = pnand %p4459_p0, %p238_p1 }
   0x8   : > { %242 = sbr.rel (%p239_p2) target bundleno = 2121 (0x849), region = 48 }
   0xf   : > { %v361_v1 = vld [vmem:[%s9156_s3] sm:$0xff]  ;;  %v362_v2 = vld [vmem:[%s9156_s3 + $0x8] sm:$0xff]  ;;  %v363_v3 = vld [vmem:[%s9156_s3 + $0x10] sm:$0xff]  ;;  %v292_v4 = vlaneseq  ;;  %v9164_v5 = vmov 0.0|0.0   ;;  %vm9161_vm0 = vmmov 0   ;;  %v9179_v8 = vmov 0.0  }
  0x10   : > { %4762 = vmatprep.subr.bf16.mxu0 %v9164_v5  ;;  %v4763_v6 = vpack.c.bf16 %v362_v2, %v361_v1  ;;  %v364_v7 = vld [vmem:[%s9156_s3 + $0x18] sm:$0xff]  ;;  %4709 = vmatprep.mubr.msk.f32.mxu0 %vm9161_vm0, %v9179_v8  ;;  %p269_p3 = scmp.lt.s32.totalorder %s4455_s27, 1  ;;  %vm9283_vm1 = vcmask 261120   ;;  %v289_v13 = vld [vmem:[%s9154_s1] sm:$0xff]  ;;  %v4462_v47 = vld [vmem:[%s9154_s1 + $0x8] ss:$0 sm:$0xff] }
  0x11   : > { %280 = vst.msk [vmem:[#allocation2 + $0x8] sm:$0xff] %vm9283_vm1, %v9179_v8  ;;  %281 = vst.msk [vmem:[#allocation2 + $0x10] sm:$0xff] %vm9283_vm1, %v9179_v8  ;;  %v4993_v9 = vshrl.u32 %v292_v4, 7  ;;  %4768 = vmatprep.subr.bf16.mxu1 %v9164_v5  ;;  %4722 = vmatprep.mubr.msk.f32.mxu1 %vm9161_vm0, %v9179_v8  ;;  %v4766_v10 = vpack.c.bf16 %v364_v7, %v363_v3  ;;  %v4463_v54 = vld [vmem:[%s9155_s2] ss:$0 sm:$0xff]  ;;  %vm9163_vm2 = vcmask 257024  }
  0x12   : > { %279 = vst.msk [vmem:[#allocation2] sm:$0xff] %vm9283_vm1, %v9179_v8  ;;  %282 = vst.msk [vmem:[#allocation2 + $0x18] sm:$0xff] %vm9283_vm1, %v9179_v8  ;;  %4764 = vmatpush3.bf16.msra.mxu0 %v4763_v6  ;;  %s10888_s27 = smov (!%p269_p3, %s4455_s27), 1  ;;  %v5038_v58 = vld [vmem:[%s9158_s5] ss:$0 sm:$0xff]  ;;  %s4913_s28 = smov 1  }
  0x13   : > { %283 = vst.msk [vmem:[#allocation2 + $0x20] sm:$0xff] %vm9283_vm1, %v9179_v8  ;;  %284 = vst.msk [vmem:[#allocation2 + $0x28] sm:$0xff] %vm9283_vm1, %v9179_v8  ;;  %4765 = vmatprep.subr.bf16.mxu0 %v9164_v5  ;;  %s4460_s12 = sshll.u32 %s10888_s27, 3  ;;  %v294_v11 = vsub.s32 0, %v4993_v9  ;;  %v300_v14 = vsub.s32 1, %v4993_v9  ;;  %v307_v15 = vsub.s32 2, %v4993_v9 }
  0x14   : > { %s272_s15 = scalar_lea.vmem %s9153_s0, %s4460_s12  ;;  %v314_v17 = vsub.s32 3, %v4993_v9  ;;  %v321_v20 = vsub.s32 4, %v4993_v9  ;;  %v328_v23 = vsub.s32 5, %v4993_v9  ;;  %v335_v30 = vsub.s32 6, %v4993_v9  ;;  %286 = vst.msk [vmem:[#allocation2 + $0x30] sm:$0xf] %vm9163_vm2, %v9179_v8 }
  0x15   : > { %v287_v12 = vld [vmem:[%s272_s15] sm:$0xff]  ;;  %v295_v16 = vrot.slane %v289_v13, %v294_v11  ;;  %v301_v18 = vrot.slane %v289_v13, %v300_v14  ;;  %v308_v19 = vrot.slane %v289_v13, %v307_v15  ;;  %v342_v35 = vsub.s32 7, %v4993_v9  ;;  %s4914_s29 = smov 2   ;;  %s4915_s6 = smov 3  }
  0x16   : > { %4767 = vmatpush3.bf16.msra.mxu0 %v4766_v10  ;;  %288 = vst.msk [vmem:[#allocation2 + $0x8] sm:$0xff] %vm9283_vm1, %v287_v12  ;;  %v315_v22 = vrot.slane %v289_v13, %v314_v17  ;;  %v322_v29 = vrot.slane %v289_v13, %v321_v20  ;;  %v329_v34 = vrot.slane %v289_v13, %v328_v23  ;;  %v5049_v3 = vadd.s32 8, %v4993_v9  ;;  %s4916_s30 = smov 4   ;;  %s4917_s8 = smov 5  }
  0x17   : > { %4776 = vmatprep.subr.bf16.mxu0 %v9164_v5  ;;  %v296_v21 = vmul.f32 %v295_v16, %v287_v12  ;;  %v336_v39 = vrot.slane %v289_v13, %v335_v30  ;;  %v343_v43 = vrot.slane %v289_v13, %v342_v35  ;;  %v5056_v7 = vadd.s32 24, %v4993_v9  ;;  %s4782_s9 = smul.u32 40, %s10888_s27 }
  0x18   : > { %v346_v48 = vld [vmem:[#allocation2 + $0x10] sm:$0xff]  ;;  %v5052_v4 = vmul.u32.u64.low 2863311531, %v5049_v3  ;;  %v5053_v6 = vmul.u32.u64.high 2863311531, %v5049_v3, %v5052_v4  ;;  %v5064_v13 = vadd.s32 32, %v4993_v9  ;;  %v506_v23 = vand.u32 1, %v5049_v3 }
  0x19   : > { %v351_v52 = vmul.f32 %v4462_v47, %v346_v48  ;;  %v448_v57 = vld [vmem:[#allocation2 + $0x18] sm:$0xff]  ;;  %v452_v59 = vld [vmem:[#allocation2] sm:$0xff]  ;;  %v5059_v10 = vmul.u32.u64.low 3817748708, %v5056_v7  ;;  %v5060_v11 = vmul.u32.u64.high 3817748708, %v5056_v7, %v5059_v10  ;;  %s8944_s11 = scalar_lea.vmem %s9160_s7, %s4782_s9 }
  0x1a   : > { %v464_v60 = vmul.f32 %v5038_v58, %v448_v57  ;;  %v461_v61 = vmul.f32 %v5038_v58, %v452_v59  ;;  %v453_v0 = vld [vmem:[#allocation2 + $0x28] sm:$0xff]  ;;  %v745_v12 = vshrl.u32 %v5053_v6, 1  ;;  %vm556_vm6 = vcmp.lt.s32.totalorder %v506_v23, 1 }
  0x1b   : > { %v466_v1 = vmul.f32 %v5038_v58, %v453_v0  ;;  %v5067_v15 = vmul.u32.u64.low 2863311531, %v4993_v9  ;;  %v5068_v16 = vmul.u32.u64.high 2863311531, %v4993_v9, %v5067_v15  ;;  %vm571_vm7 = vcmp.ge.s32.totalorder %v506_v23, 1 }
  0x1c   : > { %v477_v62 = vsel %vm9283_vm1, %v464_v60, 0.0  ;;  %v468_v63 = vsel %vm9283_vm1, %v461_v61, 0.0  ;;  %v746_v14 = vmul.u32 3, %v745_v12  ;;  %v1136_v15 = vand.u32 3, %v4993_v9 }
  0x1d   : > { %v297_v24 = vld [vmem:[#allocation2 + $0x9] sm:$0xff]  ;;  %478 = vadd.xlane.f32.xlu1 %v477_v62  ;;  %v483_v2 = vsel %vm9283_vm1, %v466_v1, 0.0 }
  0x1e   : > { %v304_v25 = vld [vmem:[#allocation2 + $0xa] sm:$0xff]  ;;  %v302_v27 = vmul.f32 %v301_v18, %v297_v24  ;;  %v5071_v17 = vmul.u32.u64.low 3817748708, %v5064_v13  ;;  %v5072_v18 = vmul.u32.u64.high 3817748708, %v5064_v13, %v5071_v17  ;;  %v747_v20 = vsub.s32 %v5049_v3, %v746_v14 }
  0x1f   : > { %v311_v26 = vld [vmem:[#allocation2 + $0xb] sm:$0xff]  ;;  %v309_v28 = vmul.f32 %v308_v19, %v304_v25  ;;  %v2558_v19 = vshrl.u32 %v5060_v11, 3  ;;  %v734_v24 = vshrl.u32 %v5068_v16, 1 }
  0x20   : > { %v318_v31 = vld [vmem:[#allocation2 + $0xc] sm:$0xff]  ;;  %v303_v32 = vadd.f32 %v302_v27, %v296_v21  ;;  %v316_v33 = vmul.f32 %v315_v22, %v311_v26  ;;  %v1684_v21 = vshrl.u32 %v5053_v6, 2  ;;  %vm784_vm3 = vcmp.ne.s32.totalorder %v747_v20, 0 }
  0x21   : > { %v325_v36 = vld [vmem:[#allocation2 + $0xd] sm:$0xff]  ;;  %v323_v38 = vmul.f32 %v322_v29, %v318_v31  ;;  %469 = vadd.xlane.f32.xlu1 %v468_v63  ;;  %v2559_v22 = vmul.u32 9, %v2558_v19  ;;  %vm789_vm4 = vcmp.lt.s32.totalorder %v747_v20, 0  ;;  %v2569_v25 = vshrl.u32 %v5072_v18, 3 }
  0x22   : > { %v310_v37 = vadd.f32 %v309_v28, %v303_v32  ;;  %v332_v40 = vld [vmem:[#allocation2 + $0xe] sm:$0xff]  ;;  %v330_v42 = vmul.f32 %v329_v34, %v325_v36  ;;  %v799_v26 = vadd.s32 3, %v747_v20  ;;  %v1685_v27 = vmul.u32 6, %v1684_v21  ;;  %vm794_vm5 = vmand %vm789_vm4, %vm784_vm3  ;;  %v449_v34 = vld [vmem:[#allocation2 + $0x20] sm:$0xff] }
  0x23   : > { %v339_v44 = vld [vmem:[#allocation2 + $0xf] sm:$0xff]  ;;  %v337_v46 = vmul.f32 %v336_v39, %v332_v40  ;;  %v2560_v28 = vsub.s32 %v5056_v7, %v2559_v22  ;;  %v463_v29 = vmul.f32 %v5038_v58, %v346_v48  ;;  %v735_v30 = vmul.u32 3, %v734_v24 }
  0x24   : > { %v317_v41 = vadd.f32 %v316_v33, %v310_v37  ;;  %v344_v50 = vmul.f32 %v343_v43, %v339_v44  ;;  %v2570_v31 = vmul.u32 9, %v2569_v25  ;;  %v804_v32 = vsel %vm794_vm5, %v799_v26, %v747_v20  ;;  %v454_v39 = vld [vmem:[#allocation2 + $0x30] sm:$0xf] }
  0x25   : > { %484 = vadd.xlane.f32.xlu1 %v483_v2  ;;  %v5083_v33 = vsub.s32 %v5049_v3, %v1685_v27  ;;  %vm2577_vm8 = vcmp.ne.s32.totalorder %v2560_v28, 0  ;;  %vm2582_vm9 = vcmp.lt.s32.totalorder %v2560_v28, 0  ;;  %v5086_v35 = vsel %vm9283_vm1, %v463_v29, 0.0 }
  0x26   : > { %v324_v45 = vadd.f32 %v323_v38, %v317_v41  ;;  %v5089_v36 = vsel %vm556_vm6, 1.0, %v9179_v8  ;;  %v5092_v37 = vsel %vm571_vm7, 1.0, %v9179_v8  ;;  %v2592_v38 = vadd.s32 9, %v2560_v28  ;;  %vm2587_vm11 = vmand %vm2582_vm9, %vm2577_vm8 }
  0x27   : > { %9655 = vst [vmem:[#allocation4_spill] sm:$0xff] %v5089_v36  ;;  %9656 = vst [vmem:[#allocation5_spill] sm:$0xff] %v5092_v37  ;;  %vm809_vm10 = vcmp.lt.s32.totalorder %v804_v32, 2  ;;  %v5095_v40 = vand.u32 3, %v5049_v3  ;;  %v736_v41 = vsub.s32 %v4993_v9, %v735_v30  ;;  %v2571_v43 = vsub.s32 %v5064_v13, %v2570_v31 }
  0x28   : > { %v331_v49 = vadd.f32 %v330_v42, %v324_v45  ;;  %v465_v42 = vmul.f32 %v5038_v58, %v449_v34  ;;  %v5101_v44 = vadd.s32 6, %v5083_v33  ;;  %v1673_v45 = vshrl.u32 %v5068_v16, 2 }
  0x29   : > { %vm824_vm12 = vcmp.ge.s32.totalorder %v804_v32, 1  ;;  %vm975_vm13 = vcmp.ge.s32.totalorder %v804_v32, 2  ;;  %v467_v48 = vmul.f32 %v5038_v58, %v454_v39  ;;  %vm960_vm14 = vcmp.lt.s32.totalorder %v804_v32, 1 }
  0x2a   : > { %v338_v51 = vadd.f32 %v337_v46, %v331_v49  ;;  %v5105_v46 = vmul.u32.u64.low 3817748708, %v5049_v3  ;;  %v5106_v47 = vmul.u32.u64.high 3817748708, %v5049_v3, %v5105_v46  ;;  %vm1193_vm15 = vcmp.lt.s32.totalorder %v5095_v40, 3 }
  0x2b   : > { %vm783_vm3 = vcmp.ne.s32.totalorder %v736_v41, 0  ;;  %vm788_vm4 = vcmp.lt.s32.totalorder %v736_v41, 0  ;;  %vm2578_vm6 = vcmp.ne.s32.totalorder %v2571_v43, 0  ;;  %vm2583_vm7 = vcmp.lt.s32.totalorder %v2571_v43, 0 }
  0x2c   : > { %v345_v53 = vadd.f32 %v344_v50, %v338_v51  ;;  %v5110_v49 = vmul.u32.u64.low 3817748708, %v4993_v9  ;;  %v5111_v50 = vmul.u32.u64.high 3817748708, %v4993_v9, %v5110_v49  ;;  %v5113_v51 = vsel %vm2587_vm11, %v2592_v38, %v2560_v28  ;;  %vm793_vm11 = vmand %vm788_vm4, %vm783_vm3 }
  0x2d   : > { %9657 = vst [vmem:[#allocation6_spill] sm:$0xff] %v5113_v51  ;;  %vm3662_vm5 = vcmp.lt.s32.totalorder %v5113_v51, 1  ;;  %vm1208_vm8 = vcmp.ge.s32.totalorder %v5095_v40, 1  ;;  %vm1359_vm9 = vcmp.ge.s32.totalorder %v5095_v40, 2  ;;  %v5125_v57 = vsel %vm809_vm10, 1.0, %v9179_v8 }
  0x2e   : > { %v352_v55 = vadd.f32 %v351_v52, %v345_v53  ;;  %v1674_v52 = vmul.u32 6, %v1673_v45  ;;  %v499_v53 = vand.u32 1, %v4993_v9  ;;  %9658 = vst [vmem:[#allocation7_spill] sm:$0xff] %v5125_v57  ;;  %v5129_v59 = vsel %vm824_vm12, 1.0, %v9179_v8 }
  0x2f   : > { %9659 = vst [vmem:[#allocation8_spill] sm:$0xff] %v5129_v59  ;;  %v5133_v60 = vsel %vm9163_vm2, %v467_v48, 0.0  ;;  %v5138_v61 = vsel %vm960_vm14, 1.0, %v9179_v8  ;;  %v5142_v62 = vsel %vm975_vm13, 1.0, %v9179_v8  ;;  %v5147_v63 = vsel %vm1193_vm15, 1.0, %v9179_v8 }
  0x30   : > { %v360_v56 = vadd.f32 %v4463_v54, %v352_v55  ;;  %v798_v54 = vadd.s32 3, %v736_v41  ;;  %v5121_v55 = vsel %vm9283_vm1, %v465_v42, 0.0  ;;  %9660 = vst [vmem:[#allocation9_spill] sm:$0xff] %v5138_v61  ;;  %9661 = vst [vmem:[#allocation10_spill] sm:$0xff] %v5142_v62  ;;  %v5152_v0 = vsel %vm3662_vm5, 1.0, %v9179_v8 }
  0x31   : > { %9662 = vst [vmem:[#allocation11_spill] sm:$0xff] %v5147_v63  ;;  %9663 = vst [vmem:[#allocation12_spill] sm:$0xff] %v5152_v0  ;;  %v5157_v1 = vsel %vm1208_vm8, 1.0, %v9179_v8  ;;  %v5162_v2 = vsel %vm1359_vm9, 1.0, %v9179_v8  ;;  %v1675_v4 = vsub.s32 %v4993_v9, %v1674_v52  ;;  %vm1510_vm10 = vcmp.ge.s32.totalorder %v5095_v40, 3 }
  0x32   : > { %4710 = vmatmul.mubr.msk.f32.vlgmr.msra.gmra.mrb[0].mxu0 %vm9283_vm1, %v360_v56  ;;  %v2593_v56 = vadd.s32 9, %v2571_v43  ;;  %9664 = vst [vmem:[#allocation13_spill] sm:$0xff] %v5157_v1  ;;  %9665 = vst [vmem:[#allocation14_spill] sm:$0xff] %v5162_v2  ;;  %vm5166_vm12 = vcmp.lt.s32.totalorder %v499_v53, 1  ;;  %v803_v10 = vsel %vm793_vm11, %v798_v54, %v736_v41  ;;  %v2536_v11 = vshrl.u32 %v5106_v47, 3 }
  0x33   : > { %4747 = vmatprep.mubr.msk.f32.mxu0 %vm9161_vm0, %v9179_v8  ;;  %vm2588_vm0 = vmand %vm2583_vm7, %vm2578_vm6  ;;  %vm1344_vm13 = vcmp.lt.s32.totalorder %v5095_v40, 2  ;;  %vm570_vm14 = vcmp.ge.s32.totalorder %v499_v53, 1  ;;  %v2525_v14 = vshrl.u32 %v5111_v50, 3  ;;  %vm1495_vm3 = vcmp.lt.s32.totalorder %v5095_v40, 1  ;;  %v4464_v52 = vld [vmem:[%s9157_s4] ss:$0 sm:$0xff] }
  0x34   : > { %v5171_v12 = vsel %vm2588_vm0, %v2593_v56, %v2571_v43  ;;  %vm1723_vm4 = vcmp.ne.s32.totalorder %v5083_v33, 0  ;;  %vm1728_vm5 = vcmp.lt.s32.totalorder %v5083_v33, 0  ;;  %vm808_vm6 = vcmp.lt.s32.totalorder %v803_v10, 2 }
  0x35   : > { %9668 = vst [vmem:[#allocation15_spill] sm:$0xff] %v5171_v12  ;;  %vm3663_vm15 = vcmp.lt.s32.totalorder %v5171_v12, 1  ;;  %vm1722_vm7 = vcmp.ne.s32.totalorder %v1675_v4, 0  ;;  %vm1727_vm8 = vcmp.lt.s32.totalorder %v1675_v4, 0  ;;  %v5181_v16 = vsel %vm1344_vm13, 1.0, %v9179_v8  ;;  %vm1733_vm0 = vmand %vm1728_vm5, %vm1723_vm4 }
  0x36   : > { %9669 = vst [vmem:[#allocation16_spill] sm:$0xff] %v5181_v16  ;;  %v5186_v17 = vsel %vm1510_vm10, 1.0, %v9179_v8  ;;  %v5191_v18 = vsel %vm5166_vm12, 1.0, %v9179_v8  ;;  %v2537_v19 = vmul.u32 9, %v2536_v11  ;;  %v5194_v20 = vsel %vm3663_vm15, 1.0, %v9179_v8  ;;  %vm1732_vm10 = vmand %vm1727_vm8, %vm1722_vm7 }
  0x37   : > { %9670 = vst [vmem:[#allocation17_spill] sm:$0xff] %v5186_v17  ;;  %9671 = vst [vmem:[#allocation18_spill] sm:$0xff] %v5191_v18  ;;  %v5197_v21 = vsel %vm570_vm14, 1.0, %v9179_v8  ;;  %v1737_v22 = vadd.s32 6, %v1675_v4  ;;  %v2526_v23 = vmul.u32 9, %v2525_v14  ;;  %v5202_v24 = vsel %vm1495_vm3, 1.0, %v9179_v8 }
  0x38   : > { %9672 = vst [vmem:[#allocation19_spill] sm:$0xff] %v5194_v20  ;;  %9673 = vst [vmem:[#allocation20_spill] sm:$0xff] %v5197_v21  ;;  %v5205_v25 = vsel %vm808_vm6, 1.0, %v9179_v8  ;;  %vm823_vm9 = vcmp.ge.s32.totalorder %v803_v10, 1  ;;  %vm959_vm11 = vcmp.lt.s32.totalorder %v803_v10, 1  ;;  %vm974_vm12 = vcmp.ge.s32.totalorder %v803_v10, 2 }
  0x39   : > { %9674 = vst [vmem:[#allocation21_spill] sm:$0xff] %v5202_v24  ;;  %9675 = vst [vmem:[#allocation22_spill] sm:$0xff] %v5205_v25  ;;  %vm1192_vm13 = vcmp.lt.s32.totalorder %v1136_v15, 3  ;;  %vm1207_vm15 = vcmp.ge.s32.totalorder %v1136_v15, 1  ;;  %vm1343_vm14 = vcmp.lt.s32.totalorder %v1136_v15, 2  ;;  %vm1358_vm2 = vcmp.ge.s32.totalorder %v1136_v15, 2 }
  0x3a   : > { %vm1494_vm4 = vcmp.lt.s32.totalorder %v1136_v15, 1  ;;  %v5210_v26 = vsel %vm1733_vm0, %v5101_v44, %v5083_v33  ;;  %v2538_v27 = vsub.s32 %v5049_v3, %v2537_v19  ;;  %v5214_v28 = vsel %vm823_vm9, 1.0, %v9179_v8 }
  0x3b   : > { %9676 = vst [vmem:[#allocation23_spill] sm:$0xff] %v5214_v28  ;;  %vm1509_vm3 = vcmp.ge.s32.totalorder %v1136_v15, 3  ;;  %v5216_v29 = vsel %vm1732_vm10, %v1737_v22, %v1675_v4  ;;  %v2527_v30 = vsub.s32 %v4993_v9, %v2526_v23  ;;  %v5220_v31 = vsel %vm959_vm11, 1.0, %v9179_v8 }
  0x3c   : > { %9677 = vst [vmem:[#allocation24_spill] sm:$0xff] %v5220_v31  ;;  %v5223_v32 = vsel %vm974_vm12, 1.0, %v9179_v8  ;;  %v5226_v34 = vsel %vm1192_vm13, 1.0, %v9179_v8  ;;  %v5229_v33 = vsel %vm1207_vm15, 1.0, %v9179_v8  ;;  %v5232_v3 = vsel %vm1343_vm14, 1.0, %v9179_v8 }
  0x3d   : > { %9678 = vst [vmem:[#allocation25_spill] sm:$0xff] %v5223_v32  ;;  %9679 = vst [vmem:[#allocation26_spill] sm:$0xff] %v5226_v34  ;;  %v5235_v38 = vsel %vm1358_vm2, 1.0, %v9179_v8  ;;  %v5238_v39 = vsel %vm1494_vm4, 1.0, %v9179_v8  ;;  %vm1748_vm5 = vcmp.lt.s32.totalorder %v5210_v26, 5  ;;  %v5242_v40 = vsel %vm1509_vm3, 1.0, %v9179_v8 }
  0x3e   : > { %9680 = vst [vmem:[#allocation27_spill] sm:$0xff] %v5229_v33  ;;  %9681 = vst [vmem:[#allocation28_spill] sm:$0xff] %v5232_v3  ;;  %vm1747_vm6 = vcmp.lt.s32.totalorder %v5216_v29, 5  ;;  %vm2575_vm7 = vcmp.ne.s32.totalorder %v2538_v27, 0  ;;  %vm2580_vm8 = vcmp.lt.s32.totalorder %v2538_v27, 0  ;;  %vm1762_vm0 = vcmp.ge.s32.totalorder %v5216_v29, 1 }
  0x3f   : > { %9682 = vst [vmem:[#allocation29_spill] sm:$0xff] %v5235_v38  ;;  %9683 = vst [vmem:[#allocation30_spill] sm:$0xff] %v5238_v39  ;;  %vm1763_vm9 = vcmp.ge.s32.totalorder %v5210_v26, 1  ;;  %vm2574_vm11 = vcmp.ne.s32.totalorder %v2527_v30, 0  ;;  %vm2579_vm10 = vcmp.lt.s32.totalorder %v2527_v30, 0  ;;  %v5248_v41 = vsel %vm1748_vm5, 1.0, %v9179_v8 }
  0x40   : > { %9684 = vst [vmem:[#allocation31_spill] sm:$0xff] %v5242_v40  ;;  %9685 = vst [vmem:[#allocation32_spill] sm:$0xff] %v5248_v41  ;;  %vm1898_vm2 = vcmp.lt.s32.totalorder %v5216_v29, 4  ;;  %vm1913_vm12 = vcmp.ge.s32.totalorder %v5216_v29, 2  ;;  %vm1914_vm13 = vcmp.ge.s32.totalorder %v5210_v26, 2  ;;  %vm1899_vm15 = vcmp.lt.s32.totalorder %v5210_v26, 4 }
  0x41   : > { %vm2049_vm14 = vcmp.lt.s32.totalorder %v5216_v29, 3  ;;  %vm5255_vm4 = vmand %vm2580_vm8, %vm2575_vm7  ;;  %v2589_v43 = vadd.s32 9, %v2527_v30  ;;  %v2590_v44 = vadd.s32 9, %v2538_v27  ;;  %v5262_v45 = vsel %vm1747_vm6, 1.0, %v9179_v8 }
  0x42   : > { %9688 = vst [vmem:[#allocation33_spill] sm:$0xff] %v5262_v45  ;;  %v5265_v46 = vsel %vm1762_vm0, 1.0, %v9179_v8  ;;  %v5268_v47 = vsel %vm1763_vm9, 1.0, %v9179_v8  ;;  %vm2064_vm3 = vcmp.ge.s32.totalorder %v5216_v29, 3  ;;  %vm2584_vm5 = vmand %vm2579_vm10, %vm2574_vm11  ;;  %v5273_v48 = vsel %vm1898_vm2, 1.0, %v9179_v8 }
  0x43   : > { %9689 = vst [vmem:[#allocation34_spill] sm:$0xff] %v5265_v46  ;;  %9690 = vst [vmem:[#allocation35_spill] sm:$0xff] %v5268_v47  ;;  %v5276_v49 = vsel %vm1913_vm12, 1.0, %v9179_v8  ;;  %v5279_v50 = vsel %vm1914_vm13, 1.0, %v9179_v8  ;;  %vm2065_vm6 = vcmp.ge.s32.totalorder %v5210_v26, 3  ;;  %v5286_v53 = vsel %vm1899_vm15, 1.0, %v9179_v8 }
  0x44   : > { %9691 = vst [vmem:[#allocation36_spill] sm:$0xff] %v5273_v48  ;;  %9692 = vst [vmem:[#allocation37_spill] sm:$0xff] %v5276_v49  ;;  %v5289_v54 = vsel %vm2049_vm14, 1.0, %v9179_v8  ;;  %vm2200_vm7 = vcmp.lt.s32.totalorder %v5216_v29, 2  ;;  %vm2215_vm8 = vcmp.ge.s32.totalorder %v5216_v29, 4  ;;  %v5294_v56 = vsel %vm2064_vm3, 1.0, %v9179_v8 }
  0x45   : > { %9693 = vst [vmem:[#allocation38_spill] sm:$0xff] %v5279_v50  ;;  %9694 = vst [vmem:[#allocation39_spill] sm:$0xff] %v5286_v53  ;;  %vm2216_vm0 = vcmp.ge.s32.totalorder %v5210_v26, 4  ;;  %v5297_v4 = vsel %vm2584_vm5, %v2589_v43, %v2527_v30  ;;  %v5301_v6 = vsel %vm5255_vm4, %v2590_v44, %v2538_v27  ;;  %vm2050_vm9 = vcmp.lt.s32.totalorder %v5210_v26, 3 }
  0x46   : > { %9695 = vst [vmem:[#allocation40_spill] sm:$0xff] %v5289_v54  ;;  %9696 = vst [vmem:[#allocation41_spill] sm:$0xff] %v5294_v56  ;;  %v5305_v11 = vsel %vm2065_vm6, 1.0, %v9179_v8  ;;  %vm2354_vm11 = vcmp.lt.s32.totalorder %v5216_v29, 1  ;;  %vm2369_vm10 = vcmp.ge.s32.totalorder %v5216_v29, 5  ;;  %v5310_v19 = vsel %vm2200_vm7, 1.0, %v9179_v8 }
  0x47   : > { %9697 = vst [vmem:[#allocation42_spill] sm:$0xff] %v5301_v6  ;;  %9698 = vst [vmem:[#allocation43_spill] sm:$0xff] %v5305_v11  ;;  %v5313_v22 = vsel %vm2215_vm8, 1.0, %v9179_v8  ;;  %vm2370_vm2 = vcmp.ge.s32.totalorder %v5210_v26, 5  ;;  %v5317_v23 = vsel %vm2216_vm0, 1.0, %v9179_v8  ;;  %vm2599_vm12 = vcmp.lt.s32.totalorder %v5297_v4, 8 }
  0x48   : > { %9699 = vst [vmem:[#allocation44_spill] sm:$0xff] %v5310_v19  ;;  %9700 = vst [vmem:[#allocation45_spill] sm:$0xff] %v5313_v22  ;;  %vm2600_vm13 = vcmp.lt.s32.totalorder %v5301_v6, 8  ;;  %vm2615_vm15 = vcmp.ge.s32.totalorder %v5301_v6, 1  ;;  %v5324_v27 = vsel %vm2050_vm9, 1.0, %v9179_v8  ;;  %v5327_v29 = vsel %vm2354_vm11, 1.0, %v9179_v8 }
  0x49   : > { %9701 = vst [vmem:[#allocation46_spill] sm:$0xff] %v5317_v23  ;;  %9702 = vst [vmem:[#allocation47_spill] sm:$0xff] %v5324_v27  ;;  %v5330_v30 = vsel %vm2369_vm10, 1.0, %v9179_v8  ;;  %vm2614_vm14 = vcmp.ge.s32.totalorder %v5297_v4, 1  ;;  %vm2201_vm4 = vcmp.lt.s32.totalorder %v5210_v26, 2  ;;  %v5335_v42 = vsel %vm2370_vm2, 1.0, %v9179_v8 }
  0x4a   : > { %9703 = vst [vmem:[#allocation48_spill] sm:$0xff] %v5327_v29  ;;  %9704 = vst [vmem:[#allocation49_spill] sm:$0xff] %v5330_v30  ;;  %vm2750_vm3 = vcmp.lt.s32.totalorder %v5297_v4, 7  ;;  %vm2765_vm5 = vcmp.ge.s32.totalorder %v5297_v4, 2  ;;  %v5340_v43 = vsel %vm2599_vm12, 1.0, %v9179_v8  ;;  %v5343_v44 = vsel %vm2600_vm13, 1.0, %v9179_v8 }
  0x4b   : > { %9705 = vst [vmem:[#allocation50_spill] sm:$0xff] %v5335_v42  ;;  %9706 = vst [vmem:[#allocation51_spill] sm:$0xff] %v5340_v43  ;;  %vm2766_vm6 = vcmp.ge.s32.totalorder %v5301_v6, 2  ;;  %vm2751_vm7 = vcmp.lt.s32.totalorder %v5301_v6, 7  ;;  %vm2901_vm8 = vcmp.lt.s32.totalorder %v5297_v4, 6  ;;  %vm2916_vm0 = vcmp.ge.s32.totalorder %v5297_v4, 3 }
  0x4c   : > { %9707 = vst [vmem:[#allocation52_spill] sm:$0xff] %v5343_v44  ;;  %v5362_v5 = vsel %vm2765_vm5, 1.0, %v9179_v8  ;;  %vm2917_vm9 = vcmp.ge.s32.totalorder %v5301_v6, 3  ;;  %v5366_v20 = vadd.s32 16, %v4993_v9  ;;  %vm2355_vm11 = vcmp.lt.s32.totalorder %v5210_v26, 1 }
  0x4d   : > { %9712 = vst [vmem:[#allocation57_spill] sm:$0xff] %v5362_v5  ;;  %v5370_v0 = vsel %vm2766_vm6, 1.0, %v9179_v8  ;;  %vm3052_vm10 = vcmp.lt.s32.totalorder %v5297_v4, 5  ;;  %v5380_v5 = vsel %vm2916_vm0, 1.0, %v9179_v8  ;;  %vm3067_vm2 = vcmp.ge.s32.totalorder %v5297_v4, 4 }
  0x4e   : > { %9713 = vst [vmem:[#allocation58_spill] sm:$0xff] %v5370_v0  ;;  %9716 = vst [vmem:[#allocation61_spill] sm:$0xff] %v5380_v5  ;;  %v5384_v44 = vmul.u32.u64.low 3817748708, %v5366_v20  ;;  %v5385_v26 = vmul.u32.u64.high 3817748708, %v5366_v20, %v5384_v44  ;;  %v5388_v0 = vsel %vm2917_vm9, 1.0, %v9179_v8  ;;  %vm3068_vm12 = vcmp.ge.s32.totalorder %v5301_v6, 4 }
  0x4f   : > { %9717 = vst [vmem:[#allocation62_spill] sm:$0xff] %v5388_v0  ;;  %v5393_v43 = vsel %vm2355_vm11, 1.0, %v9179_v8  ;;  %vm2902_vm13 = vcmp.lt.s32.totalorder %v5301_v6, 6  ;;  %v5400_v5 = vsel %vm3067_vm2, 1.0, %v9179_v8  ;;  %vm3364_vm5 = vcmp.ge.s32.totalorder %v5297_v4, 6 }
  0x50   : > { %9718 = vst [vmem:[#allocation63_spill] sm:$0xff] %v5393_v43  ;;  %9720 = vst [vmem:[#allocation65_spill] sm:$0xff] %v5400_v5  ;;  %v5418_v5 = vmul.u32.u64.low 2863311531, %v5056_v7  ;;  %v5419_v43 = vmul.u32.u64.high 2863311531, %v5056_v7, %v5418_v5  ;;  %vm3365_vm6 = vcmp.ge.s32.totalorder %v5301_v6, 6  ;;  %vm3199_vm0 = vcmp.lt.s32.totalorder %v5301_v6, 4 }
  0x51   : > { %vm3519_vm9 = vcmp.ge.s32.totalorder %v5297_v4, 7  ;;  %vm3520_vm11 = vcmp.ge.s32.totalorder %v5301_v6, 7 }
 0x105   : > { %v441_v10 = vpop.f32.mrb[0].mxu0 }
 0x106   : > { %v442_v14 = vadd.f32 %v4464_v52, %v441_v10  ;;  %v4711_v15 = vpop.f32.mrb[1].mxu0  ;;  %v5346_v52 = vsel %vm2615_vm15, 1.0, %v9179_v8  ;;  %v5350_v10 = vsel %vm2614_vm14, 1.0, %v9179_v8  ;;  %vm3198_vm15 = vcmp.lt.s32.totalorder %v5297_v4, 4 }
 0x107   : > { %9708 = vst [vmem:[#allocation53_spill] sm:$0xff] %v5346_v52  ;;  %9709 = vst [vmem:[#allocation54_spill] sm:$0xff] %v5350_v10  ;;  %v5359_v15 = vsel %vm2750_vm3, 1.0, %v9179_v8  ;;  %v5374_v52 = vsel %vm2751_vm7, 1.0, %v9179_v8  ;;  %vm3213_vm14 = vcmp.ge.s32.totalorder %v5297_v4, 5  ;;  %vm3349_vm3 = vcmp.lt.s32.totalorder %v5297_v4, 3 }
 0x108   : > { %445 = vst.msk [vmem:[#allocation2 + $0x8] sm:$0xff] %vm9283_vm1, %v442_v14  ;;  %v5356_v14 = vsel %vm2201_vm4, 1.0, %v9179_v8  ;;  %9711 = vst [vmem:[#allocation56_spill] sm:$0xff] %v5359_v15  ;;  %v5377_v15 = vsel %vm2901_vm8, 1.0, %v9179_v8  ;;  %vm3214_vm4 = vcmp.ge.s32.totalorder %v5301_v6, 5  ;;  %vm3504_vm7 = vcmp.lt.s32.totalorder %v5297_v4, 2 }
 0x109   : > { %9710 = vst [vmem:[#allocation55_spill] sm:$0xff] %v5356_v14  ;;  %9714 = vst [vmem:[#allocation59_spill] sm:$0xff] %v5374_v52  ;;  %vm3053_vm8 = vcmp.lt.s32.totalorder %v5301_v6, 5 }
 0x10a   : > { %9715 = vst [vmem:[#allocation60_spill] sm:$0xff] %v5377_v15  ;;  %v5397_v15 = vsel %vm3052_vm10, 1.0, %v9179_v8  ;;  %v2547_v8 = vshrl.u32 %v5385_v26, 3 }
 0x10b   : > { %9719 = vst [vmem:[#allocation64_spill] sm:$0xff] %v5397_v15  ;;  %v5412_v15 = vmul.u32.u64.low 2863311531, %v5064_v13  ;;  %v5413_v0 = vmul.u32.u64.high 2863311531, %v5064_v13, %v5412_v15 }
 0x10f   : > { %v446_v9 = vld [vmem:[#allocation2 + $0x8] sm:$0xff] }
 0x110   : > { %v462_v52 = vmul.f32 %v5038_v58, %v446_v9  ;;  %v5407_v58 = vmul.u32.u64.low 2863311531, %v5366_v20  ;;  %v5408_v9 = vmul.u32.u64.high 2863311531, %v5366_v20, %v5407_v58 }
 0x112   : > { %v471_v44 = vsel %vm9283_vm1, %v462_v52, 0.0  ;;  %v9721_v52 = vmov 0.0   ;;  %v756_v58 = vshrl.u32 %v5408_v9, 1 }
 0x113   : > { %472 = vadd.xlane.f32.xlu0 %v471_v44  ;;  %v5424_v42 = vsel %vm2902_vm13, 1.0, %v9721_v52  ;;  %v2548_v44 = vmul.u32 9, %v2547_v8  ;;  %v5430_v15 = vsel %vm3068_vm12, 1.0, %v9721_v52  ;;  %v5435_v26 = vsel %vm3198_vm15, 1.0, %v9721_v52 }
 0x114   : > { %9722 = vst [vmem:[#allocation66_spill] sm:$0xff] %v5424_v42  ;;  %9723 = vst [vmem:[#allocation67_spill] sm:$0xff] %v5430_v15  ;;  %v5440_v5 = vsel %vm3213_vm14, 1.0, %v9721_v52  ;;  %v5446_v8 = vsel %vm3214_vm4, 1.0, %v9721_v52  ;;  %v5451_v15 = vsel %vm3349_vm3, 1.0, %v9721_v52  ;;  %v5454_v42 = vsel %vm3364_vm5, 1.0, %v9721_v52 }
 0x115   : > { %9724 = vst [vmem:[#allocation68_spill] sm:$0xff] %v5435_v26  ;;  %9725 = vst [vmem:[#allocation69_spill] sm:$0xff] %v5440_v5  ;;  %v1717_v26 = vshrl.u32 %v5413_v0, 2  ;;  %v2549_v5 = vsub.s32 %v5366_v20, %v2548_v44  ;;  %v5460_v29 = vsel %vm3365_vm6, 1.0, %v9721_v52  ;;  %vm3350_vm12 = vcmp.lt.s32.totalorder %v5301_v6, 3 }
 0x116   : > { %9726 = vst [vmem:[#allocation70_spill] sm:$0xff] %v5446_v8  ;;  %9727 = vst [vmem:[#allocation71_spill] sm:$0xff] %v5451_v15  ;;  %v5467_v15 = vpop.xlane.xlu1 %478  ;;  %v757_v44 = vmul.u32 3, %v756_v58  ;;  %vm3505_vm13 = vcmp.lt.s32.totalorder %v5301_v6, 2  ;;  %vm3659_vm15 = vcmp.lt.s32.totalorder %v5297_v4, 1  ;;  %vm3674_vm14 = vcmp.ge.s32.totalorder %v5297_v4, 8 }
 0x117   : > { %9728 = vst [vmem:[#allocation72_spill] sm:$0xff] %v5454_v42  ;;  %475 = vadd.xlane.f32.xlu0 %v5086_v35  ;;  %9729 = vst [vmem:[#allocation73_spill] sm:$0xff] %v5460_v29  ;;  %v1718_v35 = vmul.u32 6, %v1717_v26  ;;  %vm2576_vm10 = vcmp.ne.s32.totalorder %v2549_v5, 0  ;;  %vm2581_vm2 = vcmp.lt.s32.totalorder %v2549_v5, 0  ;;  %v767_v29 = vshrl.u32 %v5419_v43, 1 }
 0x118   : > { %v2591_v8 = vadd.s32 9, %v2549_v5  ;;  %v5477_v42 = vsel %vm3504_vm7, 1.0, %v9721_v52  ;;  %v5480_v26 = vsel %vm3519_vm9, 1.0, %v9721_v52  ;;  %vm2586_vm4 = vmand %vm2581_vm2, %vm2576_vm10  ;;  %vm2617_vm3 = vcmp.ge.s32.totalorder %v5113_v51, 1 }
 0x119   : > { %9730 = vst [vmem:[#allocation74_spill] sm:$0xff] %v5477_v42  ;;  %9731 = vst [vmem:[#allocation75_spill] sm:$0xff] %v5480_v26  ;;  %v5487_v58 = vsel %vm3053_vm8, 1.0, %v9721_v52  ;;  %v5497_v42 = vsel %vm3520_vm11, 1.0, %v9721_v52  ;;  %v1719_v4 = vsub.s32 %v5064_v13, %v1718_v35  ;;  %v5503_v26 = vsel %vm3350_vm12, 1.0, %v9721_v52 }
 0x11a   : > { %9732 = vst [vmem:[#allocation76_spill] sm:$0xff] %v5487_v58  ;;  %9734 = vst [vmem:[#allocation78_spill] sm:$0xff] %v5497_v42  ;;  %v5506_v10 = vsel %vm3505_vm13, 1.0, %v9721_v52  ;;  %v5509_v58 = vsel %vm3659_vm15, 1.0, %v9721_v52  ;;  %v5511_v14 = vpop.xlane.xlu1 %469  ;;  %v5516_v19 = vmul.u32 3, %v767_v29  ;;  %v5520_v42 = vsel %vm3674_vm14, 1.0, %v9721_v52 }
 0x11b   : > { %481 = vadd.xlane.f32.xlu0 %v5121_v55  ;;  %v5492_v55 = vsel %vm3199_vm0, 1.0, %v9721_v52  ;;  %9735 = vst [vmem:[#allocation79_spill] sm:$0xff] %v5503_v26  ;;  %9736 = vst [vmem:[#allocation80_spill] sm:$0xff] %v5506_v10  ;;  %v5523_v6 = vsel %vm2586_vm4, %v2591_v8, %v2549_v5  ;;  %v5526_v10 = vsel %vm2617_vm3, 1.0, %v9721_v52  ;;  %vm2768_vm5 = vcmp.ge.s32.totalorder %v5113_v51, 2 }
 0x11c   : > { %9733 = vst [vmem:[#allocation77_spill] sm:$0xff] %v5492_v55  ;;  %9737 = vst [vmem:[#allocation81_spill] sm:$0xff] %v5509_v58  ;;  %v5514_v55 = vsub.s32 %v5366_v20, %v757_v44  ;;  %v4657_v44 = vld [vmem:[#allocation3] ss:$0 sm:$0xff]  ;;  %vm2919_vm6 = vcmp.ge.s32.totalorder %v5113_v51, 3  ;;  %vm3070_vm7 = vcmp.ge.s32.totalorder %v5113_v51, 4 }
 0x11d   : > { %9738 = vst [vmem:[#allocation82_spill] sm:$0xff] %v5520_v42  ;;  %9739 = vst [vmem:[#allocation83_spill] sm:$0xff] %v5523_v6  ;;  %v9206_v29 = vmov 0   ;;  %vm1726_vm8 = vcmp.ne.s32.totalorder %v1719_v4, 0  ;;  %vm1731_vm0 = vcmp.lt.s32.totalorder %v1719_v4, 0  ;;  %vm2602_vm9 = vcmp.lt.s32.totalorder %v5113_v51, 8 }
 0x11e   : > { %9740 = vst [vmem:[#allocation84_spill] sm:$0xff] %v5526_v10  ;;  %4825 = vset.pattern.permute.xlu1 %v9206_v29  ;;  %vm2603_vm11 = vcmp.lt.s32.totalorder %v5171_v12, 8  ;;  %v5537_v5 = vsel %vm2602_vm9, 1.0, %v9721_v52  ;;  %v5548_v26 = vsel %vm2768_vm5, 1.0, %v9721_v52  ;;  %v5555_v42 = vpop.xlane.xlu1 %484  ;;  %vm620_vm10 = vcmask 1040384   ;;  %vm1736_vm2 = vmand %vm1731_vm0, %vm1726_vm8 }
 0x11f   : > { %487 = vadd.xlane.f32.xlu0 %v5133_v60  ;;  %3881 = vperm.xlu1 %4825, %v4657_v44   ;;  %v1741_v60 = vadd.s32 6, %v1719_v4  ;;  %9741 = vst [vmem:[#allocation85_spill] sm:$0xff] %v5537_v5  ;;  %v5540_v8 = vsel %vm2603_vm11, 1.0, %v9721_v52  ;;  %v9216_v58 = vrot.slane %v5537_v5, 7  ;;  %9743 = vst [vmem:[#allocation87_spill] sm:$0xff] %v5548_v26  ;;  %v5553_v44 = vsel %vm2919_vm6, 1.0, %v9721_v52 }
 0x120   : > { %9742 = vst [vmem:[#allocation86_spill] sm:$0xff] %v5540_v8  ;;  %v2661_v29 = vrot.slane %v5540_v8, 7  ;;  %9744 = vst [vmem:[#allocation88_spill] sm:$0xff] %v5553_v44  ;;  %vm2618_vm12 = vcmp.ge.s32.totalorder %v5171_v12, 1  ;;  %vm2753_vm13 = vcmp.lt.s32.totalorder %v5113_v51, 7  ;;  %vm2754_vm15 = vcmp.lt.s32.totalorder %v5171_v12, 7 }
 0x121   : > { %9745 = vst [vmem:[#allocation89_spill] sm:$0xff] %v5555_v42  ;;  %v5562_v35 = vsel %vm2618_vm12, 1.0, %v9721_v52  ;;  %v5568_v30 = vsel %vm2753_vm13, 1.0, %v9721_v52  ;;  %v5573_v23 = vsel %vm3070_vm7, 1.0, %v9721_v52  ;;  %vm645_vm14 = vcmask 1046528  }
 0x122   : > { %9746 = vst [vmem:[#allocation90_spill] sm:$0xff] %v5562_v35  ;;  %v2662_v8 = vsel %vm620_vm10, %v9216_v58, %v2661_v29  ;;  %9747 = vst [vmem:[#allocation91_spill] sm:$0xff] %v5568_v30  ;;  %vm9438_vm4 = vcmask 1041408   ;;  %v5579_v27 = vsel %vm2754_vm15, 1.0, %v9721_v52  ;;  %vm1049_vm3 = vcmask 1045504  }
 0x123   : > { %9748 = vst [vmem:[#allocation92_spill] sm:$0xff] %v5573_v23  ;;  %v5576_v22 = vmul.f32 %v2662_v8, %v5555_v42  ;;  %9750 = vst [vmem:[#allocation94_spill] sm:$0xff] %v5579_v27  ;;  %v5581_v5 = vsel %vm1736_vm2, %v1741_v60, %v1719_v4  ;;  %v2709_v29 = vrot.slane %v5562_v35, 1  ;;  %vm2769_vm5 = vcmp.ge.s32.totalorder %v5171_v12, 2 }
 0x124   : > { %9751 = vst [vmem:[#allocation95_spill] sm:$0xff] %v5581_v5  ;;  %vm2904_vm6 = vcmp.lt.s32.totalorder %v5113_v51, 6  ;;  %vm2358_vm7 = vcmp.lt.s32.totalorder %v5581_v5, 1  ;;  %v2812_v54 = vrot.slane %v5579_v27, 6  ;;  %vm2905_vm8 = vcmp.lt.s32.totalorder %v5171_v12, 6 }
 0x125   : > { %9749 = vst [vmem:[#allocation93_spill] sm:$0xff] %v5576_v22  ;;  %vm1559_vm0 = vcmask 1042432   ;;  %v5591_v8 = vsel %vm2769_vm5, 1.0, %v9721_v52  ;;  %v5595_v60 = vsel %vm2904_vm6, 1.0, %v9721_v52  ;;  %v5599_v11 = vsel %vm2905_vm8, 1.0, %v9721_v52 }
 0x126   : > { %9752 = vst [vmem:[#allocation96_spill] sm:$0xff] %v5591_v8  ;;  %9753 = vst [vmem:[#allocation97_spill] sm:$0xff] %v5595_v60  ;;  %vm2920_vm9 = vcmp.ge.s32.totalorder %v5171_v12, 3  ;;  %v5604_v27 = vsel %vm2358_vm7, 1.0, %v9721_v52  ;;  %v5607_v5 = vmul.f32 %v2709_v29, %v5555_v42  ;;  %vm1584_vm11 = vcmask 1044480  }
 0x127   : > { %9754 = vst [vmem:[#allocation98_spill] sm:$0xff] %v5599_v11  ;;  %9755 = vst [vmem:[#allocation99_spill] sm:$0xff] %v5604_v27  ;;  %v5610_v4 = vsel %vm2920_vm9, 1.0, %v9721_v52  ;;  %v9758_v35 = vrot.slane %v5568_v30, 6  ;;  %v2860_v50 = vrot.slane %v5591_v8, 2  ;;  %v2963_v56 = vrot.slane %v5599_v11, 5 }
 0x128   : > { %9756 = vst [vmem:[#allocation100_spill] sm:$0xff] %v5607_v5  ;;  %9757 = vst [vmem:[#allocation101_spill] sm:$0xff] %v5610_v4  ;;  %v3011_v41 = vrot.slane %v5610_v4, 3  ;;  %vm3055_vm2 = vcmp.lt.s32.totalorder %v5113_v51, 5  ;;  %vm3056_vm12 = vcmp.lt.s32.totalorder %v5171_v12, 5  ;;  %vm3200_vm13 = vcmp.lt.s32.totalorder %v5523_v6, 4 }
 0x129   : > { %v2813_v48 = vsel %vm9438_vm4, %v9758_v35, %v2812_v54  ;;  %v9759_v30 = vrot.slane %v5576_v22, 1  ;;  %v9761_v35 = vrot.slane %v5526_v10, 1  ;;  %v527_v4 = vand.u32 1, %v5064_v13 }
 0x12a   : > { %vm9284_vm15 = vcmask 1043456   ;;  %v5636_v11 = vmul.f32 %v2813_v48, %v5555_v42  ;;  %v9764_v8 = vrot.slane %v5595_v60, 5  ;;  %v5642_v27 = vsel %vm3055_vm2, 1.0, %v9721_v52 }
 0x12b   : > { %v5627_v54 = vadd.f32 %v9759_v30, %v5555_v42  ;;  %v5632_v58 = vsel %vm645_vm14, %v9761_v35, %v2709_v29  ;;  %9765 = vst [vmem:[#allocation105_spill] sm:$0xff] %v5642_v27  ;;  %vm3071_vm5 = vcmp.ge.s32.totalorder %v5171_v12, 4  ;;  %v9766_v29 = vrot.slane %v5548_v26, 2 }
 0x12c   : > { %9762 = vst [vmem:[#allocation103_spill] sm:$0xff] %v5632_v58  ;;  %9763 = vst [vmem:[#allocation104_spill] sm:$0xff] %v5636_v11  ;;  %v2964_v53 = vsel %vm1559_vm0, %v9764_v8, %v2963_v56  ;;  %v5652_v22 = vsel %vm3056_vm12, 1.0, %v9721_v52  ;;  %vm3201_vm6 = vcmp.lt.s32.totalorder %v5113_v51, 4  ;;  %v5656_v48 = vmul.f32 %v2860_v50, %v5555_v42 }
 0x12d   : > { %9760 = vst [vmem:[#allocation102_spill] sm:$0xff] %v5627_v54  ;;  %v5649_v35 = vsel %vm1049_vm3, %v9766_v29, %v2860_v50  ;;  %9768 = vst [vmem:[#allocation107_spill] sm:$0xff] %v5652_v22  ;;  %v5659_v56 = vmul.f32 %v3011_v41, %v5555_v42  ;;  %vm3202_vm7 = vcmp.lt.s32.totalorder %v5171_v12, 4  ;;  %v5663_v8 = vsel %vm3201_vm6, 1.0, %v9721_v52 }
 0x12e   : > { %9767 = vst [vmem:[#allocation106_spill] sm:$0xff] %v5649_v35  ;;  %9769 = vst [vmem:[#allocation108_spill] sm:$0xff] %v5656_v48  ;;  %v5666_v30 = vmul.f32 %v2964_v53, %v5555_v42  ;;  %v5669_v29 = vsel %vm3071_vm5, 1.0, %v9721_v52  ;;  %v5673_v26 = vsel %vm3202_vm7, 1.0, %v9721_v52  ;;  %v3114_v50 = vrot.slane %v5652_v22, 4 }
 0x12f   : > { %9770 = vst [vmem:[#allocation109_spill] sm:$0xff] %v5659_v56  ;;  %9771 = vst [vmem:[#allocation110_spill] sm:$0xff] %v5663_v8  ;;  %v3258_v10 = vrot.slane %v5663_v8, 3  ;;  %vm3352_vm8 = vcmp.lt.s32.totalorder %v5113_v51, 3  ;;  %vm3353_vm9 = vcmp.lt.s32.totalorder %v5171_v12, 3  ;;  %vm3507_vm2 = vcmp.lt.s32.totalorder %v5113_v51, 2 }
 0x130   : > { %9772 = vst [vmem:[#allocation111_spill] sm:$0xff] %v5666_v30  ;;  %9773 = vst [vmem:[#allocation112_spill] sm:$0xff] %v5669_v29  ;;  %v5681_v53 = vsel %vm3352_vm8, 1.0, %v9721_v52  ;;  %vm3508_vm12 = vcmp.lt.s32.totalorder %v5171_v12, 2  ;;  %v9776_v22 = vrot.slane %v5553_v44, 3  ;;  %v5693_v54 = vsel %vm3353_vm9, 1.0, %v9721_v52 }
 0x131   : > { %9774 = vst [vmem:[#allocation113_spill] sm:$0xff] %v5673_v26  ;;  %9775 = vst [vmem:[#allocation114_spill] sm:$0xff] %v5681_v53  ;;  %v5699_v12 = vsel %vm3507_vm2, 1.0, %v9721_v52  ;;  %v3162_v5 = vrot.slane %v5669_v29, 4  ;;  %v5704_v44 = vsel %vm3508_vm12, 1.0, %v9721_v52  ;;  %v5714_v58 = vsel %vm3200_vm13, 1.0, %v9721_v52 }
 0x132   : > { %v5690_v8 = vsel %vm1584_vm11, %v9776_v22, %v3011_v41  ;;  %9778 = vst [vmem:[#allocation116_spill] sm:$0xff] %v5693_v54  ;;  %9779 = vst [vmem:[#allocation117_spill] sm:$0xff] %v5699_v12  ;;  %v9781_v41 = vand.u32 1, %v5056_v7  ;;  %v9782_v22 = vrot.slane %v5642_v27, 4  ;;  %v9784_v51 = vrot.slane %v5673_v26, 3 }
 0x133   : > { %9777 = vst [vmem:[#allocation115_spill] sm:$0xff] %v5690_v8  ;;  %9780 = vst [vmem:[#allocation118_spill] sm:$0xff] %v5704_v44  ;;  %vm559_vm6 = vcmp.lt.s32.totalorder %v527_v4, 1  ;;  %v9785_v29 = vrot.slane %v5693_v54, 2  ;;  %v9786_v30 = vrot.slane %v5681_v53, 2  ;;  %vm574_vm9 = vcmp.ge.s32.totalorder %v527_v4, 1 }
 0x134   : > { %vm558_vm5 = vcmp.lt.s32.totalorder %v9781_v41, 1  ;;  %v3115_v35 = vsel %vm9284_vm15, %v9782_v22, %v3114_v50  ;;  %9783 = vst [vmem:[#allocation119_spill] sm:$0xff] %v5714_v58  ;;  %v3261_v60 = vsel %vm1584_vm11, %v3258_v10, %v9784_v51  ;;  %v9271_v50 = vrot.slane %v5704_v44, 1 }
 0x135   : > { %v3416_v41 = vsel %vm1049_vm3, %v9786_v30, %v9785_v29  ;;  %v9787_v22 = vand.u32 1, %v5366_v20  ;;  %v5729_v56 = vsel %vm558_vm5, 1.0, %v9721_v52  ;;  %v9790_v51 = vand.u32 1, %v5056_v7 }
 0x136   : > { %9788 = vst [vmem:[#allocation120_spill] sm:$0xff] %v5729_v56  ;;  %v5736_v53 = vmul.f32 %v3115_v35, %v5555_v42  ;;  %v5739_v30 = vmul.f32 %v3261_v60, %v5555_v42  ;;  %v5742_v29 = vsel %vm559_vm6, 1.0, %v9721_v52  ;;  %v9795_v27 = vrot.slane %v5573_v23, 4 }
 0x137   : > { %vm557_vm7 = vcmp.lt.s32.totalorder %v9787_v22, 1  ;;  %v9789_v11 = vmov %v9787_v22  ;;  %vm573_vm8 = vcmp.ge.s32.totalorder %v9790_v51, 1  ;;  %9793 = vst [vmem:[#allocation123_spill] sm:$0xff] %v5742_v29  ;;  %v5754_v4 = vmul.f32 %v3416_v41, %v5555_v42 }
 0x138   : > { %vm572_vm13 = vcmp.ge.s32.totalorder %v9789_v11, 1  ;;  %9791 = vst [vmem:[#allocation121_spill] sm:$0xff] %v5736_v53  ;;  %9792 = vst [vmem:[#allocation122_spill] sm:$0xff] %v5739_v30  ;;  %v5750_v11 = vsel %vm9284_vm15, %v9795_v27, %v3162_v5  ;;  %v5757_v35 = vsel %vm573_vm8, 1.0, %v9721_v52  ;;  %v9799_v60 = vrot.slane %v5699_v12, 1 }
 0x139   : > { %v5745_v22 = vsel %vm572_vm13, 1.0, %v9721_v52  ;;  %9796 = vst [vmem:[#allocation125_spill] sm:$0xff] %v5750_v11  ;;  %9797 = vst [vmem:[#allocation126_spill] sm:$0xff] %v5754_v4  ;;  %v5765_v26 = vsel %vm557_vm7, 1.0, %v9721_v52  ;;  %v5768_v27 = vsel %vm574_vm9, 1.0, %v9721_v52  ;;  %v626_v5 = vrot.slane %v5729_v56, 7 }
 0x13a   : > { %9794 = vst [vmem:[#allocation124_spill] sm:$0xff] %v5745_v22  ;;  %9798 = vst [vmem:[#allocation127_spill] sm:$0xff] %v5757_v35  ;;  %v3571_v54 = vsel %vm645_vm14, %v9799_v60, %v9271_v50  ;;  %v628_v41 = vrot.slane %v5742_v29, 7  ;;  %v673_v51 = vrot.slane %v5745_v22, 1  ;;  %v675_v23 = vrot.slane %v5757_v35, 1 }
 0x13b   : > { %9800 = vst [vmem:[#allocation128_spill] sm:$0xff] %v5765_v26  ;;  %9801 = vst [vmem:[#allocation129_spill] sm:$0xff] %v5768_v27  ;;  %v769_v44 = vsub.s32 %v5056_v7, %v5516_v19  ;;  %v9802_v60 = vrot.slane %v5714_v58, 3  ;;  %v9804_v56 = vshrl.u32 %v5413_v0, 1  ;;  %v5787_v22 = vmul.f32 %v3571_v54, %v5555_v42 }
 0x13c   : > { %v624_v35 = vrot.slane %v5765_v26, 7  ;;  %v9280_v19 = vrot.slane %v5768_v27, 1  ;;  %v9286_v12 = vrot.slane %v5089_v36, 7  ;;  %vm785_vm2 = vcmp.ne.s32.totalorder %v5514_v55, 0 }
 0x13d   : > { %v5780_v50 = vsel %vm1584_vm11, %v9802_v60, %v3258_v10  ;;  %v779_v11 = vmul.u32 3, %v9804_v56  ;;  %9805 = vst [vmem:[#allocation131_spill] sm:$0xff] %v5787_v22  ;;  %vm786_vm12 = vcmp.ne.s32.totalorder %v769_v44, 0  ;;  %v629_v10 = vsel %vm620_vm10, %v626_v5, %v628_v41 }
 0x13e   : > { %9803 = vst [vmem:[#allocation130_spill] sm:$0xff] %v5780_v50  ;;  %v676_v0 = vsel %vm645_vm14, %v673_v51, %v675_v23  ;;  %vm790_vm5 = vcmp.lt.s32.totalorder %v5514_v55, 0  ;;  %vm791_vm6 = vcmp.lt.s32.totalorder %v769_v44, 0  ;;  %v5798_v54 = vsel %vm620_vm10, %v624_v35, %v626_v5 }
 0x13f   : > { %v780_v53 = vsub.s32 %v5064_v13, %v779_v11  ;;  %9806 = vst [vmem:[#allocation132_spill] sm:$0xff] %v5798_v54  ;;  %vm795_vm8 = vmand %vm790_vm5, %vm785_vm2  ;;  %v800_v56 = vadd.s32 3, %v5514_v55  ;;  %v5804_v11 = vsel %vm645_vm14, %v675_v23, %v9280_v19  ;;  %v9285_v41 = vrot.slane %v5092_v37, 1 }
 0x140   : > { %9807 = vst [vmem:[#allocation133_spill] sm:$0xff] %v5804_v11  ;;  %vm796_vm9 = vmand %vm791_vm6, %vm786_vm12  ;;  %v801_v60 = vadd.s32 3, %v769_v44  ;;  %v5808_v48 = vmul.f32 %v629_v10, %v5555_v42  ;;  %v5811_v5 = vmul.f32 %v676_v0, %v5467_v15  ;;  %v625_v26 = vsel %vm620_vm10, %v9286_v12, %v624_v35 }
 0x141   : > { %vm787_vm7 = vcmp.ne.s32.totalorder %v780_v53, 0  ;;  %vm792_vm13 = vcmp.lt.s32.totalorder %v780_v53, 0  ;;  %v802_v29 = vadd.s32 3, %v780_v53  ;;  %v805_v22 = vsel %vm795_vm8, %v800_v56, %v5514_v55 }
 0x142   : > { %9808 = vst [vmem:[#allocation134_spill] sm:$0xff] %v5808_v48  ;;  %9809 = vst [vmem:[#allocation135_spill] sm:$0xff] %v5811_v5  ;;  %v5820_v23 = vsel %vm645_vm14, %v9285_v41, %v673_v51  ;;  %v806_v19 = vsel %vm796_vm9, %v801_v60, %v769_v44  ;;  %vm825_vm12 = vcmp.ge.s32.totalorder %v805_v22, 1  ;;  %vm810_vm5 = vcmp.lt.s32.totalorder %v805_v22, 2 }
 0x143   : > { %vm797_vm2 = vmand %vm792_vm13, %vm787_vm7  ;;  %vm811_vm6 = vcmp.lt.s32.totalorder %v806_v19, 2  ;;  %vm826_vm15 = vcmp.ge.s32.totalorder %v806_v19, 1  ;;  %v5823_v10 = vmul.f32 %v625_v26, %v5467_v15  ;;  %v5832_v0 = vsel %vm825_vm12, 1.0, %v9721_v52 }
 0x144   : > { %v807_v4 = vsel %vm797_vm2, %v802_v29, %v780_v53  ;;  %v5826_v35 = vsel %vm811_vm6, 1.0, %v9721_v52  ;;  %9813 = vst [vmem:[#allocation139_spill] sm:$0xff] %v5832_v0  ;;  %v5836_v53 = vsel %vm826_vm15, 1.0, %v9721_v52  ;;  %v5840_v26 = vsel %vm810_vm5, 1.0, %v9721_v52 }
 0x145   : > { %vm812_vm1 = vcmp.lt.s32.totalorder %v807_v4, 2  ;;  %9810 = vst [vmem:[#allocation136_spill] sm:$0xff] %v5823_v10  ;;  %9811 = vst [vmem:[#allocation137_spill] sm:$0xff] %v5826_v35  ;;  %vm827_vm7 = vcmp.ge.s32.totalorder %v807_v4, 1  ;;  %v868_v29 = vrot.slane %v5826_v35, 7  ;;  %v914_v56 = vrot.slane %v5832_v0, 1 }
 0x146   : > { %v5829_v55 = vsel %vm812_vm1, 1.0, %v9721_v52  ;;  %9814 = vst [vmem:[#allocation140_spill] sm:$0xff] %v5836_v53  ;;  %9815 = vst [vmem:[#allocation141_spill] sm:$0xff] %v5840_v26  ;;  %v916_v60 = vrot.slane %v5836_v53, 1  ;;  %vm962_vm1 = vcmp.lt.s32.totalorder %v806_v19, 1  ;;  %vm963_vm13 = vcmp.lt.s32.totalorder %v807_v4, 1 }
 0x147   : > { %9812 = vst [vmem:[#allocation138_spill] sm:$0xff] %v5829_v55  ;;  %v870_v51 = vrot.slane %v5829_v55, 7  ;;  %v1695_v44 = vshrl.u32 %v5408_v9, 2  ;;  %v5848_v12 = vsel %vm827_vm7, 1.0, %v9721_v52  ;;  %vm961_vm15 = vcmp.lt.s32.totalorder %v805_v22, 1 }
 0x148   : > { %9816 = vst [vmem:[#allocation142_spill] sm:$0xff] %v5848_v12  ;;  %v1706_v35 = vshrl.u32 %v5419_v43, 2  ;;  %v866_v55 = vrot.slane %v5840_v26, 7  ;;  %v5855_v53 = vsel %vm962_vm1, 1.0, %v9721_v52  ;;  %v5858_v41 = vsel %vm963_vm13, 1.0, %v9721_v52 }
 0x149   : > { %v871_v0 = vsel %vm620_vm10, %v868_v29, %v870_v51  ;;  %9817 = vst [vmem:[#allocation143_spill] sm:$0xff] %v5855_v53  ;;  %9818 = vst [vmem:[#allocation144_spill] sm:$0xff] %v5858_v41  ;;  %v917_v9 = vsel %vm645_vm14, %v914_v56, %v916_v60  ;;  %vm976_vm8 = vcmp.ge.s32.totalorder %v805_v22, 2  ;;  %vm977_vm9 = vcmp.ge.s32.totalorder %v806_v19, 2 }
 0x14a   : > { %vm978_vm2 = vcmp.ge.s32.totalorder %v807_v4, 2  ;;  %v5863_v43 = vsel %vm961_vm15, 1.0, %v9721_v52  ;;  %v5866_v30 = vsel %vm976_vm8, 1.0, %v9721_v52  ;;  %v5869_v51 = vsel %vm977_vm9, 1.0, %v9721_v52 }
 0x14b   : > { %9819 = vst [vmem:[#allocation145_spill] sm:$0xff] %v5863_v43  ;;  %9820 = vst [vmem:[#allocation146_spill] sm:$0xff] %v5866_v30  ;;  %v5872_v26 = vsel %vm978_vm2, 1.0, %v9721_v52  ;;  %v1030_v50 = vrot.slane %v5855_v53, 6  ;;  %v1032_v22 = vrot.slane %v5858_v41, 6  ;;  %v5878_v19 = vmul.f32 %v871_v0, %v5555_v42 }
 0x14c   : > { %9821 = vst [vmem:[#allocation147_spill] sm:$0xff] %v5869_v51  ;;  %9822 = vst [vmem:[#allocation148_spill] sm:$0xff] %v5872_v26  ;;  %v5881_v27 = vmul.f32 %v917_v9, %v5467_v15  ;;  %v1079_v58 = vrot.slane %v5869_v51, 2  ;;  %v1696_v5 = vmul.u32 6, %v1695_v44  ;;  %v1028_v48 = vrot.slane %v5863_v43, 6 }
 0x14d   : > { %9823 = vst [vmem:[#allocation149_spill] sm:$0xff] %v5878_v19  ;;  %v1033_v8 = vsel %vm9438_vm4, %v1030_v50, %v1032_v22  ;;  %v9306_v11 = vrot.slane %v5872_v26, 2  ;;  %v5890_v4 = vsel %vm620_vm10, %v866_v55, %v868_v29  ;;  %v1707_v0 = vmul.u32 6, %v1706_v35 }
 0x14e   : > { %9824 = vst [vmem:[#allocation150_spill] sm:$0xff] %v5881_v27  ;;  %9825 = vst [vmem:[#allocation151_spill] sm:$0xff] %v5890_v4  ;;  %v9826_v54 = vrot.slane %v5848_v12, 1  ;;  %v5899_v51 = vmul.f32 %v1033_v8, %v5555_v42  ;;  %v9829_v22 = vrot.slane %v5866_v30, 2  ;;  %v5905_v41 = vsub.s32 %v5366_v20, %v1696_v5 }
 0x14f   : > { %v5910_v9 = vsel %vm9438_vm4, %v1028_v48, %v1030_v50  ;;  %v5918_v8 = vsel %vm1049_vm3, %v1079_v58, %v9306_v11  ;;  %v9834_v29 = vrot.slane %v5138_v61, 6  ;;  %v5929_v50 = vand.u32 3, %v5366_v20 }
 0x150   : > { %v5896_v44 = vsel %vm645_vm14, %v916_v60, %v9826_v54  ;;  %9828 = vst [vmem:[#allocation153_spill] sm:$0xff] %v5899_v51  ;;  %v1080_v53 = vsel %vm1049_vm3, %v9829_v22, %v1079_v58  ;;  %9830 = vst [vmem:[#allocation154_spill] sm:$0xff] %v5910_v9  ;;  %v9831_v54 = vrot.slane %v5125_v57, 7  ;;  %v9833_v22 = vrot.slane %v5129_v59, 1 }
 0x151   : > { %9827 = vst [vmem:[#allocation152_spill] sm:$0xff] %v5896_v44  ;;  %9832 = vst [vmem:[#allocation155_spill] sm:$0xff] %v5918_v8  ;;  %v1029_v35 = vsel %vm9438_vm4, %v9834_v29, %v1028_v48  ;;  %v5932_v43 = vmul.f32 %v1080_v53, %v5467_v15  ;;  %v5938_v58 = vand.u32 3, %v5056_v7  ;;  %vm1209_vm12 = vcmp.ge.s32.totalorder %v5929_v50, 1 }
 0x152   : > { %v867_v60 = vsel %vm620_vm10, %v9831_v54, %v866_v55  ;;  %v5923_v5 = vsel %vm645_vm14, %v9833_v22, %v914_v56  ;;  %v5935_v55 = vsub.s32 %v5056_v7, %v1707_v0  ;;  %v5941_v54 = vand.u32 3, %v5064_v13 }
 0x153   : > { %9835 = vst [vmem:[#allocation156_spill] sm:$0xff] %v5932_v43  ;;  %v5945_v22 = vadd.s32 6, %v5905_v41  ;;  %v5948_v20 = vmul.f32 %v867_v60, %v5467_v15  ;;  %v5952_v48 = vmul.f32 %v1029_v35, %v5467_v15  ;;  %vm1195_vm5 = vcmp.lt.s32.totalorder %v5938_v58, 3 }
 0x154   : > { %vm1196_vm6 = vcmp.lt.s32.totalorder %v5941_v54, 3  ;;  %vm1210_vm7 = vcmp.ge.s32.totalorder %v5938_v58, 1  ;;  %v5958_v7 = vsel %vm1195_vm5, 1.0, %v9721_v52  ;;  %vm1211_vm1 = vcmp.ge.s32.totalorder %v5941_v54, 1 }
 0x155   : > { %9836 = vst [vmem:[#allocation157_spill] sm:$0xff] %v5948_v20  ;;  %9837 = vst [vmem:[#allocation158_spill] sm:$0xff] %v5952_v48  ;;  %v5961_v13 = vsel %vm1196_vm6, 1.0, %v9721_v52  ;;  %v5965_v53 = vsel %vm1209_vm12, 1.0, %v9721_v52  ;;  %v5970_v35 = vsel %vm1210_vm7, 1.0, %v9721_v52  ;;  %v1252_v60 = vrot.slane %v5958_v7, 7 }
 0x156   : > { %9838 = vst [vmem:[#allocation159_spill] sm:$0xff] %v5958_v7  ;;  %9839 = vst [vmem:[#allocation160_spill] sm:$0xff] %v5961_v13  ;;  %vm1194_vm13 = vcmp.lt.s32.totalorder %v5929_v50, 3  ;;  %v5975_v11 = vsel %vm1211_vm1, 1.0, %v9721_v52  ;;  %v1254_v56 = vrot.slane %v5961_v13, 7  ;;  %vm1360_vm15 = vcmp.ge.s32.totalorder %v5929_v50, 2 }
 0x157   : > { %9840 = vst [vmem:[#allocation161_spill] sm:$0xff] %v5965_v53  ;;  %9841 = vst [vmem:[#allocation162_spill] sm:$0xff] %v5970_v35  ;;  %v1300_v0 = vrot.slane %v5970_v35, 1  ;;  %vm1346_vm8 = vcmp.lt.s32.totalorder %v5938_v58, 2  ;;  %vm1347_vm9 = vcmp.lt.s32.totalorder %v5941_v54, 2  ;;  %v5984_v29 = vadd.s32 6, %v5935_v55 }
 0x158   : > { %9842 = vst [vmem:[#allocation163_spill] sm:$0xff] %v5975_v11  ;;  %v1255_v12 = vsel %vm620_vm10, %v1252_v60, %v1254_v56  ;;  %vm1345_vm2 = vcmp.lt.s32.totalorder %v5929_v50, 2  ;;  %v5990_v13 = vsel %vm1194_vm13, 1.0, %v9721_v52  ;;  %v5993_v26 = vsel %vm1346_vm8, 1.0, %v9721_v52 }
 0x159   : > { %9843 = vst [vmem:[#allocation164_spill] sm:$0xff] %v5990_v13  ;;  %9844 = vst [vmem:[#allocation165_spill] sm:$0xff] %v5993_v26  ;;  %v5996_v35 = vsel %vm1347_vm9, 1.0, %v9721_v52  ;;  %vm1361_vm12 = vcmp.ge.s32.totalorder %v5938_v58, 2  ;;  %v6002_v7 = vsel %vm1360_vm15, 1.0, %v9721_v52  ;;  %v9848_v20 = vrot.slane %v5866_v30, 2 }
 0x15a   : > { %9845 = vst [vmem:[#allocation166_spill] sm:$0xff] %v5996_v35  ;;  %9846 = vst [vmem:[#allocation167_spill] sm:$0xff] %v6002_v7  ;;  %v6005_v56 = vsel %vm1361_vm12, 1.0, %v9721_v52  ;;  %v9849_v8 = vrot.slane %v5142_v62, 2  ;;  %v6015_v27 = vmul.f32 %v1255_v12, %v5555_v42  ;;  %v9852_v43 = vrot.slane %v5965_v53, 1 }
 0x15b   : > { %9847 = vst [vmem:[#allocation168_spill] sm:$0xff] %v6005_v56  ;;  %v6021_v48 = vsel %vm1345_vm2, 1.0, %v9721_v52  ;;  %v1250_v19 = vrot.slane %v5990_v13, 7  ;;  %vm1362_vm5 = vcmp.ge.s32.totalorder %v5941_v54, 2  ;;  %v1403_v30 = vrot.slane %v5993_v26, 6 }
 0x15c   : > { %v6012_v9 = vsel %vm1049_vm3, %v9849_v8, %v9848_v20  ;;  %9851 = vst [vmem:[#allocation170_spill] sm:$0xff] %v6015_v27  ;;  %v1301_v51 = vsel %vm645_vm14, %v9852_v43, %v1300_v0  ;;  %9853 = vst [vmem:[#allocation171_spill] sm:$0xff] %v6021_v48  ;;  %v1405_v10 = vrot.slane %v5996_v35, 6  ;;  %v1449_v8 = vrot.slane %v6002_v7, 2 }
 0x15d   : > { %9850 = vst [vmem:[#allocation169_spill] sm:$0xff] %v6012_v9  ;;  %v1451_v12 = vrot.slane %v6005_v56, 2  ;;  %vm1497_vm6 = vcmp.lt.s32.totalorder %v5938_v58, 1  ;;  %vm1498_vm7 = vcmp.lt.s32.totalorder %v5941_v54, 1  ;;  %v6032_v43 = vsel %vm620_vm10, %v1250_v19, %v1252_v60 }
 0x15e   : > { %9854 = vst [vmem:[#allocation172_spill] sm:$0xff] %v6032_v43  ;;  %v9855_v20 = vrot.slane %v5975_v11, 1  ;;  %v6040_v26 = vmul.f32 %v1301_v51, %v5467_v15  ;;  %v1401_v35 = vrot.slane %v6021_v48, 6  ;;  %vm1496_vm1 = vcmp.lt.s32.totalorder %v5929_v50, 1 }
 0x15f   : > { %v6046_v56 = vsel %vm1497_vm6, 1.0, %v9721_v52  ;;  %v6049_v60 = vsel %vm1498_vm7, 1.0, %v9721_v52  ;;  %v6052_v11 = vsel %vm1362_vm5, 1.0, %v9721_v52  ;;  %vm1511_vm13 = vcmp.ge.s32.totalorder %v5929_v50, 3 }
 0x160   : > { %v6037_v13 = vsel %vm645_vm14, %v1300_v0, %v9855_v20  ;;  %9857 = vst [vmem:[#allocation174_spill] sm:$0xff] %v6046_v56  ;;  %9858 = vst [vmem:[#allocation175_spill] sm:$0xff] %v6049_v60  ;;  %vm1512_vm15 = vcmp.ge.s32.totalorder %v5938_v58, 3  ;;  %vm1513_vm8 = vcmp.ge.s32.totalorder %v5941_v54, 3  ;;  %v1406_v51 = vsel %vm9438_vm4, %v1403_v30, %v1405_v10 }
 0x161   : > { %9856 = vst [vmem:[#allocation173_spill] sm:$0xff] %v6037_v13  ;;  %9859 = vst [vmem:[#allocation176_spill] sm:$0xff] %v6052_v11  ;;  %v1452_v0 = vsel %vm1049_vm3, %v1449_v8, %v1451_v12  ;;  %v6060_v20 = vsel %vm1511_vm13, 1.0, %v9721_v52  ;;  %v6063_v7 = vsel %vm1512_vm15, 1.0, %v9721_v52  ;;  %v6066_v48 = vsel %vm1496_vm1, 1.0, %v9721_v52 }
 0x162   : > { %9860 = vst [vmem:[#allocation177_spill] sm:$0xff] %v6060_v20  ;;  %9861 = vst [vmem:[#allocation178_spill] sm:$0xff] %v6063_v7  ;;  %v1565_v27 = vrot.slane %v6046_v56, 5  ;;  %v1567_v50 = vrot.slane %v6049_v60, 5  ;;  %v1612_v58 = vrot.slane %v6060_v20, 3  ;;  %v6073_v10 = vsel %vm1513_vm8, 1.0, %v9721_v52 }
 0x163   : > { %9862 = vst [vmem:[#allocation179_spill] sm:$0xff] %v6066_v48  ;;  %9863 = vst [vmem:[#allocation180_spill] sm:$0xff] %v6073_v10  ;;  %v1614_v13 = vrot.slane %v6063_v7, 3  ;;  %v1248_v43 = vrot.slane %v5147_v63, 7  ;;  %v6079_v4 = vmul.f32 %v1406_v51, %v5555_v42  ;;  %v1399_v60 = vrot.slane %v5181_v16, 6 }
 0x164   : > { %v1568_v56 = vsel %vm1559_vm0, %v1565_v27, %v1567_v50  ;;  %v6084_v20 = vmul.f32 %v1452_v0, %v5467_v15  ;;  %v1563_v54 = vrot.slane %v6066_v48, 5  ;;  %v6090_v63 = vsel %vm9438_vm4, %v1401_v35, %v1403_v30 }
 0x165   : > { %9864 = vst [vmem:[#allocation181_spill] sm:$0xff] %v6079_v4  ;;  %v1615_v9 = vsel %vm1584_vm11, %v1612_v58, %v1614_v13  ;;  %v1251_v7 = vsel %vm620_vm10, %v1248_v43, %v1250_v19  ;;  %v6093_v44 = vmul.f32 %v1568_v56, %v5555_v42  ;;  %v1402_v50 = vsel %vm9438_vm4, %v1399_v60, %v1401_v35 }
 0x166   : > { %v9866_v16 = vrot.slane %v6052_v11, 2  ;;  %v6103_v48 = vmul.f32 %v1615_v9, %v5467_v15  ;;  %v6106_v19 = vmul.f32 %v1251_v7, %v5467_v15  ;;  %v1561_v30 = vrot.slane %v5202_v24, 5 }
 0x167   : > { %9865 = vst [vmem:[#allocation182_spill] sm:$0xff] %v6093_v44  ;;  %v1296_v42 = vrot.slane %v5157_v1, 1  ;;  %v6112_v51 = vmul.f32 %v1402_v50, %v5467_v15  ;;  %v1447_v35 = vrot.slane %v5162_v2, 2  ;;  %v670_v7 = vrot.slane %v5197_v21, 1 }
 0x168   : > { %v6100_v0 = vsel %vm1049_vm3, %v1451_v12, %v9866_v16  ;;  %9867 = vst [vmem:[#allocation183_spill] sm:$0xff] %v6103_v48  ;;  %9868 = vst [vmem:[#allocation184_spill] sm:$0xff] %v6106_v19  ;;  %v6117_v12 = vsel %vm1559_vm0, %v1563_v54, %v1565_v27  ;;  %v1564_v9 = vsel %vm1559_vm0, %v1561_v30, %v1563_v54  ;;  %v9870_v56 = vrot.slane %v6073_v10, 3 }
 0x169   : > { %9869 = vst [vmem:[#allocation185_spill] sm:$0xff] %v6112_v51  ;;  %v9872_v50 = vrot.slane %v5965_v53, 1  ;;  %v6133_v16 = vsel %vm1049_vm3, %v1447_v35, %v1449_v8  ;;  %v6138_v21 = vmul.f32 %v1564_v9, %v5467_v15  ;;  %v1610_v24 = vrot.slane %v5186_v17, 3 }
 0x16a   : > { %v6125_v1 = vsel %vm1584_vm11, %v1614_v13, %v9870_v56  ;;  %v9362_v56 = vrot.slane %v5191_v18, 7  ;;  %v6144_v53 = vmul.f32 %v670_v7, %v5511_v14  ;;  %v1074_v54 = vrot.slane %v5223_v32, 2 }
 0x16b   : > { %9871 = vst [vmem:[#allocation186_spill] sm:$0xff] %v6125_v1  ;;  %v6130_v2 = vsel %vm645_vm14, %v1296_v42, %v9872_v50  ;;  %9873 = vst [vmem:[#allocation187_spill] sm:$0xff] %v6138_v21  ;;  %v911_v50 = vrot.slane %v5214_v28, 1  ;;  %v6148_v8 = vsel %vm1584_vm11, %v1610_v24, %v1612_v58  ;;  %v1295_v9 = vrot.slane %v5229_v33, 1 }
 0x16c   : > { %v9874_v17 = vrot.slane %v5089_v36, 7  ;;  %v9875_v10 = vrot.slane %v5092_v37, 1  ;;  %v1446_v27 = vrot.slane %v5235_v38, 2  ;;  %v9876_v33 = vrot.slane %v5125_v57, 7 }
 0x16d   : > { %v9877_v36 = vrot.slane %v5205_v25, 7  ;;  %v9879_v32 = vrot.slane %v5138_v61, 6  ;;  %v9880_v57 = vrot.slane %v5220_v31, 6  ;;  %v9370_v61 = vrot.slane %v5232_v3, 6  ;;  %v9903_v25 = vld [vmem:[#allocation43_spill] sm:$0xff] }
 0x16e   : > { %v6158_v13 = vsel %vm620_vm10, %v9362_v56, %v9874_v17  ;;  %v6163_v28 = vsel %vm645_vm14, %v670_v7, %v9875_v10  ;;  %v1609_v56 = vrot.slane %v5242_v40, 3  ;;  %v9878_v7 = vrot.slane %v5129_v59, 1 }
 0x16f   : > { %v6173_v11 = vsel %vm620_vm10, %v9877_v36, %v9876_v33  ;;  %v6188_v37 = vsel %vm9438_vm4, %v9880_v57, %v9879_v32  ;;  %v6191_v36 = vmul.f32 %v1295_v9, %v5511_v14  ;;  %v9883_v33 = vrot.slane %v5142_v62, 2 }
 0x170   : > { %v6181_v58 = vsel %vm645_vm14, %v911_v50, %v9878_v7  ;;  %9881 = vst [vmem:[#allocation188_spill] sm:$0xff] %v6188_v37  ;;  %v9884_v10 = vrot.slane %v5226_v34, 7  ;;  %v6205_v59 = vmul.f32 %v1446_v27, %v5511_v14  ;;  %v6208_v57 = vsel %vm645_vm14, %v1295_v9, %v1296_v42  ;;  %v9934_v37 = vld [vmem:[#allocation53_spill] sm:$0xff] }
 0x171   : > { %9882 = vst [vmem:[#allocation189_spill] sm:$0xff] %v6191_v36  ;;  %v6196_v17 = vsel %vm1049_vm3, %v1074_v54, %v9883_v33  ;;  %v9374_v32 = vrot.slane %v5238_v39, 5  ;;  %v6212_v62 = vmul.f32 %v1609_v56, %v5511_v14  ;;  %v6215_v33 = vmul.f32 %v911_v50, %v5511_v14 }
 0x172   : > { %v6201_v7 = vsel %vm620_vm10, %v9884_v10, %v1248_v43  ;;  %9886 = vst [vmem:[#allocation191_spill] sm:$0xff] %v6205_v59  ;;  %v6220_v43 = vsel %vm9438_vm4, %v9370_v61, %v1399_v60  ;;  %v6223_v10 = vsel %vm1049_vm3, %v1446_v27, %v1447_v35  ;;  %v6226_v40 = vmul.f32 %v1074_v54, %v5511_v14  ;;  %v9893_v54 = vld [vmem:[#allocation32_spill] sm:$0xff] }
 0x173   : > { %9885 = vst [vmem:[#allocation190_spill] sm:$0xff] %v6201_v7  ;;  %9887 = vst [vmem:[#allocation192_spill] sm:$0xff] %v6212_v62  ;;  %v1850_v42 = vrot.slane %v5265_v46, 1  ;;  %v6233_v50 = vsel %vm1559_vm0, %v9374_v32, %v1561_v30  ;;  %v2001_v60 = vrot.slane %v5276_v49, 2  ;;  %v6239_v35 = vsel %vm1584_vm11, %v1609_v56, %v1610_v24  ;;  %v9895_v32 = vld [vmem:[#allocation41_spill] sm:$0xff]  ;;  %v9897_v56 = vld [vmem:[#allocation38_spill] sm:$0xff] }
 0x174   : > { %9888 = vst [vmem:[#allocation193_spill] sm:$0xff] %v6215_v33  ;;  %9889 = vst [vmem:[#allocation194_spill] sm:$0xff] %v6220_v43  ;;  %v9383_v27 = vrot.slane %v5262_v45, 7  ;;  %v9384_v46 = vrot.slane %v9893_v54, 7  ;;  %v2152_v38 = vrot.slane %v9895_v32, 3  ;;  %v9899_v31 = vrot.slane %v5268_v47, 1 }
 0x175   : > { %9890 = vst [vmem:[#allocation195_spill] sm:$0xff] %v6226_v40  ;;  %9891 = vst [vmem:[#allocation196_spill] sm:$0xff] %v6233_v50  ;;  %v6246_v30 = vmul.f32 %v1850_v42, %v5511_v14  ;;  %v6259_v9 = vmul.f32 %v2001_v60, %v5511_v14  ;;  %v9901_v32 = vld [vmem:[#allocation36_spill] sm:$0xff]  ;;  %v9902_v49 = vld [vmem:[#allocation39_spill] sm:$0xff]  ;;  %vm9926_vm9 = vcmask 1043456   ;;  %vm1724_vm6 = vcmp.ne.s32.totalorder %v5905_v41, 0 }
 0x176   : > { %9892 = vst [vmem:[#allocation197_spill] sm:$0xff] %v6239_v35  ;;  %v6255_v24 = vsel %vm620_vm10, %v9383_v27, %v9384_v46  ;;  %v6264_v62 = vsel %vm645_vm14, %v1850_v42, %v9899_v31  ;;  %v9390_v33 = vrot.slane %v9901_v32, 6  ;;  %v9391_v40 = vrot.slane %v9902_v49, 6  ;;  %v9904_v45 = vld [vmem:[#allocation40_spill] sm:$0xff]  ;;  %v9905_v27 = vld [vmem:[#allocation47_spill] sm:$0xff]  ;;  %v9909_v42 = vld [vmem:[#allocation46_spill] sm:$0xff] }
 0x177   : > { %9894 = vst [vmem:[#allocation198_spill] sm:$0xff] %v6246_v30  ;;  %9896 = vst [vmem:[#allocation199_spill] sm:$0xff] %v6255_v24  ;;  %v6272_v61 = vmul.f32 %v2152_v38, %v5511_v14  ;;  %v9907_v24 = vld [vmem:[#allocation45_spill] sm:$0xff]  ;;  %v9911_v46 = vrot.slane %v9897_v56, 2  ;;  %v9913_v59 = vrot.slane %v9905_v27, 5  ;;  %v9914_v30 = vrot.slane %v9904_v45, 5 }
 0x178   : > { %9898 = vst [vmem:[#allocation200_spill] sm:$0xff] %v6259_v9  ;;  %9900 = vst [vmem:[#allocation201_spill] sm:$0xff] %v6264_v62  ;;  %v2311_v39 = vrot.slane %v9907_v24, 4  ;;  %v6281_v31 = vsel %vm9438_vm4, %v9390_v33, %v9391_v40  ;;  %v9910_v62 = vld [vmem:[#allocation49_spill] sm:$0xff]  ;;  %v9916_v33 = vld [vmem:[#allocation44_spill] sm:$0xff]  ;;  %v9917_v35 = vrot.slane %v9903_v25, 3 }
 0x179   : > { %9906 = vst [vmem:[#allocation202_spill] sm:$0xff] %v6272_v61  ;;  %9908 = vst [vmem:[#allocation203_spill] sm:$0xff] %v6281_v31  ;;  %v2466_v50 = vrot.slane %v9910_v62, 5  ;;  %v6288_v43 = vsel %vm1049_vm3, %v2001_v60, %v9911_v46  ;;  %v6296_v32 = vsel %vm1559_vm0, %v9914_v30, %v9913_v59  ;;  %v9919_v31 = vld [vmem:[#allocation55_spill] sm:$0xff]  ;;  %v9921_v60 = vld [vmem:[#allocation54_spill] sm:$0xff]  ;;  %vm1729_vm7 = vcmp.lt.s32.totalorder %v5905_v41, 0 }
 0x17a   : > { %9912 = vst [vmem:[#allocation204_spill] sm:$0xff] %v6288_v43  ;;  %9915 = vst [vmem:[#allocation205_spill] sm:$0xff] %v6296_v32  ;;  %v6302_v62 = vsel %vm1584_vm11, %v2152_v38, %v9917_v35  ;;  %v9403_v36 = vrot.slane %v9919_v31, 4  ;;  %v6306_v46 = vmul.f32 %v2311_v39, %v5511_v14  ;;  %v2702_v24 = vrot.slane %v9921_v60, 1  ;;  %v9922_v45 = vld [vmem:[#allocation48_spill] sm:$0xff]  ;;  %v9923_v59 = vld [vmem:[#allocation50_spill] sm:$0xff] }
 0x17b   : > { %9918 = vst [vmem:[#allocation206_spill] sm:$0xff] %v6302_v62  ;;  %v6313_v40 = vmul.f32 %v2466_v50, %v5511_v14  ;;  %v9925_v38 = vrot.slane %v9916_v33, 4  ;;  %v9928_v62 = vrot.slane %v9909_v42, 4  ;;  %vm9929_vm2 = vmmov %vm9926_vm9  ;;  %v9931_v9 = vld [vmem:[#allocation63_spill] sm:$0xff]  ;;  %v9933_v30 = vld [vmem:[#allocation52_spill] sm:$0xff]  ;;  %v9941_v48 = vrot.slane %v9923_v59, 5 }
 0x17c   : > { %9920 = vst [vmem:[#allocation207_spill] sm:$0xff] %v6306_v46  ;;  %v9406_v61 = vrot.slane %v9931_v9, 3  ;;  %v9932_v43 = vld [vmem:[#allocation51_spill] sm:$0xff]  ;;  %v6332_v21 = vmul.f32 %v2702_v24, %v5511_v14  ;;  %v9936_v33 = vld [vmem:[#allocation57_spill] sm:$0xff]  ;;  %v9949_v59 = vld [vmem:[#allocation62_spill] sm:$0xff]  ;;  %vm1725_vm8 = vcmp.ne.s32.totalorder %v5935_v55, 0 }
 0x17d   : > { %9924 = vst [vmem:[#allocation208_spill] sm:$0xff] %v6313_v40  ;;  %v6320_v35 = vsel %vm9926_vm9, %v9925_v38, %v9403_v36  ;;  %v6325_v60 = vsel %vm9929_vm2, %v2311_v39, %v9928_v62  ;;  %v2853_v51 = vrot.slane %v9936_v33, 2  ;;  %v9937_v62 = vrot.slane %v9922_v45, 3  ;;  %v9939_v36 = vld [vmem:[#allocation58_spill] sm:$0xff]  ;;  %v9960_v40 = vld [vmem:[#allocation76_spill] sm:$0xff]  ;;  %vm9970_vm12 = vmmov %vm9929_vm2 }
 0x17e   : > { %9927 = vst [vmem:[#allocation209_spill] sm:$0xff] %v6320_v35  ;;  %9930 = vst [vmem:[#allocation210_spill] sm:$0xff] %v6325_v60  ;;  %v9940_v60 = vld [vmem:[#allocation61_spill] sm:$0xff]  ;;  %v6348_v35 = vsel %vm1559_vm0, %v2466_v50, %v9941_v48  ;;  %v9943_v38 = vrot.slane %v9933_v30, 7  ;;  %v9944_v46 = vrot.slane %v9932_v43, 7  ;;  %v9951_v33 = vrot.slane %v9934_v37, 1 }
 0x17f   : > { %9935 = vst [vmem:[#allocation211_spill] sm:$0xff] %v6332_v21  ;;  %v6341_v39 = vsel %vm1584_vm11, %v9937_v62, %v9406_v61  ;;  %v3004_v7 = vrot.slane %v9940_v60, 3  ;;  %9942 = vst [vmem:[#allocation213_spill] sm:$0xff] %v6348_v35  ;;  %v9946_v62 = vld [vmem:[#allocation56_spill] sm:$0xff]  ;;  %v6361_v60 = vmul.f32 %v2853_v51, %v5511_v14  ;;  %v9950_v48 = vld [vmem:[#allocation65_spill] sm:$0xff]  ;;  %vm1730_vm9 = vcmp.lt.s32.totalorder %v5935_v55, 0 }
 0x180   : > { %9938 = vst [vmem:[#allocation212_spill] sm:$0xff] %v6341_v39  ;;  %v6356_v45 = vsel %vm620_vm10, %v9944_v46, %v9943_v38  ;;  %v9947_v39 = vld [vmem:[#allocation59_spill] sm:$0xff]  ;;  %v3155_v50 = vrot.slane %v9950_v48, 4  ;;  %v6368_v30 = vsel %vm645_vm14, %v2702_v24, %v9951_v33  ;;  %v9953_v46 = vld [vmem:[#allocation60_spill] sm:$0xff]  ;;  %v9956_v48 = vrot.slane %v9939_v36, 2  ;;  %v9957_v33 = vld [vmem:[#allocation66_spill] sm:$0xff] }
 0x181   : > { %9945 = vst [vmem:[#allocation214_spill] sm:$0xff] %v6356_v45  ;;  %v9417_v32 = vrot.slane %v9947_v39, 6  ;;  %9948 = vst [vmem:[#allocation215_spill] sm:$0xff] %v6361_v60  ;;  %v6373_v61 = vmul.f32 %v3004_v7, %v5511_v14  ;;  %v9955_v45 = vrot.slane %v9946_v62, 6  ;;  %v9422_v24 = vrot.slane %v9957_v33, 5  ;;  %v9958_v43 = vld [vmem:[#allocation67_spill] sm:$0xff] }
 0x182   : > { %9952 = vst [vmem:[#allocation216_spill] sm:$0xff] %v6368_v30  ;;  %v6385_v37 = vsel %vm1049_vm3, %v2853_v51, %v9956_v48  ;;  %v9959_v38 = vld [vmem:[#allocation64_spill] sm:$0xff]  ;;  %v6392_v39 = vmul.f32 %v3155_v50, %v5511_v14  ;;  %v9962_v62 = vld [vmem:[#allocation69_spill] sm:$0xff]  ;;  %v9963_v51 = vrot.slane %v9953_v46, 5  ;;  %vm9975_vm5 = vmmov %vm9929_vm2  ;;  %vm2601_vm2 = vcmp.lt.s32.totalorder %v5523_v6, 8 }
 0x183   : > { %9954 = vst [vmem:[#allocation217_spill] sm:$0xff] %v6373_v61  ;;  %v6380_v19 = vsel %vm9438_vm4, %v9955_v45, %v9417_v32  ;;  %v3306_v1 = vrot.slane %v9962_v62, 5  ;;  %v9965_v32 = vrot.slane %v9949_v59, 3  ;;  %v9967_v30 = vld [vmem:[#allocation72_spill] sm:$0xff]  ;;  %v9968_v62 = vrot.slane %v9960_v40, 4  ;;  %v9979_v40 = vld [vmem:[#allocation73_spill] sm:$0xff]  ;;  %vm1734_vm1 = vmand %vm1729_vm7, %vm1724_vm6 }
 0x184   : > { %9961 = vst [vmem:[#allocation218_spill] sm:$0xff] %v6392_v39  ;;  %v6401_v48 = vsel %vm1559_vm0, %v9963_v51, %v9422_v24  ;;  %v3461_v35 = vrot.slane %v9967_v30, 6  ;;  %v9969_v45 = vrot.slane %v9959_v38, 4  ;;  %v9972_v60 = vld [vmem:[#allocation68_spill] sm:$0xff]  ;;  %v9973_v51 = vld [vmem:[#allocation70_spill] sm:$0xff]  ;;  %v9974_v59 = vrot.slane %v9958_v43, 4 }
 0x185   : > { %9964 = vst [vmem:[#allocation219_spill] sm:$0xff] %v6401_v48  ;;  %v6406_v21 = vsel %vm1584_vm11, %v3004_v7, %v9965_v32  ;;  %v9977_v32 = vld [vmem:[#allocation77_spill] sm:$0xff]  ;;  %v6426_v36 = vmul.f32 %v3306_v1, %v5511_v14  ;;  %v9982_v24 = vld [vmem:[#allocation75_spill] sm:$0xff]  ;;  %v9986_v38 = vrot.slane %v9973_v51, 5  ;;  %v9987_v39 = vld [vmem:[#allocation74_spill] sm:$0xff]  ;;  %v9991_v51 = vrot.slane %v9979_v40, 6 }
 0x186   : > { %9966 = vst [vmem:[#allocation220_spill] sm:$0xff] %v6406_v21  ;;  %v6415_v33 = vsel %vm9970_vm12, %v9969_v45, %v9968_v62  ;;  %v6422_v7 = vsel %vm9975_vm5, %v3155_v50, %v9974_v59  ;;  %v9430_v30 = vrot.slane %v9977_v32, 3  ;;  %v9980_v62 = vld [vmem:[#allocation71_spill] sm:$0xff]  ;;  %v6432_v46 = vmul.f32 %v3461_v35, %v5511_v14  ;;  %v9985_v21 = vld [vmem:[#allocation78_spill] sm:$0xff]  ;;  %v9988_v48 = vld [vmem:[#allocation80_spill] sm:$0xff] }
 0x187   : > { %9971 = vst [vmem:[#allocation221_spill] sm:$0xff] %v6415_v33  ;;  %9976 = vst [vmem:[#allocation222_spill] sm:$0xff] %v6422_v7  ;;  %v3616_v33 = vrot.slane %v9982_v24, 7  ;;  %v9983_v59 = vrot.slane %v9972_v60, 3  ;;  %v9984_v43 = vld [vmem:[#allocation79_spill] sm:$0xff]  ;;  %v6448_v45 = vsel %vm1559_vm0, %v3306_v1, %v9986_v38  ;;  %v6464_v1 = vsel %vm9438_vm4, %v3461_v35, %v9991_v51  ;;  %v9993_v38 = vld [vmem:[#allocation82_spill] sm:$0xff] }
 0x188   : > { %9978 = vst [vmem:[#allocation223_spill] sm:$0xff] %v6426_v36  ;;  %9981 = vst [vmem:[#allocation224_spill] sm:$0xff] %v6432_v46  ;;  %v9434_v7 = vrot.slane %v9984_v43, 2  ;;  %v6468_v24 = vmul.f32 %v9993_v38, %v5511_v14  ;;  %v9996_v43 = vrot.slane %v9987_v39, 1  ;;  %v1744_v35 = vsel %vm1734_vm1, %v5945_v22, %v5905_v41 }
 0x189   : > { %v6440_v50 = vsel %vm1584_vm11, %v9983_v59, %v9430_v30  ;;  %v9989_v30 = vrot.slane %v9980_v62, 2  ;;  %9992 = vst [vmem:[#allocation226_spill] sm:$0xff] %v6464_v1  ;;  %v9995_v59 = vrot.slane %v9988_v48, 1  ;;  %v9999_v51 = vrot.slane %v9985_v21, 7  ;;  %v10090_v1 = vld [vmem:[#allocation150_spill] sm:$0xff] }
 0x18a   : > { %9994 = vst [vmem:[#allocation227_spill] sm:$0xff] %v6468_v24  ;;  %vm1749_vm13 = vcmp.lt.s32.totalorder %v1744_v35, 5  ;;  %vm1900_vm15 = vcmp.lt.s32.totalorder %v1744_v35, 4  ;;  %vm1764_vm12 = vcmp.ge.s32.totalorder %v1744_v35, 1  ;;  %vm1915_vm5 = vcmp.ge.s32.totalorder %v1744_v35, 2 }
 0x18b   : > { %v6459_v61 = vsel %vm1049_vm3, %v9989_v30, %v9434_v7  ;;  %v6476_v36 = vsel %vm645_vm14, %v9996_v43, %v9995_v59  ;;  %v6479_v30 = vmul.f32 %v3616_v33, %v5511_v14  ;;  %v6486_v7 = vsel %vm620_vm10, %v3616_v33, %v9999_v51 }
 0x18c   : > { %9990 = vst [vmem:[#allocation225_spill] sm:$0xff] %v6459_v61  ;;  %9997 = vst [vmem:[#allocation228_spill] sm:$0xff] %v6476_v36  ;;  %v6490_v32 = vsel %vm1749_vm13, 1.0, %v9721_v52  ;;  %v6493_v43 = vsel %vm1900_vm15, 1.0, %v9721_v52  ;;  %vm2051_vm6 = vcmp.lt.s32.totalorder %v1744_v35, 3  ;;  %vm2202_vm7 = vcmp.lt.s32.totalorder %v1744_v35, 2 }
 0x18d   : > { %9998 = vst [vmem:[#allocation229_spill] sm:$0xff] %v6479_v30  ;;  %10000 = vst [vmem:[#allocation230_spill] sm:$0xff] %v6486_v7  ;;  %v9437_v14 = vrot.slane %v6490_v32, 7  ;;  %v9439_v41 = vrot.slane %v6493_v43, 6  ;;  %vm2616_vm1 = vcmp.ge.s32.totalorder %v5523_v6, 1  ;;  %v10003_v33 = vrot.slane %v9893_v54, 7 }
 0x18e   : > { %10001 = vst [vmem:[#allocation231_spill] sm:$0xff] %v6490_v32  ;;  %10002 = vst [vmem:[#allocation232_spill] sm:$0xff] %v6493_v43  ;;  %v10004_v51 = vrot.slane %v9902_v49, 6  ;;  %vm2066_vm13 = vcmp.ge.s32.totalorder %v1744_v35, 3  ;;  %vm2752_vm15 = vcmp.lt.s32.totalorder %v5523_v6, 7  ;;  %v6513_v22 = vsel %vm1764_vm12, 1.0, %v9721_v52 }
 0x18f   : > { %v1806_v59 = vsel %vm620_vm10, %v10003_v33, %v9437_v14  ;;  %10005 = vst [vmem:[#allocation233_spill] sm:$0xff] %v6513_v22  ;;  %v6516_v21 = vsel %vm1915_vm5, 1.0, %v9721_v52  ;;  %v6519_v48 = vsel %vm2051_vm6, 1.0, %v9721_v52  ;;  %v6524_v33 = vsel %vm2601_vm2, 1.0, %v9721_v52  ;;  %vm1735_vm12 = vmand %vm1730_vm9, %vm1725_vm8 }
 0x190   : > { %v1957_v38 = vsel %vm9438_vm4, %v10004_v51, %v9439_v41  ;;  %10006 = vst [vmem:[#allocation234_spill] sm:$0xff] %v6516_v21  ;;  %10007 = vst [vmem:[#allocation235_spill] sm:$0xff] %v6519_v48  ;;  %v6528_v51 = vsel %vm2202_vm7, 1.0, %v9721_v52  ;;  %vm2217_vm4 = vcmp.ge.s32.totalorder %v1744_v35, 4  ;;  %v6531_v41 = vsel %vm2616_vm1, 1.0, %v9721_v52 }
 0x191   : > { %10008 = vst [vmem:[#allocation236_spill] sm:$0xff] %v6524_v33  ;;  %10009 = vst [vmem:[#allocation237_spill] sm:$0xff] %v6528_v51  ;;  %v6534_v49 = vmul.f32 %v1806_v59, %v5467_v15  ;;  %v6537_v54 = vmul.f32 %v1957_v38, %v5467_v15  ;;  %v6540_v40 = vsel %vm2066_vm13, 1.0, %v9721_v52  ;;  %v9455_v33 = vrot.slane %v6528_v51, 4 }
 0x192   : > { %10010 = vst [vmem:[#allocation238_spill] sm:$0xff] %v6531_v41  ;;  %10013 = vst [vmem:[#allocation241_spill] sm:$0xff] %v6540_v40  ;;  %v10014_v43 = vrot.slane %v6519_v48, 5  ;;  %v10015_v32 = vrot.slane %v9905_v27, 5  ;;  %vm2356_vm2 = vcmp.lt.s32.totalorder %v1744_v35, 1  ;;  %v6555_v38 = vsel %vm2217_vm4, 1.0, %v9721_v52 }
 0x193   : > { %10011 = vst [vmem:[#allocation239_spill] sm:$0xff] %v6534_v49  ;;  %10012 = vst [vmem:[#allocation240_spill] sm:$0xff] %v6537_v54  ;;  %v10017_v59 = vrot.slane %v9919_v31, 4  ;;  %vm10018_vm5 = vcmask 1043456   ;;  %v6563_v14 = vsel %vm2356_vm2, 1.0, %v9721_v52  ;;  %vm2371_vm6 = vcmp.ge.s32.totalorder %v1744_v35, 5 }
 0x194   : > { %v2108_v41 = vsel %vm1559_vm0, %v10015_v32, %v10014_v43  ;;  %10016 = vst [vmem:[#allocation242_spill] sm:$0xff] %v6555_v38  ;;  %10019 = vst [vmem:[#allocation243_spill] sm:$0xff] %v6563_v14  ;;  %v10020_v32 = vrot.slane %v6513_v22, 1  ;;  %v10021_v43 = vrot.slane %v5268_v47, 1  ;;  %v10023_v48 = vrot.slane %v6516_v21, 2  ;;  %v10046_v47 = vld [vmem:[#allocation169_spill] sm:$0xff] }
 0x195   : > { %v2267_v24 = vsel %vm10018_vm5, %v10017_v59, %v9455_v33  ;;  %v10024_v30 = vrot.slane %v9897_v56, 2  ;;  %v6583_v35 = vsel %vm2752_vm15, 1.0, %v9721_v52  ;;  %v6601_v56 = vsel %vm2371_vm6, 1.0, %v9721_v52  ;;  %vm10038_vm9 = vmmov %vm10018_vm5 }
 0x196   : > { %v6570_v27 = vsel %vm645_vm14, %v10021_v43, %v10020_v32  ;;  %10026 = vst [vmem:[#allocation246_spill] sm:$0xff] %v6583_v35  ;;  %v6588_v32 = vmul.f32 %v2108_v41, %v5467_v15  ;;  %v6592_v43 = vsel %vm1735_vm12, %v5984_v29, %v5935_v55  ;;  %10030 = vst [vmem:[#allocation250_spill] sm:$0xff] %v6601_v56  ;;  %v10031_v55 = vrot.slane %v5191_v18, 7 }
 0x197   : > { %10022 = vst [vmem:[#allocation244_spill] sm:$0xff] %v6570_v27  ;;  %v6577_v51 = vsel %vm1049_vm3, %v10024_v30, %v10023_v48  ;;  %10028 = vst [vmem:[#allocation248_spill] sm:$0xff] %v6592_v43  ;;  %v6597_v30 = vmul.f32 %v2267_v24, %v5467_v15  ;;  %v10032_v31 = vrot.slane %v6540_v40, 3  ;;  %v10033_v24 = vrot.slane %v9903_v25, 3 }
 0x198   : > { %10025 = vst [vmem:[#allocation245_spill] sm:$0xff] %v6577_v51  ;;  %10027 = vst [vmem:[#allocation247_spill] sm:$0xff] %v6588_v32  ;;  %vm1750_vm4 = vcmp.lt.s32.totalorder %v6592_v43, 5  ;;  %vm1765_vm8 = vcmp.ge.s32.totalorder %v6592_v43, 1  ;;  %v10037_v25 = vrot.slane %v9909_v42, 4  ;;  %v10041_v42 = vrot.slane %v6563_v14, 3 }
 0x199   : > { %10029 = vst [vmem:[#allocation249_spill] sm:$0xff] %v6597_v30  ;;  %v6618_v59 = vsel %vm1584_vm11, %v10033_v24, %v10032_v31  ;;  %v10056_v43 = vld [vmem:[#allocation151_spill] sm:$0xff]  ;;  %v10066_v32 = vld [vmem:[#allocation102_spill] sm:$0xff]  ;;  %vm10077_vm7 = vcmask 1041408  }
 0x19a   : > { %10034 = vst [vmem:[#allocation251_spill] sm:$0xff] %v6618_v59  ;;  %vm10110_vm1 = vmmov %vm10077_vm7 }
 0x19b   : > { %vm10119_vm13 = vmmov %vm10110_vm1 }
 0x19c   : > { %vm10125_vm15 = vmmov %vm10110_vm1 }
 0x19d   : > { %vm10137_vm2 = vmmov %vm10110_vm1 }
 0x19e   : > { %vm10158_vm12 = vmmov %vm10110_vm1 }
 0x19f   : > { %vm10168_vm5 = vmmov %vm10110_vm1 }
 0x1a0   : > { %v6594_v48 = vpop.xlane.xlu0 %472  ;;  %vm10185_vm6 = vmmov %vm10110_vm1 }
 0x1a1   : > { %v6606_v41 = vmul.f32 %v6163_v28, %v6594_v48  ;;  %v6611_v29 = vmul.f32 %v10031_v55, %v6594_v48  ;;  %v6623_v33 = vmul.f32 %v6181_v58, %v6594_v48  ;;  %v6627_v28 = vmul.f32 %v6196_v17, %v6594_v48 }
 0x1a2   : > { %v10035_v55 = vrot.slane %v5226_v34, 7  ;;  %v6637_v31 = vmul.f32 %v6208_v57, %v6594_v48  ;;  %v10036_v58 = vrot.slane %v6555_v38, 4  ;;  %v6657_v57 = vmul.f32 %v6223_v10, %v6594_v48 }
 0x1a3   : > { %v6675_v10 = vsel %vm1765_vm8, 1.0, %v9721_v52  ;;  %v10051_v21 = vrot.slane %v6606_v41, 7  ;;  %vm10215_vm8 = vmmov %vm10038_vm9 }
 0x1a4   : > { %v6632_v18 = vmul.f32 %v10035_v55, %v6594_v48  ;;  %v6645_v17 = vsel %vm10038_vm9, %v10037_v25, %v10036_v58  ;;  %v6648_v34 = vpop.xlane.xlu0 %475  ;;  %v10040_v55 = vrot.slane %v5232_v3, 6  ;;  %v10042_v25 = vrot.slane %v9931_v9, 3  ;;  %10045 = vst [vmem:[#allocation255_spill] sm:$0xff] %v6675_v10  ;;  %v10047_v9 = vld [vmem:[#allocation103_spill] sm:$0xff]  ;;  %vm10221_vm9 = vmmov %vm10215_vm8 }
 0x1a5   : > { %10039 = vst [vmem:[#allocation252_spill] sm:$0xff] %v6645_v17  ;;  %v6679_v24 = vmul.f32 %v5820_v23, %v6648_v34  ;;  %v6686_v6 = vmul.f32 %v5923_v5, %v6648_v34  ;;  %v6690_v3 = vmul.f32 %v10046_v47, %v6648_v34  ;;  %v6694_v14 = vmul.f32 %v6130_v2, %v6648_v34  ;;  %v10049_v23 = vld [vmem:[#allocation106_spill] sm:$0xff]  ;;  %v10053_v47 = vld [vmem:[#allocation132_spill] sm:$0xff] }
 0x1a6   : > { %v6653_v35 = vmul.f32 %v10040_v55, %v6594_v48  ;;  %v6665_v58 = vsel %vm1584_vm11, %v10042_v25, %v10041_v42  ;;  %v6672_v55 = vsel %vm1750_vm4, 1.0, %v9721_v52  ;;  %v6701_v42 = vmul.f32 %v6133_v16, %v6648_v34  ;;  %vm10204_vm4 = vmmov %vm10110_vm1 }
 0x1a7   : > { %10043 = vst [vmem:[#allocation253_spill] sm:$0xff] %v6665_v58  ;;  %10044 = vst [vmem:[#allocation254_spill] sm:$0xff] %v6672_v55  ;;  %v6705_v5 = vmul.f32 %v6148_v8, %v6648_v34  ;;  %v6719_v16 = vmul.f32 %v6158_v13, %v6648_v34  ;;  %v10052_v8 = vrot.slane %v6144_v53, 7 }
 0x1a8   : > { %v6697_v38 = vpop.xlane.xlu0 %481 }
 0x1a9   : > { %v6711_v2 = vmul.f32 %v10047_v9, %v6697_v38  ;;  %v6715_v40 = vmul.f32 %v10049_v23, %v6697_v38  ;;  %v6726_v25 = vsel %vm620_vm10, %v10052_v8, %v10051_v21  ;;  %v638_v22 = vmul.f32 %v10053_v47, %v6697_v38  ;;  %v10054_v9 = vld [vmem:[#allocation133_spill] sm:$0xff]  ;;  %v10057_v47 = vld [vmem:[#allocation115_spill] sm:$0xff]  ;;  %v10064_v8 = vld [vmem:[#allocation152_spill] sm:$0xff] }
 0x1aa   : > { %v6732_v52 = vmul.f32 %v10054_v9, %v6697_v38  ;;  %v880_v13 = vmul.f32 %v10056_v43, %v6697_v38  ;;  %v6744_v58 = vmul.f32 %v10057_v47, %v6697_v38  ;;  %v10059_v9 = vld [vmem:[#allocation125_spill] sm:$0xff]  ;;  %v10061_v43 = vld [vmem:[#allocation100_spill] sm:$0xff]  ;;  %v6759_v59 = vmul.f32 %v10064_v8, %v6697_v38  ;;  %v10071_v8 = vld [vmem:[#allocation135_spill] sm:$0xff] }
 0x1ab   : > { %10048 = vst [vmem:[#allocation169_spill] sm:$0xff] %v6711_v2  ;;  %10050 = vst [vmem:[#allocation103_spill] sm:$0xff] %v6715_v40  ;;  %v9491_v10 = vrot.slane %v6711_v2, 7  ;;  %v6748_v23 = vmul.f32 %v10059_v9, %v6697_v38  ;;  %v651_v17 = vrot.slane %v638_v22, 1  ;;  %v10062_v30 = vrot.slane %v10061_v43, 7  ;;  %v10067_v2 = vld [vmem:[#allocation134_spill] sm:$0xff] }
 0x1ac   : > { %10055 = vst [vmem:[#allocation106_spill] sm:$0xff] %v6732_v52  ;;  %10058 = vst [vmem:[#allocation132_spill] sm:$0xff] %v6744_v58  ;;  %v6755_v53 = vpop.xlane.xlu0 %487  ;;  %v892_v21 = vrot.slane %v880_v13, 1  ;;  %v10068_v54 = vrot.slane %v10067_v2, 1  ;;  %v10072_v49 = vrot.slane %v10071_v8, 7  ;;  %v10073_v47 = vrot.slane %v6679_v24, 7 }
 0x1ad   : > { %10060 = vst [vmem:[#allocation133_spill] sm:$0xff] %v6748_v23  ;;  %v2739_v56 = vsel %vm620_vm10, %v9491_v10, %v10062_v30  ;;  %10063 = vst [vmem:[#allocation151_spill] sm:$0xff] %v6755_v53  ;;  %v10069_v10 = vld [vmem:[#allocation136_spill] sm:$0xff]  ;;  %v10076_v9 = vrot.slane %v6715_v40, 6  ;;  %v9500_v40 = vrot.slane %v6759_v59, 7 }
 0x1ae   : > { %10065 = vst [vmem:[#allocation115_spill] sm:$0xff] %v6759_v59  ;;  %v2749_v51 = vadd.f32 %v2739_v56, %v10066_v32  ;;  %v654_v30 = vsel %vm645_vm14, %v651_v17, %v10068_v54  ;;  %v10070_v13 = vrot.slane %v10069_v10, 1  ;;  %v703_v56 = vsel %vm620_vm10, %v10073_v47, %v10072_v49  ;;  %v10074_v22 = vld [vmem:[#allocation108_spill] sm:$0xff]  ;;  %v10081_v47 = vld [vmem:[#allocation149_spill] sm:$0xff]  ;;  %v10101_v59 = vld [vmem:[#allocation118_spill] sm:$0xff] }
 0x1af   : > { %v6779_v32 = vmul.f32 %v6173_v11, %v6648_v34  ;;  %v10075_v43 = vrot.slane %v10074_v22, 6  ;;  %v663_v49 = vadd.f32 %v654_v30, %v6697_v38  ;;  %v10082_v36 = vrot.slane %v10081_v47, 1 }
 0x1b0   : > { %v652_v27 = vsel %vm645_vm14, %v10070_v13, %v651_v17  ;;  %v10078_v13 = vld [vmem:[#allocation113_spill] sm:$0xff]  ;;  %v10085_v17 = vld [vmem:[#allocation116_spill] sm:$0xff]  ;;  %v10089_v30 = vrot.slane %v10071_v8, 7 }
 0x1b1   : > { %v2890_v54 = vsel %vm10077_vm7, %v10076_v9, %v10075_v43  ;;  %v10079_v46 = vrot.slane %v10078_v13, 3  ;;  %v662_v11 = vadd.f32 %v652_v27, %v5467_v15  ;;  %v895_v22 = vsel %vm645_vm14, %v892_v21, %v10082_v36  ;;  %v10083_v9 = vld [vmem:[#allocation104_spill] sm:$0xff]  ;;  %vm10228_vm7 = vmmov %vm10110_vm1 }
 0x1b2   : > { %v10084_v43 = vrot.slane %v10083_v9, 2  ;;  %v10086_v23 = vrot.slane %v10085_v17, 2  ;;  %v904_v13 = vadd.f32 %v895_v22, %v6697_v38  ;;  %v10091_v9 = vrot.slane %v10090_v1, 7  ;;  %v10093_v17 = vld [vmem:[#allocation109_spill] sm:$0xff] }
 0x1b3   : > { %v6791_v7 = vmul.f32 %v10079_v46, %v6755_v53  ;;  %v10088_v46 = vrot.slane %v6732_v52, 7  ;;  %v715_v36 = vadd.f32 %v703_v56, %v662_v11  ;;  %v10094_v61 = vrot.slane %v10093_v17, 5  ;;  %v10099_v11 = vld [vmem:[#allocation157_spill] sm:$0xff] }
 0x1b4   : > { %v2847_v2 = vadd.f32 %v10084_v43, %v2749_v51  ;;  %v6804_v39 = vmul.f32 %v10086_v23, %v6755_v53  ;;  %v946_v51 = vsel %vm620_vm10, %v10091_v9, %v9500_v40  ;;  %v10092_v43 = vld [vmem:[#allocation154_spill] sm:$0xff]  ;;  %v10095_v52 = vrot.slane %v6744_v58, 5 }
 0x1b5   : > { %10080 = vst [vmem:[#allocation125_spill] sm:$0xff] %v6791_v7  ;;  %v705_v27 = vsel %vm620_vm10, %v10089_v30, %v10088_v46  ;;  %v1042_v23 = vmul.f32 %v10092_v43, %v6697_v38  ;;  %v957_v46 = vadd.f32 %v946_v51, %v904_v13  ;;  %v10100_v22 = vrot.slane %v10099_v11, 1 }
 0x1b6   : > { %10087 = vst [vmem:[#allocation100_spill] sm:$0xff] %v6804_v39  ;;  %v716_v47 = vadd.f32 %v705_v27, %v663_v49  ;;  %v6824_v8 = vsel %vm1559_vm0, %v10095_v52, %v10094_v61  ;;  %v10097_v49 = vld [vmem:[#allocation155_spill] sm:$0xff]  ;;  %v725_v27 = vmul.f32 0.5, %v715_v36  ;;  %v10102_v61 = vrot.slane %v10101_v59, 1 }
 0x1b7   : > { %10096 = vst [vmem:[#allocation152_spill] sm:$0xff] %v6824_v8  ;;  %v6828_v56 = vmul.f32 %v10097_v49, %v6697_v38  ;;  %v893_v30 = vsel %vm645_vm14, %v10100_v22, %v892_v21  ;;  %v1055_v40 = vrot.slane %v1042_v23, 2  ;;  %v10104_v51 = vrot.slane %v10090_v1, 7  ;;  %v10106_v23 = vld [vmem:[#allocation153_spill] sm:$0xff]  ;;  %v10108_v1 = vld [vmem:[#allocation156_spill] sm:$0xff] }
 0x1b8   : > { %v726_v9 = vmul.f32 0.5, %v716_v47  ;;  %v903_v43 = vadd.f32 %v893_v30, %v5467_v15  ;;  %v6838_v52 = vmul.f32 %v10102_v61, %v6755_v53  ;;  %v10105_v49 = vrot.slane %v6686_v6, 7  ;;  %3753 = vrot.lane.b32.xlu0 %v725_v27, %s4913_s28 }
 0x1b9   : > { %10098 = vst [vmem:[#allocation102_spill] sm:$0xff] %v6828_v56  ;;  %v9504_v13 = vrot.slane %v6828_v56, 6  ;;  %v6846_v47 = vadd.f32 %v2890_v54, %v2847_v2  ;;  %v10107_v22 = vrot.slane %v10106_v23, 2  ;;  %v10109_v59 = vrot.slane %v10108_v1, 6  ;;  %v10111_v54 = vld [vmem:[#allocation158_spill] sm:$0xff]  ;;  %v10114_v23 = vld [vmem:[#allocation173_spill] sm:$0xff] }
 0x1ba   : > { %10103 = vst [vmem:[#allocation136_spill] sm:$0xff] %v6838_v52  ;;  %v944_v21 = vsel %vm620_vm10, %v10105_v49, %v10104_v51  ;;  %3755 = vrot.lane.b32.xlu1 %v726_v9, %s4913_s28  ;;  %v10112_v51 = vrot.slane %v10111_v54, 2  ;;  %v10113_v9 = vld [vmem:[#allocation172_spill] sm:$0xff]  ;;  %v6866_v53 = vmul.f32 %v10114_v23, %v6697_v38 }
 0x1bb   : > { %v1058_v30 = vsel %vm1049_vm3, %v1055_v40, %v10107_v22  ;;  %v956_v61 = vadd.f32 %v944_v21, %v903_v43  ;;  %v1109_v2 = vsel %vm10110_vm1, %v10109_v59, %v9504_v13  ;;  %v1264_v36 = vmul.f32 %v10113_v9, %v6697_v38 }
 0x1bc   : > { %v1067_v17 = vadd.f32 %v1058_v30, %v957_v46  ;;  %v1056_v49 = vsel %vm1049_vm3, %v10112_v51, %v1055_v40  ;;  %10115 = vst [vmem:[#allocation135_spill] sm:$0xff] %v6866_v53  ;;  %v1415_v46 = vmul.f32 %v6090_v63, %v6697_v38  ;;  %v6872_v43 = vmul.f32 %v6100_v0, %v6697_v38  ;;  %v10120_v0 = vld [vmem:[#allocation170_spill] sm:$0xff] }
 0x1bd   : > { %v1066_v27 = vadd.f32 %v1056_v49, %v956_v61  ;;  %v10117_v21 = vrot.slane %v10108_v1, 6  ;;  %v10118_v40 = vrot.slane %v6690_v3, 6  ;;  %v1276_v30 = vrot.slane %v1264_v36, 1 }
 0x1be   : > { %10116 = vst [vmem:[#allocation108_spill] sm:$0xff] %v6872_v43  ;;  %v1120_v59 = vadd.f32 %v1109_v2, %v1067_v17  ;;  %v1577_v61 = vmul.f32 %v6117_v12, %v6697_v38  ;;  %v9506_v51 = vrot.slane %v6866_v53, 7  ;;  %v1427_v49 = vrot.slane %v1415_v46, 2 }
 0x1bf   : > { %v1107_v22 = vsel %vm10119_vm13, %v10118_v40, %v10117_v21  ;;  %v9507_v63 = vrot.slane %v6872_v43, 6  ;;  %v10121_v13 = vrot.slane %v10120_v0, 1  ;;  %v10122_v12 = vrot.slane %v6040_v26, 7  ;;  %vm10256_vm13 = vmmov %vm10215_vm8 }
 0x1c0   : > { %v1119_v23 = vadd.f32 %v1107_v22, %v1066_v27  ;;  %v1130_v9 = vmul.f32 0.33333334, %v1120_v59  ;;  %v1590_v1 = vrot.slane %v1577_v61, 3  ;;  %v10123_v46 = vrot.slane %v6079_v4, 2  ;;  %v10127_v61 = vld [vmem:[#allocation186_spill] sm:$0xff] }
 0x1c1   : > { %v1279_v17 = vsel %vm645_vm14, %v1276_v30, %v10121_v13  ;;  %v1330_v27 = vsel %vm620_vm10, %v10122_v12, %v9506_v51  ;;  %v10124_v13 = vrot.slane %v6084_v20, 6  ;;  %v10126_v40 = vrot.slane %v6093_v44, 3 }
 0x1c2   : > { %v1129_v56 = vmul.f32 0.33333334, %v1119_v23  ;;  %v1288_v36 = vadd.f32 %v1279_v17, %v6697_v38  ;;  %v1430_v59 = vsel %vm1049_vm3, %v1427_v49, %v10123_v46  ;;  %3775 = vrot.lane.b32.xlu1 %v1130_v9, %s4914_s29  ;;  %v6907_v23 = vmul.f32 %v10127_v61, %v6697_v38  ;;  %v10129_v17 = vld [vmem:[#allocation184_spill] sm:$0xff] }
 0x1c3   : > { %v1481_v21 = vsel %vm10125_vm15, %v10124_v13, %v9507_v63  ;;  %v1593_v22 = vsel %vm1584_vm11, %v1590_v1, %v10126_v40  ;;  %v10130_v12 = vrot.slane %v10129_v17, 1  ;;  %v10131_v2 = vrot.slane %v6040_v26, 7  ;;  %v10133_v40 = vld [vmem:[#allocation185_spill] sm:$0xff]  ;;  %vm10259_vm15 = vmmov %vm10215_vm8 }
 0x1c4   : > { %10128 = vst [vmem:[#allocation150_spill] sm:$0xff] %v6907_v23  ;;  %3773 = vrot.lane.b32.xlu0 %v1129_v56, %s4914_s29  ;;  %v1341_v9 = vadd.f32 %v1330_v27, %v1288_v36  ;;  %v10132_v13 = vrot.slane %v6694_v14, 7  ;;  %v10134_v44 = vrot.slane %v10133_v40, 2  ;;  %v10135_v4 = vrot.slane %v6084_v20, 6  ;;  %v10138_v36 = vld [vmem:[#allocation187_spill] sm:$0xff] }
 0x1c5   : > { %v1277_v46 = vsel %vm645_vm14, %v10130_v12, %v1276_v30  ;;  %v10136_v30 = vrot.slane %v6701_v42, 6  ;;  %v10139_v27 = vrot.slane %v10138_v36, 3  ;;  %v10140_v12 = vld [vmem:[#allocation183_spill] sm:$0xff]  ;;  %v10144_v20 = vrot.slane %v6719_v16, 1 }
 0x1c6   : > { %v1287_v51 = vadd.f32 %v1277_v46, %v5467_v15  ;;  %v1328_v63 = vsel %vm620_vm10, %v10132_v13, %v10131_v2  ;;  %v1428_v61 = vsel %vm1049_vm3, %v10134_v44, %v1427_v49  ;;  %v10141_v46 = vrot.slane %v10140_v12, 5 }
 0x1c7   : > { %v1479_v56 = vsel %vm10137_vm2, %v10136_v30, %v10135_v4  ;;  %v1591_v26 = vsel %vm1584_vm11, %v10139_v27, %v1590_v1  ;;  %v10142_v2 = vrot.slane %v6705_v5, 5  ;;  %v1439_v53 = vadd.f32 %v1430_v59, %v1341_v9  ;;  %vm10269_vm2 = vmmov %vm10110_vm1 }
 0x1c8   : > { %v1340_v44 = vadd.f32 %v1328_v63, %v1287_v51  ;;  %v10143_v49 = vrot.slane %v10069_v10, 1  ;;  %v10145_v4 = vrot.slane %v6679_v24, 7  ;;  %v10146_v30 = vrot.slane %v6606_v41, 7 }
 0x1c9   : > { %v1642_v13 = vsel %vm1559_vm0, %v10142_v2, %v10141_v46  ;;  %v10147_v27 = vrot.slane %v6907_v23, 5  ;;  %v10148_v0 = vmov %v10141_v46  ;;  %v10149_v10 = vmov %v10144_v20 }
 0x1ca   : > { %v650_v43 = vsel %vm645_vm14, %v10144_v20, %v10143_v49  ;;  %v701_v1 = vsel %vm620_vm10, %v10146_v30, %v10145_v4  ;;  %v10150_v63 = vrot.slane %v6611_v29, 1  ;;  %v10151_v24 = vrot.slane %v10099_v11, 1  ;;  %v10155_v4 = vld [vmem:[#allocation188_spill] sm:$0xff] }
 0x1cb   : > { %v1644_v46 = vsel %vm1559_vm0, %v10148_v0, %v10147_v27  ;;  %v661_v51 = vadd.f32 %v650_v43, %v6648_v34  ;;  %v10152_v41 = vrot.slane %v6779_v32, 1  ;;  %v1492_v2 = vadd.f32 %v1481_v21, %v1439_v53 }
 0x1cc   : > { %v648_v59 = vsel %vm645_vm14, %v10150_v63, %v10149_v10  ;;  %v1438_v49 = vadd.f32 %v1428_v61, %v1340_v44  ;;  %v10153_v43 = vrot.slane %v6686_v6, 7  ;;  %v10154_v16 = vrot.slane %v6623_v33, 7  ;;  %v10159_v10 = vld [vmem:[#allocation190_spill] sm:$0xff] }
 0x1cd   : > { %v891_v9 = vsel %vm645_vm14, %v10152_v41, %v10151_v24  ;;  %v660_v12 = vadd.f32 %v648_v59, %v6594_v48  ;;  %v714_v20 = vadd.f32 %v701_v1, %v661_v51  ;;  %v1040_v11 = vmul.f32 %v10155_v4, %v6648_v34  ;;  %v10161_v24 = vld [vmem:[#allocation189_spill] sm:$0xff] }
 0x1ce   : > { %v902_v0 = vadd.f32 %v891_v9, %v6648_v34  ;;  %v942_v29 = vsel %vm620_vm10, %v10154_v16, %v10153_v43  ;;  %v10156_v30 = vrot.slane %v6690_v3, 6  ;;  %v10157_v27 = vrot.slane %v6627_v28, 6 }
 0x1cf   : > { %v1602_v21 = vadd.f32 %v1593_v22, %v1492_v2  ;;  %v1491_v61 = vadd.f32 %v1479_v56, %v1438_v49  ;;  %v713_v44 = vadd.f32 %v6726_v25, %v660_v12  ;;  %v724_v51 = vmul.f32 0.5, %v714_v20  ;;  %v10163_v22 = vld [vmem:[#allocation194_spill] sm:$0xff] }
 0x1d0   : > { %v1105_v53 = vsel %vm10158_vm12, %v10157_v27, %v10156_v30  ;;  %v955_v1 = vadd.f32 %v942_v29, %v902_v0  ;;  %v1051_v6 = vrot.slane %v1040_v11, 2  ;;  %v6979_v63 = vmul.f32 %v10159_v10, %v6648_v34  ;;  %v10166_v0 = vld [vmem:[#allocation191_spill] sm:$0xff]  ;;  %vm10293_vm12 = vmmov %vm10215_vm8 }
 0x1d1   : > { %v10160_v59 = vrot.slane %v6637_v31, 7  ;;  %v10162_v41 = vrot.slane %v10161_v24, 7  ;;  %v1655_v9 = vadd.f32 %v1644_v46, %v1602_v21  ;;  %v1601_v43 = vadd.f32 %v1591_v26, %v1491_v61  ;;  %v10169_v46 = vld [vmem:[#allocation30_spill] sm:$0xff]  ;;  %v10173_v24 = vld [vmem:[#allocation197_spill] sm:$0xff] }
 0x1d2   : > { %v723_v16 = vmul.f32 0.5, %v713_v44  ;;  %v6988_v56 = vmul.f32 %v10163_v22, %v6648_v34  ;;  %v10164_v25 = vrot.slane %v10111_v54, 2  ;;  %v9519_v49 = vrot.slane %v6979_v63, 1  ;;  %v10172_v44 = vld [vmem:[#allocation196_spill] sm:$0xff] }
 0x1d3   : > { %v1324_v3 = vsel %vm620_vm10, %v10162_v41, %v10160_v59  ;;  %v10165_v12 = vrot.slane %v6657_v57, 6  ;;  %v10167_v20 = vrot.slane %v10166_v0, 6  ;;  %v10170_v26 = vrot.slane %v10169_v46, 5 }
 0x1d4   : > { %v1054_v2 = vsel %vm1049_vm3, %v1051_v6, %v10164_v25  ;;  %v1665_v11 = vmul.f32 0.25, %v1655_v9  ;;  %v1654_v30 = vadd.f32 %v1642_v13, %v1601_v43  ;;  %v9516_v21 = vrot.slane %v6988_v56, 2 }
 0x1d5   : > { %v1475_v29 = vsel %vm10168_vm5, %v10167_v20, %v10165_v12  ;;  %v1574_v4 = vmul.f32 %v10170_v26, %v6594_v48  ;;  %v1065_v27 = vadd.f32 %v1054_v2, %v955_v1  ;;  %v10171_v54 = vrot.slane %v6632_v18, 1  ;;  %v10175_v2 = vld [vmem:[#allocation22_spill] sm:$0xff]  ;;  %v10178_v26 = vld [vmem:[#allocation193_spill] sm:$0xff]  ;;  %vm10302_vm5 = vmmov %vm10110_vm1 }
 0x1d6   : > { %v7010_v10 = vmul.f32 %v10172_v44, %v6648_v34  ;;  %v7014_v41 = vmul.f32 %v10173_v24, %v6594_v48  ;;  %3795 = vrot.lane.b32.xlu1 %v1665_v11, %s4915_s6  ;;  %v1664_v13 = vmul.f32 0.25, %v1654_v30  ;;  %v10174_v18 = vrot.slane %v6653_v35, 2  ;;  %v10180_v30 = vld [vmem:[#allocation24_spill] sm:$0xff]  ;;  %v10183_v44 = vld [vmem:[#allocation195_spill] sm:$0xff] }
 0x1d7   : > { %v1273_v61 = vsel %vm645_vm14, %v10171_v54, %v9519_v49  ;;  %v1585_v59 = vrot.slane %v1574_v4, 3  ;;  %v1118_v1 = vadd.f32 %v1105_v53, %v1065_v27  ;;  %v10176_v12 = vrot.slane %v10175_v2, 7 }
 0x1d8   : > { %v1285_v9 = vadd.f32 %v1273_v61, %v6594_v48  ;;  %v1424_v43 = vsel %vm1049_vm3, %v10174_v18, %v9516_v21  ;;  %v9513_v22 = vrot.slane %v7010_v10, 3  ;;  %v9512_v25 = vrot.slane %v7014_v41, 5  ;;  %3793 = vrot.lane.b32.xlu0 %v1664_v13, %s4915_s6 }
 0x1d9   : > { %v877_v0 = vmul.f32 %v10176_v12, %v6594_v48  ;;  %v10177_v20 = vrot.slane %v6623_v33, 7  ;;  %v10179_v53 = vrot.slane %v10178_v26, 7  ;;  %v1128_v11 = vmul.f32 0.33333334, %v1118_v1  ;;  %v10186_v12 = vld [vmem:[#allocation192_spill] sm:$0xff] }
 0x1da   : > { %v1338_v35 = vadd.f32 %v1324_v3, %v1285_v9  ;;  %v10181_v27 = vrot.slane %v10180_v30, 6  ;;  %v10182_v61 = vrot.slane %v6627_v28, 6  ;;  %v10184_v24 = vrot.slane %v10183_v44, 6  ;;  %v10188_v9 = vld [vmem:[#allocation33_spill] sm:$0xff]  ;;  %3751 = vrot.lane.b32.xlu1 %v724_v51, %s4913_s28  ;;  %v10195_v51 = vld [vmem:[#allocation203_spill] sm:$0xff]  ;;  %v10279_v30 = vld [vmem:[#allocation240_spill] sm:$0xff] }
 0x1db   : > { %v940_v4 = vsel %vm620_vm10, %v10179_v53, %v10177_v20  ;;  %v1587_v33 = vsel %vm1584_vm11, %v1585_v59, %v9513_v22  ;;  %v10187_v13 = vrot.slane %v10186_v12, 5  ;;  %v887_v1 = vrot.slane %v877_v0, 1  ;;  %v10191_v59 = vld [vmem:[#allocation201_spill] sm:$0xff] }
 0x1dc   : > { %v1039_v54 = vmul.f32 %v10181_v27, %v6594_v48  ;;  %v1103_v18 = vsel %vm10185_vm6, %v10184_v24, %v10182_v61  ;;  %v10189_v20 = vrot.slane %v10188_v9, 7  ;;  %v1436_v28 = vadd.f32 %v1424_v43, %v1338_v35  ;;  %v10190_v27 = vld [vmem:[#allocation199_spill] sm:$0xff]  ;;  %3749 = vrot.lane.b32.xlu0 %v723_v16, %s4913_s28  ;;  %vm10308_vm6 = vmmov %vm10215_vm8 }
 0x1dd   : > { %v1638_v3 = vsel %vm1559_vm0, %v10187_v13, %v9512_v25  ;;  %v7056_v61 = vmul.f32 %v10190_v27, %v6648_v34  ;;  %v7060_v44 = vmul.f32 %v10191_v59, %v6594_v48  ;;  %v10192_v24 = vrot.slane %v6779_v32, 1  ;;  %v10193_v13 = vld [vmem:[#allocation36_spill] sm:$0xff] }
 0x1de   : > { %v1816_v26 = vmul.f32 %v10189_v20, %v6594_v48  ;;  %v1050_v53 = vrot.slane %v1039_v54, 2  ;;  %v10194_v20 = vrot.slane %v10193_v13, 6  ;;  %v7070_v43 = vmul.f32 %v10195_v51, %v6648_v34  ;;  %3771 = vrot.lane.b32.xlu1 %v1128_v11, %s4914_s29 }
 0x1df   : > { %v889_v0 = vsel %vm645_vm14, %v887_v1, %v10192_v24  ;;  %v1489_v35 = vadd.f32 %v1475_v29, %v1436_v28  ;;  %v9514_v32 = vrot.slane %v7056_v61, 1  ;;  %v9515_v1 = vrot.slane %v7060_v44, 7  ;;  %v10196_v24 = vld [vmem:[#allocation204_spill] sm:$0xff] }
 0x1e0   : > { %v1826_v12 = vrot.slane %v1816_v26, 1  ;;  %v1967_v25 = vmul.f32 %v10194_v20, %v6594_v48  ;;  %v901_v54 = vadd.f32 %v889_v0, %v6594_v48  ;;  %v1052_v27 = vsel %vm1049_vm3, %v1050_v53, %v1051_v6  ;;  %v10197_v6 = vld [vmem:[#allocation40_spill] sm:$0xff]  ;;  %v10199_v0 = vld [vmem:[#allocation198_spill] sm:$0xff] }
 0x1e1   : > { %v9518_v59 = vrot.slane %v7070_v43, 2  ;;  %v7080_v20 = vmul.f32 %v10196_v24, %v6594_v48  ;;  %v1599_v51 = vadd.f32 %v1587_v33, %v1489_v35  ;;  %v10198_v28 = vrot.slane %v10197_v6, 5  ;;  %v10201_v35 = vld [vmem:[#allocation205_spill] sm:$0xff] }
 0x1e2   : > { %v1977_v26 = vrot.slane %v1967_v25, 2  ;;  %v954_v16 = vadd.f32 %v940_v4, %v901_v54  ;;  %v1828_v29 = vsel %vm645_vm14, %v1826_v12, %v9514_v32  ;;  %v10200_v22 = vrot.slane %v10199_v0, 7  ;;  %v10202_v32 = vld [vmem:[#allocation200_spill] sm:$0xff] }
 0x1e3   : > { %v2118_v53 = vmul.f32 %v10198_v28, %v6594_v48  ;;  %v1840_v25 = vadd.f32 %v1828_v29, %v6594_v48  ;;  %v9517_v11 = vrot.slane %v7080_v20, 6  ;;  %v1652_v33 = vadd.f32 %v1638_v3, %v1599_v51 }
 0x1e4   : > { %v1879_v24 = vsel %vm620_vm10, %v10200_v22, %v9515_v1  ;;  %v1979_v4 = vsel %vm1049_vm3, %v1977_v26, %v9518_v59  ;;  %v1064_v12 = vadd.f32 %v1052_v27, %v954_v16  ;;  %v7101_v54 = vmul.f32 %v10201_v35, %v6648_v34  ;;  %v10205_v1 = vld [vmem:[#allocation206_spill] sm:$0xff]  ;;  %v10206_v26 = vld [vmem:[#allocation44_spill] sm:$0xff] }
 0x1e5   : > { %v2128_v28 = vrot.slane %v2118_v53, 3  ;;  %v1893_v29 = vadd.f32 %v1879_v24, %v1840_v25  ;;  %v10203_v0 = vrot.slane %v10202_v32, 6  ;;  %v7110_v21 = vmul.f32 %v10205_v1, %v6594_v48  ;;  %v10208_v53 = vld [vmem:[#allocation209_spill] sm:$0xff] }
 0x1e6   : > { %v10207_v3 = vrot.slane %v10206_v26, 4  ;;  %v1662_v51 = vmul.f32 0.25, %v1652_v33  ;;  %v1117_v16 = vadd.f32 %v1103_v18, %v1064_v12  ;;  %v9521_v35 = vrot.slane %v7101_v54, 3  ;;  %v10210_v12 = vld [vmem:[#allocation48_spill] sm:$0xff] }
 0x1e7   : > { %v2030_v22 = vsel %vm10204_vm4, %v10203_v0, %v9517_v11  ;;  %v7118_v25 = vmul.f32 %v10208_v53, %v6648_v34  ;;  %v1991_v24 = vadd.f32 %v1979_v4, %v1893_v29  ;;  %v9520_v32 = vrot.slane %v7110_v21, 5  ;;  %v10209_v11 = vld [vmem:[#allocation210_spill] sm:$0xff] }
 0x1e8   : > { %v2277_v27 = vmul.f32 %v10207_v3, %v6594_v48  ;;  %v7123_v1 = vmul.f32 %v10209_v11, %v6594_v48  ;;  %3789 = vrot.lane.b32.xlu0 %v1662_v51, %s4915_s6  ;;  %v1127_v59 = vmul.f32 0.33333334, %v1117_v16  ;;  %v2130_v18 = vsel %vm1584_vm11, %v2128_v28, %v9521_v35  ;;  %v10214_v16 = vld [vmem:[#allocation212_spill] sm:$0xff] }
 0x1e9   : > { %v9522_v33 = vrot.slane %v7118_v25, 4  ;;  %v10211_v3 = vrot.slane %v10210_v12, 3  ;;  %v2044_v29 = vadd.f32 %v2030_v22, %v1991_v24  ;;  %v7141_v49 = vmul.f32 %v10214_v16, %v6648_v34  ;;  %v10216_v22 = vld [vmem:[#allocation213_spill] sm:$0xff]  ;;  %v10219_v16 = vld [vmem:[#allocation207_spill] sm:$0xff] }
 0x1ea   : > { %v2287_v0 = vrot.slane %v2277_v27, 4  ;;  %v10212_v27 = vld [vmem:[#allocation202_spill] sm:$0xff]  ;;  %v9533_v51 = vrot.slane %v7123_v1, 4  ;;  %3769 = vrot.lane.b32.xlu1 %v1127_v59, %s4914_s29  ;;  %v7149_v24 = vmul.f32 %v10216_v22, %v6594_v48  ;;  %v10220_v59 = vrot.slane %v10219_v16, 4 }
 0x1eb   : > { %v2428_v4 = vmul.f32 %v10211_v3, %v6594_v48  ;;  %v10213_v53 = vrot.slane %v10212_v27, 5  ;;  %v10217_v27 = vrot.slane %v10129_v17, 1  ;;  %v2142_v35 = vadd.f32 %v2130_v18, %v2044_v29 }
 0x1ec   : > { %v2289_v28 = vsel %vm10215_vm8, %v2287_v0, %v9522_v33  ;;  %v2337_v12 = vsel %vm10221_vm9, %v10220_v59, %v9533_v51  ;;  %v9527_v0 = vrot.slane %v7141_v49, 5  ;;  %v9523_v22 = vrot.slane %v7149_v24, 3 }
 0x1ed   : > { %v2181_v11 = vsel %vm1559_vm0, %v10213_v53, %v9520_v32  ;;  %v2440_v3 = vrot.slane %v2428_v4, 5  ;;  %v10218_v53 = vrot.slane %v6979_v63, 1  ;;  %v10222_v33 = vrot.slane %v6694_v14, 7 }
 0x1ee   : > { %v10223_v17 = vrot.slane %v6637_v31, 7  ;;  %v10224_v18 = vrot.slane %v10133_v40, 2  ;;  %v10225_v29 = vrot.slane %v6988_v56, 2  ;;  %v10227_v16 = vrot.slane %v6657_v57, 6 }
 0x1ef   : > { %v1275_v32 = vsel %vm645_vm14, %v10218_v53, %v10217_v27  ;;  %v10226_v53 = vrot.slane %v6701_v42, 6  ;;  %v2195_v59 = vadd.f32 %v2181_v11, %v2142_v35  ;;  %v2442_v14 = vsel %vm1559_vm0, %v2440_v3, %v9527_v0  ;;  %v10235_v3 = vld [vmem:[#allocation51_spill] sm:$0xff] }
 0x1f0   : > { %v1286_v4 = vadd.f32 %v1275_v32, %v6648_v34  ;;  %v1326_v63 = vsel %vm620_vm10, %v10223_v17, %v10222_v33  ;;  %v1426_v27 = vsel %vm1049_vm3, %v10225_v29, %v10224_v18  ;;  %v10229_v33 = vrot.slane %v10138_v36, 3  ;;  %v10231_v17 = vld [vmem:[#allocation208_spill] sm:$0xff] }
 0x1f1   : > { %v1477_v32 = vsel %vm10228_vm7, %v10227_v16, %v10226_v53  ;;  %v10230_v40 = vrot.slane %v7010_v10, 3  ;;  %v10232_v42 = vrot.slane %v10231_v17, 3  ;;  %v10233_v18 = vrot.slane %v6705_v5, 5  ;;  %v10237_v10 = vld [vmem:[#allocation214_spill] sm:$0xff]  ;;  %v10238_v16 = vld [vmem:[#allocation216_spill] sm:$0xff]  ;;  %vm10321_vm7 = vmmov %vm10110_vm1 }
 0x1f2   : > { %v1339_v31 = vadd.f32 %v1326_v63, %v1286_v4  ;;  %v10234_v35 = vrot.slane %v7014_v41, 5  ;;  %v10236_v4 = vrot.slane %v10235_v3, 7  ;;  %v7202_v63 = vmul.f32 %v10237_v10, %v6648_v34  ;;  %v10239_v5 = vld [vmem:[#allocation56_spill] sm:$0xff] }
 0x1f3   : > { %v1589_v56 = vsel %vm1584_vm11, %v10230_v40, %v10229_v33  ;;  %v2492_v57 = vsel %vm1584_vm11, %v10232_v42, %v9523_v22  ;;  %v2301_v29 = vadd.f32 %v2289_v28, %v2195_v59  ;;  %v7206_v33 = vmul.f32 %v10238_v16, %v6594_v48 }
 0x1f4   : > { %v1640_v11 = vsel %vm1559_vm0, %v10234_v35, %v10233_v18  ;;  %v2668_v36 = vmul.f32 %v10236_v4, %v6594_v48  ;;  %v1437_v53 = vadd.f32 %v1426_v27, %v1339_v31  ;;  %v10240_v40 = vrot.slane %v10239_v5, 6  ;;  %v10297_v5 = vld [vmem:[#allocation250_spill] sm:$0xff] }
 0x1f5   : > { %v9524_v42 = vrot.slane %v7202_v63, 1  ;;  %v7214_v18 = vmul.f32 %v6380_v19, %v6648_v34  ;;  %v7218_v35 = vmul.f32 %v6385_v37, %v6594_v48  ;;  %v2349_v28 = vadd.f32 %v2337_v12, %v2301_v29  ;;  %v10241_v19 = vld [vmem:[#allocation60_spill] sm:$0xff] }
 0x1f6   : > { %v2819_v41 = vmul.f32 %v10240_v40, %v6594_v48  ;;  %v2678_v17 = vrot.slane %v2668_v36, 1  ;;  %v1490_v27 = vadd.f32 %v1477_v32, %v1437_v53  ;;  %v9525_v59 = vrot.slane %v7206_v33, 7  ;;  %v10243_v32 = vld [vmem:[#allocation211_spill] sm:$0xff] }
 0x1f7   : > { %v9526_v36 = vrot.slane %v7214_v18, 2  ;;  %v9528_v10 = vrot.slane %v7218_v35, 6  ;;  %v10242_v16 = vrot.slane %v10241_v19, 5  ;;  %v2456_v22 = vadd.f32 %v2442_v14, %v2349_v28  ;;  %v10247_v14 = vld [vmem:[#allocation219_spill] sm:$0xff] }
 0x1f8   : > { %v2829_v31 = vrot.slane %v2819_v41, 2  ;;  %v2680_v4 = vsel %vm645_vm14, %v2678_v17, %v9524_v42  ;;  %v1600_v37 = vadd.f32 %v1589_v56, %v1490_v27  ;;  %v10244_v29 = vrot.slane %v10243_v32, 7  ;;  %v10245_v17 = vld [vmem:[#allocation215_spill] sm:$0xff] }
 0x1f9   : > { %v2970_v40 = vmul.f32 %v10242_v16, %v6594_v48  ;;  %v2692_v12 = vadd.f32 %v2680_v4, %v6594_v48  ;;  %v10246_v42 = vrot.slane %v10245_v17, 6  ;;  %v7245_v56 = vmul.f32 %v10247_v14, %v6648_v34  ;;  %v10252_v14 = vld [vmem:[#allocation222_spill] sm:$0xff] }
 0x1fa   : > { %v2731_v53 = vsel %vm620_vm10, %v10244_v29, %v9525_v59  ;;  %v2831_v41 = vsel %vm1049_vm3, %v2829_v31, %v9526_v36  ;;  %v2504_v27 = vadd.f32 %v2492_v57, %v2456_v22  ;;  %v1653_v4 = vadd.f32 %v1640_v11, %v1600_v37  ;;  %v10248_v29 = vld [vmem:[#allocation220_spill] sm:$0xff] }
 0x1fb   : > { %v2882_v16 = vsel %vm10110_vm1, %v10246_v42, %v9528_v10  ;;  %v2980_v28 = vrot.slane %v2970_v40, 3  ;;  %v2745_v32 = vadd.f32 %v2731_v53, %v2692_v12  ;;  %v7249_v59 = vmul.f32 %v10248_v29, %v6594_v48  ;;  %v10249_v36 = vld [vmem:[#allocation64_spill] sm:$0xff]  ;;  %v10251_v42 = vld [vmem:[#allocation221_spill] sm:$0xff] }
 0x1fc   : > { %v9531_v31 = vrot.slane %v7245_v56, 3  ;;  %v10250_v0 = vrot.slane %v10249_v36, 4  ;;  %v7257_v10 = vmul.f32 %v10251_v42, %v6648_v34  ;;  %v7261_v40 = vmul.f32 %v10252_v14, %v6594_v48 }
 0x1fd   : > { %v2514_v22 = vmul.f32 0.16666667, %v2504_v27  ;;  %v1663_v57 = vmul.f32 0.25, %v1653_v4  ;;  %v2843_v11 = vadd.f32 %v2831_v41, %v2745_v32  ;;  %v9529_v37 = vrot.slane %v7249_v59, 5  ;;  %v10253_v41 = vld [vmem:[#allocation217_spill] sm:$0xff] }
 0x1fe   : > { %v3121_v17 = vmul.f32 %v10250_v0, %v6594_v48  ;;  %v2982_v12 = vsel %vm1584_vm11, %v2980_v28, %v9531_v31  ;;  %v9530_v0 = vrot.slane %v7257_v10, 4  ;;  %v9532_v29 = vrot.slane %v7261_v40, 4 }
 0x1ff   : > { %3809 = vrot.lane.b32.xlu0 %v2514_v22, %s4916_s30  ;;  %3791 = vrot.lane.b32.xlu1 %v1663_v57, %s4915_s6  ;;  %v2896_v42 = vadd.f32 %v2882_v16, %v2843_v11  ;;  %v10254_v27 = vrot.slane %v10253_v41, 5  ;;  %v10255_v28 = vrot.slane %v9972_v60, 3  ;;  %v10257_v22 = vld [vmem:[#allocation218_spill] sm:$0xff]  ;;  %v7290_v11 = vmul.f32 %v6440_v50, %v6648_v34 }
 0x200   : > { %v3131_v53 = vrot.slane %v3121_v17, 4  ;;  %v10258_v16 = vrot.slane %v10257_v22, 4  ;;  %v7294_v41 = vmul.f32 %v6448_v45, %v6594_v48  ;;  %v10262_v50 = vld [vmem:[#allocation226_spill] sm:$0xff]  ;;  %v10265_v17 = vld [vmem:[#allocation228_spill] sm:$0xff]  ;;  %v10280_v13 = vrot.slane %v10279_v30, 2 }
 0x201   : > { %v3033_v4 = vsel %vm1559_vm0, %v10254_v27, %v9529_v37  ;;  %v3268_v32 = vmul.f32 %v10255_v28, %v6594_v48  ;;  %v2994_v27 = vadd.f32 %v2982_v12, %v2896_v42  ;;  %v10260_v37 = vrot.slane %v9980_v62, 2  ;;  %v10263_v45 = vld [vmem:[#allocation74_spill] sm:$0xff] }
 0x202   : > { %v3133_v14 = vsel %vm10256_vm13, %v3131_v53, %v9530_v0  ;;  %v3181_v57 = vsel %vm10259_vm15, %v10258_v16, %v9532_v29  ;;  %v10261_v0 = vld [vmem:[#allocation225_spill] sm:$0xff]  ;;  %v9535_v22 = vrot.slane %v7290_v11, 5  ;;  %v7307_v29 = vmul.f32 %v10262_v50, %v6594_v48  ;;  %v10267_v50 = vld [vmem:[#allocation223_spill] sm:$0xff]  ;;  %vm10333_vm15 = vmmov %vm10269_vm2 }
 0x203   : > { %v3280_v28 = vrot.slane %v3268_v32, 5  ;;  %v3423_v53 = vmul.f32 %v10260_v37, %v6594_v48  ;;  %v7301_v31 = vmul.f32 %v10261_v0, %v6648_v34  ;;  %v10264_v12 = vrot.slane %v10263_v45, 1  ;;  %v10270_v45 = vld [vmem:[#allocation230_spill] sm:$0xff] }
 0x204   : > { %v3047_v32 = vadd.f32 %v3033_v4, %v2994_v27  ;;  %v7315_v0 = vmul.f32 %v10265_v17, %v6648_v34  ;;  %v10266_v26 = vrot.slane %v7294_v41, 3  ;;  %v10268_v62 = vrot.slane %v10267_v50, 3 }
 0x205   : > { %v3578_v42 = vmul.f32 %v10264_v12, %v6594_v48  ;;  %v3435_v51 = vrot.slane %v3423_v53, 6  ;;  %v9536_v37 = vrot.slane %v7301_v31, 6  ;;  %v3282_v16 = vsel %vm1559_vm0, %v3280_v28, %v9535_v22  ;;  %v10271_v28 = vld [vmem:[#allocation224_spill] sm:$0xff] }
 0x206   : > { %v3332_v6 = vsel %vm1584_vm11, %v10268_v62, %v10266_v26  ;;  %v9538_v12 = vrot.slane %v7307_v29, 2  ;;  %v3145_v27 = vadd.f32 %v3133_v14, %v3047_v32  ;;  %v7332_v46 = vmul.f32 %v10270_v45, %v6594_v48  ;;  %v10273_v26 = vld [vmem:[#allocation81_spill] sm:$0xff]  ;;  %v10274_v14 = vld [vmem:[#allocation239_spill] sm:$0xff] }
 0x207   : > { %v3590_v4 = vrot.slane %v3578_v42, 7  ;;  %v3437_v53 = vsel %vm10269_vm2, %v3435_v51, %v9536_v37  ;;  %v10272_v50 = vrot.slane %v10271_v28, 2  ;;  %v3714_v42 = vmul.f32 %v10273_v26, %v6648_v34  ;;  %v10277_v37 = vld [vmem:[#allocation244_spill] sm:$0xff] }
 0x208   : > { %v10275_v32 = vrot.slane %v10274_v14, 1  ;;  %v10276_v22 = vrot.slane %v7056_v61, 1  ;;  %v7348_v17 = vmul.f32 %v10277_v37, %v6648_v34  ;;  %v3193_v45 = vadd.f32 %v3181_v57, %v3145_v27  ;;  %v10282_v37 = vld [vmem:[#allocation245_spill] sm:$0xff]  ;;  %v10283_v57 = vld [vmem:[#allocation247_spill] sm:$0xff] }
 0x209   : > { %v3487_v62 = vsel %vm1049_vm3, %v10272_v50, %v9538_v12  ;;  %v10278_v60 = vrot.slane %v7315_v0, 7  ;;  %v10281_v61 = vrot.slane %v7070_v43, 2  ;;  %v10284_v27 = vrot.slane %v10283_v57, 3  ;;  %v10289_v43 = vld [vmem:[#allocation251_spill] sm:$0xff] }
 0x20a   : > { %v1830_v51 = vsel %vm645_vm14, %v10276_v22, %v10275_v32  ;;  %v1880_v26 = vrot.slane %v7348_v17, 7  ;;  %v7363_v32 = vmul.f32 %v10282_v37, %v6648_v34  ;;  %v3296_v50 = vadd.f32 %v3282_v16, %v3193_v45  ;;  %v10287_v17 = vld [vmem:[#allocation229_spill] sm:$0xff] }
 0x20b   : > { %v3592_v28 = vsel %vm620_vm10, %v3590_v4, %v10278_v60  ;;  %v1841_v12 = vadd.f32 %v1830_v51, %v6648_v34  ;;  %v1981_v22 = vsel %vm1049_vm3, %v10281_v61, %v10280_v13  ;;  %v10285_v60 = vrot.slane %v7101_v54, 3  ;;  %v10290_v61 = vld [vmem:[#allocation249_spill] sm:$0xff] }
 0x20c   : > { %v10286_v51 = vrot.slane %v7332_v46, 1  ;;  %v10288_v36 = vrot.slane %v10287_v17, 1  ;;  %v7377_v13 = vmul.f32 %v10289_v43, %v6648_v34  ;;  %v10291_v37 = vrot.slane %v10290_v61, 4 }
 0x20d   : > { %v2132_v4 = vsel %vm1584_vm11, %v10285_v60, %v10284_v27  ;;  %v10292_v9 = vrot.slane %v7118_v25, 4  ;;  %v10294_v54 = vrot.slane %v7060_v44, 7  ;;  %v9540_v45 = vrot.slane %v7363_v32, 6  ;;  %v10295_v27 = vld [vmem:[#allocation252_spill] sm:$0xff] }
 0x20e   : > { %v3642_v2 = vsel %vm645_vm14, %v10288_v36, %v10286_v51  ;;  %v7390_v60 = vmul.f32 %v10295_v27, %v6648_v34  ;;  %v10296_v36 = vld [vmem:[#allocation253_spill] sm:$0xff]  ;;  %v3344_v17 = vadd.f32 %v3332_v6, %v3296_v50  ;;  %v9541_v25 = vrot.slane %v7377_v13, 5 }
 0x20f   : > { %v2291_v19 = vsel %vm10293_vm12, %v10292_v9, %v10291_v37  ;;  %v1881_v16 = vsel %vm620_vm10, %v10294_v54, %v1880_v26  ;;  %v7394_v51 = vmul.f32 %v10296_v36, %v5467_v15  ;;  %v10298_v9 = vrot.slane %v10297_v5, 5  ;;  %v10299_v37 = vld [vmem:[#allocation50_spill] sm:$0xff] }
 0x210   : > { %v1894_v43 = vadd.f32 %v1881_v16, %v1841_v12  ;;  %v10300_v44 = vrot.slane %v10299_v37, 5  ;;  %v10301_v3 = vrot.slane %v7080_v20, 6  ;;  %v9543_v23 = vrot.slane %v7390_v60, 4  ;;  %v10305_v20 = vld [vmem:[#allocation231_spill] sm:$0xff] }
 0x211   : > { %v9542_v36 = vrot.slane %v7394_v51, 5  ;;  %v3451_v12 = vadd.f32 %v3437_v53, %v3344_v17  ;;  %v10303_v16 = vrot.slane %v7110_v21, 5  ;;  %v10306_v37 = vrot.slane %v10305_v20, 7 }
 0x212   : > { %v2470_v54 = vsel %vm1559_vm0, %v10300_v44, %v10298_v9  ;;  %v2032_v27 = vsel %vm10302_vm5, %v10301_v3, %v9540_v45  ;;  %v1992_v50 = vadd.f32 %v1981_v22, %v1894_v43  ;;  %v10304_v44 = vrot.slane %v6672_v55, 7  ;;  %vm10341_vm5 = vmmov %vm10308_vm6 }
 0x213   : > { %v7410_v6 = vmul.f32 %v2470_v54, %v6648_v34  ;;  %v2183_v9 = vsel %vm1559_vm0, %v10303_v16, %v9541_v25  ;;  %v10307_v45 = vrot.slane %v7123_v1, 4  ;;  %v10309_v53 = vrot.slane %v7141_v49, 5  ;;  %v10311_v25 = vld [vmem:[#allocation248_spill] sm:$0xff] }
 0x214   : > { %v1808_v3 = vsel %vm620_vm10, %v10306_v37, %v10304_v44  ;;  %v3499_v43 = vadd.f32 %v3487_v62, %v3451_v12  ;;  %v2045_v16 = vadd.f32 %v2032_v27, %v1992_v50  ;;  %v10310_v37 = vld [vmem:[#allocation255_spill] sm:$0xff]  ;;  %vm1901_vm4 = vcmp.lt.s32.totalorder %v10311_v25, 4  ;;  %v10315_v27 = vld [vmem:[#allocation233_spill] sm:$0xff] }
 0x215   : > { %v2339_v54 = vsel %vm10308_vm6, %v10307_v45, %v9543_v23  ;;  %v2444_v21 = vsel %vm1559_vm0, %v10309_v53, %v9542_v36  ;;  %v9544_v22 = vrot.slane %v7410_v6, 3  ;;  %v7434_v17 = vmul.f32 %v1808_v3, %v6697_v38  ;;  %vm10345_vm6 = vmmov %vm10341_vm5 }
 0x216   : > { %v9545_v44 = vrot.slane %v10310_v37, 1  ;;  %v10312_v1 = vrot.slane %v7149_v24, 3  ;;  %v10313_v53 = vmov 0.0   ;;  %vm1916_vm8 = vcmp.ge.s32.totalorder %v10311_v25, 2 }
 0x217   : > { %v9546_v49 = vrot.slane %v7434_v17, 1  ;;  %v7445_v36 = vsel %vm1901_vm4, 1.0, %v10313_v53  ;;  %v3606_v3 = vadd.f32 %v3592_v28, %v3499_v43  ;;  %v2143_v62 = vadd.f32 %v2132_v4, %v2045_v16 }
 0x218   : > { %v2494_v45 = vsel %vm1584_vm11, %v10312_v1, %v9544_v22  ;;  %10314 = vst [vmem:[#allocation154_spill] sm:$0xff] %v7445_v36  ;;  %v10316_v12 = vrot.slane %v10315_v27, 1  ;;  %v7454_v23 = vsel %vm1916_vm8, 1.0, %v10313_v53  ;;  %v10318_v24 = vrot.slane %v10274_v14, 1  ;;  %v10319_v14 = vld [vmem:[#allocation232_spill] sm:$0xff]  ;;  %vm10356_vm8 = vmmov %vm10341_vm5 }
 0x219   : > { %10317 = vst [vmem:[#allocation109_spill] sm:$0xff] %v7454_v23  ;;  %v9547_v28 = vrot.slane %v7445_v36, 6  ;;  %v9548_v4 = vrot.slane %v7454_v23, 2  ;;  %v3654_v43 = vadd.f32 %v3642_v2, %v3606_v3  ;;  %v2196_v16 = vadd.f32 %v2183_v9, %v2143_v62 }
 0x21a   : > { %v1856_v50 = vsel %vm645_vm14, %v10316_v12, %v9545_v44  ;;  %v1832_v1 = vsel %vm645_vm14, %v10318_v24, %v9546_v49  ;;  %vm2052_vm9 = vcmp.lt.s32.totalorder %v10311_v25, 3  ;;  %v10320_v27 = vrot.slane %v10319_v14, 6 }
 0x21b   : > { %v7462_v22 = vmul.f32 %v1856_v50, %v5467_v15  ;;  %v1842_v12 = vadd.f32 %v1832_v1, %v5467_v15  ;;  %v10322_v50 = vld [vmem:[#allocation234_spill] sm:$0xff]  ;;  %v7480_v2 = vsel %vm2052_vm9, 1.0, %v10313_v53  ;;  %v3719_v9 = vadd.f32 %v3714_v42, %v3654_v43  ;;  %vm10363_vm9 = vmmov %vm10341_vm5 }
 0x21c   : > { %v1959_v24 = vsel %vm10321_vm7, %v10320_v27, %v9547_v28  ;;  %v10323_v49 = vrot.slane %v10322_v50, 2  ;;  %10324 = vst [vmem:[#allocation155_spill] sm:$0xff] %v7480_v2  ;;  %v2302_v3 = vadd.f32 %v2291_v19, %v2196_v16  ;;  %vm2067_vm1 = vcmp.ge.s32.totalorder %v10311_v25, 3 }
 0x21d   : > { %v9549_v44 = vrot.slane %v7462_v22, 7  ;;  %v7483_v62 = vmul.f32 %v1959_v24, %v6697_v38  ;;  %v9550_v28 = vrot.slane %v7480_v2, 5  ;;  %vm2203_vm13 = vcmp.lt.s32.totalorder %v10311_v25, 2 }
 0x21e   : > { %v2007_v20 = vsel %vm1049_vm3, %v10323_v49, %v9548_v4  ;;  %v10325_v49 = vld [vmem:[#allocation227_spill] sm:$0xff]  ;;  %v2350_v42 = vadd.f32 %v2339_v54, %v2302_v3  ;;  %v7506_v50 = vsel %vm2203_vm13, 1.0, %v10313_v53  ;;  %v10330_v54 = vrot.slane %v10279_v30, 2  ;;  %vm10376_vm13 = vmmov %vm10333_vm15 }
 0x21f   : > { %v7486_v1 = vmul.f32 %v2007_v20, %v5467_v15  ;;  %v1883_v27 = vsel %vm620_vm10, %v1880_v26, %v9549_v44  ;;  %v3729_v4 = vadd.f32 %v10325_v49, %v3719_v9  ;;  %v9553_v43 = vrot.slane %v7483_v62, 2  ;;  %v10327_v26 = vld [vmem:[#allocation235_spill] sm:$0xff]  ;;  %10329 = vst [vmem:[#allocation156_spill] sm:$0xff] %v7506_v50 }
 0x220   : > { %v1895_v19 = vadd.f32 %v1883_v27, %v1842_v12  ;;  %v7498_v20 = vsel %vm2067_vm1, 1.0, %v10313_v53  ;;  %v10328_v24 = vrot.slane %v10327_v26, 5  ;;  %v2457_v9 = vadd.f32 %v2444_v21, %v2350_v42 }
 0x221   : > { %v9551_v16 = vrot.slane %v7486_v1, 6  ;;  %10326 = vst [vmem:[#allocation157_spill] sm:$0xff] %v7498_v20  ;;  %v3739_v14 = vmul.f32 0.11111111, %v3729_v4  ;;  %v1983_v12 = vsel %vm1049_vm3, %v10330_v54, %v9553_v43  ;;  %v10332_v49 = vrot.slane %v7363_v32, 6  ;;  %v10335_v32 = vld [vmem:[#allocation241_spill] sm:$0xff] }
 0x222   : > { %v2110_v44 = vsel %vm1559_vm0, %v10328_v24, %v9550_v28  ;;  %v1993_v27 = vadd.f32 %v1983_v12, %v1895_v19  ;;  %v9552_v28 = vrot.slane %v7498_v20, 3  ;;  %vm2218_vm2 = vcmp.ge.s32.totalorder %v10311_v25, 4 }
 0x223   : > { %v7514_v3 = vmul.f32 %v2110_v44, %v6697_v38  ;;  %v2034_v24 = vsel %vm10333_vm15, %v10332_v49, %v9551_v16  ;;  %3829 = vrot.lane.b32.xlu0 %v3739_v14, %s4917_s8  ;;  %v2505_v30 = vadd.f32 %v2494_v45, %v2457_v9  ;;  %v7526_v44 = vsel %vm2218_vm2, 1.0, %v10313_v53 }
 0x224   : > { %10334 = vst [vmem:[#allocation172_spill] sm:$0xff] %v7526_v44  ;;  %v9556_v4 = vrot.slane %v7506_v50, 4  ;;  %v2046_v42 = vadd.f32 %v2034_v24, %v1993_v27  ;;  %v10336_v19 = vrot.slane %v10335_v32, 3  ;;  %v9555_v12 = vrot.slane %v7526_v44, 4  ;;  %v10339_v27 = vld [vmem:[#allocation237_spill] sm:$0xff] }
 0x225   : > { %10331 = vst [vmem:[#allocation158_spill] sm:$0xff] %v7514_v3  ;;  %v9554_v21 = vrot.slane %v7514_v3, 3  ;;  %vm2357_vm12 = vcmp.lt.s32.totalorder %v10311_v25, 1  ;;  %v2515_v14 = vmul.f32 0.16666667, %v2505_v30  ;;  %v10337_v45 = vrot.slane %v10283_v57, 3 }
 0x226   : > { %v2158_v54 = vsel %vm1584_vm11, %v10336_v19, %v9552_v28  ;;  %v10340_v24 = vrot.slane %v10339_v27, 4  ;;  %v10343_v30 = vld [vmem:[#allocation242_spill] sm:$0xff]  ;;  %vm2372_vm4 = vcmp.ge.s32.totalorder %v10311_v25, 5  ;;  %v10352_v25 = vld [vmem:[#allocation243_spill] sm:$0xff] }
 0x227   : > { %v2134_v9 = vsel %vm1584_vm11, %v10337_v45, %v9554_v21  ;;  %v7542_v49 = vmul.f32 %v2158_v54, %v5467_v15  ;;  %v10344_v43 = vrot.slane %v10343_v30, 4  ;;  %v7558_v45 = vsel %vm2357_vm12, 1.0, %v10313_v53  ;;  %3811 = vrot.lane.b32.xlu1 %v2515_v14, %s4916_s30 }
 0x228   : > { %v2269_v19 = vsel %vm10341_vm5, %v10340_v24, %v9556_v4  ;;  %v2144_v16 = vadd.f32 %v2134_v9, %v2046_v42  ;;  %10346 = vst [vmem:[#allocation184_spill] sm:$0xff] %v7558_v45  ;;  %v9559_v42 = vrot.slane %v7558_v45, 3  ;;  %v7569_v24 = vsel %vm2372_vm4, 1.0, %v10313_v53  ;;  %vm10402_vm4 = vmmov %vm10376_vm13 }
 0x229   : > { %10338 = vst [vmem:[#allocation173_spill] sm:$0xff] %v7542_v49  ;;  %v7550_v28 = vmul.f32 %v2269_v19, %v6697_v38  ;;  %v2317_v57 = vsel %vm10345_vm6, %v10344_v43, %v9555_v12  ;;  %v9558_v54 = vrot.slane %v7542_v49, 5  ;;  %10348 = vst [vmem:[#allocation187_spill] sm:$0xff] %v7569_v24  ;;  %v10349_v43 = vld [vmem:[#allocation236_spill] sm:$0xff]  ;;  %v10350_v12 = vld [vmem:[#allocation238_spill] sm:$0xff]  ;;  %v10351_v14 = vrot.slane %v7377_v13, 5 }
 0x22a   : > { %v7563_v21 = vmul.f32 %v2317_v57, %v5467_v15  ;;  %v10353_v27 = vrot.slane %v10352_v25, 3  ;;  %v9560_v32 = vrot.slane %v7569_v24, 5  ;;  %v10355_v4 = vrot.slane %v10290_v61, 4 }
 0x22b   : > { %10342 = vst [vmem:[#allocation186_spill] sm:$0xff] %v7550_v28  ;;  %v2185_v57 = vsel %vm1559_vm0, %v10351_v14, %v9558_v54  ;;  %v10354_v19 = vrot.slane %v7550_v28, 4  ;;  %v10358_v14 = vrot.slane %v10349_v43, 7  ;;  %v10359_v54 = vld [vmem:[#allocation52_spill] sm:$0xff]  ;;  %v10364_v61 = vrot.slane %v10297_v5, 5 }
 0x22c   : > { %10347 = vst [vmem:[#allocation185_spill] sm:$0xff] %v7563_v21  ;;  %v2419_v9 = vsel %vm1584_vm11, %v10353_v27, %v9559_v42  ;;  %v2197_v26 = vadd.f32 %v2185_v57, %v2144_v16  ;;  %v10360_v30 = vrot.slane %v10359_v54, 7  ;;  %v10361_v27 = vrot.slane %v7563_v21, 4  ;;  %v10366_v57 = vld [vmem:[#allocation53_spill] sm:$0xff] }
 0x22d   : > { %v2293_v39 = vsel %vm10356_vm8, %v10355_v4, %v10354_v19  ;;  %v7591_v13 = vmul.f32 %v2419_v9, %v6697_v38  ;;  %v10362_v42 = vrot.slane %v7390_v60, 4  ;;  %v2472_v4 = vsel %vm1559_vm0, %v10364_v61, %v9560_v32  ;;  %v10369_v32 = vld [vmem:[#allocation83_spill] sm:$0xff] }
 0x22e   : > { %v2658_v25 = vsel %vm620_vm10, %v10360_v30, %v10358_v14  ;;  %v10365_v19 = vrot.slane %v10350_v12, 1  ;;  %v10367_v54 = vrot.slane %v10366_v57, 1  ;;  %v2303_v14 = vadd.f32 %v2293_v39, %v2197_v26 }
 0x22f   : > { %10357 = vst [vmem:[#allocation183_spill] sm:$0xff] %v7591_v13  ;;  %v2341_v16 = vsel %vm10363_vm9, %v10362_v42, %v10361_v27  ;;  %v7609_v9 = vmul.f32 %v2658_v25, %v5467_v15  ;;  %v9563_v60 = vrot.slane %v7591_v13, 5  ;;  %v7618_v42 = vmul.f32 %v2472_v4, %v5467_v15  ;;  %v10370_v25 = vld [vmem:[#allocation246_spill] sm:$0xff]  ;;  %vm10408_vm9 = vmmov %vm10341_vm5 }
 0x230   : > { %v2706_v30 = vsel %vm645_vm14, %v10367_v54, %v10365_v19  ;;  %vm2767_vm7 = vcmp.ge.s32.totalorder %v10369_v32, 2  ;;  %vm2903_vm1 = vcmp.lt.s32.totalorder %v10369_v32, 6  ;;  %v2351_v57 = vadd.f32 %v2341_v16, %v2303_v14  ;;  %v10374_v14 = vld [vmem:[#allocation59_spill] sm:$0xff] }
 0x231   : > { %10368 = vst [vmem:[#allocation188_spill] sm:$0xff] %v7618_v42  ;;  %v7621_v27 = vmul.f32 %v2706_v30, %v6648_v34  ;;  %v9564_v61 = vrot.slane %v7609_v9, 1  ;;  %v10371_v39 = vrot.slane %v7394_v51, 5  ;;  %v9566_v54 = vrot.slane %v7618_v42, 3 }
 0x232   : > { %v10372_v19 = vrot.slane %v7202_v63, 1  ;;  %v7640_v5 = vsel %vm2767_vm7, 1.0, %v10313_v53  ;;  %v10373_v16 = vrot.slane %v10370_v25, 6  ;;  %v10375_v58 = vrot.slane %v10374_v14, 6 }
 0x233   : > { %v2446_v26 = vsel %vm1559_vm0, %v10371_v39, %v9563_v60  ;;  %v7648_v39 = vsel %vm2903_vm1, 1.0, %v10313_v53  ;;  %v10378_v4 = vrot.slane %v7410_v6, 3  ;;  %v10380_v13 = vrot.slane %v7206_v33, 7  ;;  %vm10413_vm1 = vmmov %vm10341_vm5 }
 0x234   : > { %v2682_v30 = vsel %vm645_vm14, %v10372_v19, %v9564_v61  ;;  %v2809_v51 = vsel %vm10376_vm13, %v10375_v58, %v10373_v16  ;;  %10377 = vst [vmem:[#allocation190_spill] sm:$0xff] %v7648_v39  ;;  %v2458_v60 = vadd.f32 %v2446_v26, %v2351_v57  ;;  %v10379_v61 = vrot.slane %v7621_v27, 7 }
 0x235   : > { %v2496_v63 = vsel %vm1584_vm11, %v10378_v4, %v9566_v54  ;;  %v2693_v19 = vadd.f32 %v2682_v30, %v6648_v34  ;;  %v7662_v58 = vmul.f32 %v2809_v51, %v5467_v15  ;;  %v9568_v16 = vrot.slane %v7640_v5, 2  ;;  %v10384_v51 = vld [vmem:[#allocation66_spill] sm:$0xff] }
 0x236   : > { %v2733_v14 = vsel %vm620_vm10, %v10380_v13, %v10379_v61  ;;  %vm2918_vm15 = vcmp.ge.s32.totalorder %v10369_v32, 3  ;;  %v9569_v57 = vrot.slane %v7648_v39, 5  ;;  %v2506_v6 = vadd.f32 %v2496_v63, %v2458_v60  ;;  %v10382_v13 = vld [vmem:[#allocation58_spill] sm:$0xff] }
 0x237   : > { %v2746_v26 = vadd.f32 %v2733_v14, %v2693_v19  ;;  %v7668_v4 = vsel %vm2918_vm15, 1.0, %v10313_v53  ;;  %vm3054_vm2 = vcmp.lt.s32.totalorder %v10369_v32, 5  ;;  %v10383_v61 = vrot.slane %v10382_v13, 2 }
 0x238   : > { %10381 = vst [vmem:[#allocation189_spill] sm:$0xff] %v7668_v4  ;;  %v10385_v54 = vrot.slane %v10384_v51, 5  ;;  %v9571_v14 = vrot.slane %v7668_v4, 3  ;;  %v2516_v63 = vmul.f32 0.16666667, %v2506_v6  ;;  %v7690_v42 = vsel %vm3054_vm2, 1.0, %v10313_v53  ;;  %vm10417_vm2 = vmmov %vm10413_vm1 }
 0x239   : > { %v2857_v30 = vsel %vm1049_vm3, %v10383_v61, %v9568_v16  ;;  %10386 = vst [vmem:[#allocation194_spill] sm:$0xff] %v7690_v42  ;;  %v10387_v61 = vrot.slane %v7662_v58, 2  ;;  %v10388_v16 = vrot.slane %v7214_v18, 2  ;;  %vm3069_vm12 = vcmp.ge.s32.totalorder %v10369_v32, 4 }
 0x23a   : > { %v2960_v60 = vsel %vm1559_vm0, %v10385_v54, %v9569_v57  ;;  %v7684_v19 = vmul.f32 %v2857_v30, %v6648_v34  ;;  %v10389_v54 = vld [vmem:[#allocation62_spill] sm:$0xff]  ;;  %v9574_v30 = vrot.slane %v7690_v42, 4  ;;  %3813 = vrot.lane.b32.xlu0 %v2516_v63, %s4916_s30  ;;  %vm3215_vm6 = vcmp.ge.s32.totalorder %v10369_v32, 5  ;;  %v10399_v63 = vld [vmem:[#allocation77_spill] sm:$0xff] }
 0x23b   : > { %v7687_v33 = vmul.f32 %v2960_v60, %v5467_v15  ;;  %v2833_v51 = vsel %vm1049_vm3, %v10388_v16, %v10387_v61  ;;  %v10390_v57 = vrot.slane %v10389_v54, 3  ;;  %v10391_v60 = vld [vmem:[#allocation111_spill] sm:$0xff]  ;;  %v7715_v54 = vsel %vm3069_vm12, 1.0, %v10313_v53  ;;  %vm10423_vm12 = vmmov %vm10402_vm4 }
 0x23c   : > { %v10392_v13 = vrot.slane %v10391_v60, 3  ;;  %v2844_v18 = vadd.f32 %v2833_v51, %v2746_v26  ;;  %v9575_v16 = vrot.slane %v7684_v19, 6  ;;  %10394 = vst [vmem:[#allocation196_spill] sm:$0xff] %v7715_v54  ;;  %v10400_v26 = vrot.slane %v10399_v63, 3 }
 0x23d   : > { %v3008_v6 = vsel %vm1584_vm11, %v10390_v57, %v9571_v14  ;;  %v10395_v57 = vld [vmem:[#allocation76_spill] sm:$0xff]  ;;  %v9578_v52 = vrot.slane %v7687_v33, 3  ;;  %v7740_v63 = vsel %vm3215_vm6, 1.0, %v10313_v53  ;;  %vm3351_vm8 = vcmp.lt.s32.totalorder %v10369_v32, 3 }
 0x23e   : > { %v7707_v7 = vadd.f32 %v10392_v13, %v6846_v47  ;;  %v7712_v61 = vmul.f32 %v3008_v6, %v6648_v34  ;;  %v10396_v14 = vrot.slane %v10395_v57, 4  ;;  %v10397_v47 = vld [vmem:[#allocation119_spill] sm:$0xff]  ;;  %v10401_v6 = vrot.slane %v7218_v35, 6  ;;  %10403 = vst [vmem:[#allocation197_spill] sm:$0xff] %v7740_v63 }
 0x23f   : > { %v10398_v13 = vrot.slane %v10397_v47, 3  ;;  %v9579_v47 = vrot.slane %v7715_v54, 4  ;;  %v10404_v35 = vrot.slane %v7245_v56, 3  ;;  %vm3366_vm7 = vcmp.ge.s32.totalorder %v10369_v32, 6 }
 0x240   : > { %10393 = vst [vmem:[#allocation191_spill] sm:$0xff] %v7707_v7  ;;  %v3111_v21 = vsel %vm10341_vm5, %v10396_v14, %v9574_v30  ;;  %v2884_v60 = vsel %vm10402_vm4, %v10401_v6, %v9575_v16  ;;  %v9577_v57 = vrot.slane %v7712_v61, 5  ;;  %v10406_v16 = vld [vmem:[#allocation67_spill] sm:$0xff]  ;;  %vm3506_vm13 = vcmp.lt.s32.totalorder %v10369_v32, 2 }
 0x241   : > { %v3257_v51 = vsel %vm1584_vm11, %v10400_v26, %v10398_v13  ;;  %v7736_v14 = vmul.f32 %v3111_v21, %v5467_v15  ;;  %v2897_v30 = vadd.f32 %v2884_v60, %v2844_v18  ;;  %v2984_v26 = vsel %vm1584_vm11, %v10404_v35, %v9578_v52 }
 0x242   : > { %v7743_v13 = vmul.f32 %v3257_v51, %v5467_v15  ;;  %v10405_v21 = vrot.slane %v7249_v59, 5  ;;  %v9580_v18 = vrot.slane %v7740_v63, 5  ;;  %v10407_v28 = vrot.slane %v10406_v16, 4 }
 0x243   : > { %v2995_v6 = vadd.f32 %v2984_v26, %v2897_v30  ;;  %v9581_v51 = vrot.slane %v7736_v14, 4  ;;  %v7764_v35 = vsel %vm3351_vm8, 1.0, %v10313_v53  ;;  %vm3521_vm15 = vcmp.ge.s32.totalorder %v10369_v32, 7  ;;  %vm10449_vm8 = vmmov %vm10402_vm4 }
 0x244   : > { %v3035_v60 = vsel %vm1559_vm0, %v10405_v21, %v9577_v57  ;;  %v3159_v56 = vsel %vm10408_vm9, %v10407_v28, %v9579_v47  ;;  %10409 = vst [vmem:[#allocation193_spill] sm:$0xff] %v7764_v35  ;;  %v10410_v57 = vld [vmem:[#allocation70_spill] sm:$0xff]  ;;  %v10412_v28 = vrot.slane %v7257_v10, 4  ;;  %v7785_v21 = vsel %vm3366_vm7, 1.0, %v10313_v53  ;;  %vm10468_vm9 = vmmov %vm10413_vm1 }
 0x245   : > { %v7767_v59 = vmul.f32 %v3159_v56, %v6648_v34  ;;  %v10411_v30 = vrot.slane %v10410_v57, 5  ;;  %v3048_v52 = vadd.f32 %v3035_v60, %v2995_v6  ;;  %10414 = vst [vmem:[#allocation195_spill] sm:$0xff] %v7785_v21  ;;  %v9588_v57 = vrot.slane %v7764_v35, 2  ;;  %vm10472_vm7 = vmmov %vm10413_vm1 }
 0x246   : > { %v3135_v47 = vsel %vm10413_vm1, %v10412_v28, %v9581_v51  ;;  %v7793_v10 = vsel %vm3506_vm13, 1.0, %v10313_v53  ;;  %v7812_v49 = vsel %vm3521_vm15, 1.0, %v10313_v53  ;;  %v10445_v8 = vrot.slane %v10350_v12, 1  ;;  %vm10476_vm1 = vmmov %vm10402_vm4 }
 0x247   : > { %v3310_v26 = vsel %vm1559_vm0, %v10411_v30, %v9580_v18  ;;  %v9587_v16 = vrot.slane %v7767_v59, 4  ;;  %v3146_v60 = vadd.f32 %v3135_v47, %v3048_v52  ;;  %10415 = vst [vmem:[#allocation192_spill] sm:$0xff] %v7793_v10  ;;  %v10418_v18 = vld [vmem:[#allocation79_spill] sm:$0xff]  ;;  %v10420_v52 = vrot.slane %v7785_v21, 6  ;;  %v10421_v47 = vld [vmem:[#allocation73_spill] sm:$0xff]  ;;  %10424 = vst [vmem:[#allocation199_spill] sm:$0xff] %v7812_v49 }
 0x248   : > { %v7782_v56 = vmul.f32 %v3310_v26, %v6648_v34  ;;  %v10416_v26 = vrot.slane %v7261_v40, 4  ;;  %v10419_v51 = vrot.slane %v10418_v18, 2  ;;  %v10422_v6 = vrot.slane %v10421_v47, 6 }
 0x249   : > { %v10425_v40 = vrot.slane %v7743_v13, 5  ;;  %v10432_v44 = vrot.slane %v7812_v49, 7 }
 0x24a   : > { %v3183_v28 = vsel %vm10417_vm2, %v10416_v26, %v9587_v16  ;;  %v3412_v30 = vsel %vm1049_vm3, %v10419_v51, %v9588_v57  ;;  %v3465_v24 = vsel %vm10423_vm12, %v10422_v6, %v10420_v52  ;;  %v10426_v26 = vrot.slane %v7290_v11, 5  ;;  %v10427_v52 = vld [vmem:[#allocation42_spill] sm:$0xff]  ;;  %vm10484_vm12 = vmmov %vm10417_vm2 }
 0x24b   : > { %v3194_v45 = vadd.f32 %v3183_v28, %v3146_v60  ;;  %v7820_v18 = vmul.f32 %v3412_v30, %v5467_v15  ;;  %v7823_v51 = vmul.f32 %v3465_v24, %v6648_v34  ;;  %v9591_v57 = vrot.slane %v7793_v10, 1 }
 0x24c   : > { %v3284_v16 = vsel %vm1559_vm0, %v10426_v26, %v10425_v40  ;;  %vm3660_vm5 = vcmp.lt.s32.totalorder %v10427_v52, 1  ;;  %vm3675_vm6 = vcmp.ge.s32.totalorder %v10427_v52, 8  ;;  %v10428_v28 = vrot.slane %v7782_v56, 3  ;;  %v10430_v26 = vld [vmem:[#allocation80_spill] sm:$0xff]  ;;  %v10433_v52 = vld [vmem:[#allocation78_spill] sm:$0xff] }
 0x24d   : > { %v3297_v60 = vadd.f32 %v3284_v16, %v3194_v45  ;;  %v10429_v11 = vrot.slane %v7294_v41, 3  ;;  %v9593_v30 = vrot.slane %v7820_v18, 6  ;;  %v10431_v47 = vrot.slane %v10430_v26, 1 }
 0x24e   : > { %v10434_v45 = vrot.slane %v10433_v52, 7  ;;  %v7847_v41 = vsel %vm3660_vm5, 1.0, %v10313_v53  ;;  %v10437_v24 = vrot.slane %v7301_v31, 6  ;;  %v10442_v31 = vrot.slane %v10349_v43, 7 }
 0x24f   : > { %v3334_v40 = vsel %vm1584_vm11, %v10429_v11, %v10428_v28  ;;  %v3567_v6 = vsel %vm645_vm14, %v10431_v47, %v9591_v57  ;;  %10435 = vst [vmem:[#allocation201_spill] sm:$0xff] %v7847_v41  ;;  %v7850_v28 = vsel %vm3675_vm6, 1.0, %v10313_v53  ;;  %v3715_v57 = vmul.f32 %v7847_v41, %v5467_v15  ;;  %vm10493_vm6 = vmmov %vm10476_vm1 }
 0x250   : > { %v3620_v16 = vsel %vm620_vm10, %v10434_v45, %v10432_v44  ;;  %10436 = vst [vmem:[#allocation203_spill] sm:$0xff] %v7850_v28  ;;  %v3345_v11 = vadd.f32 %v3334_v40, %v3297_v60  ;;  %v3439_v26 = vsel %vm10402_vm4, %v10437_v24, %v9593_v30  ;;  %v7858_v47 = vmul.f32 %v3567_v6, %v5467_v15  ;;  %v10440_v40 = vld [vmem:[#allocation85_spill] sm:$0xff]  ;;  %v10443_v6 = vld [vmem:[#allocation84_spill] sm:$0xff] }
 0x251   : > { %v10438_v44 = vrot.slane %v7823_v51, 2  ;;  %v10439_v45 = vrot.slane %v7307_v29, 2  ;;  %v7868_v60 = vmul.f32 %v3620_v16, %v6648_v34  ;;  %v10441_v3 = vrot.slane %v10440_v40, 7  ;;  %v10446_v40 = vld [vmem:[#allocation91_spill] sm:$0xff] }
 0x252   : > { %v10444_v30 = vrot.slane %v10443_v6, 1  ;;  %v3452_v7 = vadd.f32 %v3439_v26, %v3345_v11  ;;  %v10447_v43 = vrot.slane %v10446_v40, 6  ;;  %v10450_v6 = vld [vmem:[#allocation87_spill] sm:$0xff]  ;;  %v10453_v26 = vld [vmem:[#allocation97_spill] sm:$0xff]  ;;  %v10457_v40 = vrot.slane %v7315_v0, 7 }
 0x253   : > { %v3489_v52 = vsel %vm1049_vm3, %v10439_v45, %v10438_v44  ;;  %v2660_v24 = vsel %vm620_vm10, %v10442_v31, %v10441_v3  ;;  %v10448_v3 = vrot.slane %v10370_v25, 6  ;;  %v10451_v12 = vrot.slane %v10450_v6, 2 }
 0x254   : > { %v2708_v41 = vsel %vm645_vm14, %v10445_v8, %v10444_v30  ;;  %v7882_v44 = vmul.f32 %v2660_v24, %v6697_v38  ;;  %v10452_v8 = vrot.slane %v7640_v5, 2  ;;  %v10454_v11 = vrot.slane %v10453_v26, 5 }
 0x255   : > { %v7885_v16 = vmul.f32 %v2708_v41, %v5467_v15  ;;  %v2811_v31 = vsel %vm10449_vm8, %v10448_v3, %v10447_v43  ;;  %v10455_v24 = vrot.slane %v7648_v39, 5  ;;  %v3500_v29 = vadd.f32 %v3489_v52, %v3452_v7  ;;  %v10587_v39 = vld [vmem:[#allocation15_spill] sm:$0xff] }
 0x256   : > { %v2859_v30 = vsel %vm1049_vm3, %v10452_v8, %v10451_v12  ;;  %v10456_v45 = vrot.slane %v7858_v47, 7  ;;  %v9599_v43 = vrot.slane %v7882_v44, 1  ;;  %v10458_v6 = vrot.slane %v7868_v60, 1 }
 0x257   : > { %v2962_v41 = vsel %vm1559_vm0, %v10455_v24, %v10454_v11  ;;  %v9598_v3 = vrot.slane %v7885_v16, 7  ;;  %v10459_v12 = vrot.slane %v7332_v46, 1  ;;  %v7916_v26 = vmul.f32 %v2811_v31, %v6697_v38  ;;  %v10462_v31 = vld [vmem:[#allocation88_spill] sm:$0xff] }
 0x258   : > { %v3594_v25 = vsel %vm620_vm10, %v10457_v40, %v10456_v45  ;;  %v7919_v7 = vmul.f32 %v2859_v30, %v5467_v15  ;;  %v7922_v0 = vmul.f32 %v2962_v41, %v6697_v38  ;;  %v10460_v40 = vrot.slane %v7609_v9, 1 }
 0x259   : > { %v3644_v8 = vsel %vm645_vm14, %v10459_v12, %v10458_v6  ;;  %v3607_v52 = vadd.f32 %v3594_v25, %v3500_v29  ;;  %v10461_v46 = vrot.slane %v7621_v27, 7  ;;  %v10463_v11 = vrot.slane %v10462_v31, 3  ;;  %v10465_v27 = vld [vmem:[#allocation105_spill] sm:$0xff]  ;;  %v10469_v31 = vld [vmem:[#allocation92_spill] sm:$0xff] }
 0x25a   : > { %v2684_v45 = vsel %vm645_vm14, %v10460_v40, %v9599_v43  ;;  %v10464_v30 = vrot.slane %v7668_v4, 3  ;;  %v9601_v29 = vrot.slane %v7916_v26, 2  ;;  %v3725_v9 = vmul.f32 %v7850_v28, %v6594_v48 }
 0x25b   : > { %v2735_v6 = vsel %vm620_vm10, %v10461_v46, %v9598_v3  ;;  %v2694_v25 = vadd.f32 %v2684_v45, %v5467_v15  ;;  %v3655_v12 = vadd.f32 %v3644_v8, %v3607_v52  ;;  %v10466_v46 = vrot.slane %v10465_v27, 4 }
 0x25c   : > { %v3010_v24 = vsel %vm1584_vm11, %v10464_v30, %v10463_v11  ;;  %v10467_v3 = vrot.slane %v7690_v42, 4  ;;  %v10470_v11 = vrot.slane %v10469_v31, 4  ;;  %v10471_v45 = vrot.slane %v7715_v54, 4  ;;  %v10579_v42 = vld [vmem:[#allocation104_spill] sm:$0xff] }
 0x25d   : > { %v7944_v40 = vmul.f32 %v3010_v24, %v5467_v15  ;;  %v2747_v41 = vadd.f32 %v2735_v6, %v2694_v25  ;;  %v10473_v8 = vrot.slane %v7662_v58, 2  ;;  %v10474_v24 = vrot.slane %v7919_v7, 6  ;;  %v10478_v58 = vld [vmem:[#allocation130_spill] sm:$0xff] }
 0x25e   : > { %v3113_v43 = vsel %vm10468_vm9, %v10467_v3, %v10466_v46  ;;  %v3161_v30 = vsel %vm10472_vm7, %v10471_v45, %v10470_v11  ;;  %v10475_v3 = vrot.slane %v7684_v19, 6  ;;  %v3720_v31 = vadd.f32 %v3715_v57, %v3655_v12  ;;  %v10477_v45 = vld [vmem:[#allocation6_spill] sm:$0xff]  ;;  %vm10500_vm9 = vmmov %vm10476_vm1 }
 0x25f   : > { %v2835_v52 = vsel %vm1049_vm3, %v10473_v8, %v9601_v29  ;;  %v9600_v27 = vrot.slane %v7944_v40, 5  ;;  %v7970_v11 = vmul.f32 %v3113_v43, %v6697_v38  ;;  %v7973_v6 = vmul.f32 %v3161_v30, %v5467_v15 }
 0x260   : > { %v2886_v46 = vsel %vm10476_vm1, %v10475_v3, %v10474_v24  ;;  %v2845_v25 = vadd.f32 %v2835_v52, %v2747_v41  ;;  %vm3216_vm13 = vcmp.ge.s32.totalorder %v10477_v45, 5  ;;  %v7978_v8 = vmul.f32 %v10478_v58, %v6697_v38 }
 0x261   : > { %vm3367_vm15 = vcmp.ge.s32.totalorder %v10477_v45, 6  ;;  %v3730_v19 = vadd.f32 %v3725_v9, %v3720_v31  ;;  %v10479_v57 = vrot.slane %v7922_v0, 3  ;;  %v10480_v12 = vrot.slane %v7687_v33, 3 }
 0x262   : > { %v10481_v30 = vrot.slane %v7712_v61, 5  ;;  %v9604_v52 = vrot.slane %v7970_v11, 4  ;;  %v2898_v24 = vadd.f32 %v2886_v46, %v2845_v25  ;;  %v9603_v3 = vrot.slane %v7973_v6, 4 }
 0x263   : > { %v2986_v43 = vsel %vm1584_vm11, %v10480_v12, %v10479_v57  ;;  %v7994_v58 = vsel %vm3216_vm13, 1.0, %v10313_v53  ;;  %v7997_v31 = vsel %vm3367_vm15, 1.0, %v10313_v53  ;;  %v3740_v33 = vmul.f32 0.11111111, %v3730_v19 }
 0x264   : > { %v3037_v41 = vsel %vm1559_vm0, %v10481_v30, %v9600_v27  ;;  %v10482_v9 = vrot.slane %v7736_v14, 4  ;;  %v9605_v12 = vrot.slane %v7994_v58, 5  ;;  %v2996_v46 = vadd.f32 %v2986_v43, %v2898_v24  ;;  %v10485_v27 = vld [vmem:[#allocation114_spill] sm:$0xff] }
 0x265   : > { %v10483_v25 = vrot.slane %v7767_v59, 4  ;;  %v10486_v29 = vrot.slane %v10485_v27, 2  ;;  %v10487_v19 = vrot.slane %v7764_v35, 2  ;;  %v9606_v14 = vrot.slane %v7997_v31, 6  ;;  %3831 = vrot.lane.b32.xlu1 %v3740_v33, %s4917_s8 }
 0x266   : > { %v3137_v61 = vsel %vm10417_vm2, %v10482_v9, %v9604_v52  ;;  %v10488_v43 = vrot.slane %v7740_v63, 5  ;;  %vm3522_vm5 = vcmp.ge.s32.totalorder %v10477_v45, 7  ;;  %v10489_v9 = vld [vmem:[#allocation117_spill] sm:$0xff]  ;;  %v10492_v52 = vrot.slane %v7785_v21, 6 }
 0x267   : > { %v3185_v30 = vsel %vm10484_vm12, %v10483_v25, %v9603_v3  ;;  %v3414_v28 = vsel %vm1049_vm3, %v10487_v19, %v10486_v29  ;;  %v10490_v25 = vrot.slane %v10489_v9, 1  ;;  %v10491_v3 = vrot.slane %v7793_v10, 1 }
 0x268   : > { %v3312_v24 = vsel %vm1559_vm0, %v10488_v43, %v9605_v12  ;;  %v8024_v59 = vmul.f32 %v3414_v28, %v6697_v38  ;;  %v3049_v19 = vadd.f32 %v3037_v41, %v2996_v46  ;;  %v3467_v43 = vsel %vm10493_vm6, %v10492_v52, %v9606_v14 }
 0x269   : > { %v3569_v29 = vsel %vm645_vm14, %v10491_v3, %v10490_v25  ;;  %v8033_v33 = vmul.f32 %v3312_v24, %v5467_v15  ;;  %v8041_v28 = vsel %vm3522_vm5, 1.0, %v10313_v53  ;;  %v8045_v57 = vmul.f32 %v3467_v43, %v5467_v15  ;;  %vm10517_vm5 = vmmov %vm10493_vm6 }
 0x26a   : > { %10494 = vst [vmem:[#allocation204_spill] sm:$0xff] %v8041_v28  ;;  %v8048_v3 = vmul.f32 %v3569_v29, %v6697_v38  ;;  %v9607_v41 = vrot.slane %v8041_v28, 7  ;;  %v3147_v46 = vadd.f32 %v3137_v61, %v3049_v19  ;;  %v10495_v24 = vrot.slane %v7978_v8, 5 }
 0x26b   : > { %v10496_v25 = vrot.slane %v7743_v13, 5  ;;  %vm3661_vm4 = vcmp.lt.s32.totalorder %v10369_v32, 1  ;;  %vm3676_vm8 = vcmp.ge.s32.totalorder %v10369_v32, 8  ;;  %v9608_v14 = vrot.slane %v8033_v33, 3 }
 0x26c   : > { %v10497_v61 = vrot.slane %v7812_v49, 7  ;;  %v3195_v12 = vadd.f32 %v3185_v30, %v3147_v46  ;;  %v10498_v13 = vrot.slane %v8024_v59, 6  ;;  %v8075_v43 = vsel %vm3661_vm4, 1.0, %v10313_v53 }
 0x26d   : > { %v3286_v52 = vsel %vm1559_vm0, %v10496_v25, %v10495_v24  ;;  %v10499_v24 = vrot.slane %v7820_v18, 6  ;;  %10501 = vst [vmem:[#allocation198_spill] sm:$0xff] %v8075_v43  ;;  %v10502_v29 = vrot.slane %v7782_v56, 3  ;;  %v10503_v30 = vrot.slane %v8045_v57, 2 }
 0x26e   : > { %v3622_v19 = vsel %vm620_vm10, %v10497_v61, %v9607_v41  ;;  %v10504_v46 = vrot.slane %v7823_v51, 2  ;;  %v10505_v61 = vrot.slane %v8048_v3, 7  ;;  %v3298_v41 = vadd.f32 %v3286_v52, %v3195_v12 }
 0x26f   : > { %v3441_v25 = vsel %vm10500_vm9, %v10499_v24, %v10498_v13  ;;  %v8072_v32 = vmul.f32 %v3622_v19, %v5467_v15  ;;  %v3336_v9 = vsel %vm1584_vm11, %v10502_v29, %v9608_v14  ;;  %v10506_v19 = vrot.slane %v7858_v47, 7  ;;  %v10508_v14 = vld [vmem:[#allocation95_spill] sm:$0xff]  ;;  %vm10532_vm9 = vmmov %vm10517_vm5 }
 0x270   : > { %v3491_v18 = vsel %vm1049_vm3, %v10504_v46, %v10503_v30  ;;  %v8093_v24 = vsel %vm3676_vm8, 1.0, %v10313_v53  ;;  %v3716_v29 = vmul.f32 %v8075_v43, %v6697_v38  ;;  %vm1751_vm7 = vcmp.lt.s32.totalorder %v10508_v14, 5 }
 0x271   : > { %v3596_v13 = vsel %vm620_vm10, %v10506_v19, %v10505_v61  ;;  %10507 = vst [vmem:[#allocation205_spill] sm:$0xff] %v8093_v24  ;;  %v8100_v51 = vsel %vm1751_vm7, 1.0, %v10313_v53  ;;  %vm1766_vm1 = vcmp.ge.s32.totalorder %v10508_v14, 1  ;;  %vm1902_vm13 = vcmp.lt.s32.totalorder %v10508_v14, 4 }
 0x272   : > { %10509 = vst [vmem:[#allocation200_spill] sm:$0xff] %v8100_v51  ;;  %vm1917_vm15 = vcmp.ge.s32.totalorder %v10508_v14, 2  ;;  %v3346_v47 = vadd.f32 %v3336_v9, %v3298_v41  ;;  %v3726_v12 = vmul.f32 %v8093_v24, %v6648_v34  ;;  %v8108_v52 = vsel %vm1766_vm1, 1.0, %v10313_v53 }
 0x273   : > { %v1809_v30 = vrot.slane %v8100_v51, 7  ;;  %v9616_v46 = vrot.slane %v8108_v52, 1  ;;  %v8113_v61 = vsel %vm1902_vm13, 1.0, %v10313_v53  ;;  %v8116_v19 = vsel %vm1917_vm15, 1.0, %v10313_v53  ;;  %v10513_v51 = vld [vmem:[#allocation89_spill] sm:$0xff] }
 0x274   : > { %10510 = vst [vmem:[#allocation206_spill] sm:$0xff] %v8113_v61  ;;  %10511 = vst [vmem:[#allocation209_spill] sm:$0xff] %v8116_v19  ;;  %vm2053_vm2 = vcmp.lt.s32.totalorder %v10508_v14, 3  ;;  %v3453_v56 = vadd.f32 %v3441_v25, %v3346_v47  ;;  %v10512_v9 = vrot.slane %v6672_v55, 7  ;;  %v1960_v24 = vrot.slane %v8113_v61, 6 }
 0x275   : > { %v9618_v27 = vrot.slane %v8116_v19, 2  ;;  %v10514_v49 = vrot.slane %v10310_v37, 1  ;;  %v8133_v21 = vsel %vm2053_vm2, 1.0, %v10313_v53  ;;  %vm2068_vm12 = vcmp.ge.s32.totalorder %v10508_v14, 3 }
 0x276   : > { %v1810_v41 = vsel %vm620_vm10, %v10512_v9, %v1809_v30  ;;  %10515 = vst [vmem:[#allocation210_spill] sm:$0xff] %v8133_v21  ;;  %v3501_v25 = vadd.f32 %v3491_v18, %v3453_v56  ;;  %v10516_v30 = vrot.slane %v7445_v36, 6  ;;  %vm2204_vm6 = vcmp.lt.s32.totalorder %v10508_v14, 2 }
 0x277   : > { %v8125_v43 = vmul.f32 %v1810_v41, %v10513_v51  ;;  %v1858_v10 = vsel %vm645_vm14, %v10514_v49, %v9616_v46  ;;  %v10518_v41 = vrot.slane %v7454_v23, 2  ;;  %vm2219_vm4 = vcmp.ge.s32.totalorder %v10508_v14, 4 }
 0x278   : > { %v8137_v47 = vmul.f32 %v1858_v10, %v6697_v38  ;;  %v1961_v9 = vsel %vm10517_vm5, %v10516_v30, %v1960_v24  ;;  %v8155_v10 = vsel %vm2068_vm12, 1.0, %v10313_v53  ;;  %v3608_v56 = vadd.f32 %v3596_v13, %v3501_v25  ;;  %vm10591_vm12 = vmmov %vm10517_vm5 }
 0x279   : > { %v2009_v61 = vsel %vm1049_vm3, %v10518_v41, %v9618_v27  ;;  %v9621_v49 = vrot.slane %v8125_v43, 1  ;;  %v8149_v46 = vmul.f32 %v1961_v9, %v10513_v51  ;;  %10519 = vst [vmem:[#allocation202_spill] sm:$0xff] %v8155_v10  ;;  %v2111_v30 = vrot.slane %v8133_v21, 5 }
 0x27a   : > { %v8152_v18 = vmul.f32 %v2009_v61, %v6697_v38  ;;  %v10520_v41 = vrot.slane %v8072_v32, 1  ;;  %v10521_v27 = vrot.slane %v7868_v60, 1  ;;  %v10522_v61 = vrot.slane %v7434_v17, 1 }
 0x27b   : > { %v9622_v13 = vrot.slane %v8149_v46, 2  ;;  %v10523_v21 = vrot.slane %v7480_v2, 5  ;;  %vm2373_vm8 = vcmp.ge.s32.totalorder %v10508_v14, 5  ;;  %vm10535_vm7 = vcmask 1043456   ;;  %v10546_v2 = vld [vmem:[#allocation184_spill] sm:$0xff] }
 0x27c   : > { %v3646_v9 = vsel %vm645_vm14, %v10521_v27, %v10520_v41  ;;  %v1834_v36 = vsel %vm645_vm14, %v10522_v61, %v9621_v49  ;;  %v10524_v27 = vrot.slane %v8137_v47, 7  ;;  %v10525_v41 = vrot.slane %v7462_v22, 7  ;;  %vm10543_vm1 = vmmov %vm10535_vm7 }
 0x27d   : > { %v3656_v25 = vadd.f32 %v3646_v9, %v3608_v56  ;;  %v1843_v24 = vadd.f32 %v1834_v36, %v6697_v38  ;;  %v2112_v60 = vsel %vm1559_vm0, %v10523_v21, %v2111_v30  ;;  %v10526_v61 = vrot.slane %v7483_v62, 2  ;;  %vm10563_vm13 = vmmov %vm10543_vm1 }
 0x27e   : > { %v1885_v17 = vsel %vm620_vm10, %v10525_v41, %v10524_v27  ;;  %v8188_v36 = vmul.f32 %v2112_v60, %v10513_v51  ;;  %v10527_v9 = vrot.slane %v8155_v10, 3  ;;  %v10528_v49 = vrot.slane %v7498_v20, 3  ;;  %vm10572_vm15 = vmmov %vm10543_vm1 }
 0x27f   : > { %v1985_v56 = vsel %vm1049_vm3, %v10526_v61, %v9622_v13  ;;  %v3721_v30 = vadd.f32 %v3716_v29, %v3656_v25  ;;  %v1896_v23 = vadd.f32 %v1885_v17, %v1843_v24  ;;  %v8199_v27 = vsel %vm2204_vm6, 1.0, %v10313_v53 }
 0x280   : > { %v2160_v21 = vsel %vm1584_vm11, %v10528_v49, %v10527_v9  ;;  %10529 = vst [vmem:[#allocation212_spill] sm:$0xff] %v8199_v27  ;;  %v9629_v62 = vrot.slane %v8188_v36, 3  ;;  %v2270_v60 = vrot.slane %v8199_v27, 4  ;;  %v10530_v49 = vrot.slane %v8152_v18, 6 }
 0x281   : > { %v8196_v22 = vmul.f32 %v2160_v21, %v6697_v38  ;;  %v3731_v41 = vadd.f32 %v3726_v12, %v3721_v30  ;;  %v1994_v61 = vadd.f32 %v1985_v56, %v1896_v23  ;;  %v10531_v29 = vrot.slane %v7486_v1, 6  ;;  %v10537_v23 = vld [vmem:[#allocation191_spill] sm:$0xff]  ;;  %v10538_v12 = vld [vmem:[#allocation152_spill] sm:$0xff] }
 0x282   : > { %v8211_v25 = vsel %vm2219_vm4, 1.0, %v10313_v53  ;;  %v10534_v9 = vrot.slane %v7506_v50, 4  ;;  %v8219_v14 = vsel %vm2373_vm8, 1.0, %v10313_v53  ;;  %v3051_v56 = vadd.f32 %v10538_v12, %v10537_v23  ;;  %v10544_v50 = vld [vmem:[#allocation99_spill] sm:$0xff]  ;;  %v10549_v12 = vld [vmem:[#allocation173_spill] sm:$0xff]  ;;  %vm10606_vm4 = vmmov %vm10532_vm9 }
 0x283   : > { %v2036_v24 = vsel %vm10532_vm9, %v10531_v29, %v10530_v49  ;;  %10533 = vst [vmem:[#allocation213_spill] sm:$0xff] %v8211_v25  ;;  %v2318_v13 = vrot.slane %v8211_v25, 4  ;;  %10536 = vst [vmem:[#allocation207_spill] sm:$0xff] %v8219_v14  ;;  %v3741_v1 = vmul.f32 0.11111111, %v3731_v41  ;;  %v10539_v29 = vld [vmem:[#allocation158_spill] sm:$0xff] }
 0x284   : > { %v2271_v21 = vsel %vm10535_vm7, %v10534_v9, %v2270_v60  ;;  %v2047_v30 = vadd.f32 %v2036_v24, %v1994_v61  ;;  %v10540_v17 = vrot.slane %v10539_v29, 3  ;;  %v10541_v60 = vld [vmem:[#allocation172_spill] sm:$0xff]  ;;  %v10545_v20 = vrot.slane %v10544_v50, 3  ;;  %vm10608_vm8 = vmmov %vm10606_vm4 }
 0x285   : > { %v8224_v49 = vmul.f32 %v2271_v21, %v10513_v51  ;;  %v10542_v9 = vrot.slane %v10541_v60, 4  ;;  %v10547_v37 = vrot.slane %v10546_v2, 3  ;;  %v2473_v61 = vrot.slane %v8219_v14, 5  ;;  %3833 = vrot.lane.b32.xlu0 %v3741_v1, %s4917_s8  ;;  %v10555_v21 = vld [vmem:[#allocation93_spill] sm:$0xff]  ;;  %vm10612_vm9 = vmmov %vm10543_vm1 }
 0x286   : > { %v2136_v27 = vsel %vm1584_vm11, %v10540_v17, %v9629_v62  ;;  %v10550_v29 = vrot.slane %v10549_v12, 5  ;;  %v10557_v14 = vrot.slane %v7882_v44, 1  ;;  %v10558_v2 = vld [vmem:[#allocation121_spill] sm:$0xff]  ;;  %v10580_v4 = vrot.slane %v10579_v42, 2 }
 0x287   : > { %v2319_v25 = vsel %vm10543_vm1, %v10542_v9, %v2318_v13  ;;  %v2421_v41 = vsel %vm1584_vm11, %v10547_v37, %v10545_v20  ;;  %v2145_v24 = vadd.f32 %v2136_v27, %v2047_v30  ;;  %v10548_v13 = vrot.slane %v8196_v22, 5  ;;  %v10551_v37 = vld [vmem:[#allocation187_spill] sm:$0xff]  ;;  %v10553_v27 = vld [vmem:[#allocation129_spill] sm:$0xff] }
 0x288   : > { %v8243_v23 = vmul.f32 %v2319_v25, %v6697_v38  ;;  %v8246_v17 = vmul.f32 %v2421_v41, %v10513_v51  ;;  %v10552_v20 = vrot.slane %v10551_v37, 5  ;;  %v10554_v1 = vrot.slane %v10553_v27, 1  ;;  %v10573_v27 = vld [vmem:[#allocation106_spill] sm:$0xff] }
 0x289   : > { %v2187_v9 = vsel %vm1559_vm0, %v10550_v29, %v10548_v13  ;;  %v10556_v25 = vrot.slane %v10555_v21, 1  ;;  %v10559_v60 = vrot.slane %v10558_v2, 4  ;;  %v10560_v13 = vrot.slane %v8224_v49, 4  ;;  %v10561_v29 = vld [vmem:[#allocation186_spill] sm:$0xff] }
 0x28a   : > { %v2474_v62 = vsel %vm1559_vm0, %v10552_v20, %v2473_v61  ;;  %v690_v30 = vmul.f32 %v10554_v1, %v10513_v51  ;;  %v2198_v12 = vadd.f32 %v2187_v9, %v2145_v24  ;;  %v10562_v37 = vrot.slane %v10561_v29, 4  ;;  %v10567_v29 = vld [vmem:[#allocation169_spill] sm:$0xff] }
 0x28b   : > { %v2686_v41 = vsel %vm645_vm14, %v10557_v14, %v10556_v25  ;;  %v3149_v35 = vadd.f32 %v10559_v60, %v3051_v56  ;;  %v9637_v20 = vrot.slane %v8243_v23, 4  ;;  %v8274_v21 = vmul.f32 %v2474_v62, %v6697_v38  ;;  %v10564_v25 = vld [vmem:[#allocation136_spill] sm:$0xff]  ;;  %v10565_v60 = vld [vmem:[#allocation134_spill] sm:$0xff]  ;;  %v10570_v62 = vld [vmem:[#allocation185_spill] sm:$0xff] }
 0x28c   : > { %v2295_v61 = vsel %vm10563_vm13, %v10562_v37, %v10560_v13  ;;  %v706_v44 = vrot.slane %v690_v30, 7  ;;  %v2695_v14 = vadd.f32 %v2686_v41, %v6697_v38  ;;  %v10566_v24 = vrot.slane %v10565_v60, 1  ;;  %vm10624_vm13 = vmmov %vm10606_vm4 }
 0x28d   : > { %v2304_v56 = vadd.f32 %v2295_v61, %v2198_v12  ;;  %v10568_v55 = vrot.slane %v10567_v29, 7  ;;  %v10569_v37 = vrot.slane %v7885_v16, 7  ;;  %v10571_v1 = vrot.slane %v10570_v62, 4  ;;  %v10577_v29 = vld [vmem:[#allocation122_spill] sm:$0xff] }
 0x28e   : > { %v664_v9 = vadd.f32 %v10566_v24, %v10513_v51  ;;  %v10574_v12 = vrot.slane %v10573_v27, 7  ;;  %v10575_v24 = vld [vmem:[#allocation125_spill] sm:$0xff]  ;;  %v10578_v54 = vrot.slane %v10577_v29, 5  ;;  %v10581_v62 = vrot.slane %v7916_v26, 2 }
 0x28f   : > { %v2737_v13 = vsel %vm620_vm10, %v10569_v37, %v10568_v55  ;;  %v2343_v30 = vsel %vm10572_vm15, %v10571_v1, %v9637_v20  ;;  %v10576_v63 = vrot.slane %v10575_v24, 5  ;;  %v10582_v20 = vld [vmem:[#allocation133_spill] sm:$0xff]  ;;  %vm3217_vm2 = vcmp.ge.s32.totalorder %v10587_v39, 5  ;;  %vm10645_vm15 = vmmov %vm10606_vm4 }
 0x290   : > { %v707_v61 = vsel %vm620_vm10, %v10574_v12, %v706_v44  ;;  %v2748_v60 = vadd.f32 %v2737_v13, %v2695_v14  ;;  %v2352_v55 = vadd.f32 %v2343_v30, %v2304_v56  ;;  %v2837_v1 = vsel %vm1049_vm3, %v10581_v62, %v10580_v4  ;;  %v10585_v14 = vld [vmem:[#allocation183_spill] sm:$0xff]  ;;  %v10593_v30 = vld [vmem:[#allocation188_spill] sm:$0xff] }
 0x291   : > { %v3290_v16 = vsel %vm1559_vm0, %v10578_v54, %v10576_v63  ;;  %v717_v37 = vadd.f32 %v707_v61, %v664_v9  ;;  %v10583_v41 = vrot.slane %v10582_v20, 4  ;;  %v10584_v44 = vrot.slane %v8246_v17, 5  ;;  %v10588_v56 = vld [vmem:[#allocation103_spill] sm:$0xff] }
 0x292   : > { %v10586_v13 = vrot.slane %v10585_v14, 5  ;;  %v2846_v24 = vadd.f32 %v2837_v1, %v2748_v60  ;;  %v10589_v42 = vrot.slane %v10588_v56, 6  ;;  %v10590_v26 = vrot.slane %v7919_v7, 6  ;;  %v10595_v7 = vld [vmem:[#allocation111_spill] sm:$0xff] }
 0x293   : > { %v3197_v27 = vadd.f32 %v10583_v41, %v3149_v35  ;;  %v727_v63 = vmul.f32 0.5, %v717_v37  ;;  %v8319_v9 = vsel %vm3217_vm2, 1.0, %v10313_v53  ;;  %v10592_v35 = vrot.slane %v8274_v21, 3 }
 0x294   : > { %v2448_v12 = vsel %vm1559_vm0, %v10586_v13, %v10584_v44  ;;  %v2888_v4 = vsel %vm10591_vm12, %v10590_v26, %v10589_v42  ;;  %v10594_v41 = vrot.slane %v10593_v30, 3  ;;  %v3313_v62 = vrot.slane %v8319_v9, 5  ;;  %v10599_v42 = vld [vmem:[#allocation132_spill] sm:$0xff]  ;;  %vm10670_vm12 = vmmov %vm10606_vm4 }
 0x295   : > { %v2459_v54 = vadd.f32 %v2448_v12, %v2352_v55  ;;  %v2899_v60 = vadd.f32 %v2888_v4, %v2846_v24  ;;  %vm3368_vm5 = vcmp.ge.s32.totalorder %v10587_v39, 6  ;;  %3757 = vrot.lane.b32.xlu0 %v727_v63, %s4913_s28  ;;  %v10596_v37 = vrot.slane %v10595_v7, 3 }
 0x296   : > { %v2498_v61 = vsel %vm1584_vm11, %v10594_v41, %v10592_v35  ;;  %v10597_v1 = vrot.slane %v7922_v0, 3  ;;  %v8335_v14 = vsel %vm3368_vm5, 1.0, %v10313_v53  ;;  %vm3523_vm6 = vcmp.ge.s32.totalorder %v10587_v39, 7  ;;  %v10602_v41 = vld [vmem:[#allocation100_spill] sm:$0xff] }
 0x297   : > { %v2507_v55 = vadd.f32 %v2498_v61, %v2459_v54  ;;  %v10598_v12 = vrot.slane %v7994_v58, 5  ;;  %v3468_v54 = vrot.slane %v8335_v14, 6  ;;  %v8343_v63 = vsel %vm3523_vm6, 1.0, %v10313_v53 }
 0x298   : > { %v2988_v44 = vsel %vm1584_vm11, %v10597_v1, %v10596_v37  ;;  %v10600_v0 = vrot.slane %v10599_v42, 5  ;;  %v10601_v26 = vrot.slane %v7944_v40, 5  ;;  %v3623_v30 = vrot.slane %v8343_v63, 7  ;;  %v8361_v40 = vpop.permute.xlu1 %3881 }
 0x299   : > { %v2997_v13 = vadd.f32 %v2988_v44, %v2899_v60  ;;  %v3314_v24 = vsel %vm1559_vm0, %v10598_v12, %v3313_v62  ;;  %v2517_v56 = vmul.f32 0.16666667, %v2507_v55  ;;  %v10603_v61 = vrot.slane %v10602_v41, 6  ;;  %v10604_v60 = vld [vmem:[#allocation126_spill] sm:$0xff]  ;;  %v10609_v44 = vld [vmem:[#allocation131_spill] sm:$0xff] }
 0x29a   : > { %v3039_v4 = vsel %vm1559_vm0, %v10601_v26, %v10600_v0  ;;  %v3324_v35 = vmul.f32 %v3314_v24, %v6697_v38  ;;  %v10605_v62 = vrot.slane %v10604_v60, 6  ;;  %v10607_v1 = vrot.slane %v7997_v31, 6 }
 0x29b   : > { %v3050_v37 = vadd.f32 %v3039_v4, %v2997_v13  ;;  %v3597_v12 = vrot.slane %v10609_v44, 7  ;;  %3815 = vrot.lane.b32.xlu1 %v2517_v56, %s4916_s30  ;;  %v10610_v24 = vrot.slane %v10558_v2, 4  ;;  %v10611_v42 = vrot.slane %v7970_v11, 4 }
 0x29c   : > { %v3445_v7 = vsel %vm10606_vm4, %v10605_v62, %v10603_v61  ;;  %v3469_v55 = vsel %vm10608_vm8, %v10607_v1, %v3468_v54  ;;  %v10613_v13 = vrot.slane %v8041_v28, 7  ;;  %vm3677_vm7 = vcmp.ge.s32.totalorder %v10477_v45, 8  ;;  %v10773_v28 = vld [vmem:[#allocation21_spill] sm:$0xff] }
 0x29d   : > { %v3139_v0 = vsel %vm10612_vm9, %v10611_v42, %v10610_v24  ;;  %v3479_v26 = vmul.f32 %v3469_v55, %v6697_v38  ;;  %v3300_v54 = vadd.f32 %v3290_v16, %v3197_v27  ;;  %v3337_v61 = vrot.slane %v3324_v35, 3  ;;  %v10620_v27 = vld [vmem:[#allocation176_spill] sm:$0xff]  ;;  %vm10681_vm9 = vmmov %vm10543_vm1 }
 0x29e   : > { %v3624_v4 = vsel %vm620_vm10, %v10613_v13, %v3623_v30  ;;  %v3148_v41 = vadd.f32 %v3139_v0, %v3050_v37  ;;  %v10614_v56 = vrot.slane %v10582_v20, 4  ;;  %v10615_v2 = vrot.slane %v7973_v6, 4  ;;  %v10618_v30 = vld [vmem:[#allocation163_spill] sm:$0xff] }
 0x29f   : > { %v3634_v62 = vmul.f32 %v3624_v4, %v6697_v38  ;;  %v10616_v1 = vrot.slane %v10577_v29, 5  ;;  %v10617_v55 = vrot.slane %v7978_v8, 5  ;;  %v10619_v45 = vrot.slane %v10618_v30, 1  ;;  %v10627_v4 = vld [vmem:[#allocation170_spill] sm:$0xff] }
 0x2a0   : > { %v3187_v11 = vsel %vm10543_vm1, %v10615_v2, %v10614_v56  ;;  %v10621_v35 = vrot.slane %v10620_v27, 2  ;;  %v10622_v20 = vrot.slane %v10604_v60, 6  ;;  %v10623_v6 = vrot.slane %v8024_v59, 6 }
 0x2a1   : > { %v3288_v44 = vsel %vm1559_vm0, %v10617_v55, %v10616_v1  ;;  %v1315_v16 = vmul.f32 %v10619_v45, %v10513_v51  ;;  %v3196_v24 = vadd.f32 %v3187_v11, %v3148_v41  ;;  %v10625_v29 = vrot.slane %v8048_v3, 7  ;;  %v10629_v41 = vld [vmem:[#allocation142_spill] sm:$0xff] }
 0x2a2   : > { %v1466_v37 = vmul.f32 %v10621_v35, %v10513_v51  ;;  %v3443_v42 = vsel %vm10624_vm13, %v10623_v6, %v10622_v20  ;;  %v8400_v0 = vsel %vm3677_vm7, 1.0, %v10313_v53  ;;  %v3492_v13 = vrot.slane %v3479_v26, 2  ;;  %v10632_v35 = vld [vmem:[#allocation180_spill] sm:$0xff]  ;;  %v3756_v26 = vpop.permute.xlu1 %3755 }
 0x2a3   : > { %v3598_v8 = vsel %vm620_vm10, %v10625_v29, %v3597_v12  ;;  %10626 = vst [vmem:[#allocation208_spill] sm:$0xff] %v8400_v0  ;;  %v10628_v56 = vrot.slane %v10627_v4, 1  ;;  %v1331_v1 = vrot.slane %v1315_v16, 7  ;;  %v10630_v60 = vrot.slane %v10629_v41, 1  ;;  %v10634_v29 = vld [vmem:[#allocation135_spill] sm:$0xff] }
 0x2a4   : > { %v3299_v59 = vadd.f32 %v3288_v44, %v3196_v24  ;;  %v10631_v55 = vrot.slane %v8033_v33, 3  ;;  %v3647_v45 = vrot.slane %v3634_v62, 1  ;;  %v10633_v20 = vrot.slane %v10632_v35, 3  ;;  %v10636_v44 = vld [vmem:[#allocation12_spill] sm:$0xff] }
 0x2a5   : > { %v1289_v2 = vadd.f32 %v10628_v56, %v10513_v51  ;;  %v931_v11 = vmul.f32 %v10630_v60, %v10513_v51  ;;  %v10635_v27 = vrot.slane %v10634_v29, 7  ;;  %v1482_v16 = vrot.slane %v1466_v37, 6 }
 0x2a6   : > { %v3338_v3 = vsel %vm1584_vm11, %v10631_v55, %v3337_v61  ;;  %v1629_v6 = vmul.f32 %v10633_v20, %v10513_v51  ;;  %v3348_v30 = vadd.f32 %v3337_v61, %v3300_v54  ;;  %v3717_v24 = vmul.f32 %v10636_v44, %v10513_v51  ;;  %v10638_v20 = vld [vmem:[#allocation149_spill] sm:$0xff] }
 0x2a7   : > { %v1332_v4 = vsel %vm620_vm10, %v10635_v27, %v1331_v1  ;;  %v947_v56 = vrot.slane %v931_v11, 7  ;;  %v3347_v41 = vadd.f32 %v3338_v3, %v3299_v59  ;;  %v3727_v33 = vmul.f32 %v8400_v0, %v5467_v15  ;;  %v10641_v1 = vld [vmem:[#allocation181_spill] sm:$0xff]  ;;  %v10643_v3 = vld [vmem:[#allocation108_spill] sm:$0xff] }
 0x2a8   : > { %v1342_v62 = vadd.f32 %v1332_v4, %v1289_v2  ;;  %v10637_v60 = vrot.slane %v8045_v57, 2  ;;  %v10639_v29 = vrot.slane %v10638_v20, 1  ;;  %v3455_v27 = vadd.f32 %v3445_v7, %v3348_v30  ;;  %v10648_v7 = vld [vmem:[#allocation148_spill] sm:$0xff] }
 0x2a9   : > { %vm3678_vm11 = vcmp.ge.s32.totalorder %v10587_v39, 8  ;;  %v3454_v54 = vadd.f32 %v3443_v42, %v3347_v41  ;;  %v10640_v61 = vrot.slane %v8072_v32, 1  ;;  %v10642_v11 = vrot.slane %v10641_v1, 2  ;;  %v10652_v1 = vld [vmem:[#allocation151_spill] sm:$0xff] }
 0x2aa   : > { %v3493_v55 = vsel %vm1049_vm3, %v10637_v60, %v3492_v13  ;;  %v905_v35 = vadd.f32 %v10639_v29, %v10513_v51  ;;  %v1645_v2 = vrot.slane %v1629_v6, 5  ;;  %v10644_v57 = vrot.slane %v10643_v3, 6  ;;  %v10646_v60 = vld [vmem:[#allocation115_spill] sm:$0xff] }
 0x2ab   : > { %v3648_v37 = vsel %vm645_vm14, %v10640_v61, %v3647_v45  ;;  %v1440_v59 = vadd.f32 %v10642_v11, %v1342_v62  ;;  %v10647_v0 = vrot.slane %v10646_v60, 7  ;;  %v10649_v39 = vrot.slane %v10648_v7, 2  ;;  %v3776_v61 = vpop.permute.xlu1 %3775  ;;  %v10653_v11 = vld [vmem:[#allocation19_spill] sm:$0xff] }
 0x2ac   : > { %v1483_v4 = vsel %vm10645_vm15, %v10644_v57, %v1482_v16  ;;  %v3503_v42 = vadd.f32 %v3492_v13, %v3455_v27  ;;  %v3502_v32 = vadd.f32 %v3493_v55, %v3454_v54  ;;  %v10650_v29 = vrot.slane %v10564_v25, 7  ;;  %v10656_v25 = vld [vmem:[#allocation182_spill] sm:$0xff] }
 0x2ad   : > { %v948_v20 = vsel %vm620_vm10, %v10647_v0, %v947_v56  ;;  %v1094_v30 = vmul.f32 %v10649_v39, %v10513_v51  ;;  %v1493_v41 = vadd.f32 %v1483_v4, %v1440_v59  ;;  %v8446_v6 = vsel %vm3678_vm11, 1.0, %v10313_v53  ;;  %v10658_v59 = vld [vmem:[#allocation150_spill] sm:$0xff] }
 0x2ae   : > { %v3600_v62 = vsel %vm620_vm10, %v3597_v12, %v10650_v29  ;;  %10651 = vst [vmem:[#allocation214_spill] sm:$0xff] %v8446_v6  ;;  %v3718_v3 = vmul.f32 %v10653_v11, %v10652_v1  ;;  %v10654_v0 = vrot.slane %v8108_v52, 1  ;;  %v10655_v13 = vrot.slane %v8116_v19, 2  ;;  %v10764_v19 = vld [vmem:[#allocation75_spill] sm:$0xff] }
 0x2af   : > { %v3610_v16 = vadd.f32 %v3600_v62, %v3503_v42  ;;  %v3609_v27 = vadd.f32 %v3598_v8, %v3502_v32  ;;  %v10657_v54 = vrot.slane %v10656_v25, 3  ;;  %v10659_v57 = vrot.slane %v10658_v59, 5 }
 0x2b0   : > { %v1870_v56 = vmul.f32 %v10654_v0, %v10513_v51  ;;  %v2021_v55 = vmul.f32 %v10655_v13, %v10513_v51  ;;  %v958_v60 = vadd.f32 %v948_v20, %v905_v35  ;;  %v1110_v39 = vrot.slane %v1094_v30, 6  ;;  %v10663_v30 = vld [vmem:[#allocation153_spill] sm:$0xff] }
 0x2b1   : > { %v1603_v12 = vadd.f32 %v10657_v54, %v1493_v41  ;;  %v1646_v4 = vsel %vm1559_vm0, %v10659_v57, %v1645_v2  ;;  %v3658_v42 = vadd.f32 %v3647_v45, %v3610_v16  ;;  %v10660_v29 = vrot.slane %v8125_v43, 1 }
 0x2b2   : > { %v1886_v0 = vrot.slane %v1870_v56, 7  ;;  %v3657_v7 = vadd.f32 %v3648_v37, %v3609_v27  ;;  %v3728_v8 = vmul.f32 %v8446_v6, %v6697_v38  ;;  %vm3844_vm14 = vcmask 7168   ;;  %v3796_v27 = vpop.permute.xlu1 %3795 }
 0x2b3   : > { %v1844_v62 = vadd.f32 %v10660_v29, %v10513_v51  ;;  %v1656_v44 = vadd.f32 %v1646_v4, %v1603_v12  ;;  %v3723_v32 = vadd.f32 %v3718_v3, %v3658_v42  ;;  %v10661_v41 = vrot.slane %v8137_v47, 7 }
 0x2b4   : > { %v2037_v2 = vrot.slane %v2021_v55, 6  ;;  %v10662_v45 = vrot.slane %v8155_v10, 3  ;;  %v3722_v20 = vadd.f32 %v3717_v24, %v3657_v7  ;;  %v10664_v16 = vrot.slane %v10663_v30, 2  ;;  %v10750_v10 = vld [vmem:[#allocation72_spill] sm:$0xff] }
 0x2b5   : > { %v1887_v13 = vsel %vm620_vm10, %v10661_v41, %v1886_v0  ;;  %v1666_v43 = vmul.f32 0.25, %v1656_v44  ;;  %v3733_v25 = vadd.f32 %v3728_v8, %v3723_v32  ;;  %v3848_v3 = vsel %vm3844_vm14, %v6697_v38, %v3756_v26  ;;  %v10666_v44 = vld [vmem:[#allocation102_spill] sm:$0xff]  ;;  %vm10668_vm10 = vmmov %vm10606_vm4  ;;  %v3754_v0 = vpop.permute.xlu0 %3753 }
 0x2b6   : > { %v2172_v35 = vmul.f32 %v10662_v45, %v10513_v51  ;;  %v1068_v37 = vadd.f32 %v10664_v16, %v958_v60  ;;  %v1897_v56 = vadd.f32 %v1887_v13, %v1844_v62  ;;  %vm3850_vm3 = vcmask 15360  }
 0x2b7   : > { %vm3856_vm2 = vcmask 23552   ;;  %v3732_v47 = vadd.f32 %v3727_v33, %v3722_v20  ;;  %3797 = vrot.lane.b32.xlu0 %v1666_v43, %s4915_s6  ;;  %v10665_v55 = vrot.slane %v8149_v46, 2  ;;  %v3854_v24 = vsel %vm3850_vm3, %v3848_v3, %v3776_v61 }
 0x2b8   : > { %v10667_v7 = vrot.slane %v10666_v44, 6  ;;  %v10669_v59 = vrot.slane %v8152_v18, 6  ;;  %v2188_v4 = vrot.slane %v2172_v35, 5  ;;  %v8487_v38 = vsel %vm3856_vm2, %v3854_v24, %v3796_v27 }
 0x2b9   : > { %v1995_v54 = vadd.f32 %v10665_v55, %v1897_v56  ;;  %v3742_v26 = vmul.f32 0.11111111, %v3732_v47  ;;  %v3743_v60 = vmul.f32 0.11111111, %v3733_v25  ;;  %v10671_v46 = vrot.slane %v10544_v50, 3  ;;  %v3774_v20 = vpop.permute.xlu0 %3773  ;;  %v3752_v56 = vpop.permute.xlu1 %3751 }
 0x2ba   : > { %v1111_v12 = vsel %vm10668_vm10, %v10667_v7, %v1110_v39  ;;  %v2038_v57 = vsel %vm10670_vm12, %v10669_v59, %v2037_v2  ;;  %v10672_v18 = vrot.slane %v8188_v36, 3  ;;  %v10673_v29 = vrot.slane %v8196_v22, 5 }
 0x2bb   : > { %v1121_v33 = vadd.f32 %v1111_v12, %v1068_v37  ;;  %v2048_v42 = vadd.f32 %v2038_v57, %v1995_v54  ;;  %v2433_v61 = vmul.f32 %v10671_v46, %v10652_v1  ;;  %3835 = vrot.lane.b32.xlu1 %v3742_v26, %s4917_s8  ;;  %3837 = vrot.lane.b32.xlu0 %v3743_v60, %s4917_s8  ;;  %v10674_v13 = vrot.slane %v8224_v49, 4 }
 0x2bc   : > { %v2189_v62 = vsel %vm1559_vm0, %v10673_v29, %v2188_v4  ;;  %v10675_v2 = vrot.slane %v8243_v23, 4  ;;  %v10676_v35 = vrot.slane %v8246_v17, 5  ;;  %v10677_v43 = vrot.slane %v8274_v21, 3 }
 0x2bd   : > { %v2146_v39 = vadd.f32 %v10672_v18, %v2048_v42  ;;  %v1131_v8 = vmul.f32 0.33333334, %v1121_v33  ;;  %v2449_v41 = vrot.slane %v2433_v61, 5  ;;  %v3794_v37 = vpop.permute.xlu0 %3793  ;;  %v3772_v49 = vpop.permute.xlu1 %3771  ;;  %vm3868_vm5 = vcmask 39936  }
 0x2be   : > { %vm3889_vm6 = vcmask 48128   ;;  %v3847_v18 = vsel %vm3844_vm14, %v5467_v15, %v3754_v0  ;;  %vm3902_vm4 = vcmask 44032   ;;  %vm10682_vm7 = vmmov 0  }
 0x2bf   : > { %v2199_v32 = vadd.f32 %v2189_v62, %v2146_v39  ;;  %3777 = vrot.lane.b32.xlu1 %v1131_v8, %s4914_s29  ;;  %v2450_v36 = vsel %vm1559_vm0, %v10676_v35, %v2449_v41  ;;  %vm3862_vm0 = vcmask 31744   ;;  %vm8554_vm8 = vmpackc.low %vm3889_vm6, %vm3889_vm6  ;;  %vm4051_vm1 = vcmask 293888  }
 0x2c0   : > { %vm4064_vm13 = vcmask 289792   ;;  %vm10793_vm11 = vcmask 261120  }
 0x2c1   : > { %v2305_v1 = vadd.f32 %v10674_v13, %v2199_v32  ;;  %v3750_v27 = vpop.permute.xlu0 %3749  ;;  %v3770_v3 = vpop.permute.xlu1 %3769  ;;  %vm10813_vm15 = vmmov %vm10793_vm11 }
 0x2c2   : > { %v3845_v23 = vsel %vm3844_vm14, %v6594_v48, %v3750_v27  ;;  %v3846_v48 = vsel %vm3844_vm14, %v6648_v34, %v3752_v56  ;;  %v3853_v34 = vsel %vm3850_vm3, %v3847_v18, %v3774_v20 }
 0x2c3   : > { %v2353_v45 = vadd.f32 %v10675_v2, %v2305_v1  ;;  %v3851_v17 = vsel %vm3850_vm3, %v3845_v23, %v3770_v3  ;;  %v3852_v57 = vsel %vm3850_vm3, %v3846_v48, %v3772_v49  ;;  %v3859_v39 = vsel %vm3856_vm2, %v3853_v34, %v3794_v37 }
 0x2c5   : > { %v2460_v22 = vadd.f32 %v2450_v36, %v2353_v45  ;;  %v3790_v25 = vpop.permute.xlu0 %3789  ;;  %v3792_v24 = vpop.permute.xlu1 %3791 }
 0x2c6   : > { %v3857_v55 = vsel %vm3856_vm2, %v3851_v17, %v3790_v25  ;;  %v3858_v4 = vsel %vm3856_vm2, %v3852_v57, %v3792_v24 }
 0x2c7   : > { %v2508_v30 = vadd.f32 %v10677_v43, %v2460_v22 }
 0x2c9   : > { %v2518_v16 = vmul.f32 0.16666667, %v2508_v30  ;;  %v3810_v47 = vpop.permute.xlu0 %3809  ;;  %v3812_v12 = vpop.permute.xlu1 %3811 }
 0x2ca   : > { %v3863_v21 = vsel %vm3862_vm0, %v3857_v55, %v3810_v47  ;;  %v3864_v26 = vsel %vm3862_vm0, %v3858_v4, %v3812_v12 }
 0x2cb   : > { %3817 = vrot.lane.b32.xlu1 %v2518_v16, %s4916_s30 }
 0x2cd   : > { %v3830_v54 = vpop.permute.xlu0 %3829 }
 0x2ce   : > { %v3869_v44 = vsel %vm3868_vm5, %v3863_v21, %v3830_v54 }
 0x2cf   : > { %v3884_v7 = vadd.f32 %v8361_v40, %v3869_v44 }
 0x2d1   : > { %v3890_v59 = vsel %vm3889_vm6, %v3884_v7, -inf  ;;  %v3814_v61 = vpop.permute.xlu0 %3813 }
 0x2d2   : > { %v3865_v29 = vsel %vm3862_vm0, %v3859_v39, %v3814_v61 }
 0x2d7   : > { %v3832_v33 = vpop.permute.xlu1 %3831 }
 0x2d8   : > { %v3870_v60 = vsel %vm3868_vm5, %v3864_v26, %v3832_v33 }
 0x2d9   : > { %v3885_v42 = vadd.f32 %v8361_v40, %v3870_v60 }
 0x2db   : > { %v3893_v46 = vsel %vm3889_vm6, %v3885_v42, -inf }
 0x2dc   : > { %3894 = vmax.xlane.f32.xlu0 %v3893_v46 }
 0x2ef   : > { %3891 = vmax.xlane.f32.xlu1 %v3890_v59 }
 0x2f7   : > { %v3834_v62 = vpop.permute.xlu0 %3833 }
 0x2f8   : > { %v3871_v8 = vsel %vm3868_vm5, %v3865_v29, %v3834_v62 }
 0x2f9   : > { %v3886_v32 = vadd.f32 %v8361_v40, %v3871_v8 }
 0x2fb   : > { %v3896_v41 = vsel %vm3889_vm6, %v3886_v32, -inf }
 0x2fc   : > { %3897 = vmax.xlane.f32.xlu0 %v3896_v41 }
 0x307   : > { %v3758_v45 = vpop.permute.xlu0 %3757 }
 0x308   : > { %v3849_v22 = vsel %vm3844_vm14, %v10513_v51, %v3758_v45  ;;  %vm10858_vm14 = vmmov %vm10793_vm11 }
 0x30d   : > { %v3816_v13 = vpop.permute.xlu1 %3815 }
 0x30e   : > { %v3866_v1 = vsel %vm3862_vm0, %v8487_v38, %v3816_v13 }
 0x329   : > { %v3798_v20 = vpop.permute.xlu0 %3797 }
 0x32d   : > { %v3836_v2 = vpop.permute.xlu1 %3835  ;;  %v3838_v38 = vpop.permute.xlu0 %3837 }
 0x32e   : > { %v3872_v15 = vsel %vm3868_vm5, %v3866_v1, %v3836_v2  ;;  %v10680_v1 = vmov 0.0|0.0  }
 0x32f   : > { %v3887_v0 = vadd.f32 %v8361_v40, %v3872_v15 }
 0x331   : > { %v3899_v35 = vsel %vm3889_vm6, %v3887_v0, -inf  ;;  %v3778_v36 = vpop.permute.xlu1 %3777 }
 0x332   : > { %3900 = vmax.xlane.f32.xlu0 %v3899_v35  ;;  %v3855_v43 = vsel %vm3850_vm3, %v3849_v22, %v3778_v36  ;;  %vm10880_vm3 = vmmov %vm10793_vm11 }
 0x333   : > { %v3861_v16 = vsel %vm3856_vm2, %v3855_v43, %v3798_v20  ;;  %vm10886_vm2 = vcmask 257024  }
 0x33d   : > { %v3818_v30 = vpop.permute.xlu1 %3817 }
 0x33e   : > { %v3867_v37 = vsel %vm3862_vm0, %v3861_v16, %v3818_v30 }
 0x33f   : > { %v3873_v56 = vsel %vm3868_vm5, %v3867_v37, %v3838_v38 }
 0x340   : > { %v3888_v27 = vadd.f32 %v8361_v40, %v3873_v56 }
 0x342   : > { %v3903_v49 = vsel %vm3902_vm4, %v3888_v27, -inf }
 0x343   : > { %3904 = vmax.xlane.f32.xlu1 %v3903_v49 }
 0x369   : > { %v3895_v51 = vpop.xlane.xlu0 %3894 }
 0x36a   : > { %v3907_v17 = vsub.f32 %v3885_v42, %v3895_v51 }
 0x36c   : > { %v3913_v47 = vmul.f32 1.442695, %v3907_v17 }
 0x37c   : > { %v3892_v25 = vpop.xlane.xlu1 %3891 }
 0x37d   : > { %v3906_v3 = vsub.f32 %v3884_v7, %v3892_v25 }
 0x37f   : > { %v3911_v23 = vmul.f32 1.442695, %v3906_v3 }
 0x381   : > { %4854 = vpow2.f32 %v3911_v23 }
 0x382   : > { %4856 = vpow2.f32 %v3913_v47 }
 0x389   : > { %v3898_v40 = vpop.xlane.xlu0 %3897 }
 0x38a   : > { %v3908_v44 = vsub.f32 %v3886_v32, %v3898_v40 }
 0x38b   : > { %v4855_v55 = vpop.eup %4854 }
 0x38c   : > { %v3921_v21 = vsel %vm3889_vm6, %v4855_v55, 0.0  ;;  %v4857_v54 = vpop.eup %4856  ;;  %v3915_v12 = vmul.f32 1.442695, %v3908_v44 }
 0x38d   : > { %3922 = vadd.xlane.f32.xlu0 %v3921_v21  ;;  %v3924_v24 = vsel %vm3889_vm6, %v4857_v54, 0.0 }
 0x38e   : > { %3925 = vadd.xlane.f32.xlu1 %v3924_v24  ;;  %4858 = vpow2.f32 %v3915_v12 }
 0x398   : > { %v4859_v59 = vpop.eup %4858 }
 0x399   : > { %v3927_v7 = vsel %vm3889_vm6, %v4859_v59, 0.0 }
 0x39a   : > { %3928 = vadd.xlane.f32.xlu0 %v3927_v7 }
 0x3bf   : > { %v3901_v48 = vpop.xlane.xlu0 %3900 }
 0x3c0   : > { %v3909_v57 = vsub.f32 %v3887_v0, %v3901_v48 }
 0x3c2   : > { %v3917_v4 = vmul.f32 1.442695, %v3909_v57 }
 0x3c4   : > { %4860 = vpow2.f32 %v3917_v4 }
 0x3ce   : > { %v4861_v26 = vpop.eup %4860 }
 0x3cf   : > { %v3930_v42 = vsel %vm3889_vm6, %v4861_v26, 0.0 }
 0x3d0   : > { %v3905_v33 = vpop.xlane.xlu1 %3904  ;;  %3931 = vadd.xlane.f32.xlu1 %v3930_v42 }
 0x3d1   : > { %v3910_v60 = vsub.f32 %v3888_v27, %v3905_v33 }
 0x3d3   : > { %v3919_v46 = vmul.f32 1.442695, %v3910_v60 }
 0x3d5   : > { %4862 = vpow2.f32 %v3919_v46 }
 0x3df   : > { %v4863_v61 = vpop.eup %4862 }
 0x3e0   : > { %v3933_v18 = vsel %vm3902_vm4, %v4863_v61, 0.0 }
 0x3e1   : > { %3934 = vadd.xlane.f32.xlu0 %v3933_v18 }
 0x41a   : > { %v3923_v34 = vpop.xlane.xlu0 %3922 }
 0x41b   : > { %4864 = vrcp.f32 %v3923_v34  ;;  %v3926_v39 = vpop.xlane.xlu1 %3925 }
 0x41c   : > { %4866 = vrcp.f32 %v3926_v39 }
 0x425   : > { %v4865_v29 = vpop.eup %4864 }
 0x426   : > { %v4867_v62 = vpop.eup %4866  ;;  %v3941_v8 = vmul.f32 %v4865_v29, %v4855_v55 }
 0x427   : > { %v3942_v32 = vmul.f32 %v4867_v62, %v4857_v54  ;;  %v3929_v2 = vpop.xlane.xlu0 %3928 }
 0x428   : > { %4868 = vrcp.f32 %v3929_v2  ;;  %v4918_v2 = vmov 2  }
 0x429   : > { %v4769_v13 = vpack.c.bf16 %v3942_v32, %v3941_v8  ;;  %4827 = vset.pattern.permute.xlu0 %v4918_v2 }
 0x42b   : > { %4771 = vmatpush3.bf16.xpose.msk.msra.mxu1 %vm8554_vm8, %v4769_v13  ;;  %4778 = vmatpush3.bf16.msra.mxu0 %v4769_v13 }
 0x42c   : > { %4772 = vmatprep.subr.bf16.mxu1 %v10680_v1  ;;  %4779 = vmatprep.subr.bf16.mxu0 %v10680_v1 }
 0x432   : > { %v4869_v0 = vpop.eup %4868 }
 0x433   : > { %v3943_v35 = vmul.f32 %v4869_v0, %v4859_v59 }
 0x45d   : > { %v3932_v15 = vpop.xlane.xlu1 %3931 }
 0x45e   : > { %4870 = vrcp.f32 %v3932_v15 }
 0x468   : > { %v4871_v45 = vpop.eup %4870 }
 0x469   : > { %v3944_v36 = vmul.f32 %v4871_v45, %v4861_v26 }
 0x46b   : > { %v4773_v20 = vpack.c.bf16 %v3944_v36, %v3943_v35 }
 0x46d   : > { %4775 = vmatpush3.bf16.xpose.msk.msra.mxu1 %vm8554_vm8, %v4773_v20  ;;  %4781 = vmatpush3.bf16.msra.mxu0 %v4773_v20 }
 0x46e   : > { %v3935_v22 = vpop.xlane.xlu0 %3934  ;;  %4745 = vmatprep.subr.mxu0 %v10313_v53  ;;  %4720 = vmatprep.subr.mxu1 %v10313_v53 }
 0x46f   : > { %4872 = vrcp.f32 %v3935_v22 }
 0x479   : > { %v4873_v43 = vpop.eup %4872 }
 0x47a   : > { %v3945_v30 = vmul.f32 %v4873_v43, %v4863_v61 }
 0x47c   : > { %4746 = vmatpush3.msk.msra.mxu0 %vm10681_vm9, %v3945_v30  ;;  %4721 = vmatpush3.xpose.msk.msra.mxu1 %vm3889_vm6, %v3945_v30 }
 0x47f   : > { %4723 = vmatmul.mubr.msk.f32.vlgmr.msra.gmra.mrb[0].mxu1 %vm3889_vm6, %v3941_v8 }
 0x480   : > { %4725 = vmatprep.mubr.msk.f32.mxu1 %vm10682_vm7, %v10313_v53 }
 0x483   : > { %4726 = vmatmul.mubr.msk.f32.gmra.mrb[2].mxu1 %vm3889_vm6, %v3942_v32 }
 0x484   : > { %4728 = vmatprep.mubr.msk.f32.mxu1 %vm10682_vm7, %v10313_v53 }
 0x487   : > { %4729 = vmatmul.mubr.msk.f32.gmra.mrb[4].mxu1 %vm3889_vm6, %v3943_v35 }
 0x488   : > { %4731 = vmatprep.mubr.msk.f32.mxu1 %vm10682_vm7, %v10313_v53 }
 0x48b   : > { %4732 = vmatmul.mubr.msk.f32.gmra.mrb[6].mxu1 %vm3889_vm6, %v3944_v36 }
 0x48c   : > { %4734 = vmatprep.mubr.msk.f32.mxu1 %vm10682_vm7, %v10313_v53 }
 0x48f   : > { %4735 = vmatmul.mubr.msk.f32.gmra.mrb[8].mxu1 %vm3889_vm6, %v3945_v30 }
 0x552   : > { %v4027_v16 = vpop.f32.mrb[0].mxu1 }
 0x553   : > { %v4724_v38 = vpop.f32.mrb[1].mxu1  ;;  %v4052_v37 = vsel %vm4051_vm1, %v4027_v16, -inf }
 0x554   : > { %4053 = vmax.xlane.f32.xlu1 %v4052_v37 }
 0x556   : > { %v4032_v56 = vpop.f32.mrb[2].mxu1 }
 0x557   : > { %v4727_v27 = vpop.f32.mrb[3].mxu1  ;;  %v4055_v49 = vsel %vm4051_vm1, %v4032_v56, -inf }
 0x558   : > { %4056 = vmax.xlane.f32.xlu0 %v4055_v49 }
 0x55a   : > { %v4037_v25 = vpop.f32.mrb[4].mxu1 }
 0x55b   : > { %v4730_v3 = vpop.f32.mrb[5].mxu1  ;;  %v4058_v23 = vsel %vm4051_vm1, %v4037_v25, -inf }
 0x55c   : > { %4059 = vmax.xlane.f32.xlu1 %v4058_v23 }
 0x55e   : > { %v4042_v51 = vpop.f32.mrb[6].mxu1 }
 0x55f   : > { %v4733_v17 = vpop.f32.mrb[7].mxu1  ;;  %v4061_v47 = vsel %vm4051_vm1, %v4042_v51, -inf }
 0x560   : > { %4062 = vmax.xlane.f32.xlu0 %v4061_v47  ;;  %v4920_v17 = vmov 1  }
 0x562   : > { %v4047_v55 = vpop.f32.mrb[8].mxu1 }
 0x563   : > { %v4736_v21 = vpop.f32.mrb[9].mxu1  ;;  %v4065_v54 = vsel %vm4064_vm13, %v4047_v55, -inf }
 0x564   : > { %4066 = vmax.xlane.f32.xlu1 %v4065_v54  ;;  %v4921_v54 = vmov 4  }
 0x5e1   : > { %v4054_v24 = vpop.xlane.xlu1 %4053 }
 0x5e2   : > { %v4068_v40 = vsub.f32 %v4027_v16, %v4054_v24 }
 0x5e4   : > { %v4073_v44 = vmul.f32 1.442695, %v4068_v40  ;;  %v4922_v40 = vmov 5  }
 0x5e5   : > { %v4057_v12 = vpop.xlane.xlu0 %4056 }
 0x5e6   : > { %4874 = vpow2.f32 %v4073_v44  ;;  %v4069_v59 = vsub.f32 %v4032_v56, %v4057_v12 }
 0x5e8   : > { %v4075_v7 = vmul.f32 1.442695, %v4069_v59  ;;  %v10683_v59 = vmov 0  }
 0x5e9   : > { %v4060_v48 = vpop.xlane.xlu1 %4059 }
 0x5ea   : > { %4876 = vpow2.f32 %v4075_v7  ;;  %v4070_v57 = vsub.f32 %v4037_v25, %v4060_v48  ;;  %v8625_v7 = vld [vmem:[#allocation2 + $0x9] sm:$0xff]  ;;  %v10684_v48 = vld [vmem:[#allocation51_spill] sm:$0xff] }
 0x5ec   : > { %v4077_v4 = vmul.f32 1.442695, %v4070_v57  ;;  %v2629_v57 = vmul.f32 %v10684_v48, %v8625_v7  ;;  %v8691_v48 = vld [vmem:[#allocation2 + $0x12] sm:$0xff] }
 0x5ed   : > { %v4063_v26 = vpop.xlane.xlu0 %4062 }
 0x5ee   : > { %4878 = vpow2.f32 %v4077_v4  ;;  %v4071_v33 = vsub.f32 %v4042_v51, %v4063_v26  ;;  %v4919_v51 = vmov 3   ;;  %v8631_v4 = vld [vmem:[#allocation2 + $0x7] sm:$0xff] }
 0x5ef   : > { %v8633_v26 = vld [vmem:[#allocation2 + $0x8] sm:$0xff] }
 0x5f0   : > { %v4875_v60 = vpop.eup %4874  ;;  %v4079_v42 = vmul.f32 1.442695, %v4071_v33  ;;  %v2634_v33 = vadd.f32 %v8633_v26, %v2629_v57  ;;  %v8693_v57 = vld [vmem:[#allocation2 + $0x2c] sm:$0xf] }
 0x5f1   : > { %v4067_v46 = vpop.xlane.xlu1 %4066  ;;  %v4083_v61 = vsel %vm4051_vm1, %v4875_v60, 0.0  ;;  %10699 = vst [vmem:[#allocation219_spill] sm:$0xff] %v8693_v57 }
 0x5f2   : > { %4880 = vpow2.f32 %v4079_v42  ;;  %v4072_v18 = vsub.f32 %v4047_v55, %v4067_v46  ;;  %4084 = vadd.xlane.f32.xlu0 %v4083_v61  ;;  %v8639_v46 = vld [vmem:[#allocation2 + $0xa] sm:$0xff] }
 0x5f4   : > { %v4877_v34 = vpop.eup %4876  ;;  %v4081_v39 = vmul.f32 1.442695, %v4072_v18  ;;  %v8641_v18 = vld [vmem:[#allocation2 + $0x29] sm:$0xf] }
 0x5f5   : > { %v4086_v29 = vsel %vm4051_vm1, %v4877_v34, 0.0 }
 0x5f6   : > { %4882 = vpow2.f32 %v4081_v39  ;;  %4087 = vadd.xlane.f32.xlu1 %v4086_v29  ;;  %v10686_v39 = vld [vmem:[#allocation56_spill] sm:$0xff] }
 0x5f7   : > { %v2780_v29 = vmul.f32 %v10686_v39, %v8639_v46 }
 0x5f8   : > { %v4879_v62 = vpop.eup %4878 }
 0x5f9   : > { %v4089_v8 = vsel %vm4051_vm1, %v4879_v62, 0.0 }
 0x5fa   : > { %4090 = vadd.xlane.f32.xlu0 %v4089_v8  ;;  %v8650_v8 = vld [vmem:[#allocation2 + $0x28] sm:$0xf] }
 0x5fc   : > { %v4881_v32 = vpop.eup %4880 }
 0x5fd   : > { %v4092_v41 = vsel %vm4051_vm1, %v4881_v32, 0.0 }
 0x5fe   : > { %4093 = vadd.xlane.f32.xlu1 %v4092_v41 }
 0x600   : > { %v4883_v13 = vpop.eup %4882 }
 0x601   : > { %v4095_v1 = vsel %vm4064_vm13, %v4883_v13, 0.0 }
 0x602   : > { %4096 = vadd.xlane.f32.xlu0 %v4095_v1  ;;  %v8657_v1 = vld [vmem:[#allocation2 + $0x6] sm:$0xff] }
 0x67f   : > { %v4085_v15 = vpop.xlane.xlu0 %4084 }
 0x680   : > { %4884 = vrcp.f32 %v4085_v15  ;;  %v10688_v15 = vld [vmem:[#allocation90_spill] sm:$0xff] }
 0x683   : > { %v4088_v0 = vpop.xlane.xlu1 %4087 }
 0x684   : > { %4886 = vrcp.f32 %v4088_v0 }
 0x687   : > { %v4091_v45 = vpop.xlane.xlu0 %4090 }
 0x688   : > { %4888 = vrcp.f32 %v4091_v45  ;;  %v8661_v45 = vld [vmem:[#allocation2 + $0x26] sm:$0xf] }
 0x689   : > { %10689 = vst [vmem:[#allocation216_spill] sm:$0xff] %v8661_v45 }
 0x68a   : > { %v4885_v35 = vpop.eup %4884 }
 0x68b   : > { %v4103_v36 = vmul.f32 %v4885_v35, %v4875_v60  ;;  %v4094_v20 = vpop.xlane.xlu1 %4093  ;;  %v10685_v60 = vld [vmem:[#allocation54_spill] sm:$0xff]  ;;  %v10690_v35 = vld [vmem:[#allocation52_spill] sm:$0xff] }
 0x68c   : > { %4890 = vrcp.f32 %v4094_v20  ;;  %v2639_v42 = vmul.f32 %v10685_v60, %v8631_v4 }
 0x68d   : > { %4748 = vmatmul.mubr.msk.f32.vlgmr.msra.gmra.mrb[2].mxu0 %vm4051_vm1, %v4103_v36 }
 0x68e   : > { %v4887_v22 = vpop.eup %4886  ;;  %4750 = vmatprep.mubr.msk.f32.mxu0 %vm10682_vm7, %v10313_v53  ;;  %v2644_v61 = vadd.f32 %v2639_v42, %v2634_v33  ;;  %v8695_v33 = vld [vmem:[#allocation2 + $0x5] sm:$0xff] }
 0x68f   : > { %v4097_v43 = vpop.xlane.xlu0 %4096  ;;  %v4104_v30 = vmul.f32 %v4887_v22, %v4877_v34  ;;  %v8643_v34 = vld [vmem:[#allocation2 + $0x27] sm:$0xf] }
 0x690   : > { %4892 = vrcp.f32 %v4097_v43  ;;  %v2643_v0 = vmul.f32 %v10688_v15, %v8643_v34  ;;  %v10691_v22 = vld [vmem:[#allocation94_spill] sm:$0xff]  ;;  %v10700_v42 = vld [vmem:[#allocation101_spill] sm:$0xff] }
 0x691   : > { %4751 = vmatmul.mubr.msk.f32.gmra.mrb[4].mxu0 %vm4051_vm1, %v4104_v30  ;;  %v10692_v30 = vld [vmem:[#allocation57_spill] sm:$0xff] }
 0x692   : > { %v4889_v16 = vpop.eup %4888  ;;  %4753 = vmatprep.mubr.msk.f32.mxu0 %vm10682_vm7, %v10313_v53 }
 0x693   : > { %v4105_v38 = vmul.f32 %v4889_v16, %v4879_v62  ;;  %v8648_v62 = vld [vmem:[#allocation2 + $0x11] sm:$0xff]  ;;  %v2790_v16 = vmul.f32 %v10692_v30, %v8657_v1 }
 0x694   : > { %v2630_v36 = vmul.f32 %v10690_v35, %v8648_v62 }
 0x695   : > { %4754 = vmatmul.mubr.msk.f32.gmra.mrb[6].mxu0 %vm4051_vm1, %v4105_v38  ;;  %v8670_v38 = vld [vmem:[#allocation2 + $0xf] sm:$0xff] }
 0x696   : > { %v4891_v37 = vpop.eup %4890  ;;  %4756 = vmatprep.mubr.msk.f32.mxu0 %vm10682_vm7, %v10313_v53 }
 0x697   : > { %v4106_v56 = vmul.f32 %v4891_v37, %v4881_v32  ;;  %v10687_v32 = vld [vmem:[#allocation86_spill] sm:$0xff] }
 0x698   : > { %v2633_v41 = vmul.f32 %v10687_v32, %v8641_v18  ;;  %v8672_v37 = vld [vmem:[#allocation2 + $0x2b] sm:$0xf] }
 0x699   : > { %4757 = vmatmul.mubr.msk.f32.gmra.mrb[8].mxu0 %vm4051_vm1, %v4106_v56  ;;  %10693 = vst [vmem:[#allocation211_spill] sm:$0xff] %v8672_v37  ;;  %v8675_v56 = vld [vmem:[#allocation2 + $0xb] sm:$0xff] }
 0x69a   : > { %v4893_v27 = vpop.eup %4892  ;;  %4759 = vmatprep.mubr.msk.f32.mxu0 %vm10682_vm7, %v10313_v53  ;;  %v2638_v20 = vadd.f32 %v2633_v41, %v8650_v8  ;;  %v8702_v41 = vld [vmem:[#allocation2 + $0x24] sm:$0xf] }
 0x69b   : > { %v4107_v49 = vmul.f32 %v4893_v27, %v4883_v13  ;;  %v8654_v13 = vld [vmem:[#allocation2 + $0x2a] sm:$0xf]  ;;  %10702 = vst [vmem:[#allocation220_spill] sm:$0xff] %v8702_v41 }
 0x69c   : > { %v2784_v43 = vmul.f32 %v10691_v22, %v8654_v13  ;;  %v2648_v27 = vadd.f32 %v2643_v0, %v2638_v20  ;;  %v10703_v0 = vld [vmem:[#allocation59_spill] sm:$0xff]  ;;  %v10705_v22 = vld [vmem:[#allocation22_spill] sm:$0xff] }
 0x69d   : > { %4760 = vmatmul.mubr.msk.f32.gmra.mrb[10].mxu0 %vm4051_vm1, %v4107_v49  ;;  %v10694_v49 = vld [vmem:[#allocation96_spill] sm:$0xff] }
 0x760   : > { %v4191_v25 = vpop.f32.mrb[2].mxu0 }
 0x761   : > { %4276 = vperm.xlu0 %4827, %v4191_v25   ;;  %4217 = vperm.xlu1 %4825, %v4191_v25   ;;  %v4749_v3 = vpop.f32.mrb[3].mxu0 }
 0x764   : > { %v4196_v23 = vpop.f32.mrb[4].mxu0 }
 0x765   : > { %4828 = vset.pattern.permute.xlu0 %v4919_v51  ;;  %4826 = vset.pattern.permute.xlu1 %v4920_v17  ;;  %v4752_v47 = vpop.f32.mrb[5].mxu0 }
 0x766   : > { %4306 = vperm.xlu0 %4828, %v4191_v25   ;;  %4246 = vperm.xlu1 %4826, %v4191_v25  }
 0x768   : > { %v4201_v55 = vpop.f32.mrb[6].mxu0 }
 0x769   : > { %v4755_v21 = vpop.f32.mrb[7].mxu0 }
 0x76a   : > { %4829 = vset.pattern.permute.xlu0 %v4921_v54  ;;  %4250 = vperm.xlu1 %4826, %v4196_v23  }
 0x76b   : > { %4336 = vperm.xlu0 %4829, %v4191_v25  }
 0x76c   : > { %v4206_v53 = vpop.f32.mrb[8].mxu0 }
 0x76d   : > { %v4758_v24 = vpop.f32.mrb[9].mxu0 }
 0x76e   : > { %4832 = vset.pattern.permute.xlu1 %v4918_v2 }
 0x76f   : > { %4830 = vset.pattern.permute.xlu0 %v4922_v40  ;;  %4280 = vperm.xlu1 %4832, %v4196_v23  }
 0x770   : > { %4366 = vperm.xlu0 %4830, %v4191_v25   ;;  %v8609_v44 = vpop.f32.mrb[10].mxu0  ;;  %v2794_v25 = vmul.f32 %v10694_v49, %v8661_v45 }
 0x771   : > { %v4761_v12 = vpop.f32.mrb[11].mxu0 }
 0x772   : > { %v10698_v12 = vld [vmem:[#allocation60_spill] sm:$0xff] }
 0x773   : > { %4833 = vset.pattern.permute.xlu1 %v4919_v51 }
 0x774   : > { %4831 = vset.pattern.permute.xlu0 %v10683_v59  ;;  %4310 = vperm.xlu1 %4833, %v4196_v23  }
 0x775   : > { %4222 = vperm.xlu0 %4831, %v4196_v23  }
 0x778   : > { %4834 = vset.pattern.permute.xlu1 %v4921_v54 }
 0x779   : > { %4340 = vperm.xlu1 %4834, %v4196_v23   ;;  %4844 = vset.pattern.permute.xlu0 %v4918_v2 }
 0x77a   : > { %4288 = vperm.xlu0 %4844, %v4206_v53  }
 0x77d   : > { %4835 = vset.pattern.permute.xlu1 %v4922_v40 }
 0x77e   : > { %4370 = vperm.xlu1 %4835, %v4196_v23   ;;  %4845 = vset.pattern.permute.xlu0 %v4919_v51  ;;  %v8680_v23 = vld [vmem:[#allocation2 + $0x25] sm:$0xf] }
 0x77f   : > { %4318 = vperm.xlu0 %4845, %v4206_v53   ;;  %10695 = vst [vmem:[#allocation215_spill] sm:$0xff] %v8680_v23 }
 0x782   : > { %4836 = vset.pattern.permute.xlu1 %v10683_v59 }
 0x783   : > { %4227 = vperm.xlu1 %4836, %v4201_v55   ;;  %4846 = vset.pattern.permute.xlu0 %v4921_v54 }
 0x784   : > { %4348 = vperm.xlu0 %4846, %v4206_v53  }
 0x787   : > { %4837 = vset.pattern.permute.xlu1 %v4920_v17 }
 0x788   : > { %4254 = vperm.xlu1 %4837, %v4201_v55   ;;  %4852 = vset.pattern.permute.xlu0 %v4922_v40 }
 0x789   : > { %4378 = vperm.xlu0 %4852, %v4206_v53  }
 0x78c   : > { %4838 = vset.pattern.permute.xlu1 %v4918_v2 }
 0x78d   : > { %4284 = vperm.xlu1 %4838, %v4201_v55  }
 0x791   : > { %4839 = vset.pattern.permute.xlu1 %v4919_v51 }
 0x792   : > { %4314 = vperm.xlu1 %4839, %v4201_v55  }
 0x796   : > { %4840 = vset.pattern.permute.xlu1 %v4921_v54 }
 0x797   : > { %4344 = vperm.xlu1 %4840, %v4201_v55  }
 0x79b   : > { %4841 = vset.pattern.permute.xlu1 %v4922_v40 }
 0x79c   : > { %4374 = vperm.xlu1 %4841, %v4201_v55   ;;  %v8684_v55 = vld [vmem:[#allocation2 + $0x10] sm:$0xff] }
 0x79d   : > { %v2635_v21 = vadd.f32 %v8684_v55, %v2630_v36  ;;  %v10704_v36 = vld [vmem:[#allocation107_spill] sm:$0xff] }
 0x79e   : > { %v3086_v20 = vmul.f32 %v10704_v36, %v8693_v57  ;;  %v8735_v36 = vld [vmem:[#allocation2 + $0x13] sm:$0xff]  ;;  %v10725_v57 = vld [vmem:[#allocation37_spill] sm:$0xff] }
 0x7a0   : > { %4842 = vset.pattern.permute.xlu1 %v10683_v59 }
 0x7a1   : > { %4232 = vperm.xlu1 %4842, %v4206_v53  }
 0x7a5   : > { %4843 = vset.pattern.permute.xlu1 %v4920_v17 }
 0x7a6   : > { %4258 = vperm.xlu1 %4843, %v4206_v53   ;;  %v2789_v53 = vadd.f32 %v2784_v43, %v2648_v27  ;;  %v838_v43 = vmul.f32 %v10705_v22, %v8625_v7  ;;  %v8715_v27 = vld [vmem:[#allocation2 + $0xc] sm:$0xff]  ;;  %v8737_v22 = vld [vmem:[#allocation2 + $0x4] sm:$0xff] }
 0x7a8   : > { %v2799_v60 = vadd.f32 %v2794_v25, %v2789_v53  ;;  %v10708_v25 = vld [vmem:[#allocation112_spill] sm:$0xff]  ;;  %v8721_v53 = vld [vmem:[#allocation2 + $0xe] sm:$0xff] }
 0x7aa   : > { %4847 = vset.pattern.permute.xlu1 %v10683_v59  ;;  %v2931_v59 = vmul.f32 %v10698_v12, %v8675_v56 }
 0x7ab   : > { %4237 = vperm.xlu1 %4847, %v8609_v44  }
 0x7af   : > { %4848 = vset.pattern.permute.xlu1 %v4920_v17  ;;  %v10696_v17 = vld [vmem:[#allocation53_spill] sm:$0xff] }
 0x7b0   : > { %4262 = vperm.xlu1 %4848, %v8609_v44   ;;  %v2640_v47 = vmul.f32 %v10696_v17, %v8670_v38  ;;  %v10709_v17 = vld [vmem:[#allocation26_spill] sm:$0xff] }
 0x7b2   : > { %v2645_v15 = vadd.f32 %v2640_v47, %v2635_v21  ;;  %v1222_v47 = vmul.f32 %v10709_v17, %v8625_v7  ;;  %v10716_v17 = vld [vmem:[#allocation116_spill] sm:$0xff] }
 0x7b4   : > { %4849 = vset.pattern.permute.xlu1 %v4918_v2  ;;  %v2785_v2 = vadd.f32 %v2780_v29, %v2644_v61  ;;  %v2945_v61 = vmul.f32 %v10700_v42, %v8680_v23  ;;  %v10701_v29 = vld [vmem:[#allocation33_spill] sm:$0xff] }
 0x7b5   : > { %4292 = vperm.xlu1 %4849, %v8609_v44   ;;  %v1777_v32 = vmul.f32 %v10701_v29, %v8625_v7  ;;  %v843_v29 = vadd.f32 %v8633_v26, %v838_v43 }
 0x7b6   : > { %v2795_v3 = vadd.f32 %v2790_v16, %v2785_v2  ;;  %v2781_v2 = vmul.f32 %v10703_v0, %v8691_v48  ;;  %v8713_v16 = vld [vmem:[#allocation2 + $0x2d] sm:$0xf] }
 0x7b7   : > { %10707 = vst [vmem:[#allocation221_spill] sm:$0xff] %v8713_v16 }
 0x7b8   : > { %v2936_v39 = vadd.f32 %v2931_v59, %v2795_v3  ;;  %v3096_v3 = vmul.f32 %v10708_v25, %v8702_v41  ;;  %v2786_v12 = vadd.f32 %v2781_v2, %v2645_v15  ;;  %v3392_v25 = vld [vmem:[#allocation2 + $0x22] sm:$0xf] }
 0x7b9   : > { %4850 = vset.pattern.permute.xlu1 %v4919_v51  ;;  %v10697_v51 = vld [vmem:[#allocation98_spill] sm:$0xff] }
 0x7ba   : > { %4322 = vperm.xlu1 %4850, %v8609_v44   ;;  %v2935_v24 = vmul.f32 %v10697_v51, %v8672_v37  ;;  %v1782_v51 = vadd.f32 %v8633_v26, %v1777_v32 }
 0x7bc   : > { %v2940_v35 = vadd.f32 %v2935_v24, %v2799_v60  ;;  %v8724_v24 = vld [vmem:[#allocation2 + $0x23] sm:$0xf] }
 0x7bd   : > { %10710 = vst [vmem:[#allocation222_spill] sm:$0xff] %v8724_v24  ;;  %v10711_v60 = vld [vmem:[#allocation113_spill] sm:$0xff] }
 0x7be   : > { %4851 = vset.pattern.permute.xlu1 %v4921_v54  ;;  %v10706_v54 = vld [vmem:[#allocation61_spill] sm:$0xff]  ;;  %v2950_v49 = vadd.f32 %v2945_v61, %v2940_v35  ;;  %v3232_v42 = vmul.f32 %v10711_v60, %v8713_v16  ;;  %v3380_v61 = vld [vmem:[#allocation2 + $0x2e] sm:$0xf] }
 0x7bf   : > { %4352 = vperm.xlu1 %4851, %v8609_v44   ;;  %v2941_v30 = vmul.f32 %v10706_v54, %v8695_v33  ;;  %v10713_v35 = vld [vmem:[#allocation34_spill] sm:$0xff]  ;;  %v1227_v54 = vadd.f32 %v8633_v26, %v1222_v47  ;;  %v3385_v60 = vmul.f32 %v10716_v17, %v3380_v61 }
 0x7c0   : > { %v3091_v59 = vadd.f32 %v3086_v20, %v2950_v49  ;;  %v1787_v32 = vmul.f32 %v10713_v35, %v8631_v4  ;;  %v3242_v20 = vmul.f32 %v8319_v9, %v8724_v24  ;;  %v10717_v35 = vld [vmem:[#allocation66_spill] sm:$0xff]  ;;  %v10719_v9 = vld [vmem:[#allocation36_spill] sm:$0xff] }
 0x7c1   : > { %v2946_v21 = vadd.f32 %v2941_v30, %v2936_v39  ;;  %v10712_v39 = vld [vmem:[#allocation64_spill] sm:$0xff]  ;;  %v2932_v6 = vmul.f32 %v10717_v35, %v8735_v36  ;;  %v1928_v24 = vmul.f32 %v10719_v9, %v8639_v46 }
 0x7c2   : > { %v3082_v0 = vmul.f32 %v10712_v39, %v8715_v27  ;;  %v3101_v2 = vadd.f32 %v3096_v3, %v3091_v59  ;;  %v1792_v49 = vadd.f32 %v1787_v32, %v1782_v51  ;;  %v10718_v3 = vld [vmem:[#allocation27_spill] sm:$0xff] }
 0x7c3   : > { %4853 = vset.pattern.permute.xlu1 %v4922_v40  ;;  %v10714_v40 = vld [vmem:[#allocation58_spill] sm:$0xff]  ;;  %v1232_v59 = vmul.f32 %v10718_v3, %v8631_v4  ;;  %v3547_v3 = vld [vmem:[#allocation2 + $0x21] sm:$0xf] }
 0x7c4   : > { %4382 = vperm.xlu1 %4853, %v8609_v44   ;;  %v2791_v15 = vmul.f32 %v10714_v40, %v8721_v53  ;;  %v10715_v44 = vld [vmem:[#allocation23_spill] sm:$0xff]  ;;  %v3087_v30 = vadd.f32 %v3082_v0, %v2946_v21  ;;  %v3237_v50 = vadd.f32 %v3232_v42, %v3101_v2  ;;  %v1933_v17 = vadd.f32 %v1928_v24, %v1792_v49  ;;  %v8776_v49 = vld [vmem:[#allocation2 + $0x3] sm:$0xff] }
 0x7c5   : > { %v848_v43 = vmul.f32 %v10715_v44, %v8631_v4  ;;  %v10720_v44 = vld [vmem:[#allocation65_spill] sm:$0xff]  ;;  %v3535_v21 = vld [vmem:[#allocation2 + $0x2f] sm:$0xf]  ;;  %v8772_v24 = vld [vmem:[#allocation2 + $0x14] sm:$0xff] }
 0x7c6   : > { %v2796_v39 = vadd.f32 %v2791_v15, %v2786_v12  ;;  %v3092_v47 = vmul.f32 %v10720_v44, %v8737_v22  ;;  %v4896_v51 = vld [vmem:[#allocation2 + $0x30] sm:$0xf]  ;;  %v10721_v12 = vld [vmem:[#allocation24_spill] sm:$0xff]  ;;  %v3247_v42 = vadd.f32 %v3242_v20, %v3237_v50  ;;  %v10722_v15 = vld [vmem:[#allocation25_spill] sm:$0xff]  ;;  %v1938_v50 = vmul.f32 %v10725_v57, %v8657_v1 }
 0x7c7   : > { %v853_v40 = vadd.f32 %v848_v43, %v843_v29  ;;  %v3693_v0 = vmul.f32 %v4896_v51, %v10653_v11  ;;  %v994_v61 = vmul.f32 %v10721_v12, %v8639_v46  ;;  %v8758_v32 = vld [vmem:[#allocation2 + $0xd] sm:$0xff]  ;;  %v3397_v29 = vmul.f32 %v8335_v14, %v3392_v25  ;;  %v10723_v44 = vld [vmem:[#allocation32_spill] sm:$0xff] }
 0x7c8   : > { %v1009_v2 = vmul.f32 %v10722_v15, %v8657_v1  ;;  %v1237_v43 = vadd.f32 %v1232_v59, %v1227_v54  ;;  %v3097_v35 = vadd.f32 %v3092_v47, %v3087_v30  ;;  %v2937_v9 = vadd.f32 %v2932_v6, %v2796_v39  ;;  %v10724_v51 = vld [vmem:[#allocation118_spill] sm:$0xff]  ;;  %v10726_v14 = vld [vmem:[#allocation28_spill] sm:$0xff]  ;;  %v10728_v6 = vld [vmem:[#allocation29_spill] sm:$0xff] }
 0x7c9   : > { %v1778_v16 = vmul.f32 %v10723_v44, %v8648_v62  ;;  %v3390_v11 = vadd.f32 %v3385_v60, %v3247_v42  ;;  %v3540_v41 = vmul.f32 %v10724_v51, %v3535_v21  ;;  %v999_v12 = vadd.f32 %v994_v61, %v853_v40  ;;  %v10727_v25 = vld [vmem:[#allocation68_spill] sm:$0xff]  ;;  %v10729_v60 = vld [vmem:[#allocation62_spill] sm:$0xff]  ;;  %v10730_v61 = vld [vmem:[#allocation35_spill] sm:$0xff] }
 0x7ca   : > { %v1373_v20 = vmul.f32 %v10726_v14, %v8639_v46  ;;  %v3228_v54 = vmul.f32 %v10727_v25, %v8758_v32  ;;  %v1383_v30 = vmul.f32 %v10728_v6, %v8657_v1  ;;  %v2942_v39 = vmul.f32 %v10729_v60, %v8758_v32  ;;  %v10731_v44 = vld [vmem:[#allocation76_spill] sm:$0xff]  ;;  %v10732_v6 = vld [vmem:[#allocation30_spill] sm:$0xff] }
 0x7cb   : > { %v3402_v40 = vadd.f32 %v3397_v29, %v3390_v11  ;;  %v3552_v59 = vmul.f32 %v8343_v63, %v3547_v3  ;;  %v1943_v47 = vadd.f32 %v1938_v50, %v1933_v17  ;;  %v1788_v42 = vmul.f32 %v10730_v61, %v8670_v38  ;;  %v10733_v29 = vld [vmem:[#allocation40_spill] sm:$0xff]  ;;  %v10737_v50 = vld [vmem:[#allocation18_spill] sm:$0xff] }
 0x7cc   : > { %v1378_v57 = vadd.f32 %v1373_v20, %v1237_v43  ;;  %v3233_v21 = vadd.f32 %v3228_v54, %v3097_v35  ;;  %v1783_v15 = vadd.f32 %v8684_v55, %v1778_v16  ;;  %v3083_v51 = vmul.f32 %v10731_v44, %v8772_v24  ;;  %v10734_v43 = vld [vmem:[#allocation69_spill] sm:$0xff]  ;;  %v10735_v35 = vld [vmem:[#allocation31_spill] sm:$0xff]  ;;  %v10738_v20 = vld [vmem:[#allocation4_spill] sm:$0xff] }
 0x7cd   : > { %v2947_v1 = vadd.f32 %v2942_v39, %v2937_v9  ;;  %v3545_v14 = vadd.f32 %v3540_v41, %v3402_v40  ;;  %v1014_v25 = vadd.f32 %v1009_v2, %v999_v12  ;;  %v1529_v60 = vmul.f32 %v10732_v6, %v8675_v56  ;;  %v10736_v16 = vld [vmem:[#allocation41_spill] sm:$0xff]  ;;  %v8798_v41 = vld [vmem:[#allocation2 + $0x19] sm:$0xff]  ;;  %v10739_v44 = vld [vmem:[#allocation39_spill] sm:$0xff] }
 0x7ce   : > { %v2079_v63 = vmul.f32 %v10733_v29, %v8675_v56  ;;  %v3238_v17 = vmul.f32 %v10734_v43, %v8776_v49  ;;  %v1544_v3 = vmul.f32 %v10735_v35, %v8695_v33  ;;  %v2089_v11 = vmul.f32 %v10736_v16, %v8695_v33  ;;  %v10741_v35 = vld [vmem:[#allocation20_spill] sm:$0xff] }
 0x7cf   : > { %v590_v9 = vmul.f32 %v10737_v50, %v8625_v7  ;;  %v3557_v2 = vadd.f32 %v3552_v59, %v3545_v14  ;;  %v1388_v12 = vadd.f32 %v1383_v30, %v1378_v57  ;;  %v591_v54 = vmul.f32 %v10738_v20, %v8648_v62  ;;  %v10742_v59 = vld [vmem:[#allocation71_spill] sm:$0xff]  ;;  %v10747_v20 = vld [vmem:[#allocation44_spill] sm:$0xff] }
 0x7d0   : > { %v2084_v39 = vadd.f32 %v2079_v63, %v1943_v47  ;;  %v3243_v40 = vadd.f32 %v3238_v17, %v3233_v21  ;;  %v1793_v61 = vadd.f32 %v1788_v42, %v1783_v15  ;;  %v1929_v6 = vmul.f32 %v10739_v44, %v8691_v48  ;;  %v8812_v57 = vld [vmem:[#allocation2 + $0x15] sm:$0xff]  ;;  %v10744_v15 = vld [vmem:[#allocation5_spill] sm:$0xff] }
 0x7d1   : > { %v3088_v29 = vadd.f32 %v3083_v51, %v2947_v1  ;;  %v8804_v43 = vadd.f32 %v3693_v0, %v3557_v2  ;;  %v8806_v33 = vmul.f32 0.33333334, %v1014_v25  ;;  %v605_v16 = vmul.f32 %v10741_v35, %v8631_v4  ;;  %v10743_v47 = vld [vmem:[#allocation236_spill] sm:$0xff]  ;;  %v3391_v0 = vld [vmem:[#allocation2 + $0x2] sm:$0xff]  ;;  %v10745_v1 = vld [vmem:[#allocation11_spill] sm:$0xff] }
 0x7d2   : > { %v3381_v30 = vmul.f32 %v10742_v59, %v8721_v53  ;;  %v2631_v21 = vmul.f32 %v10743_v47, %v8798_v41  ;;  %v595_v42 = vadd.f32 %v8633_v26, %v590_v9  ;;  %v606_v51 = vmul.f32 %v10744_v15, %v8670_v38  ;;  %v10746_v25 = vld [vmem:[#allocation67_spill] sm:$0xff]  ;;  %v10748_v47 = vld [vmem:[#allocation77_spill] sm:$0xff] }
 0x7d3   : > { %10740 = vst [vmem:[#allocation217_spill] sm:$0xff] %v8804_v43  ;;  %v1223_v14 = vmul.f32 %v10745_v1, %v8648_v62  ;;  %v3093_v4 = vmul.f32 %v10746_v25, %v8715_v27  ;;  %v1534_v63 = vadd.f32 %v1529_v60, %v1388_v12  ;;  %v596_v17 = vadd.f32 %v8684_v55, %v591_v54  ;;  %v8826_v9 = vld [vmem:[#allocation2 + $0x17] sm:$0xff]  ;;  %v10751_v60 = vld [vmem:[#allocation238_spill] sm:$0xff] }
 0x7d4   : > { %v2094_v50 = vadd.f32 %v2089_v11, %v2084_v39  ;;  %v3386_v2 = vadd.f32 %v3381_v30, %v3243_v40  ;;  %v2235_v44 = vmul.f32 %v10747_v20, %v8715_v27  ;;  %v1934_v35 = vadd.f32 %v1929_v6, %v1793_v61  ;;  %v10749_v1 = vld [vmem:[#allocation7_spill] sm:$0xff]  ;;  %v10752_v61 = vld [vmem:[#allocation13_spill] sm:$0xff] }
 0x7d5   : > { %v3098_v59 = vadd.f32 %v3093_v4, %v3088_v29  ;;  %v3229_v15 = vmul.f32 %v10748_v47, %v8812_v57  ;;  %v839_v43 = vmul.f32 %v10749_v1, %v8648_v62  ;;  %v3393_v25 = vmul.f32 %v10750_v10, %v3391_v0  ;;  %v8835_v11 = vld [vmem:[#allocation2 + $0x18] sm:$0xff]  ;;  %v10753_v29 = vld [vmem:[#allocation38_spill] sm:$0xff]  ;;  %v10754_v0 = vld [vmem:[#allocation45_spill] sm:$0xff] }
 0x7d6   : > { %v2641_v12 = vmul.f32 %v10751_v60, %v8826_v9  ;;  %v2636_v54 = vadd.f32 %v8835_v11, %v2631_v21  ;;  %v610_v39 = vadd.f32 %v605_v16, %v595_v42  ;;  %v1228_v40 = vadd.f32 %v8684_v55, %v1223_v14  ;;  %v8843_v4 = vld [vmem:[#allocation2 + $0x1a] sm:$0xff]  ;;  %v10756_v14 = vld [vmem:[#allocation47_spill] sm:$0xff] }
 0x7d7   : > { %v1233_v6 = vmul.f32 %v10752_v61, %v8670_v38  ;;  %v1939_v30 = vmul.f32 %v10753_v29, %v8721_v53  ;;  %v8845_v20 = vadd.f32 %v606_v51, %v596_v17  ;;  %v2240_v10 = vadd.f32 %v2235_v44, %v2094_v50  ;;  %v10755_v21 = vld [vmem:[#allocation8_spill] sm:$0xff]  ;;  %v10757_v29 = vld [vmem:[#allocation74_spill] sm:$0xff]  ;;  %v3546_v44 = vld [vmem:[#allocation2 + $0x1] sm:$0xff] }
 0x7d8   : > { %v2247_v47 = vmul.f32 %v10754_v0, %v8737_v22  ;;  %v3398_v1 = vadd.f32 %v3393_v25, %v3386_v2  ;;  %v849_v16 = vmul.f32 %v10755_v21, %v8670_v38  ;;  %v2080_v60 = vmul.f32 %v10756_v14, %v8735_v36  ;;  %v8856_v51 = vld [vmem:[#allocation2 + $0x16] sm:$0xff]  ;;  %v10758_v50 = vld [vmem:[#allocation246_spill] sm:$0xff] }
 0x7d9   : > { %v1944_v42 = vadd.f32 %v1939_v30, %v1934_v35  ;;  %v3234_v61 = vadd.f32 %v3229_v15, %v3098_v59  ;;  %v844_v23 = vadd.f32 %v8684_v55, %v839_v43  ;;  %v3536_v37 = vmul.f32 %v10757_v29, %v8670_v38  ;;  %v10759_v35 = vld [vmem:[#allocation16_spill] sm:$0xff]  ;;  %v10760_v0 = vld [vmem:[#allocation70_spill] sm:$0xff] }
 0x7da   : > { %v2646_v17 = vadd.f32 %v2641_v12, %v2636_v54  ;;  %v2782_v22 = vmul.f32 %v10758_v50, %v8843_v4  ;;  %v1549_v2 = vadd.f32 %v1544_v3, %v1534_v63  ;;  %v1238_v25 = vadd.f32 %v1233_v6, %v1228_v40  ;;  %v10761_v21 = vld [vmem:[#allocation48_spill] sm:$0xff]  ;;  %v10762_v12 = vld [vmem:[#allocation9_spill] sm:$0xff]  ;;  %v10763_v3 = vld [vmem:[#allocation79_spill] sm:$0xff] }
 0x7db   : > { %v1374_v30 = vmul.f32 %v10759_v35, %v8691_v48  ;;  %v3239_v59 = vmul.f32 %v10760_v0, %v8675_v56  ;;  %v718_v15 = vmul.f32 0.5, %v610_v39  ;;  %v2252_v43 = vadd.f32 %v2247_v47, %v2240_v10  ;;  %v3699_v0 = vld [vmem:[#allocation2] sm:$0xff] }
 0x7dc   : > { %v2386_v38 = vmul.f32 %v10761_v21, %v8758_v32  ;;  %v3541_v14 = vadd.f32 %v3536_v37, %v3398_v1  ;;  %v995_v54 = vmul.f32 %v10762_v12, %v8691_v48  ;;  %v2085_v29 = vadd.f32 %v2080_v60, %v1944_v42  ;;  %v10765_v37 = vld [vmem:[#allocation49_spill] sm:$0xff]  ;;  %v10766_v42 = vld [vmem:[#allocation43_spill] sm:$0xff] }
 0x7dd   : > { %v3244_v50 = vadd.f32 %v3239_v59, %v3234_v61  ;;  %v3382_v63 = vmul.f32 %v10763_v3, %v8856_v51  ;;  %v854_v35 = vadd.f32 %v849_v16, %v844_v23  ;;  %v3548_v45 = vmul.f32 %v10764_v19, %v3546_v44  ;;  %v10767_v59 = vld [vmem:[#allocation10_spill] sm:$0xff]  ;;  %v10768_v16 = vld [vmem:[#allocation81_spill] sm:$0xff] }
 0x7de   : > { %v2792_v39 = vmul.f32 %v7640_v5, %v8856_v51  ;;  %v2787_v10 = vadd.f32 %v2782_v22, %v2646_v17  ;;  %v1657_v47 = vmul.f32 0.25, %v1549_v2  ;;  %v2398_v1 = vmul.f32 %v10765_v37, %v8776_v49  ;;  %v8881_v44 = vld [vmem:[#allocation2 + $0x21] sm:$0xff]  ;;  %v10769_v5 = vld [vmem:[#allocation14_spill] sm:$0xff]  ;;  %v10770_v49 = vld [vmem:[#allocation55_spill] sm:$0xff] }
 0x7df   : > { %v1379_v21 = vadd.f32 %v1374_v30, %v1238_v25  ;;  %v2090_v60 = vmul.f32 %v10766_v42, %v8758_v32  ;;  %v2391_v61 = vadd.f32 %v2386_v38, %v2252_v43  ;;  %v1010_v12 = vmul.f32 %v10767_v59, %v8721_v53  ;;  %v8887_v30 = vld [vmem:[#allocation2 + $0x1b] sm:$0xff]  ;;  %v10771_v38 = vld [vmem:[#allocation82_spill] sm:$0xff] }
 0x7e0   : > { %v4277_v40 = vpop.permute.xlu0 %4276  ;;  %v4218_v6 = vpop.permute.xlu1 %4217  ;;  %v3553_v23 = vadd.f32 %v3548_v45, %v3541_v14  ;;  %v3689_v19 = vmul.f32 %v8684_v55, %v10768_v16  ;;  %v1384_v17 = vmul.f32 %v10769_v5, %v8721_v53  ;;  %v2236_v2 = vmul.f32 %v10770_v49, %v8772_v24  ;;  %v10772_v45 = vld [vmem:[#allocation190_spill] sm:$0xff]  ;;  %v8899_v49 = vld [vmem:[#allocation2 + $0x1f] sm:$0xff] }
 0x7e1   : > { %v2095_v22 = vadd.f32 %v2090_v60, %v2085_v29  ;;  %v3387_v25 = vadd.f32 %v3382_v63, %v3244_v50  ;;  %v1000_v43 = vadd.f32 %v995_v54, %v854_v35  ;;  %v3704_v3 = vmul.f32 %v10771_v38, %v3699_v0  ;;  %v10774_v29 = vld [vmem:[#allocation85_spill] sm:$0xff] }
 0x7e2   : > { %v2933_v14 = vmul.f32 %v10772_v45, %v8887_v30  ;;  %v2797_v37 = vadd.f32 %v2792_v39, %v2787_v10  ;;  %v1389_v16 = vadd.f32 %v1384_v17, %v1379_v21  ;;  %v1530_v53 = vmul.f32 %v10773_v28, %v8735_v36  ;;  %v10775_v50 = vld [vmem:[#allocation73_spill] sm:$0xff]  ;;  %v10776_v21 = vld [vmem:[#allocation80_spill] sm:$0xff]  ;;  %v10777_v28 = vld [vmem:[#allocation231_spill] sm:$0xff] }
 0x7e3   : > { %v2632_v60 = vmul.f32 %v10774_v29, %v8881_v44  ;;  %v3394_v63 = vmul.f32 %v10775_v50, %v8639_v46  ;;  %v4240_v54 = vmul.f32 %v8633_v26, %v4218_v6  ;;  %v2403_v0 = vadd.f32 %v2398_v1, %v2391_v61  ;;  %v10778_v46 = vld [vmem:[#allocation189_spill] sm:$0xff]  ;;  %v10779_v6 = vld [vmem:[#allocation46_spill] sm:$0xff]  ;;  %v10780_v61 = vld [vmem:[#allocation63_spill] sm:$0xff] }
 0x7e4   : > { %v3694_v5 = vadd.f32 %v3689_v19, %v3553_v23  ;;  %v2241_v39 = vadd.f32 %v2236_v2, %v2095_v22  ;;  %v3537_v17 = vmul.f32 %v10776_v21, %v8826_v9  ;;  %v1779_v38 = vmul.f32 %v10777_v28, %v8798_v41  ;;  %v8912_v19 = vld [vmem:[#allocation2 + $0x20] sm:$0xff] }
 0x7e5   : > { %v4307_v42 = vpop.permute.xlu0 %4306  ;;  %v4247_v59 = vpop.permute.xlu1 %4246  ;;  %v3399_v10 = vadd.f32 %v3394_v63, %v3387_v25  ;;  %v4295_v45 = vmul.f32 %v4277_v40, %v8806_v33  ;;  %v2943_v50 = vmul.f32 %v10778_v46, %v8812_v57  ;;  %v2938_v26 = vadd.f32 %v2933_v14, %v2797_v37  ;;  %v10781_v2 = vld [vmem:[#allocation84_spill] sm:$0xff]  ;;  %v8917_v37 = vld [vmem:[#allocation2 + $0x22] sm:$0xff] }
 0x7e6   : > { %v4265_v35 = vmul.f32 %v4247_v59, %v718_v15  ;;  %v2248_v1 = vmul.f32 %v10779_v6, %v8715_v27  ;;  %v2387_v23 = vmul.f32 %v10780_v61, %v8812_v57  ;;  %v2637_v22 = vadd.f32 %v8912_v19, %v2632_v60  ;;  %v10782_v28 = vld [vmem:[#allocation233_spill] sm:$0xff]  ;;  %v10783_v61 = vld [vmem:[#allocation194_spill] sm:$0xff] }
 0x7e7   : > { %v2642_v25 = vmul.f32 %v10781_v2, %v8899_v49  ;;  %v4325_v33 = vmul.f32 %v4307_v42, %v1657_v47  ;;  %v2509_v59 = vmul.f32 0.16666667, %v2403_v0  ;;  %v3709_v14 = vadd.f32 %v3704_v3, %v3694_v5  ;;  %v10784_v3 = vld [vmem:[#allocation17_spill] sm:$0xff] }
 0x7e8   : > { %v4270_v29 = vadd.f32 %v4265_v35, %v4240_v54  ;;  %v2253_v54 = vadd.f32 %v2248_v1, %v2241_v39  ;;  %v3542_v27 = vadd.f32 %v3537_v17, %v3399_v10  ;;  %v8919_v35 = vld [vmem:[#allocation2 + $0x1c] sm:$0xff]  ;;  %v1784_v21 = vadd.f32 %v8835_v11, %v1779_v38  ;;  %v10785_v39 = vld [vmem:[#allocation91_spill] sm:$0xff]  ;;  %v10786_v17 = vld [vmem:[#allocation78_spill] sm:$0xff] }
 0x7e9   : > { %v4251_v15 = vpop.permute.xlu1 %4250  ;;  %v1789_v60 = vmul.f32 %v10782_v28, %v8826_v9  ;;  %v3084_v47 = vmul.f32 %v10783_v61, %v8919_v35  ;;  %v2948_v42 = vadd.f32 %v2943_v50, %v2938_v26  ;;  %v1545_v0 = vmul.f32 %v10784_v3, %v8758_v32  ;;  %v8953_v3 = vld [vmem:[#allocation2 + $0x1d] sm:$0xff] }
 0x7ea   : > { %v4300_v40 = vadd.f32 %v4295_v45, %v4270_v29  ;;  %v4337_v63 = vpop.permute.xlu0 %4336  ;;  %v2647_v5 = vadd.f32 %v2642_v25, %v2637_v22  ;;  %v2783_v10 = vmul.f32 %v10785_v39, %v8917_v37  ;;  %v3549_v38 = vmul.f32 %v10786_v17, %v8625_v7  ;;  %v10788_v22 = vld [vmem:[#allocation232_spill] sm:$0xff] }
 0x7eb   : > { %v4355_v6 = vmul.f32 %v4337_v63, %v2509_v59  ;;  %v1015_v45 = vadd.f32 %v1010_v12, %v1000_v43  ;;  %v3734_v1 = vmul.f32 0.11111111, %v3709_v14  ;;  %v1535_v2 = vadd.f32 %v1530_v53, %v1389_v16  ;;  %v10789_v7 = vld [vmem:[#allocation196_spill] sm:$0xff]  ;;  %v10790_v53 = vld [vmem:[#allocation87_spill] sm:$0xff] }
 0x7ec   : > { %v4330_v46 = vadd.f32 %v4325_v33, %v4300_v40  ;;  %v8933_v33 = vld [vmem:[#allocation2 + $0x1e] sm:$0xff]  ;;  %v2392_v59 = vadd.f32 %v2387_v23, %v2253_v54  ;;  %v3554_v63 = vadd.f32 %v3549_v38, %v3542_v27  ;;  %v1794_v32 = vadd.f32 %v1789_v60, %v1784_v21  ;;  %v10791_v27 = vld [vmem:[#allocation50_spill] sm:$0xff] }
 0x7ed   : > { %v10787_v40 = vld [vmem:[#allocation201_spill] sm:$0xff]  ;;  %v1930_v25 = vmul.f32 %v10788_v22, %v8843_v4  ;;  %v3094_v12 = vmul.f32 %v10789_v7, %v8772_v24  ;;  %v3089_v43 = vadd.f32 %v3084_v47, %v2948_v42  ;;  %v2788_v16 = vadd.f32 %v2783_v10, %v2647_v5  ;;  %v10792_v5 = vld [vmem:[#allocation234_spill] sm:$0xff] }
 0x7ee   : > { %v4281_v29 = vpop.permute.xlu1 %4280  ;;  %v3690_v50 = vmul.f32 %v8835_v11, %v10787_v40  ;;  %v4360_v28 = vadd.f32 %v4355_v6, %v4330_v46  ;;  %v2793_v23 = vmul.f32 %v10790_v53, %v8933_v33  ;;  %v1550_v54 = vadd.f32 %v1545_v0, %v1535_v2  ;;  %v8950_v60 = vld [vmem:[#allocation2 + $0x23] sm:$0xff] }
 0x7ef   : > { %v4367_v26 = vpop.permute.xlu0 %4366  ;;  %v2399_v21 = vmul.f32 %v10791_v27, %v8675_v56  ;;  %v719_v46 = vmul.f32 0.5, %v8845_v20  ;;  %v1123_v6 = vmul.f32 0.33333334, %v1015_v45  ;;  %v3700_v42 = vld [vmem:[#allocation2 + $0x8] sm:$0xff]  ;;  %v1935_v39 = vadd.f32 %v1930_v25, %v1794_v32  ;;  %v10794_v56 = vld [vmem:[#allocation119_spill] sm:$0xff] }
 0x7f0   : > { %v4385_v61 = vmul.f32 %v4367_v26, %v3734_v1  ;;  %v1940_v10 = vmul.f32 %v10792_v5, %v8856_v51  ;;  %v3695_v38 = vadd.f32 %v3690_v50, %v3554_v63  ;;  %v3230_v1 = vmul.f32 %v10794_v56, %v8953_v3  ;;  %v10795_v26 = vld [vmem:[#allocation97_spill] sm:$0xff]  ;;  %v10796_v25 = vld [vmem:[#allocation203_spill] sm:$0xff] }
 0x7f1   : > { %v2404_v0 = vadd.f32 %v2399_v21, %v2392_v59  ;;  %v3099_v2 = vadd.f32 %v3094_v12, %v3089_v43  ;;  %v4266_v40 = vmul.f32 %v4251_v15, %v719_v46  ;;  %v2798_v45 = vadd.f32 %v2793_v23, %v2788_v16  ;;  %v10798_v63 = vld [vmem:[#allocation235_spill] sm:$0xff]  ;;  %v10799_v16 = vld [vmem:[#allocation197_spill] sm:$0xff]  ;;  %v10800_v46 = vld [vmem:[#allocation88_spill] sm:$0xff] }
 0x7f2   : > { %v4390_v14 = vadd.f32 %v4385_v61, %v4360_v28  ;;  %v2934_v22 = vmul.f32 %v10795_v26, %v8950_v60  ;;  %v1658_v32 = vmul.f32 0.25, %v1550_v54  ;;  %v3705_v28 = vmul.f32 %v10796_v25, %v3700_v42  ;;  %v10797_v61 = vld [vmem:[#allocation164_spill] sm:$0xff]  ;;  %v10805_v26 = vld [vmem:[#allocation193_spill] sm:$0xff] }
 0x7f3   : > { %v4311_v47 = vpop.permute.xlu1 %4310  ;;  %v1224_v7 = vmul.f32 %v10797_v61, %v8798_v41  ;;  %v4296_v53 = vmul.f32 %v4281_v29, %v1123_v6  ;;  %v1945_v50 = vadd.f32 %v1940_v10, %v1935_v39  ;;  %v2510_v12 = vmul.f32 0.16666667, %v2404_v0  ;;  %v10801_v29 = vld [vmem:[#allocation254_spill] sm:$0xff]  ;;  %v10802_v10 = vld [vmem:[#allocation161_spill] sm:$0xff] }
 0x7f4   : > { %4395 = vst.msk [vmem:[%s8944_s11] sm:$0xff] %vm10793_vm11, %v4390_v14  ;;  %v4223_v17 = vpop.permute.xlu0 %4222  ;;  %v2081_v14 = vmul.f32 %v10798_v63, %v8887_v30  ;;  %v3710_v43 = vadd.f32 %v3705_v28, %v3695_v38  ;;  %v3240_v23 = vmul.f32 %v10799_v16, %v8735_v36  ;;  %v4326_v27 = vmul.f32 %v4311_v47, %v1658_v32  ;;  %v8975_v39 = vld [vmem:[#allocation2 + $0x24] sm:$0xff] }
 0x7f5   : > { %v4241_v20 = vmul.f32 %v8684_v55, %v4223_v17  ;;  %v3235_v55 = vadd.f32 %v3230_v1, %v3099_v2  ;;  %v2939_v21 = vadd.f32 %v2934_v22, %v2798_v45  ;;  %v2944_v42 = vmul.f32 %v10800_v46, %v8953_v3  ;;  %v10803_v47 = vld [vmem:[#allocation241_spill] sm:$0xff] }
 0x7f6   : > { %v1780_v6 = vmul.f32 %v10801_v29, %v8881_v44  ;;  %v1229_v5 = vadd.f32 %v8835_v11, %v1224_v7  ;;  %v1234_v17 = vmul.f32 %v10802_v10, %v8826_v9  ;;  %v2086_v56 = vadd.f32 %v2081_v14, %v1945_v50  ;;  %v10806_v61 = vld [vmem:[#allocation105_spill] sm:$0xff]  ;;  %v10808_v14 = vld [vmem:[#allocation171_spill] sm:$0xff]  ;;  %v10812_v10 = vld [vmem:[#allocation92_spill] sm:$0xff] }
 0x7f7   : > { %v4271_v59 = vadd.f32 %v4266_v40, %v4241_v20  ;;  %v2091_v1 = vmul.f32 %v10803_v47, %v8812_v57  ;;  %v3735_v2 = vmul.f32 0.11111111, %v3710_v43  ;;  %v10804_v40 = vld [vmem:[#allocation141_spill] sm:$0xff]  ;;  %v3245_v45 = vadd.f32 %v3240_v23, %v3235_v55  ;;  %v10809_v43 = vld [vmem:[#allocation139_spill] sm:$0xff] }
 0x7f8   : > { %v4341_v15 = vpop.permute.xlu1 %4340  ;;  %v840_v20 = vmul.f32 %v10804_v40, %v8798_v41  ;;  %v3383_v22 = vmul.f32 %v10805_v26, %v8933_v33  ;;  %v2949_v28 = vadd.f32 %v2944_v42, %v2939_v21  ;;  %v3085_v7 = vmul.f32 %v10806_v61, %v8975_v39  ;;  %v10810_v23 = vld [vmem:[#allocation237_spill] sm:$0xff]  ;;  %v10811_v42 = vld [vmem:[#allocation195_spill] sm:$0xff]  ;;  %v10816_v40 = vld [vmem:[#allocation154_spill] sm:$0xff] }
 0x7f9   : > { %v4301_v54 = vadd.f32 %v4296_v53, %v4271_v59  ;;  %v4356_v38 = vmul.f32 %v4341_v15, %v2510_v12  ;;  %v10807_v59 = vld [vmem:[#allocation255_spill] sm:$0xff]  ;;  %v1239_v63 = vadd.f32 %v1234_v17, %v1229_v5  ;;  %v1375_v12 = vmul.f32 %v10808_v14, %v8843_v4  ;;  %v10817_v26 = vld [vmem:[#allocation242_spill] sm:$0xff] }
 0x7fa   : > { %v1790_v50 = vmul.f32 %v10807_v59, %v8899_v49  ;;  %v1785_v15 = vadd.f32 %v8912_v19, %v1780_v6  ;;  %v850_v55 = vmul.f32 %v10809_v43, %v8826_v9  ;;  %v2096_v16 = vadd.f32 %v2091_v1, %v2086_v56  ;;  %v10815_v1 = vld [vmem:[#allocation167_spill] sm:$0xff] }
 0x7fb   : > { %v4331_v0 = vadd.f32 %v4326_v27, %v4301_v54  ;;  %v2237_v27 = vmul.f32 %v10810_v23, %v8919_v35  ;;  %v845_v21 = vadd.f32 %v8835_v11, %v840_v20  ;;  %v3388_v46 = vadd.f32 %v3383_v22, %v3245_v45  ;;  %v10823_v23 = vld [vmem:[#allocation109_spill] sm:$0xff] }
 0x7fc   : > { %v3395_v29 = vmul.f32 %v10811_v42, %v8691_v48  ;;  %v3090_v5 = vadd.f32 %v3085_v7, %v2949_v28  ;;  %v3095_v17 = vmul.f32 %v10812_v10, %v8919_v35  ;;  %v1380_v47 = vadd.f32 %v1375_v12, %v1239_v63  ;;  %v10819_v7 = vld [vmem:[#allocation192_spill] sm:$0xff]  ;;  %v10820_v63 = vld [vmem:[#allocation110_spill] sm:$0xff] }
 0x7fd   : > { %v4361_v32 = vadd.f32 %v4356_v38, %v4331_v0  ;;  %v4371_v25 = vpop.permute.xlu1 %4370  ;;  %v9006_v0 = vld [vmem:[#allocation2 + $0x25] sm:$0xff]  ;;  %v10814_v38 = vld [vmem:[#allocation128_spill] sm:$0xff]  ;;  %v1931_v48 = vmul.f32 %v10816_v40, %v8917_v37  ;;  %v1795_v20 = vadd.f32 %v1790_v50, %v1785_v15  ;;  %v2242_v45 = vadd.f32 %v2237_v27, %v2096_v16 }
 0x7fe   : > { %v4386_v53 = vmul.f32 %v4371_v25, %v3735_v2  ;;  %v592_v56 = vmul.f32 %v10814_v38, %v8798_v41  ;;  %v1385_v2 = vmul.f32 %v10815_v1, %v8856_v51  ;;  %v2249_v22 = vmul.f32 %v10817_v26, %v8772_v24  ;;  %v10818_v25 = vld [vmem:[#allocation145_spill] sm:$0xff]  ;;  %v10821_v50 = vld [vmem:[#allocation124_spill] sm:$0xff]  ;;  %v10822_v24 = vld [vmem:[#allocation179_spill] sm:$0xff] }
 0x7ff   : > { %v996_v28 = vmul.f32 %v10818_v25, %v8843_v4  ;;  %v3400_v61 = vadd.f32 %v3395_v29, %v3388_v46  ;;  %v3100_v59 = vadd.f32 %v3095_v17, %v3090_v5  ;;  %v3231_v14 = vmul.f32 %v10820_v63, %v9006_v0  ;;  %v10824_v46 = vld [vmem:[#allocation243_spill] sm:$0xff]  ;;  %v10825_v5 = vld [vmem:[#allocation146_spill] sm:$0xff] }
 0x800   : > { %v4391_v54 = vadd.f32 %v4386_v53, %v4361_v32  ;;  %v855_v32 = vadd.f32 %v850_v55, %v845_v21  ;;  %v3538_v53 = vmul.f32 %v10819_v7, %v8899_v49  ;;  %v597_v12 = vadd.f32 %v8835_v11, %v592_v56  ;;  %v10827_v56 = vld [vmem:[#allocation159_spill] sm:$0xff] }
 0x801   : > { %v607_v15 = vmul.f32 %v10821_v50, %v8826_v9  ;;  %v1390_v43 = vadd.f32 %v1385_v2, %v1380_v47  ;;  %v1531_v55 = vmul.f32 %v10822_v24, %v8887_v30  ;;  %v1936_v16 = vadd.f32 %v1931_v48, %v1795_v20  ;;  %v10826_v9 = vld [vmem:[#allocation199_spill] sm:$0xff]  ;;  %v3379_v48 = vld [vmem:[#allocation2 + $0x26] sm:$0xff] }
 0x802   : > { %4396 = vst.msk [vmem:[%s8944_s11 + $0x8] sm:$0xff] %vm10813_vm15, %v4391_v54  ;;  %v9004_v6 = vpop.permute.xlu1 %4227  ;;  %v1941_v27 = vmul.f32 %v10823_v23, %v8933_v33  ;;  %v2254_v21 = vadd.f32 %v2249_v22, %v2242_v45  ;;  %v2388_v42 = vmul.f32 %v10824_v46, %v8953_v3  ;;  %v1001_v29 = vadd.f32 %v996_v28, %v855_v32  ;;  %v10828_v45 = vld [vmem:[#allocation177_spill] sm:$0xff]  ;;  %v10829_v22 = vld [vmem:[#allocation155_spill] sm:$0xff]  ;;  %v10833_v50 = vld [vmem:[#allocation114_spill] sm:$0xff] }
 0x803   : > { %v1011_v10 = vmul.f32 %v10825_v5, %v8856_v51  ;;  %v3543_v17 = vadd.f32 %v3538_v53, %v3400_v61  ;;  %v3550_v38 = vmul.f32 %v10826_v9, %v8648_v62  ;;  %v1225_v47 = vmul.f32 %v10827_v56, %v8881_v44  ;;  %v10830_v62 = vld [vmem:[#allocation250_spill] sm:$0xff]  ;;  %v10834_v24 = vld [vmem:[#allocation137_spill] sm:$0xff] }
 0x804   : > { %v3236_v1 = vadd.f32 %v3231_v14, %v3100_v59  ;;  %v3241_v2 = vmul.f32 %v7994_v58, %v8887_v30  ;;  %v612_v40 = vadd.f32 %v607_v15, %v597_v12  ;;  %v1536_v20 = vadd.f32 %v1531_v55, %v1390_v43  ;;  %v10831_v59 = vld [vmem:[#allocation198_spill] sm:$0xff]  ;;  %v10836_v5 = vld [vmem:[#allocation205_spill] sm:$0xff] }
 0x805   : > { %v1546_v26 = vmul.f32 %v10828_v45, %v8812_v57  ;;  %v2082_v51 = vmul.f32 %v10829_v22, %v8950_v60  ;;  %v1946_v32 = vadd.f32 %v1941_v27, %v1936_v16  ;;  %v2393_v25 = vadd.f32 %v2388_v42, %v2254_v21  ;;  %v10832_v14 = vld [vmem:[#allocation162_spill] sm:$0xff]  ;;  %v10835_v27 = vld [vmem:[#allocation157_spill] sm:$0xff] }
 0x806   : > { %v2400_v28 = vmul.f32 %v10830_v62, %v8735_v36  ;;  %v1016_v61 = vadd.f32 %v1011_v10, %v1001_v29  ;;  %v3555_v53 = vadd.f32 %v3550_v38, %v3543_v17  ;;  %v3691_v58 = vmul.f32 %v8912_v19, %v10831_v59  ;;  %v3701_v43 = vld [vmem:[#allocation2 + $0x10] sm:$0xff]  ;;  %v10837_v17 = vld [vmem:[#allocation200_spill] sm:$0xff]  ;;  %v10838_v56 = vld [vmem:[#allocation165_spill] sm:$0xff] }
 0x807   : > { %v4255_v54 = vpop.permute.xlu1 %4254  ;;  %v1230_v63 = vadd.f32 %v8912_v19, %v1225_v47  ;;  %v1235_v12 = vmul.f32 %v10832_v14, %v8899_v49  ;;  %v3246_v57 = vadd.f32 %v3241_v2, %v3236_v1  ;;  %v3384_v15 = vmul.f32 %v10833_v50, %v3379_v48  ;;  %v3534_v22 = vld [vmem:[#allocation2 + $0x27] sm:$0xff] }
 0x808   : > { %v841_v55 = vmul.f32 %v10834_v24, %v8881_v44  ;;  %v720_v16 = vmul.f32 0.5, %v612_v40  ;;  %v1551_v36 = vadd.f32 %v1546_v26, %v1536_v20  ;;  %v2087_v23 = vadd.f32 %v2082_v51, %v1946_v32  ;;  %v10839_v20 = vld [vmem:[#allocation140_spill] sm:$0xff] }
 0x809   : > { %v2092_v21 = vmul.f32 %v10835_v27, %v8953_v3  ;;  %v2405_v46 = vadd.f32 %v2400_v28, %v2393_v25  ;;  %v1124_v42 = vmul.f32 0.33333334, %v1016_v61  ;;  %v3696_v29 = vadd.f32 %v3691_v58, %v3555_v53  ;;  %v10840_v25 = vld [vmem:[#allocation156_spill] sm:$0xff] }
 0x80a   : > { %v3706_v10 = vmul.f32 %v10836_v5, %v3701_v43  ;;  %v1781_v9 = vmul.f32 %v10837_v17, %v8641_v18  ;;  %v1240_v38 = vadd.f32 %v1235_v12, %v1230_v63  ;;  %v1376_v47 = vmul.f32 %v10838_v56, %v8917_v37  ;;  %v10842_v12 = vld [vmem:[#allocation117_spill] sm:$0xff]  ;;  %v10844_v24 = vld [vmem:[#allocation120_spill] sm:$0xff]  ;;  %v10847_v5 = vld [vmem:[#allocation174_spill] sm:$0xff] }
 0x80b   : > { %v3389_v1 = vadd.f32 %v3384_v15, %v3246_v57  ;;  %v3396_v2 = vmul.f32 %v7997_v31, %v8843_v4  ;;  %v846_v48 = vadd.f32 %v8912_v19, %v841_v55  ;;  %v851_v45 = vmul.f32 %v10839_v20, %v8899_v49  ;;  %v10845_v55 = vld [vmem:[#allocation172_spill] sm:$0xff] }
 0x80c   : > { %v4285_v7 = vpop.permute.xlu1 %4284  ;;  %v4267_v26 = vmul.f32 %v4255_v54, %v720_v16  ;;  %v1659_v51 = vmul.f32 0.25, %v1551_v36  ;;  %v2097_v32 = vadd.f32 %v2092_v21, %v2087_v23  ;;  %v2238_v62 = vmul.f32 %v10840_v25, %v8975_v39  ;;  %v10841_v54 = vld [vmem:[#allocation168_spill] sm:$0xff]  ;;  %v10843_v39 = vld [vmem:[#allocation143_spill] sm:$0xff]  ;;  %v10846_v36 = vld [vmem:[#allocation206_spill] sm:$0xff] }
 0x80d   : > { %v2511_v28 = vmul.f32 0.16666667, %v2405_v46  ;;  %v1791_v61 = vmul.f32 %v8108_v52, %v8643_v34  ;;  %v4242_v31 = vmul.f32 %v8835_v11, %v9004_v6  ;;  %v4297_v4 = vmul.f32 %v4285_v7, %v1124_v42  ;;  %v10851_v20 = vld [vmem:[#allocation184_spill] sm:$0xff] }
 0x80e   : > { %v3711_v53 = vadd.f32 %v3706_v10, %v3696_v29  ;;  %v1786_v59 = vadd.f32 %v1781_v9, %v8650_v8  ;;  %v1381_v58 = vadd.f32 %v1376_v47, %v1240_v38  ;;  %v1386_v63 = vmul.f32 %v10841_v54, %v8933_v33  ;;  %v4289_v29 = vpop.permute.xlu0 %4288 }
 0x80f   : > { %v3401_v14 = vadd.f32 %v3396_v2, %v3389_v1  ;;  %v3539_v57 = vmul.f32 %v10842_v12, %v3534_v22  ;;  %v997_v50 = vmul.f32 %v10843_v39, %v8917_v37  ;;  %v4272_v15 = vadd.f32 %v4267_v26, %v4242_v31  ;;  %v10850_v2 = vld [vmem:[#allocation147_spill] sm:$0xff]  ;;  %v10855_v31 = vld [vmem:[#allocation178_spill] sm:$0xff] }
 0x810   : > { %v593_v11 = vmul.f32 %v10844_v24, %v8881_v44  ;;  %v856_v6 = vadd.f32 %v851_v45, %v846_v48  ;;  %v2243_v7 = vadd.f32 %v2238_v62, %v2097_v32  ;;  %v2250_v16 = vmul.f32 %v10845_v55, %v8919_v35  ;;  %v10848_v44 = vld [vmem:[#allocation204_spill] sm:$0xff]  ;;  %v10849_v35 = vld [vmem:[#allocation127_spill] sm:$0xff]  ;;  %v10853_v32 = vld [vmem:[#allocation209_spill] sm:$0xff] }
 0x811   : > { %v4315_v40 = vpop.permute.xlu1 %4314  ;;  %v1932_v23 = vmul.f32 %v10846_v36, %v8654_v13  ;;  %v4302_v27 = vadd.f32 %v4297_v4, %v4272_v15  ;;  %v3736_v46 = vmul.f32 0.11111111, %v3711_v53  ;;  %v1796_v42 = vadd.f32 %v1791_v61, %v1786_v59  ;;  %v4899_v62 = vld [vmem:[#allocation2 + $0x28] sm:$0xff]  ;;  %v3702_v53 = vld [vmem:[#allocation2 + $0x18] sm:$0xff] }
 0x812   : > { %v4327_v43 = vmul.f32 %v4315_v40, %v1659_v51  ;;  %v1391_v37 = vadd.f32 %v1386_v63, %v1381_v58  ;;  %v1532_v10 = vmul.f32 %v10847_v5, %v8950_v60  ;;  %v3544_v17 = vadd.f32 %v3539_v57, %v3401_v14  ;;  %v10852_v51 = vld [vmem:[#allocation216_spill] sm:$0xff]  ;;  %v4319_v63 = vpop.permute.xlu0 %4318  ;;  %v10857_v12 = vld [vmem:[#allocation187_spill] sm:$0xff] }
 0x813   : > { %v3551_v9 = vmul.f32 %v10848_v44, %v8798_v41  ;;  %v598_v56 = vadd.f32 %v8912_v19, %v593_v11  ;;  %v608_v47 = vmul.f32 %v10849_v35, %v8899_v49  ;;  %v1002_v1 = vadd.f32 %v997_v50, %v856_v6  ;;  %v10859_v15 = vld [vmem:[#allocation211_spill] sm:$0xff]  ;;  %v10861_v6 = vld [vmem:[#allocation208_spill] sm:$0xff] }
 0x814   : > { %v4332_v38 = vadd.f32 %v4327_v43, %v4302_v27  ;;  %v1012_v40 = vmul.f32 %v10850_v2, %v8933_v33  ;;  %v2255_v48 = vadd.f32 %v2250_v16, %v2243_v7  ;;  %v2389_v45 = vmul.f32 %v10851_v20, %v9006_v0  ;;  %v10856_v0 = vld [vmem:[#allocation160_spill] sm:$0xff]  ;;  %v10860_v43 = vld [vmem:[#allocation210_spill] sm:$0xff]  ;;  %v10862_v36 = vld [vmem:[#allocation163_spill] sm:$0xff] }
 0x815   : > { %v1942_v41 = vmul.f32 %v10853_v32, %v10852_v51  ;;  %v1937_v25 = vadd.f32 %v1932_v23, %v1796_v42  ;;  %v1537_v49 = vadd.f32 %v1532_v10, %v1391_v37  ;;  %v1547_v4 = vmul.f32 %v10855_v31, %v8953_v3  ;;  %v10864_v42 = vld [vmem:[#allocation215_spill] sm:$0xff]  ;;  %v10865_v37 = vld [vmem:[#allocation202_spill] sm:$0xff] }
 0x816   : > { %v4345_v52 = vpop.permute.xlu1 %4344  ;;  %v3556_v33 = vadd.f32 %v3551_v9, %v3544_v17  ;;  %v613_v58 = vadd.f32 %v608_v47, %v598_v56  ;;  %v1226_v54 = vmul.f32 %v10856_v0, %v8641_v18  ;;  %v2394_v14 = vadd.f32 %v2389_v45, %v2255_v48  ;;  %v4349_v44 = vpop.permute.xlu0 %4348  ;;  %v10867_v20 = vld [vmem:[#allocation142_spill] sm:$0xff]  ;;  %v10868_v32 = vld [vmem:[#allocation219_spill] sm:$0xff] }
 0x817   : > { %v4357_v21 = vmul.f32 %v4345_v52, %v2511_v28  ;;  %v10854_v28 = vld [vmem:[#allocation12_spill] sm:$0xff]  ;;  %v2401_v57 = vmul.f32 %v10857_v12, %v8887_v30  ;;  %v1017_v39 = vadd.f32 %v1012_v40, %v1002_v1  ;;  %v2083_v52 = vmul.f32 %v10860_v43, %v10859_v15  ;;  %v10863_v30 = vld [vmem:[#allocation138_spill] sm:$0xff] }
 0x818   : > { %v3692_v61 = vmul.f32 %v4899_v62, %v10854_v28  ;;  %v1947_v3 = vadd.f32 %v1942_v41, %v1937_v25  ;;  %v1552_v24 = vadd.f32 %v1547_v4, %v1537_v49  ;;  %v3707_v7 = vmul.f32 %v10861_v6, %v3702_v53  ;;  %v10866_v1 = vld [vmem:[#allocation166_spill] sm:$0xff]  ;;  %v10869_v41 = vld [vmem:[#allocation212_spill] sm:$0xff] }
 0x819   : > { %v4362_v60 = vadd.f32 %v4357_v21, %v4332_v38  ;;  %v721_v55 = vmul.f32 0.5, %v613_v58  ;;  %v1231_v16 = vadd.f32 %v1226_v54, %v8650_v8  ;;  %v1236_v23 = vmul.f32 %v10862_v36, %v8643_v34 }
 0x81a   : > { %v3697_v11 = vadd.f32 %v3692_v61, %v3556_v33  ;;  %v2406_v27 = vadd.f32 %v2401_v57, %v2394_v14  ;;  %v842_v21 = vmul.f32 %v10863_v30, %v8641_v18  ;;  %v2093_v5 = vmul.f32 %v10865_v37, %v10864_v42  ;;  %v10871_v33 = vld [vmem:[#allocation176_spill] sm:$0xff]  ;;  %v10879_v30 = vld [vmem:[#allocation99_spill] sm:$0xff] }
 0x81b   : > { %v4375_v26 = vpop.permute.xlu1 %4374  ;;  %v2088_v10 = vadd.f32 %v2083_v52, %v1947_v3  ;;  %v1660_v17 = vmul.f32 0.25, %v1552_v24  ;;  %v1241_v47 = vadd.f32 %v1236_v23, %v1231_v16  ;;  %v1377_v2 = vmul.f32 %v10866_v1, %v8654_v13  ;;  %v10873_v57 = vld [vmem:[#allocation220_spill] sm:$0xff]  ;;  %v10884_v1 = vld [vmem:[#allocation214_spill] sm:$0xff] }
 0x81c   : > { %v4387_v22 = vmul.f32 %v4375_v26, %v3736_v46  ;;  %v1125_v46 = vmul.f32 0.33333334, %v1017_v39  ;;  %v3712_v9 = vadd.f32 %v3707_v7, %v3697_v11  ;;  %v2512_v40 = vmul.f32 0.16666667, %v2406_v27  ;;  %v10874_v39 = vld [vmem:[#allocation213_spill] sm:$0xff]  ;;  %v10876_v11 = vld [vmem:[#allocation175_spill] sm:$0xff] }
 0x81d   : > { %v847_v48 = vadd.f32 %v842_v21, %v8650_v8  ;;  %v852_v45 = vmul.f32 %v10867_v20, %v8643_v34  ;;  %v2239_v25 = vmul.f32 %v10869_v41, %v10868_v32  ;;  %v4328_v61 = vmul.f32 %v4319_v63, %v1660_v17  ;;  %v10875_v63 = vld [vmem:[#allocation129_spill] sm:$0xff]  ;;  %v10882_v17 = vld [vmem:[#allocation222_spill] sm:$0xff] }
 0x81e   : > { %v4392_v59 = vadd.f32 %v4387_v22, %v4362_v60  ;;  %v4298_v26 = vmul.f32 %v4289_v29, %v1125_v46  ;;  %v2098_v22 = vadd.f32 %v2093_v5, %v2088_v10  ;;  %v3737_v62 = vmul.f32 0.11111111, %v3712_v9  ;;  %v10872_v29 = vld [vmem:[#allocation144_spill] sm:$0xff]  ;;  %v10878_v27 = vld [vmem:[#allocation221_spill] sm:$0xff] }
 0x81f   : > { %v1382_v4 = vadd.f32 %v1377_v2, %v1241_v47  ;;  %v1387_v53 = vmul.f32 %v10871_v33, %v10852_v51  ;;  %v857_v58 = vadd.f32 %v852_v45, %v847_v48  ;;  %v998_v0 = vmul.f32 %v10872_v29, %v8654_v13  ;;  %v10877_v13 = vld [vmem:[#allocation148_spill] sm:$0xff]  ;;  %v4900_v45 = vld [vmem:[#allocation2 + $0x28] sm:$0xf] }
 0x820   : > { %4397 = vst.msk [vmem:[%s8944_s11 + $0x10] sm:$0xff] %vm10858_vm14, %v4392_v59  ;;  %v4233_v50 = vpop.permute.xlu1 %4232  ;;  %v4379_v59 = vpop.permute.xlu0 %4378  ;;  %v4358_v54 = vmul.f32 %v4349_v44, %v2512_v40  ;;  %v2244_v12 = vadd.f32 %v2239_v25, %v2098_v22  ;;  %v609_v43 = vmul.f32 %v10875_v63, %v8643_v34  ;;  %v1533_v6 = vmul.f32 %v10876_v11, %v10859_v15  ;;  %v10881_v46 = vld [vmem:[#allocation180_spill] sm:$0xff]  ;;  %v10883_v44 = vld [vmem:[#allocation207_spill] sm:$0xff]  ;;  %v10885_v22 = vld [vmem:[#allocation217_spill] sm:$0xff] }
 0x821   : > { %v4243_v56 = vmul.f32 %v8912_v19, %v4233_v50  ;;  %v10870_v19 = vld [vmem:[#allocation123_spill] sm:$0xff]  ;;  %v2251_v50 = vmul.f32 %v10874_v39, %v10873_v57  ;;  %v4388_v52 = vmul.f32 %v4379_v59, %v3737_v62  ;;  %v1392_v24 = vadd.f32 %v1387_v53, %v1382_v4 }
 0x822   : > { %v594_v28 = vmul.f32 %v10870_v19, %v8641_v18  ;;  %v1003_v36 = vadd.f32 %v998_v0, %v857_v58  ;;  %v2390_v21 = vmul.f32 %v10879_v30, %v10878_v27  ;;  %v1548_v37 = vmul.f32 %v10881_v46, %v10864_v42 }
 0x823   : > { %v2256_v23 = vadd.f32 %v2251_v50, %v2244_v12  ;;  %v1538_v34 = vadd.f32 %v1533_v6, %v1392_v24  ;;  %v2402_v9 = vmul.f32 %v10883_v44, %v10882_v17 }
 0x824   : > { %v599_v18 = vadd.f32 %v594_v28, %v8650_v8 }
 0x825   : > { %v4259_v38 = vpop.permute.xlu1 %4258  ;;  %v2395_v15 = vadd.f32 %v2390_v21, %v2256_v23 }
 0x826   : > { %v4268_v35 = vmul.f32 %v4259_v38, %v721_v55  ;;  %v1013_v55 = vmul.f32 %v10877_v13, %v10852_v51  ;;  %v614_v8 = vadd.f32 %v609_v43, %v599_v18  ;;  %v3703_v51 = vld [vmem:[#allocation2 + $0x20] sm:$0xf] }
 0x827   : > { %v2407_v47 = vadd.f32 %v2402_v9, %v2395_v15  ;;  %v3708_v2 = vmul.f32 %v10884_v1, %v3703_v51 }
 0x828   : > { %v4273_v60 = vadd.f32 %v4268_v35, %v4243_v56  ;;  %v1018_v5 = vadd.f32 %v1013_v55, %v1003_v36  ;;  %v722_v38 = vmul.f32 0.5, %v614_v8  ;;  %v1553_v56 = vadd.f32 %v1548_v37, %v1538_v34 }
 0x829   : > { %v3713_v32 = vadd.f32 %v3708_v2, %v10885_v22 }
 0x82a   : > { %v4303_v49 = vadd.f32 %v4298_v26, %v4273_v60  ;;  %v4238_v31 = vpop.permute.xlu1 %4237  ;;  %v1126_v35 = vmul.f32 0.33333334, %v1018_v5  ;;  %v1661_v20 = vmul.f32 0.25, %v1553_v56  ;;  %v2513_v60 = vmul.f32 0.16666667, %v2407_v47 }
 0x82b   : > { %v4244_v26 = vmul.f32 %v4900_v45, %v4238_v31 }
 0x82c   : > { %v4333_v14 = vadd.f32 %v4328_v61, %v4303_v49  ;;  %v3738_v61 = vmul.f32 0.11111111, %v3713_v32 }
 0x82e   : > { %v4363_v3 = vadd.f32 %v4358_v54, %v4333_v14 }
 0x82f   : > { %v4263_v7 = vpop.permute.xlu1 %4262 }
 0x830   : > { %v4393_v16 = vadd.f32 %v4388_v52, %v4363_v3  ;;  %v4269_v48 = vmul.f32 %v4263_v7, %v722_v38 }
 0x832   : > { %4398 = vst.msk [vmem:[%s8944_s11 + $0x18] sm:$0xff] %vm10880_vm3, %v4393_v16  ;;  %v4274_v41 = vadd.f32 %v4269_v48, %v4244_v26 }
 0x834   : > { %v4293_v10 = vpop.permute.xlu1 %4292 }
 0x835   : > { %v4299_v42 = vmul.f32 %v4293_v10, %v1126_v35 }
 0x837   : > { %v4304_v19 = vadd.f32 %v4299_v42, %v4274_v41 }
 0x839   : > { %v4323_v40 = vpop.permute.xlu1 %4322 }
 0x83a   : > { %v4329_v25 = vmul.f32 %v4323_v40, %v1661_v20 }
 0x83c   : > { %v4334_v49 = vadd.f32 %v4329_v25, %v4304_v19 }
 0x83e   : > { %v4353_v62 = vpop.permute.xlu1 %4352 }
 0x83f   : > { %v4359_v28 = vmul.f32 %v4353_v62, %v2513_v60 }
 0x841   : > { %v4364_v33 = vadd.f32 %v4359_v28, %v4334_v49 }
 0x843   : > { %v4383_v4 = vpop.permute.xlu1 %4382 }
 0x844   : > { %v4389_v53 = vmul.f32 %v4383_v4, %v3738_v61 }
 0x846   : > { %v4394_v59 = vadd.f32 %v4389_v53, %v4364_v33 }
 0x848   : > { %4399 = vst.msk [vmem:[%s8944_s11 + $0x20] sm:$0xf] %vm10886_vm2, %v4394_v59 }
 0x849 PF: > { %s19_s26 = sadd.s32 1, %s4907_s26  }
 0x84a   : > { %p16_p4 = scmp.ge.s32.totalorder %s19_s26, 4  }
 0x84c   :  { %18 = sbr.rel (!%p16_p4) target bundleno = 3 (0x3), region = 78 }

</bundles_post_ra>
